<compile_context>
chip_gen: v7x
topology: tpu7x:2x2x1
jax: 0.10.0
libtpu: 0.0.40
codegen_flags: <defaults>
</compile_context>

<pallas_src>
import math

import jax
import jax.numpy as jnp
from jax.experimental import pallas as pl
from jax.experimental.pallas import tpu as pltpu

_VMEM_LIMIT = 48 * 1024 * 1024   # safely below v7x's 64 MiB physical VMEM


def _round_up(x, m):
    return (x + m - 1) // m * m


# ---------------------------------------------------------------------------
# Pallas kernels: tiled matmul + bias + ReLU + (64-row max-pool) epilogue
# ---------------------------------------------------------------------------
def _mm_bias_relu_pool_1k_kernel(x_ref, w_ref, b_ref, o_ref):
    # Single K step: no accumulator scratch / init / finalize needed.
    z = jnp.dot(x_ref[...], w_ref[...], preferred_element_type=jnp.float32)
    z = jnp.maximum(z + b_ref[...], 0.0)
    gm, tn = o_ref.shape
    pr = z.shape[0] // gm                     # rows per pooling window (64)
    o_ref[...] = jnp.max(z.reshape(gm, pr, tn), axis=1).astype(o_ref.dtype)


def _mm_bias_relu_pool_acc_kernel(x_ref, w_ref, b_ref, o_ref, acc_ref):
    @pl.when(pl.program_id(2) == 0)
    def _():
        acc_ref[...] = jnp.zeros_like(acc_ref)

    acc_ref[...] += jnp.dot(x_ref[...], w_ref[...],
                            preferred_element_type=jnp.float32)

    @pl.when(pl.program_id(2) == pl.num_programs(2) - 1)
    def _():
        z = jnp.maximum(acc_ref[...] + b_ref[...], 0.0)
        gm, tn = o_ref.shape
        pr = z.shape[0] // gm
        o_ref[...] = jnp.max(z.reshape(gm, pr, tn), axis=1).astype(o_ref.dtype)


def matmul_bias_relu_pool(x, w, b, *, tm, tn, tk, pool_rows, out_dtype):
    """(M,K)@(K,N)+b, ReLU, then max over every `pool_rows` consecutive rows."""
    M, K = x.shape
    N = w.shape[1]
    nm, nn, nk = M // tm, N // tn, K // tk
    out_shape = jax.ShapeDtypeStruct((M // pool_rows, N), out_dtype)

    if nk == 1:
        return pl.pallas_call(
            _mm_bias_relu_pool_1k_kernel,
            out_shape=out_shape,
            grid_spec=pltpu.PrefetchScalarGridSpec(
                num_scalar_prefetch=0,
                grid=(nm, nn),
                in_specs=[
                    pl.BlockSpec((tm, tk), lambda i, j: (i, 0)),
                    pl.BlockSpec((tk, tn), lambda i, j: (0, j)),
                    pl.BlockSpec((1, tn), lambda i, j: (0, j)),
                ],
                out_specs=pl.BlockSpec((tm // pool_rows, tn),
                                       lambda i, j: (i, j)),
            ),
            compiler_params=pltpu.CompilerParams(
                dimension_semantics=("parallel", "parallel"),
                vmem_limit_bytes=_VMEM_LIMIT),
        )(x, w, b)

    return pl.pallas_call(
        _mm_bias_relu_pool_acc_kernel,
        out_shape=out_shape,
        grid_spec=pltpu.PrefetchScalarGridSpec(
            num_scalar_prefetch=0,
            grid=(nm, nn, nk),
            in_specs=[
                pl.BlockSpec((tm, tk), lambda i, j, k: (i, k)),
                pl.BlockSpec((tk, tn), lambda i, j, k: (k, j)),
                pl.BlockSpec((1, tn), lambda i, j, k: (0, j)),
            ],
            out_specs=pl.BlockSpec((tm // pool_rows, tn),
                                   lambda i, j, k: (i, j)),
            scratch_shapes=[pltpu.VMEM((tm, tn), jnp.float32)],
        ),
        compiler_params=pltpu.CompilerParams(
            dimension_semantics=("parallel", "parallel", "arbitrary"),
            vmem_limit_bytes=_VMEM_LIMIT),
    )(x, w, b)


# ---------------------------------------------------------------------------
# Conv3d(k=5, s=1, 'same') + bias + ReLU + MaxPool3d(4,4), fused via im2col
# ---------------------------------------------------------------------------
def _pick_tm(M, pool_rows):
    # Largest tile (multiple of pool_rows) dividing M that still leaves >=2
    # M-tiles, so both v7x TensorCores get work along the 'parallel' axis.
    for cand in (4096, 2048, 1024, 512, 256, 128, 64):
        if cand % pool_rows == 0 and M % cand == 0 and M // cand >= 2:
            return cand
    return pool_rows


def conv3d_bias_relu_maxpool4(x, w, b, *, out_dtype):
    # x: (B, D, H, W, Cin);  w: (k, k, k, Cin, Cout);  b: (Cout,)
    B, D, H, W, Cin = x.shape
    k = w.shape[0]
    Cout = w.shape[-1]
    pad = k // 2
    pool = 4
    taps = k ** 3

    # Pad the tap count so K = taps_pad * Cin is a multiple of 128
    # (conv1: 125 -> 128 taps, K=128; conv2: 125 -> 128 taps, K=4096).
    step = 128 // math.gcd(Cin, 128)
    taps_pad = _round_up(taps, step)
    K = taps_pad * Cin
    Np = _round_up(Cout, 128)

    xb = x.astype(jnp.bfloat16)
    xp = jnp.pad(xb, ((0, 0), (pad, pad), (pad, pad), (pad, pad), (0, 0)))

    cols = []
    for kd in range(k):
        for kh in range(k):
            for kw in range(k):
                cols.append(xp[:, kd:kd + D, kh:kh + H, kw:kw + W, :])
    if taps_pad > taps:                       # K padding fused into im2col
        zero = jnp.zeros_like(cols[0])
        cols.extend([zero] * (taps_pad - taps))
    patches = jnp.stack(cols, axis=-2)        # (B, D, H, W, taps_pad, Cin)

    # Reorder rows to pooling-window-major order: every 64 consecutive rows
    # form one 4x4x4 pooling window so the kernel can pool in its epilogue.
    D4, H4, W4 = D // pool, H // pool, W // pool
    patches = patches.reshape(B, D4, pool, H4, pool, W4, pool, taps_pad * Cin)
    patches = patches.transpose(0, 1, 3, 5, 2, 4, 6, 7)
    pool_rows = pool ** 3
    M = B * D4 * H4 * W4 * pool_rows
    patches = patches.reshape(M, K)

    wm = w.reshape(taps * Cin, Cout).astype(jnp.bfloat16)
    wm = jnp.pad(wm, ((0, K - taps * Cin), (0, Np - Cout)))
    bm = jnp.pad(b.astype(jnp.float32), (0, Np - Cout)).reshape(1, Np)

    if K <= 512:
        tk = K                                # conv1: single K step
    elif K % 512 == 0:
        tk = 512                              # conv2: 8 K steps, feeds 256-deep MXU
    else:
        tk = 128
    tm = _pick_tm(M, pool_rows)

    out = matmul_bias_relu_pool(patches, wm, bm, tm=tm, tn=128, tk=tk,
                                pool_rows=pool_rows, out_dtype=out_dtype)
    # (M // 64, 128) -> (B, D//4, H//4, W//4, Cout), channels-last
    return out[:, :Cout].reshape(B, D4, H4, W4, Cout)


# ---------------------------------------------------------------------------
# Full forward pass (mirrors PyTorchModel.forward)
# ---------------------------------------------------------------------------
def init_params(key):
    k1, k2, k3, k4 = jax.random.split(key, 4)
    w1 = jax.random.normal(k1, (5, 5, 5, 1, 32), jnp.float32) / math.sqrt(125.0)
    b1 = 0.01 * jax.random.normal(k2, (32,), jnp.float32)
    w2 = jax.random.normal(k3, (5, 5, 5, 32, 64), jnp.float32) / math.sqrt(4000.0)
    b2 = 0.01 * jax.random.normal(k4, (64,), jnp.float32)
    return (w1, b1, w2, b2)


@jax.jit
def forward(x, params):
    w1, b1, w2, b2 = params
    # torch: x.view(-1, 64, 64, 32, 1).permute(0, 4, 1, 2, 3) -> NCDHW with C=1
    # channels-last equivalent: (B, 64, 64, 32, 1)
    B = x.size // (64 * 64 * 32)
    h = x.reshape(B, 64, 64, 32, 1)
    h = conv3d_bias_relu_maxpool4(h, w1, b1, out_dtype=jnp.bfloat16)  # (B,16,16,8,32)
    h = conv3d_bias_relu_maxpool4(h, w2, b2, out_dtype=jnp.float32)   # (B,4,4,2,64)
    # torch flattens NCDHW -> (B, C*D*H*W); transpose back before flattening
    h = jnp.transpose(h, (0, 4, 1, 2, 3))                             # (B,64,4,4,2)
    return h.reshape(B, -1)                                           # (B, 2048)


if __name__ == "__main__":
    key = jax.random.PRNGKey(0)
    kx, kp = jax.random.split(key)
    params = init_params(kp)
    # spatial shape is fixed by the module's view(-1, 64, 64, 32, 1); batch = 1
    x = jax.random.normal(kx, (1, 64, 64, 32), jnp.float32)
    out = forward(x, params)
    out = jax.block_until_ready(out)
    assert out.shape == (1, 2048), out.shape
    assert bool(jnp.all(jnp.isfinite(out)))
    print("KERNEL_OK")
</pallas_src>

<mosaic_0001>
module attributes {stable_mosaic.version = 11 : i64} {
  func.func @_mm_bias_relu_pool_1k_kernel(%arg0: i32, %arg1: i32, %arg2: memref<4096x128xbf16, #tpu.memory_space<vmem>>, %arg3: memref<128x128xbf16, #tpu.memory_space<vmem>>, %arg4: memref<1x128xf32, #tpu.memory_space<vmem>>, %arg5: memref<64x128xbf16, #tpu.memory_space<vmem>>) attributes {dimension_semantics = [#tpu.dimension_semantics<parallel>, #tpu.dimension_semantics<parallel>], iteration_bounds = array<i64: 32, 1>, scalar_prefetch = 0 : i64, scratch_operands = 0 : i64, tpu.core_type = #tpu.core_type<tc>, window_params = [{transform_indices = @transform_0, window_bounds = array<i64: 4096, 128>}, {transform_indices = @transform_1, window_bounds = array<i64: 128, 128>}, {transform_indices = @transform_2, window_bounds = array<i64: 1, 128>}, {transform_indices = @transform_3, window_bounds = array<i64: 64, 128>}]} {
    %c0 = arith.constant 0 : index
    %c0_0 = arith.constant 0 : index
    %0 = vector.load %arg2[%c0, %c0_0] : memref<4096x128xbf16, #tpu.memory_space<vmem>>, vector<4096x128xbf16>
    %c0_1 = arith.constant 0 : index
    %c0_2 = arith.constant 0 : index
    %1 = vector.load %arg3[%c0_1, %c0_2] : memref<128x128xbf16, #tpu.memory_space<vmem>>, vector<128x128xbf16>
    %cst = arith.constant dense<0.000000e+00> : vector<4096x128xf32>
    %2 = tpu.matmul %0, %1, %cst {dimension_numbers = #tpu.dot_dimension_numbers<[1], [0], [0], [1], [0, 0, 1, 1], [], []>} : vector<4096x128xbf16>, vector<128x128xbf16>, vector<4096x128xf32> -> vector<4096x128xf32>
    %c0_3 = arith.constant 0 : index
    %c0_4 = arith.constant 0 : index
    %3 = vector.load %arg4[%c0_3, %c0_4] : memref<1x128xf32, #tpu.memory_space<vmem>>, vector<1x128xf32>
    %4 = vector.broadcast %3 : vector<1x128xf32> to vector<4096x128xf32>
    %5 = arith.addf %2, %4 : vector<4096x128xf32>
    %cst_5 = arith.constant 0.000000e+00 : f32
    %6 = vector.broadcast %cst_5 : f32 to vector<4096x128xf32>
    %7 = arith.maximumf %5, %6 : vector<4096x128xf32>
    %8 = vector.shape_cast %7 : vector<4096x128xf32> to vector<64x64x128xf32>
    %cst_6 = arith.constant dense<0xFF800000> : vector<64x128xf32>
    %9 = vector.multi_reduction <maximumf>, %8, %cst_6 [1] : vector<64x64x128xf32> to vector<64x128xf32>
    %10 = arith.truncf %9 : vector<64x128xf32> to vector<64x128xbf16>
    %c0_7 = arith.constant 0 : index
    %c0_8 = arith.constant 0 : index
    %11 = vector.load %arg5[%c0_7, %c0_8] : memref<64x128xbf16, #tpu.memory_space<vmem>>, vector<64x128xbf16>
    tpu.vector_store %arg5[%c0_7, %c0_8], %10 {strides = array<i32>} : memref<64x128xbf16, #tpu.memory_space<vmem>>, vector<64x128xbf16>,
    return
  }
  func.func @transform_0(%arg0: i32, %arg1: i32) -> (i32, i32) {
    %c0_i32 = arith.constant 0 : i32
    %c0_i32_0 = arith.constant 0 : i32
    return %arg0, %c0_i32 : i32, i32
  }
  func.func @transform_1(%arg0: i32, %arg1: i32) -> (i32, i32) {
    %c0_i32 = arith.constant 0 : i32
    %c0_i32_0 = arith.constant 0 : i32
    return %c0_i32, %arg1 : i32, i32
  }
  func.func @transform_2(%arg0: i32, %arg1: i32) -> (i32, i32) {
    %c0_i32 = arith.constant 0 : i32
    %c0_i32_0 = arith.constant 0 : i32
    return %c0_i32, %arg1 : i32, i32
  }
  func.func @transform_3(%arg0: i32, %arg1: i32) -> (i32, i32) {
    %c0_i32 = arith.constant 0 : i32
    return %arg0, %arg1 : i32, i32
  }
}

module attributes {stable_mosaic.version = 11 : i64} {
  func.func @_mm_bias_relu_pool_acc_kernel(%arg0: i32, %arg1: i32, %arg2: i32, %arg3: memref<1024x512xbf16, #tpu.memory_space<vmem>>, %arg4: memref<512x128xbf16, #tpu.memory_space<vmem>>, %arg5: memref<1x128xf32, #tpu.memory_space<vmem>>, %arg6: memref<16x128xf32, #tpu.memory_space<vmem>>, %arg7: memref<1024x128xf32, #tpu.memory_space<vmem>>) attributes {dimension_semantics = [#tpu.dimension_semantics<parallel>, #tpu.dimension_semantics<parallel>, #tpu.dimension_semantics<arbitrary>], iteration_bounds = array<i64: 2, 1, 8>, scalar_prefetch = 0 : i64, scratch_operands = 1 : i64, tpu.core_type = #tpu.core_type<tc>, window_params = [{transform_indices = @transform_0, window_bounds = array<i64: 1024, 512>}, {transform_indices = @transform_1, window_bounds = array<i64: 512, 128>}, {transform_indices = @transform_2, window_bounds = array<i64: 1, 128>}, {transform_indices = @transform_3, window_bounds = array<i64: 16, 128>}]} {
    %c0_i32 = arith.constant 0 : i32
    %0 = arith.cmpi eq, %arg2, %c0_i32 : i32
    %1 = arith.extui %0 : i1 to i32
    %c0_i32_0 = arith.constant 0 : i32
    %2 = arith.cmpi ne, %1, %c0_i32_0 : i32
    scf.if %2 {
      %cst_9 = arith.constant 0.000000e+00 : f32
      %12 = vector.broadcast %cst_9 : f32 to vector<1024x128xf32>
      %c0_10 = arith.constant 0 : index
      %c0_11 = arith.constant 0 : index
      %13 = vector.load %arg7[%c0_10, %c0_11] : memref<1024x128xf32, #tpu.memory_space<vmem>>, vector<1024x128xf32>
      tpu.vector_store %arg7[%c0_10, %c0_11], %12 {strides = array<i32>} : memref<1024x128xf32, #tpu.memory_space<vmem>>, vector<1024x128xf32>,
    } else {
    }
    %c0 = arith.constant 0 : index
    %c0_1 = arith.constant 0 : index
    %3 = vector.load %arg7[%c0, %c0_1] : memref<1024x128xf32, #tpu.memory_space<vmem>>, vector<1024x128xf32>
    %c0_2 = arith.constant 0 : index
    %c0_3 = arith.constant 0 : index
    %4 = vector.load %arg3[%c0_2, %c0_3] : memref<1024x512xbf16, #tpu.memory_space<vmem>>, vector<1024x512xbf16>
    %c0_4 = arith.constant 0 : index
    %c0_5 = arith.constant 0 : index
    %5 = vector.load %arg4[%c0_4, %c0_5] : memref<512x128xbf16, #tpu.memory_space<vmem>>, vector<512x128xbf16>
    %cst = arith.constant dense<0.000000e+00> : vector<1024x128xf32>
    %6 = tpu.matmul %4, %5, %cst {dimension_numbers = #tpu.dot_dimension_numbers<[1], [0], [0], [1], [0, 0, 1, 1], [], []>} : vector<1024x512xbf16>, vector<512x128xbf16>, vector<1024x128xf32> -> vector<1024x128xf32>
    %7 = arith.addf %3, %6 : vector<1024x128xf32>
    %c0_6 = arith.constant 0 : index
    %c0_7 = arith.constant 0 : index
    %8 = vector.load %arg7[%c0_6, %c0_7] : memref<1024x128xf32, #tpu.memory_space<vmem>>, vector<1024x128xf32>
    tpu.vector_store %arg7[%c0_6, %c0_7], %7 {strides = array<i32>} : memref<1024x128xf32, #tpu.memory_space<vmem>>, vector<1024x128xf32>,
    %c7_i32 = arith.constant 7 : i32
    %9 = arith.cmpi eq, %arg2, %c7_i32 : i32
    %10 = arith.extui %9 : i1 to i32
    %c0_i32_8 = arith.constant 0 : i32
    %11 = arith.cmpi ne, %10, %c0_i32_8 : i32
    scf.if %11 {
      %c0_9 = arith.constant 0 : index
      %c0_10 = arith.constant 0 : index
      %12 = vector.load %arg7[%c0_9, %c0_10] : memref<1024x128xf32, #tpu.memory_space<vmem>>, vector<1024x128xf32>
      %c0_11 = arith.constant 0 : index
      %c0_12 = arith.constant 0 : index
      %13 = vector.load %arg5[%c0_11, %c0_12] : memref<1x128xf32, #tpu.memory_space<vmem>>, vector<1x128xf32>
      %14 = vector.broadcast %13 : vector<1x128xf32> to vector<1024x128xf32>
      %15 = arith.addf %12, %14 : vector<1024x128xf32>
      %cst_13 = arith.constant 0.000000e+00 : f32
      %16 = vector.broadcast %cst_13 : f32 to vector<1024x128xf32>
      %17 = arith.maximumf %15, %16 : vector<1024x128xf32>
      %18 = vector.shape_cast %17 : vector<1024x128xf32> to vector<16x64x128xf32>
      %cst_14 = arith.constant dense<0xFF800000> : vector<16x128xf32>
      %19 = vector.multi_reduction <maximumf>, %18, %cst_14 [1] : vector<16x64x128xf32> to vector<16x128xf32>
      %c0_15 = arith.constant 0 : index
      %c0_16 = arith.constant 0 : index
      %20 = vector.load %arg6[%c0_15, %c0_16] : memref<16x128xf32, #tpu.memory_space<vmem>>, vector<16x128xf32>
      tpu.vector_store %arg6[%c0_15, %c0_16], %19 {strides = array<i32>} : memref<16x128xf32, #tpu.memory_space<vmem>>, vector<16x128xf32>,
    } else {
    }
    return
  }
  func.func @transform_0(%arg0: i32, %arg1: i32, %arg2: i32) -> (i32, i32) {
    %c0_i32 = arith.constant 0 : i32
    return %arg0, %arg2 : i32, i32
  }
  func.func @transform_1(%arg0: i32, %arg1: i32, %arg2: i32) -> (i32, i32) {
    %c0_i32 = arith.constant 0 : i32
    return %arg2, %arg1 : i32, i32
  }
  func.func @transform_2(%arg0: i32, %arg1: i32, %arg2: i32) -> (i32, i32) {
    %c0_i32 = arith.constant 0 : i32
    %c0_i32_0 = arith.constant 0 : i32
    return %c0_i32, %arg1 : i32, i32
  }
  func.func @transform_3(%arg0: i32, %arg1: i32, %arg2: i32) -> (i32, i32) {
    %c0_i32 = arith.constant 0 : i32
    return %arg0, %arg1 : i32, i32
  }
}

</mosaic_0001>

<bundles_post_ra>
// kernel: forward.2
= control target key start
LH: loop header
LB: loop body
LE: loop exit
PB: predicated region body
PF: predicated region fallthrough
CT: control target
= control target key end

     0   :  { %8 = vsyncpa [#allocation3], 0  ;;  %s9193_s0 = inlined_call_operand.hbm [shape: bf16[131072,128], index: 0, kind: input, shape index: {}]   ;;  %s9194_s1 = inlined_call_operand.vmem [shape: bf16[128,128], index: 1, kind: input, shape index: {}]   ;;  %s9195_s2 = inlined_call_operand.vmem [shape: f32[1,128], index: 2, kind: input, shape index: {}]   ;;  %s9196_s3 = inlined_call_operand.vmem [shape: bf16[2048,128], index: 3, kind: output, shape index: {}]  }
   0x1   :  { %10 = vsyncpa [#allocation3 + $0x1], 0  ;;  %s7957_s12 = smov 0   ;;  %s7959_s13 = smov 0  }
   0x2   :  { %s7961_s14 = smov 0   ;;  %s7963_s15 = smov 0  }
   0x3   :  { %s7965_s16 = smov 0   ;;  %s7967_s17 = smov 0  }
   0x4 LB: > { %s6309_s18 = sadd.s32 4294967295, %s7932_s17   ;;  %s28_s19 = sadd.s32 1, %s7928_s16  ;;  %s7932_s17 = sphi %s7967_s17, %s16_s17   ;;  %s7928_s16 = sphi %s7965_s16, %s9205_s16   ;;  %s7924_s15 = sphi %s7963_s15, %s9204_s15   ;;  %s7920_s14 = sphi %s7961_s14, %s9203_s14   ;;  %s7916_s13 = sphi %s7959_s13, %s9202_s13   ;;  %s7912_s12 = sphi %s7957_s12, %s9201_s12  }
   0x5   : > { %p30_p0 = scmp.ge.s32.totalorder %s28_s19, 32  ;;  %s35_s20 = sadd.s32 1, %s7920_s14 }
   0x6   : > { %p42_p1 = scmp.ne.s32.totalorder %s7920_s14, %s7916_s13  ;;  %p43_p2 = scmp.eq.s32.totalorder %s7932_s17, 0 }
   0x7   : > { %s9207_s19 = smov (%p30_p0, %s28_s19), 0  ;;  %p48_p4 = scmp.ne.s32.totalorder %s7916_s13, %s7912_s12 }
   0x8   : > { %p7993_p3 = por %p43_p2, %p42_p1  ;;  %s32_s22 = ssub.s32 %s7928_s16, %s9207_s19 }
   0x9   : > { %p49_p5 = scmp.eq.s32.totalorder %s6309_s18, 0  ;;  %p33_p6 = scmp.eq.s32.totalorder %s32_s22, 0 }
   0xa   : > { %p7532_p8 = scmp.lt.s32.totalorder %s7932_s17, 32  ;;  %s165_s25 = sand.u32 1, %s7920_s14  }
   0xb   : > { %p8000_p7 = por %p49_p5, %p48_p4  ;;  %s6653_s26 = sshll.u32 %s7928_s16, 15 }
   0xc   : > { %s8006_s24 = scalar_select %p33_p6, %s7920_s14, %s35_s20  }
   0xd   : > { %s6315_s27 = sshll.u32 %s165_s25, 11  ;;  %s8013_s30 = scalar_lea.hbm %s9193_s0, %s6653_s26 }
   0xe   : > { %s169_s4 = scalar_lea.vmem [#allocation2], %s6315_s27  ;;  %p8017_p9 = pnand %p7532_p8, %p7993_p3 }
   0xf   : > { %s176_s5 = sshll.u32 %s169_s4, 4  ;;  %s8023_s7 = scalar_lea.sflag [#allocation3], %s165_s25  ;;  %s8021_s5 = int_to_ptr.vmem [resolvable:$true] %s176_s5 }
  0x10   : > { %s7852_s8 = scalar_lea.hbm %s8013_s30, 32768  ;;  %p7854_p11 = pneg %p8017_p9 }
  0x11   : > { %p7853_p10 = scmp.ne.s32.totalorder %s8013_s30, %s7852_s8  ;;  %s7857_s11 = scalar_lea.hbm %s9193_s0, 1048576 }
  0x12   : > { %p7858_p0 = scmp.lt.u32.totalorder %s8013_s30, %s9193_s0  ;;  %p7859_p1 = scmp.lt.u32.totalorder %s7857_s11, %s7852_s8 }
  0x13   : > { %p7855_p12 = pnand %p7854_p11, %p7853_p10  ;;  %p7861_p3 = scmp.lt.u32.totalorder %s7852_s8, %s8013_s30 }
  0x14   : > { %p7860_p2 = por %p7859_p1, %p7858_p0 }
  0x15   : > { %p7856_p13 = pneg %p7855_p12 }
  0x16   : > { %p7862_p4 = por %p7861_p3, %p7860_p2 }
  0x18   : > { %p7863_p5 = pnand %p7862_p4, %p7856_p13 }
  0x1a   : > { %7866 = shalt.err (!%p7863_p5)
}
  0x1b   : > { %s7867_s20 = scalar_lea.vmem %s8021_s5, 32768  ;;  %s7934_s21 = smov [#allocation2]  }
  0x1c   : > { %p7868_p6 = scmp.ne.s32.totalorder %s8021_s5, %s7867_s20  ;;  %s7872_s22 = sshll.u32 %s7934_s21, 4  ;;  %s7873_s22 = int_to_ptr.vmem [resolvable:$false] %s7872_s22 }
  0x1d   : > { %s7874_s25 = scalar_lea.vmem %s7873_s22, 65536  ;;  %p7875_p12 = scmp.lt.s32.totalorder %s8021_s5, %s7873_s22 }
  0x1e   : > { %p7870_p8 = pnand %p7868_p6, %p7854_p11  ;;  %p7876_p0 = scmp.lt.s32.totalorder %s7874_s25, %s7867_s20 }
  0x20   : > { %p7871_p10 = pneg %p7870_p8  ;;  %p7877_p1 = por %p7876_p0, %p7875_p12 }
  0x22   : > { %p7878_p2 = pnand %p7877_p1, %p7871_p10 }
  0x24   : > { %7881 = shalt.err (!%p7878_p2)
}
  0x25   : > { %s7935_s26 = smov 64   ;;  %s7936_s27 = smov 4  }
  0x26   : > { %7531 = dma.hbm_to_vmem [thread:$0]  (!%p8017_p9), %s8013_s30, 32768, %s8021_s5, %s8023_s7, %s7935_s26, %s7935_s26, %s7936_s27  }
  0x27   : > { %p6318_p11 = scmp.ge.s32.totalorder %s7932_s17, 1  ;;  %p184_p13 = scmp.lt.s32.totalorder %s7932_s17, 33 }
  0x29   : > { %p185_p3 = pnand %p6318_p11, %p184_p13 }
  0x2a   : > { %s190_s28 = sand.u32 (!%p185_p3), 1, %s7916_s13  }
  0x2b   : > { %188 = sbr.rel (%p185_p3) target bundleno = 835 (0x343), region = 32  ;;  %s6319_s29 = sshll.u32 (!%p185_p3), %s190_s28, 11 }
  0x2c   : > { %s191_s4 = scalar_lea.sflag (!%p185_p3), [#allocation3], %s190_s28  ;;  %s8054_s8 = scalar_lea.vmem (!%p185_p3), [#allocation2], %s6319_s29 }
  0x32   : > { %7907 = dma.done.wait (%p8000_p7), %s191_s4, 32768  }
  0x33   : > { %7909 = vsyncadd (%p8000_p7), %s191_s4, 4294934528  ;;  %v7583_v0 = vld [vmem:[%s9194_s1] sm:$0xff]   ;;  %v7584_v1 = vld [vmem:[%s9194_s1 + $0x8] sm:$0xff]   ;;  %vm6109_vm0 = vcmask 1041409   ;;  %vm6111_vm1 = vcmask 1042434   ;;  %vm6113_vm2 = vcmask 1043459  }
  0x34   : > { %6982 = vmatprep.subr.bf16.mxu0 %v7583_v0  ;;  %7510 = vmatprep.subr.bf16.mxu1 %v7583_v0  ;;  %v7585_v2 = vld [vmem:[%s9194_s1 + $0x10] sm:$0xff]   ;;  %v7586_v3 = vld [vmem:[%s9194_s1 + $0x18] sm:$0xff]   ;;  %v7591_v4 = vld [vmem:[%s8054_s8] sm:$0xff]   ;;  %vm6115_vm3 = vcmask 1044484   ;;  %vm6117_vm4 = vcmask 1045509   ;;  %vm6119_vm5 = vcmask 1046534  }
  0x35   : > { %6983 = vmatpush3.bf16.msra.mxu0 %v7583_v0  ;;  %7518 = vmatpush3.bf16.msra.mxu1 %v7583_v0  ;;  %v7592_v5 = vld [vmem:[%s8054_s8 + $0x400] sm:$0xff]   ;;  %v7588_v7 = vld [vmem:[%s9194_s1 + $0x28] sm:$0xff]   ;;  %v7589_v8 = vld [vmem:[%s9194_s1 + $0x30] sm:$0xff]   ;;  %s6320_s10 = sshll.u32 %s7924_s15, 3  ;;  %vm6121_vm6 = vcmask 1047559  }
  0x36   : > { %6984 = vmatprep.subr.bf16.mxu0 %v7584_v1  ;;  %7511 = vmatprep.subr.bf16.mxu1 %v7584_v1  ;;  %v7587_v6 = vld [vmem:[%s9194_s1 + $0x20] sm:$0xff]   ;;  %v7590_v9 = vld [vmem:[%s9194_s1 + $0x38] sm:$0xff]   ;;  %v7593_v10 = vld [vmem:[%s8054_s8 + $0x8] sm:$0xff]   ;;  %p8490_p7 = scmp.lt.s32.totalorder %s6320_s10, 255 }
  0x37   : > { %6998 = vmatprep.mubr.bf16.mxu0 %v7591_v4  ;;  %7254 = vmatprep.mubr.bf16.mxu1 %v7592_v5  ;;  %v7594_v11 = vld [vmem:[%s8054_s8 + $0x408] sm:$0xff]   ;;  %v7595_v12 = vld [vmem:[%s8054_s8 + $0x10] sm:$0xff]   ;;  %v7597_v14 = vld [vmem:[%s8054_s8 + $0x18] sm:$0xff]  }
  0x38   : > { %v7596_v13 = vld [vmem:[%s8054_s8 + $0x410] sm:$0xff]   ;;  %v7598_v15 = vld [vmem:[%s8054_s8 + $0x418] sm:$0xff]   ;;  %v7599_v16 = vld [vmem:[%s8054_s8 + $0x20] sm:$0xff]   ;;  %s9209_s10 = smov (!%p8490_p7, %s6320_s10), 255 }
  0x39   : > { %6985 = vmatpush3.bf16.msra.mxu0 %v7584_v1  ;;  %7519 = vmatpush3.bf16.msra.mxu1 %v7584_v1  ;;  %v7600_v17 = vld [vmem:[%s8054_s8 + $0x420] sm:$0xff]   ;;  %v7601_v18 = vld [vmem:[%s8054_s8 + $0x28] sm:$0xff]   ;;  %v7603_v20 = vld [vmem:[%s8054_s8 + $0x30] sm:$0xff]   ;;  %s6321_s15 = sshll.u32 %s9209_s10, 2 }
  0x3a   : > { %6986 = vmatprep.subr.bf16.mxu0 %v7585_v2  ;;  %7512 = vmatprep.subr.bf16.mxu1 %v7585_v2  ;;  %v7602_v19 = vld [vmem:[%s8054_s8 + $0x428] sm:$0xff]   ;;  %v7604_v21 = vld [vmem:[%s8054_s8 + $0x430] sm:$0xff]   ;;  %v7605_v22 = vld [vmem:[%s8054_s8 + $0x38] sm:$0xff]   ;;  %s8525_s7 = scalar_lea.vmem %s9196_s3, %s6321_s15 }
  0x3b   : > { %v7606_v23 = vld [vmem:[%s8054_s8 + $0x438] sm:$0xff]   ;;  %v7607_v24 = vld [vmem:[%s8054_s8 + $0x40] sm:$0xff]   ;;  %v7609_v26 = vld [vmem:[%s8054_s8 + $0x48] sm:$0xff]  }
  0x3c   : > { %v7608_v25 = vld [vmem:[%s8054_s8 + $0x440] sm:$0xff]   ;;  %v7610_v27 = vld [vmem:[%s8054_s8 + $0x448] sm:$0xff]   ;;  %v7611_v28 = vld [vmem:[%s8054_s8 + $0x50] sm:$0xff]  }
  0x3d   : > { %6987 = vmatpush3.bf16.msra.mxu0 %v7585_v2  ;;  %7520 = vmatpush3.bf16.msra.mxu1 %v7585_v2  ;;  %v7612_v29 = vld [vmem:[%s8054_s8 + $0x450] sm:$0xff]   ;;  %v7613_v30 = vld [vmem:[%s8054_s8 + $0x58] sm:$0xff]   ;;  %v7615_v32 = vld [vmem:[%s8054_s8 + $0x60] sm:$0xff]  }
  0x3e   : > { %6988 = vmatprep.subr.bf16.mxu0 %v7586_v3  ;;  %7513 = vmatprep.subr.bf16.mxu1 %v7586_v3  ;;  %v7614_v31 = vld [vmem:[%s8054_s8 + $0x458] sm:$0xff]   ;;  %v7616_v33 = vld [vmem:[%s8054_s8 + $0x460] sm:$0xff]   ;;  %v7617_v34 = vld [vmem:[%s8054_s8 + $0x68] sm:$0xff]  }
  0x3f   : > { %v7618_v35 = vld [vmem:[%s8054_s8 + $0x468] sm:$0xff]   ;;  %v7619_v36 = vld [vmem:[%s8054_s8 + $0x70] sm:$0xff]   ;;  %v7621_v38 = vld [vmem:[%s8054_s8 + $0x78] sm:$0xff]  }
  0x40   : > { %v7620_v37 = vld [vmem:[%s8054_s8 + $0x470] sm:$0xff]   ;;  %v7622_v39 = vld [vmem:[%s8054_s8 + $0x478] sm:$0xff]   ;;  %v7623_v40 = vld [vmem:[%s8054_s8 + $0x80] sm:$0xff]  }
  0x41   : > { %6989 = vmatpush3.bf16.msra.mxu0 %v7586_v3  ;;  %7521 = vmatpush3.bf16.msra.mxu1 %v7586_v3  ;;  %v7624_v41 = vld [vmem:[%s8054_s8 + $0x480] sm:$0xff]   ;;  %v7625_v42 = vld [vmem:[%s8054_s8 + $0x88] sm:$0xff]   ;;  %v7627_v44 = vld [vmem:[%s8054_s8 + $0x90] sm:$0xff]  }
  0x42   : > { %6990 = vmatprep.subr.bf16.mxu0 %v7587_v6  ;;  %7514 = vmatprep.subr.bf16.mxu1 %v7587_v6  ;;  %v7626_v43 = vld [vmem:[%s8054_s8 + $0x488] sm:$0xff]   ;;  %v7628_v45 = vld [vmem:[%s8054_s8 + $0x490] sm:$0xff]   ;;  %v7629_v46 = vld [vmem:[%s8054_s8 + $0x98] sm:$0xff]  }
  0x43   : > { %v7630_v47 = vld [vmem:[%s8054_s8 + $0x498] sm:$0xff]   ;;  %v7631_v48 = vld [vmem:[%s8054_s8 + $0xa0] sm:$0xff]   ;;  %v7633_v50 = vld [vmem:[%s8054_s8 + $0xa8] sm:$0xff]  }
  0x44   : > { %v7632_v49 = vld [vmem:[%s8054_s8 + $0x4a0] sm:$0xff]   ;;  %v7634_v51 = vld [vmem:[%s8054_s8 + $0x4a8] sm:$0xff]   ;;  %v7635_v52 = vld [vmem:[%s8054_s8 + $0xb0] sm:$0xff]  }
  0x45   : > { %6991 = vmatpush3.bf16.msra.mxu0 %v7587_v6  ;;  %7522 = vmatpush3.bf16.msra.mxu1 %v7587_v6  ;;  %v7636_v53 = vld [vmem:[%s8054_s8 + $0x4b0] sm:$0xff]   ;;  %v7637_v54 = vld [vmem:[%s8054_s8 + $0xb8] sm:$0xff]   ;;  %v7639_v56 = vld [vmem:[%s8054_s8 + $0xc0] sm:$0xff]  }
  0x46   : > { %6992 = vmatprep.subr.bf16.mxu0 %v7588_v7  ;;  %7515 = vmatprep.subr.bf16.mxu1 %v7588_v7  ;;  %v7638_v55 = vld [vmem:[%s8054_s8 + $0x4b8] sm:$0xff]   ;;  %v7640_v57 = vld [vmem:[%s8054_s8 + $0x4c0] sm:$0xff]   ;;  %v7641_v58 = vld [vmem:[%s8054_s8 + $0xc8] sm:$0xff]  }
  0x47   : > { %v7642_v59 = vld [vmem:[%s8054_s8 + $0x4c8] sm:$0xff]   ;;  %v7643_v60 = vld [vmem:[%s8054_s8 + $0xd0] sm:$0xff]   ;;  %v7645_v62 = vld [vmem:[%s8054_s8 + $0xd8] sm:$0xff]  }
  0x48   : > { %v7644_v61 = vld [vmem:[%s8054_s8 + $0x4d0] sm:$0xff]   ;;  %v7646_v63 = vld [vmem:[%s8054_s8 + $0x4d8] sm:$0xff]   ;;  %v7647_v0 = vld [vmem:[%s8054_s8 + $0xe0] sm:$0xff]  }
  0x49   : > { %6993 = vmatpush3.bf16.msra.mxu0 %v7588_v7  ;;  %7523 = vmatpush3.bf16.msra.mxu1 %v7588_v7  ;;  %v7648_v1 = vld [vmem:[%s8054_s8 + $0x4e0] sm:$0xff]   ;;  %v7649_v2 = vld [vmem:[%s8054_s8 + $0xe8] sm:$0xff]   ;;  %v7651_v4 = vld [vmem:[%s8054_s8 + $0xf0] sm:$0xff]  }
  0x4a   : > { %6994 = vmatprep.subr.bf16.mxu0 %v7589_v8  ;;  %7516 = vmatprep.subr.bf16.mxu1 %v7589_v8  ;;  %v7650_v3 = vld [vmem:[%s8054_s8 + $0x4e8] sm:$0xff]   ;;  %v7652_v5 = vld [vmem:[%s8054_s8 + $0x4f0] sm:$0xff]   ;;  %v7653_v6 = vld [vmem:[%s8054_s8 + $0xf8] sm:$0xff]  }
  0x4b   : > { %v7654_v7 = vld [vmem:[%s8054_s8 + $0x4f8] sm:$0xff]  }
  0x4d   : > { %6995 = vmatpush3.bf16.msra.mxu0 %v7589_v8  ;;  %7524 = vmatpush3.bf16.msra.mxu1 %v7589_v8  ;;  %v7655_v8 = vld [vmem:[%s8054_s8 + $0x100] sm:$0xff]  }
  0x4e   : > { %6996 = vmatprep.subr.bf16.mxu0 %v7590_v9  ;;  %7517 = vmatprep.subr.bf16.mxu1 %v7590_v9 }
  0x51   : > { %6997 = vmatpush3.bf16.msra.mxu0 %v7590_v9  ;;  %7525 = vmatpush3.bf16.msra.mxu1 %v7590_v9  ;;  %v7656_v9 = vld [vmem:[%s8054_s8 + $0x500] sm:$0xff]  }
  0x54   : > { %6999 = vmatmul.mubr.bf16.vlgmr.msra.gmra.mrb[0].mxu0 %v7593_v10  ;;  %7255 = vmatmul.mubr.bf16.vlgmr.msra.gmra.mrb[0].mxu1 %v7594_v11  ;;  %v7657_v10 = vld [vmem:[%s8054_s8 + $0x108] sm:$0xff]  }
  0x55   : > { %7002 = vmatprep.mubr.bf16.mxu0 %v7595_v12  ;;  %7258 = vmatprep.mubr.bf16.mxu1 %v7596_v13  ;;  %v7658_v11 = vld [vmem:[%s8054_s8 + $0x508] sm:$0xff]   ;;  %v7659_v12 = vld [vmem:[%s8054_s8 + $0x110] sm:$0xff]  }
  0x56   : > { %v7660_v13 = vld [vmem:[%s8054_s8 + $0x510] sm:$0xff]  }
  0x5c   : > { %7003 = vmatmul.mubr.bf16.gmra.mrb[4].mxu0 %v7597_v14  ;;  %7259 = vmatmul.mubr.bf16.gmra.mrb[4].mxu1 %v7598_v15  ;;  %v7661_v14 = vld [vmem:[%s8054_s8 + $0x118] sm:$0xff]  }
  0x5d   : > { %7006 = vmatprep.mubr.bf16.mxu0 %v7599_v16  ;;  %7262 = vmatprep.mubr.bf16.mxu1 %v7600_v17  ;;  %v7662_v15 = vld [vmem:[%s8054_s8 + $0x518] sm:$0xff]   ;;  %v7663_v16 = vld [vmem:[%s8054_s8 + $0x120] sm:$0xff]  }
  0x5e   : > { %v7664_v17 = vld [vmem:[%s8054_s8 + $0x520] sm:$0xff]  }
  0x64   : > { %7007 = vmatmul.mubr.bf16.gmra.mrb[8].mxu0 %v7601_v18  ;;  %7263 = vmatmul.mubr.bf16.gmra.mrb[8].mxu1 %v7602_v19  ;;  %v7665_v18 = vld [vmem:[%s8054_s8 + $0x128] sm:$0xff]  }
  0x65   : > { %7010 = vmatprep.mubr.bf16.mxu0 %v7603_v20  ;;  %7266 = vmatprep.mubr.bf16.mxu1 %v7604_v21  ;;  %v7666_v19 = vld [vmem:[%s8054_s8 + $0x528] sm:$0xff]   ;;  %v7667_v20 = vld [vmem:[%s8054_s8 + $0x130] sm:$0xff]  }
  0x66   : > { %v7668_v21 = vld [vmem:[%s8054_s8 + $0x530] sm:$0xff]  }
  0x6c   : > { %7011 = vmatmul.mubr.bf16.gmra.mrb[12].mxu0 %v7605_v22  ;;  %7267 = vmatmul.mubr.bf16.gmra.mrb[12].mxu1 %v7606_v23  ;;  %v7669_v22 = vld [vmem:[%s8054_s8 + $0x138] sm:$0xff]  }
  0x6d   : > { %7014 = vmatprep.mubr.bf16.mxu0 %v7607_v24  ;;  %7270 = vmatprep.mubr.bf16.mxu1 %v7608_v25  ;;  %v7670_v23 = vld [vmem:[%s8054_s8 + $0x538] sm:$0xff]   ;;  %v7671_v24 = vld [vmem:[%s8054_s8 + $0x140] sm:$0xff]  }
  0x6e   : > { %v7672_v25 = vld [vmem:[%s8054_s8 + $0x540] sm:$0xff]  }
  0x74   : > { %7015 = vmatmul.mubr.bf16.gmra.mrb[16].mxu0 %v7609_v26  ;;  %7271 = vmatmul.mubr.bf16.gmra.mrb[16].mxu1 %v7610_v27  ;;  %v7673_v26 = vld [vmem:[%s8054_s8 + $0x148] sm:$0xff]  }
  0x75   : > { %7018 = vmatprep.mubr.bf16.mxu0 %v7611_v28  ;;  %7274 = vmatprep.mubr.bf16.mxu1 %v7612_v29  ;;  %v7674_v27 = vld [vmem:[%s8054_s8 + $0x548] sm:$0xff]   ;;  %v7675_v28 = vld [vmem:[%s8054_s8 + $0x150] sm:$0xff]  }
  0x76   : > { %v7676_v29 = vld [vmem:[%s8054_s8 + $0x550] sm:$0xff]  }
  0x7c   : > { %7019 = vmatmul.mubr.bf16.gmra.mrb[20].mxu0 %v7613_v30  ;;  %7275 = vmatmul.mubr.bf16.gmra.mrb[20].mxu1 %v7614_v31  ;;  %v7677_v30 = vld [vmem:[%s8054_s8 + $0x158] sm:$0xff]  }
  0x7d   : > { %7022 = vmatprep.mubr.bf16.mxu0 %v7615_v32  ;;  %7278 = vmatprep.mubr.bf16.mxu1 %v7616_v33  ;;  %v7678_v31 = vld [vmem:[%s8054_s8 + $0x558] sm:$0xff]   ;;  %v7679_v32 = vld [vmem:[%s8054_s8 + $0x160] sm:$0xff]  }
  0x7e   : > { %v7680_v33 = vld [vmem:[%s8054_s8 + $0x560] sm:$0xff]  }
  0x84   : > { %7023 = vmatmul.mubr.bf16.gmra.mrb[24].mxu0 %v7617_v34  ;;  %7279 = vmatmul.mubr.bf16.gmra.mrb[24].mxu1 %v7618_v35  ;;  %v7681_v34 = vld [vmem:[%s8054_s8 + $0x168] sm:$0xff]  }
  0x85   : > { %7026 = vmatprep.mubr.bf16.mxu0 %v7619_v36  ;;  %7282 = vmatprep.mubr.bf16.mxu1 %v7620_v37  ;;  %v7682_v35 = vld [vmem:[%s8054_s8 + $0x568] sm:$0xff]   ;;  %v7683_v36 = vld [vmem:[%s8054_s8 + $0x170] sm:$0xff]  }
  0x86   : > { %v7684_v37 = vld [vmem:[%s8054_s8 + $0x570] sm:$0xff]  }
  0x8c   : > { %7027 = vmatmul.mubr.bf16.gmra.mrb[28].mxu0 %v7621_v38  ;;  %7283 = vmatmul.mubr.bf16.gmra.mrb[28].mxu1 %v7622_v39  ;;  %v7685_v38 = vld [vmem:[%s8054_s8 + $0x178] sm:$0xff]  }
  0x8d   : > { %7030 = vmatprep.mubr.bf16.mxu0 %v7623_v40  ;;  %7286 = vmatprep.mubr.bf16.mxu1 %v7624_v41  ;;  %v7686_v39 = vld [vmem:[%s8054_s8 + $0x578] sm:$0xff]   ;;  %v7687_v40 = vld [vmem:[%s8054_s8 + $0x180] sm:$0xff]  }
  0x8e   : > { %v7688_v41 = vld [vmem:[%s8054_s8 + $0x580] sm:$0xff]  }
  0x94   : > { %7031 = vmatmul.mubr.bf16.gmra.mrb[32].mxu0 %v7625_v42  ;;  %7287 = vmatmul.mubr.bf16.gmra.mrb[32].mxu1 %v7626_v43  ;;  %v7689_v42 = vld [vmem:[%s8054_s8 + $0x188] sm:$0xff]  }
  0x95   : > { %7034 = vmatprep.mubr.bf16.mxu0 %v7627_v44  ;;  %7290 = vmatprep.mubr.bf16.mxu1 %v7628_v45  ;;  %v7690_v43 = vld [vmem:[%s8054_s8 + $0x588] sm:$0xff]   ;;  %v7691_v44 = vld [vmem:[%s8054_s8 + $0x190] sm:$0xff]  }
  0x96   : > { %v7692_v45 = vld [vmem:[%s8054_s8 + $0x590] sm:$0xff]  }
  0x9c   : > { %7035 = vmatmul.mubr.bf16.gmra.mrb[36].mxu0 %v7629_v46  ;;  %7291 = vmatmul.mubr.bf16.gmra.mrb[36].mxu1 %v7630_v47  ;;  %v7693_v46 = vld [vmem:[%s8054_s8 + $0x198] sm:$0xff]  }
  0x9d   : > { %7038 = vmatprep.mubr.bf16.mxu0 %v7631_v48  ;;  %7294 = vmatprep.mubr.bf16.mxu1 %v7632_v49  ;;  %v7694_v47 = vld [vmem:[%s8054_s8 + $0x598] sm:$0xff]   ;;  %v7695_v48 = vld [vmem:[%s8054_s8 + $0x1a0] sm:$0xff]  }
  0x9e   : > { %v7696_v49 = vld [vmem:[%s8054_s8 + $0x5a0] sm:$0xff]  }
  0xa4   : > { %7039 = vmatmul.mubr.bf16.gmra.mrb[40].mxu0 %v7633_v50  ;;  %7295 = vmatmul.mubr.bf16.gmra.mrb[40].mxu1 %v7634_v51  ;;  %v7697_v50 = vld [vmem:[%s8054_s8 + $0x1a8] sm:$0xff]  }
  0xa5   : > { %7042 = vmatprep.mubr.bf16.mxu0 %v7635_v52  ;;  %7298 = vmatprep.mubr.bf16.mxu1 %v7636_v53  ;;  %v7698_v51 = vld [vmem:[%s8054_s8 + $0x5a8] sm:$0xff]   ;;  %v7699_v52 = vld [vmem:[%s8054_s8 + $0x1b0] sm:$0xff]  }
  0xa6   : > { %v7700_v53 = vld [vmem:[%s8054_s8 + $0x5b0] sm:$0xff]  }
  0xac   : > { %7043 = vmatmul.mubr.bf16.gmra.mrb[44].mxu0 %v7637_v54  ;;  %7299 = vmatmul.mubr.bf16.gmra.mrb[44].mxu1 %v7638_v55  ;;  %v8197_v54 = vld [vmem:[%s9195_s2] ss:$0 sm:$0xff] }
  0xad   : > { %7046 = vmatprep.mubr.bf16.mxu0 %v7639_v56  ;;  %7302 = vmatprep.mubr.bf16.mxu1 %v7640_v57 }
  0xb4   : > { %7047 = vmatmul.mubr.bf16.gmra.mrb[48].mxu0 %v7641_v58  ;;  %7303 = vmatmul.mubr.bf16.gmra.mrb[48].mxu1 %v7642_v59  ;;  %v7701_v59 = vld [vmem:[%s8054_s8 + $0x1b8] sm:$0xff]  }
  0xb5   : > { %7050 = vmatprep.mubr.bf16.mxu0 %v7643_v60  ;;  %7306 = vmatprep.mubr.bf16.mxu1 %v7644_v61  ;;  %v7702_v60 = vld [vmem:[%s8054_s8 + $0x5b8] sm:$0xff]  }
  0xbc   : > { %7051 = vmatmul.mubr.bf16.gmra.mrb[52].mxu0 %v7645_v62  ;;  %7307 = vmatmul.mubr.bf16.gmra.mrb[52].mxu1 %v7646_v63 }
  0xbd   : > { %7054 = vmatprep.mubr.bf16.mxu0 %v7647_v0  ;;  %7310 = vmatprep.mubr.bf16.mxu1 %v7648_v1  ;;  %v7703_v1 = vld [vmem:[%s8054_s8 + $0x1c0] sm:$0xff]  }
  0xc4   : > { %7055 = vmatmul.mubr.bf16.gmra.mrb[56].mxu0 %v7649_v2  ;;  %7311 = vmatmul.mubr.bf16.gmra.mrb[56].mxu1 %v7650_v3  ;;  %v7704_v2 = vld [vmem:[%s8054_s8 + $0x5c0] sm:$0xff]  }
  0xc5   : > { %7058 = vmatprep.mubr.bf16.mxu0 %v7651_v4  ;;  %7314 = vmatprep.mubr.bf16.mxu1 %v7652_v5 }
  0xcc   : > { %7059 = vmatmul.mubr.bf16.gmra.mrb[60].mxu0 %v7653_v6  ;;  %7315 = vmatmul.mubr.bf16.gmra.mrb[60].mxu1 %v7654_v7 }
  0xcd   : > { %7062 = vmatprep.mubr.bf16.mxu0 %v7655_v8  ;;  %7318 = vmatprep.mubr.bf16.mxu1 %v7656_v9 }
  0xd4   : > { %7063 = vmatmul.mubr.bf16.gmra.mrb[64].mxu0 %v7657_v10  ;;  %7319 = vmatmul.mubr.bf16.gmra.mrb[64].mxu1 %v7658_v11 }
  0xd5   : > { %7066 = vmatprep.mubr.bf16.mxu0 %v7659_v12  ;;  %7322 = vmatprep.mubr.bf16.mxu1 %v7660_v13 }
  0xdc   : > { %7067 = vmatmul.mubr.bf16.gmra.mrb[68].mxu0 %v7661_v14  ;;  %7323 = vmatmul.mubr.bf16.gmra.mrb[68].mxu1 %v7662_v15 }
  0xdd   : > { %7070 = vmatprep.mubr.bf16.mxu0 %v7663_v16  ;;  %7326 = vmatprep.mubr.bf16.mxu1 %v7664_v17 }
  0xe4   : > { %7071 = vmatmul.mubr.bf16.gmra.mrb[72].mxu0 %v7665_v18  ;;  %7327 = vmatmul.mubr.bf16.gmra.mrb[72].mxu1 %v7666_v19 }
  0xe5   : > { %7074 = vmatprep.mubr.bf16.mxu0 %v7667_v20  ;;  %7330 = vmatprep.mubr.bf16.mxu1 %v7668_v21 }
  0xec   : > { %7075 = vmatmul.mubr.bf16.gmra.mrb[76].mxu0 %v7669_v22  ;;  %7331 = vmatmul.mubr.bf16.gmra.mrb[76].mxu1 %v7670_v23 }
  0xed   : > { %7078 = vmatprep.mubr.bf16.mxu0 %v7671_v24  ;;  %7334 = vmatprep.mubr.bf16.mxu1 %v7672_v25  ;;  %v7705_v25 = vld [vmem:[%s8054_s8 + $0x1c8] sm:$0xff]  }
  0xf4   : > { %7079 = vmatmul.mubr.bf16.gmra.mrb[80].mxu0 %v7673_v26  ;;  %7335 = vmatmul.mubr.bf16.gmra.mrb[80].mxu1 %v7674_v27  ;;  %v7706_v26 = vld [vmem:[%s8054_s8 + $0x5c8] sm:$0xff]  }
  0xf5   : > { %7082 = vmatprep.mubr.bf16.mxu0 %v7675_v28  ;;  %7338 = vmatprep.mubr.bf16.mxu1 %v7676_v29 }
  0xfc   : > { %7083 = vmatmul.mubr.bf16.gmra.mrb[84].mxu0 %v7677_v30  ;;  %7339 = vmatmul.mubr.bf16.gmra.mrb[84].mxu1 %v7678_v31 }
  0xfd   : > { %7086 = vmatprep.mubr.bf16.mxu0 %v7679_v32  ;;  %7342 = vmatprep.mubr.bf16.mxu1 %v7680_v33  ;;  %v7707_v33 = vld [vmem:[%s8054_s8 + $0x1d0] sm:$0xff]  }
 0x104   : > { %7087 = vmatmul.mubr.bf16.gmra.mrb[88].mxu0 %v7681_v34  ;;  %7343 = vmatmul.mubr.bf16.gmra.mrb[88].mxu1 %v7682_v35  ;;  %v7708_v34 = vld [vmem:[%s8054_s8 + $0x5d0] sm:$0xff]  }
 0x105   : > { %7090 = vmatprep.mubr.bf16.mxu0 %v7683_v36  ;;  %7346 = vmatprep.mubr.bf16.mxu1 %v7684_v37 }
 0x10c   : > { %7091 = vmatmul.mubr.bf16.gmra.mrb[92].mxu0 %v7685_v38  ;;  %7347 = vmatmul.mubr.bf16.gmra.mrb[92].mxu1 %v7686_v39 }
 0x10d   : > { %7094 = vmatprep.mubr.bf16.mxu0 %v7687_v40  ;;  %7350 = vmatprep.mubr.bf16.mxu1 %v7688_v41 }
 0x114   : > { %7095 = vmatmul.mubr.bf16.gmra.mrb[96].mxu0 %v7689_v42  ;;  %7351 = vmatmul.mubr.bf16.gmra.mrb[96].mxu1 %v7690_v43 }
 0x115   : > { %7098 = vmatprep.mubr.bf16.mxu0 %v7691_v44  ;;  %7354 = vmatprep.mubr.bf16.mxu1 %v7692_v45 }
 0x11c   : > { %7099 = vmatmul.mubr.bf16.gmra.mrb[100].mxu0 %v7693_v46  ;;  %7355 = vmatmul.mubr.bf16.gmra.mrb[100].mxu1 %v7694_v47 }
 0x11d   : > { %7102 = vmatprep.mubr.bf16.mxu0 %v7695_v48  ;;  %7358 = vmatprep.mubr.bf16.mxu1 %v7696_v49 }
 0x124   : > { %7103 = vmatmul.mubr.bf16.gmra.mrb[104].mxu0 %v7697_v50  ;;  %7359 = vmatmul.mubr.bf16.gmra.mrb[104].mxu1 %v7698_v51 }
 0x125   : > { %7106 = vmatprep.mubr.bf16.mxu0 %v7699_v52  ;;  %7362 = vmatprep.mubr.bf16.mxu1 %v7700_v53 }
 0x127   : > { %v7000_v55 = vpop.f32.mrb[0].mxu0  ;;  %v7256_v56 = vpop.f32.mrb[0].mxu1 }
 0x128   : > { %v2398_v57 = vpop.f32.mrb[1].mxu0  ;;  %v3422_v58 = vpop.f32.mrb[1].mxu1  ;;  %v2407_v5 = vadd.f32 %v7000_v55, %v8197_v54  ;;  %v3431_v6 = vadd.f32 %v7256_v56, %v8197_v54 }
 0x129   : > { %v2399_v61 = vadd.f32 %v8197_v54, %v2398_v57  ;;  %v3423_v62 = vadd.f32 %v8197_v54, %v3422_v58  ;;  %v7001_v63 = vpop.f32.mrb[2].mxu0  ;;  %v7257_v0 = vpop.f32.mrb[2].mxu1 }
 0x12a   : > { %v2401_v3 = vpop.f32.mrb[3].mxu0  ;;  %v3425_v4 = vpop.f32.mrb[3].mxu1  ;;  %v2410_v9 = vadd.f32 %v7001_v63, %v8197_v54  ;;  %v3434_v10 = vadd.f32 %v7257_v0, %v8197_v54  ;;  %v4447_v15 = vmax.f32 %v2407_v5, 0.0  ;;  %v4703_v16 = vmax.f32 %v3431_v6, 0.0 }
 0x12b   : > { %v2402_v7 = vadd.f32 %v8197_v54, %v2401_v3  ;;  %v3426_v8 = vadd.f32 %v8197_v54, %v3425_v4  ;;  %v4445_v11 = vmax.f32 %v2399_v61, 0.0  ;;  %v4701_v12 = vmax.f32 %v3423_v62, 0.0 }
 0x12c   : > { %7107 = vmatmul.mubr.bf16.gmra.mrb[108].mxu0 %v7701_v59  ;;  %7363 = vmatmul.mubr.bf16.gmra.mrb[108].mxu1 %v7702_v60  ;;  %v4448_v21 = vmax.f32 %v2410_v9, 0.0  ;;  %v4704_v22 = vmax.f32 %v3434_v10, 0.0  ;;  %v7709_v60 = vld [vmem:[%s8054_s8 + $0x1d8] sm:$0xff]   ;;  %v7712_v9 = vld [vmem:[%s8054_s8 + $0x5e0] sm:$0xff]  }
 0x12d   : > { %v4446_v13 = vmax.f32 %v2402_v7, 0.0  ;;  %v4702_v14 = vmax.f32 %v3426_v8, 0.0  ;;  %7110 = vmatprep.mubr.bf16.mxu0 %v7703_v1  ;;  %7366 = vmatprep.mubr.bf16.mxu1 %v7704_v2  ;;  %v7710_v1 = vld [vmem:[%s8054_s8 + $0x5d8] sm:$0xff]   ;;  %v7711_v2 = vld [vmem:[%s8054_s8 + $0x1e0] sm:$0xff]  }
 0x12f   : > { %v4957_v17 = vmax.f32 %v4445_v11, %v4446_v13  ;;  %v5373_v18 = vmax.f32 %v4701_v12, %v4702_v14  ;;  %v7004_v19 = vpop.f32.mrb[4].mxu0  ;;  %v7260_v20 = vpop.f32.mrb[4].mxu1 }
 0x130   : > { %v2414_v23 = vpop.f32.mrb[5].mxu0  ;;  %v3438_v24 = vpop.f32.mrb[5].mxu1  ;;  %v2423_v35 = vadd.f32 %v7004_v19, %v8197_v54  ;;  %v3447_v42 = vadd.f32 %v7260_v20, %v8197_v54 }
 0x131   : > { %v4958_v27 = vmax.f32 %v4957_v17, %v4447_v15  ;;  %v5374_v28 = vmax.f32 %v5373_v18, %v4703_v16  ;;  %v2415_v29 = vadd.f32 %v8197_v54, %v2414_v23  ;;  %v3439_v30 = vadd.f32 %v8197_v54, %v3438_v24  ;;  %v7005_v31 = vpop.f32.mrb[6].mxu0  ;;  %v7261_v32 = vpop.f32.mrb[6].mxu1 }
 0x132   : > { %v2417_v36 = vpop.f32.mrb[7].mxu0  ;;  %v3441_v37 = vpop.f32.mrb[7].mxu1  ;;  %v2426_v47 = vadd.f32 %v7005_v31, %v8197_v54  ;;  %v3450_v48 = vadd.f32 %v7261_v32, %v8197_v54  ;;  %v4451_v53 = vmax.f32 %v2423_v35, 0.0  ;;  %v4707_v55 = vmax.f32 %v3447_v42, 0.0 }
 0x133   : > { %v4449_v38 = vmax.f32 %v2415_v29, 0.0  ;;  %v4959_v39 = vmax.f32 %v4958_v27, %v4448_v21  ;;  %v4705_v40 = vmax.f32 %v3439_v30, 0.0  ;;  %v5375_v41 = vmax.f32 %v5374_v28, %v4704_v22 }
 0x134   : > { %v2418_v43 = vadd.f32 %v8197_v54, %v2417_v36  ;;  %v3442_v44 = vadd.f32 %v8197_v54, %v3441_v37  ;;  %7111 = vmatmul.mubr.bf16.gmra.mrb[112].mxu0 %v7705_v25  ;;  %7367 = vmatmul.mubr.bf16.gmra.mrb[112].mxu1 %v7706_v26  ;;  %v4452_v3 = vmax.f32 %v2426_v47, 0.0  ;;  %v4708_v4 = vmax.f32 %v3450_v48, 0.0  ;;  %v7715_v48 = vld [vmem:[%s8054_s8 + $0x1f0] sm:$0xff]  }
 0x135   : > { %v4960_v45 = vmax.f32 %v4959_v39, %v4449_v38  ;;  %v5376_v46 = vmax.f32 %v5375_v41, %v4705_v40  ;;  %7114 = vmatprep.mubr.bf16.mxu0 %v7707_v33  ;;  %7370 = vmatprep.mubr.bf16.mxu1 %v7708_v34  ;;  %v7713_v34 = vld [vmem:[%s8054_s8 + $0x1e8] sm:$0xff]  }
 0x136   : > { %v4450_v49 = vmax.f32 %v2418_v43, 0.0  ;;  %v4706_v50 = vmax.f32 %v3442_v44, 0.0  ;;  %v7714_v41 = vld [vmem:[%s8054_s8 + $0x5e8] sm:$0xff]  }
 0x137   : > { %v7008_v51 = vpop.f32.mrb[8].mxu0  ;;  %v7264_v52 = vpop.f32.mrb[8].mxu1 }
 0x138   : > { %v4961_v56 = vmax.f32 %v4960_v45, %v4450_v49  ;;  %v5377_v57 = vmax.f32 %v5376_v46, %v4706_v50  ;;  %v2430_v58 = vpop.f32.mrb[9].mxu0  ;;  %v3454_v59 = vpop.f32.mrb[9].mxu1  ;;  %v2439_v10 = vadd.f32 %v7008_v51, %v8197_v54  ;;  %v3463_v11 = vadd.f32 %v7264_v52, %v8197_v54  ;;  %v7716_v49 = vld [vmem:[%s8054_s8 + $0x5f0] sm:$0xff]  }
 0x139   : > { %v2431_v61 = vadd.f32 %v8197_v54, %v2430_v58  ;;  %v3455_v62 = vadd.f32 %v8197_v54, %v3454_v59  ;;  %v7009_v63 = vpop.f32.mrb[10].mxu0  ;;  %v7265_v0 = vpop.f32.mrb[10].mxu1 }
 0x13a   : > { %v4962_v5 = vmax.f32 %v4961_v56, %v4451_v53  ;;  %v5378_v6 = vmax.f32 %v5377_v57, %v4707_v55  ;;  %v2433_v7 = vpop.f32.mrb[11].mxu0  ;;  %v3457_v8 = vpop.f32.mrb[11].mxu1  ;;  %v2442_v18 = vadd.f32 %v7009_v63, %v8197_v54  ;;  %v3466_v19 = vadd.f32 %v7265_v0, %v8197_v54 }
 0x13b   : > { %v2434_v14 = vadd.f32 %v8197_v54, %v2433_v7  ;;  %v3458_v15 = vadd.f32 %v8197_v54, %v3457_v8  ;;  %v4453_v16 = vmax.f32 %v2431_v61, 0.0  ;;  %v4709_v17 = vmax.f32 %v3455_v62, 0.0 }
 0x13c   : > { %v4963_v12 = vmax.f32 %v4962_v5, %v4452_v3  ;;  %v5379_v13 = vmax.f32 %v5378_v6, %v4708_v4  ;;  %7115 = vmatmul.mubr.bf16.gmra.mrb[116].mxu0 %v7709_v60  ;;  %7371 = vmatmul.mubr.bf16.gmra.mrb[116].mxu1 %v7710_v1  ;;  %v4455_v24 = vmax.f32 %v2439_v10, 0.0  ;;  %v4711_v25 = vmax.f32 %v3463_v11, 0.0  ;;  %v7717_v11 = vld [vmem:[%s8054_s8 + $0x1f8] sm:$0xff]  }
 0x13d   : > { %7118 = vmatprep.mubr.bf16.mxu0 %v7711_v2  ;;  %v4454_v22 = vmax.f32 %v2434_v14, 0.0  ;;  %v4710_v23 = vmax.f32 %v3458_v15, 0.0  ;;  %7374 = vmatprep.mubr.bf16.mxu1 %v7712_v9  ;;  %v4456_v35 = vmax.f32 %v2442_v18, 0.0  ;;  %v4712_v36 = vmax.f32 %v3466_v19, 0.0  ;;  %v7718_v18 = vld [vmem:[%s8054_s8 + $0x5f8] sm:$0xff]  }
 0x13e   : > { %v4964_v20 = vrot.slane %v4963_v12, 4  ;;  %v5380_v21 = vrot.slane %v5379_v13, 4 }
 0x13f   : > { %v7012_v26 = vpop.f32.mrb[12].mxu0  ;;  %v7268_v27 = vpop.f32.mrb[12].mxu1  ;;  %v4970_v30 = vmax.f32 %v4453_v16, %v4454_v22  ;;  %v5386_v31 = vmax.f32 %v4709_v17, %v4710_v23 }
 0x140   : > { %v4965_v28 = vmax.f32 %v4963_v12, %v4964_v20  ;;  %v5381_v29 = vmax.f32 %v5379_v13, %v5380_v21  ;;  %v2446_v32 = vpop.f32.mrb[13].mxu0  ;;  %v3470_v33 = vpop.f32.mrb[13].mxu1  ;;  %v2455_v57 = vadd.f32 %v7012_v26, %v8197_v54  ;;  %v3479_v58 = vadd.f32 %v7268_v27, %v8197_v54 }
 0x141   : > { %v2447_v37 = vadd.f32 %v8197_v54, %v2446_v32  ;;  %v3471_v38 = vadd.f32 %v8197_v54, %v3470_v33  ;;  %v7013_v39 = vpop.f32.mrb[14].mxu0  ;;  %v7269_v40 = vpop.f32.mrb[14].mxu1  ;;  %v4971_v44 = vmax.f32 %v4970_v30, %v4455_v24  ;;  %v5387_v45 = vmax.f32 %v5386_v31, %v4711_v25  ;;  %v7719_v24 = vld [vmem:[%s8054_s8 + $0x200] sm:$0xff]  }
 0x142   : > { %v4966_v42 = vrot.slane %v4965_v28, 2  ;;  %v5382_v43 = vrot.slane %v5381_v29, 2  ;;  %v2449_v46 = vpop.f32.mrb[15].mxu0  ;;  %v3473_v47 = vpop.f32.mrb[15].mxu1  ;;  %v2458_v1 = vadd.f32 %v7013_v39, %v8197_v54  ;;  %v3482_v2 = vadd.f32 %v7269_v40, %v8197_v54  ;;  %v7720_v25 = vld [vmem:[%s8054_s8 + $0x600] sm:$0xff]  }
 0x143   : > { %v4457_v50 = vmax.f32 %v2447_v37, 0.0  ;;  %v4713_v51 = vmax.f32 %v3471_v38, 0.0  ;;  %v4972_v55 = vmax.f32 %v4971_v44, %v4456_v35  ;;  %v5388_v56 = vmax.f32 %v5387_v45, %v4712_v36 }
 0x144   : > { %v4967_v52 = vmax.f32 %v4965_v28, %v4966_v42  ;;  %v5383_v53 = vmax.f32 %v5381_v29, %v5382_v43  ;;  %7119 = vmatmul.mubr.bf16.gmra.mrb[120].mxu0 %v7713_v34  ;;  %v2450_v59 = vadd.f32 %v8197_v54, %v2449_v46  ;;  %v3474_v60 = vadd.f32 %v8197_v54, %v3473_v47 }
 0x145   : > { %7375 = vmatmul.mubr.bf16.gmra.mrb[120].mxu1 %v7714_v41  ;;  %v4973_v63 = vmax.f32 %v4972_v55, %v4457_v50  ;;  %v5389_v0 = vmax.f32 %v5388_v56, %v4713_v51  ;;  %7122 = vmatprep.mubr.bf16.mxu0 %v7715_v48  ;;  %v4459_v12 = vmax.f32 %v2455_v57, 0.0  ;;  %v4715_v13 = vmax.f32 %v3479_v58, 0.0  ;;  %v7721_v55 = vld [vmem:[%s8054_s8 + $0x208] sm:$0xff]  }
 0x146   : > { %v4968_v61 = vrot.slane %v4967_v52, 1  ;;  %v5384_v62 = vrot.slane %v5383_v53, 1  ;;  %7378 = vmatprep.mubr.bf16.mxu1 %v7716_v49  ;;  %v4458_v3 = vmax.f32 %v2450_v59, 0.0  ;;  %v4714_v4 = vmax.f32 %v3474_v60, 0.0 }
 0x147   : > { %v7016_v5 = vpop.f32.mrb[16].mxu0  ;;  %v7272_v6 = vpop.f32.mrb[16].mxu1  ;;  %v4460_v26 = vmax.f32 %v2458_v1, 0.0  ;;  %v4716_v27 = vmax.f32 %v3482_v2, 0.0 }
 0x148   : > { %v4969_v7 = vmax.f32 %v4967_v52, %v4968_v61  ;;  %v5385_v8 = vmax.f32 %v5383_v53, %v5384_v62  ;;  %v2462_v9 = vpop.f32.mrb[17].mxu0  ;;  %v3486_v10 = vpop.f32.mrb[17].mxu1  ;;  %v4974_v14 = vmax.f32 %v4973_v63, %v4458_v3  ;;  %v5390_v15 = vmax.f32 %v5389_v0, %v4714_v4  ;;  %v7722_v62 = vld [vmem:[%s8054_s8 + $0x608] sm:$0xff]  }
 0x149   : > { %v7017_v16 = vpop.f32.mrb[18].mxu0  ;;  %v7273_v17 = vpop.f32.mrb[18].mxu1  ;;  %v2471_v19 = vadd.f32 %v7016_v5, %v8197_v54  ;;  %v2463_v20 = vadd.f32 %v8197_v54, %v2462_v9  ;;  %v3487_v21 = vadd.f32 %v8197_v54, %v3486_v10  ;;  %v3495_v32 = vadd.f32 %v7272_v6, %v8197_v54  ;;  %v7723_v5 = vld [vmem:[%s8054_s8 + $0x210] sm:$0xff]  }
 0x14a   : > { %v2465_v22 = vpop.f32.mrb[19].mxu0  ;;  %v3489_v23 = vpop.f32.mrb[19].mxu1  ;;  %v4975_v28 = vmax.f32 %v4974_v14, %v4459_v12  ;;  %v5391_v29 = vmax.f32 %v5390_v15, %v4715_v13  ;;  %v6654_v30 = vpack.c.bf16 %v4969_v7, %v4969_v7  ;;  %v6686_v31 = vpack.c.bf16 %v5385_v8, %v5385_v8  ;;  %v7724_v6 = vld [vmem:[%s8054_s8 + $0x610] sm:$0xff]  }
 0x14b   : > { %v2474_v33 = vadd.f32 %v7017_v16, %v8197_v54  ;;  %v2466_v36 = vadd.f32 %v8197_v54, %v2465_v22  ;;  %v3490_v37 = vadd.f32 %v8197_v54, %v3489_v23  ;;  %v4463_v38 = vmax.f32 %v2471_v19, 0.0 }
 0x14c   : > { %7123 = vmatmul.mubr.bf16.gmra.mrb[124].mxu0 %v7717_v11  ;;  %v4976_v34 = vmax.f32 %v4975_v28, %v4460_v26  ;;  %v5392_v35 = vmax.f32 %v5391_v29, %v4716_v27  ;;  %v4461_v39 = vmax.f32 %v2463_v20, 0.0  ;;  %v4717_v40 = vmax.f32 %v3487_v21, 0.0 }
 0x14d   : > { %7379 = vmatmul.mubr.bf16.gmra.mrb[124].mxu1 %v7718_v18  ;;  %v3498_v41 = vadd.f32 %v7273_v17, %v8197_v54  ;;  %7126 = vmatprep.mubr.bf16.mxu0 %v7719_v24  ;;  %v4462_v44 = vmax.f32 %v2466_v36, 0.0  ;;  %v4718_v45 = vmax.f32 %v3490_v37, 0.0  ;;  %v8259_v48 = vunpack.c.l.b16 %v6654_v30 }
 0x14e   : > { %7382 = vmatprep.mubr.bf16.mxu1 %v7720_v25  ;;  %v4977_v42 = vrot.slane %v4976_v34, 4  ;;  %v5393_v43 = vrot.slane %v5392_v35, 4  ;;  %v8261_v49 = vunpack.c.l.b16 %v6686_v31  ;;  %v4719_v50 = vmax.f32 %v3495_v32, 0.0 }
 0x14f   : > { %v7020_v46 = vpop.f32.mrb[20].mxu0  ;;  %v7276_v47 = vpop.f32.mrb[20].mxu1  ;;  %v4464_v51 = vmax.f32 %v2474_v33, 0.0  ;;  %v4983_v58 = vmax.f32 %v4461_v39, %v4462_v44  ;;  %v5399_v59 = vmax.f32 %v4717_v40, %v4718_v45  ;;  %v4720_v63 = vmax.f32 %v3498_v41, 0.0 }
 0x150   : > { %v2478_v52 = vpop.f32.mrb[21].mxu0  ;;  %v3502_v53 = vpop.f32.mrb[21].mxu1  ;;  %v4978_v56 = vmax.f32 %v4976_v34, %v4977_v42  ;;  %v5394_v57 = vmax.f32 %v5392_v35, %v5393_v43  ;;  %v2487_v0 = vadd.f32 %v7020_v46, %v8197_v54  ;;  %v3511_v11 = vadd.f32 %v7276_v47, %v8197_v54  ;;  %v7725_v35 = vld [vmem:[%s8054_s8 + $0x218] sm:$0xff]   ;;  %v7727_v43 = vld [vmem:[%s8054_s8 + $0x220] sm:$0xff]  }
 0x151   : > { %v7021_v60 = vpop.f32.mrb[22].mxu0  ;;  %v7277_v61 = vpop.f32.mrb[22].mxu1  ;;  %v2479_v1 = vadd.f32 %v8197_v54, %v2478_v52  ;;  %v3503_v2 = vadd.f32 %v8197_v54, %v3502_v53  ;;  %v4984_v9 = vmax.f32 %v4983_v58, %v4463_v38  ;;  %v5400_v10 = vmax.f32 %v5399_v59, %v4719_v50  ;;  %v7726_v42 = vld [vmem:[%s8054_s8 + $0x618] sm:$0xff]   ;;  %v7728_v52 = vld [vmem:[%s8054_s8 + $0x620] sm:$0xff]  }
 0x152   : > { %v2481_v3 = vpop.f32.mrb[23].mxu0  ;;  %v3505_v4 = vpop.f32.mrb[23].mxu1  ;;  %v4979_v7 = vrot.slane %v4978_v56, 2  ;;  %v5395_v8 = vrot.slane %v5394_v57, 2  ;;  %v2490_v14 = vadd.f32 %v7021_v60, %v8197_v54  ;;  %v4467_v19 = vmax.f32 %v2487_v0, 0.0 }
 0x153   : > { %v4465_v12 = vmax.f32 %v2479_v1, 0.0  ;;  %v4721_v13 = vmax.f32 %v3503_v2, 0.0  ;;  %v4985_v17 = vmax.f32 %v4984_v9, %v4464_v51  ;;  %v5401_v18 = vmax.f32 %v5400_v10, %v4720_v63 }
 0x154   : > { %7127 = vmatmul.mubr.bf16.gmra.mrb[128].mxu0 %v7721_v55  ;;  %v4980_v15 = vmax.f32 %v4978_v56, %v4979_v7  ;;  %v5396_v16 = vmax.f32 %v5394_v57, %v5395_v8  ;;  %v3514_v20 = vadd.f32 %v7277_v61, %v8197_v54  ;;  %v2482_v21 = vadd.f32 %v8197_v54, %v2481_v3 }
 0x155   : > { %7383 = vmatmul.mubr.bf16.gmra.mrb[128].mxu1 %v7722_v62  ;;  %v3506_v22 = vadd.f32 %v8197_v54, %v3505_v4  ;;  %7130 = vmatprep.mubr.bf16.mxu0 %v7723_v5  ;;  %v4986_v25 = vmax.f32 %v4985_v17, %v4465_v12  ;;  %v5402_v26 = vmax.f32 %v5401_v18, %v4721_v13  ;;  %v4723_v29 = vmax.f32 %v3511_v11, 0.0  ;;  %v7729_v12 = vld [vmem:[%s8054_s8 + $0x228] sm:$0xff]  }
 0x156   : > { %7386 = vmatprep.mubr.bf16.mxu1 %v7724_v6  ;;  %v4981_v23 = vrot.slane %v4980_v15, 1  ;;  %v5397_v24 = vrot.slane %v5396_v16, 1  ;;  %v4466_v30 = vmax.f32 %v2482_v21, 0.0  ;;  %v4468_v38 = vmax.f32 %v2490_v14, 0.0 }
 0x157   : > { %v7024_v27 = vpop.f32.mrb[24].mxu0  ;;  %v7280_v28 = vpop.f32.mrb[24].mxu1  ;;  %v4722_v31 = vmax.f32 %v3506_v22, 0.0  ;;  %v4724_v44 = vmax.f32 %v3514_v20, 0.0 }
 0x158   : > { %v8276_v32 = vadd.f32 %v7024_v27, %v8197_v54  ;;  %v2494_v33 = vpop.f32.mrb[25].mxu0  ;;  %v3518_v34 = vpop.f32.mrb[25].mxu1  ;;  %v4982_v36 = vmax.f32 %v4980_v15, %v4981_v23  ;;  %v5398_v37 = vmax.f32 %v5396_v16, %v5397_v24  ;;  %v4987_v45 = vmax.f32 %v4986_v25, %v4466_v30  ;;  %v7730_v23 = vld [vmem:[%s8054_s8 + $0x628] sm:$0xff]   ;;  %v7731_v30 = vld [vmem:[%s8054_s8 + $0x230] sm:$0xff]  }
 0x159   : > { %v2495_v39 = vadd.f32 %v8197_v54, %v2494_v33  ;;  %v7025_v40 = vpop.f32.mrb[26].mxu0  ;;  %v7281_v41 = vpop.f32.mrb[26].mxu1  ;;  %v5403_v46 = vmax.f32 %v5402_v26, %v4722_v31  ;;  %v3519_v47 = vadd.f32 %v8197_v54, %v3518_v34  ;;  %v3527_v57 = vadd.f32 %v7280_v28, %v8197_v54  ;;  %v7732_v31 = vld [vmem:[%s8054_s8 + $0x630] sm:$0xff]  }
 0x15a   : > { %v2497_v50 = vpop.f32.mrb[27].mxu0  ;;  %v3521_v51 = vpop.f32.mrb[27].mxu1  ;;  %v6655_v53 = vpack.c.bf16 %v4982_v36, %v4982_v36  ;;  %v6687_v55 = vpack.c.bf16 %v5398_v37, %v5398_v37  ;;  %v4471_v56 = vmax.f32 %v8276_v32, 0.0  ;;  %v4988_v58 = vmax.f32 %v4987_v45, %v4467_v19 }
 0x15b   : > { %v5404_v59 = vmax.f32 %v5403_v46, %v4723_v29  ;;  %v4469_v60 = vmax.f32 %v2495_v39, 0.0  ;;  %v2506_v61 = vadd.f32 %v7025_v40, %v8197_v54  ;;  %v2498_v0 = vadd.f32 %v8197_v54, %v2497_v50 }
 0x15c   : > { %7131 = vmatmul.mubr.bf16.gmra.mrb[132].mxu0 %v7725_v35  ;;  %v6046_v62 = vunpack.c.l.b16 %v6655_v53  ;;  %v6078_v63 = vunpack.c.l.b16 %v6687_v55  ;;  %v3522_v1 = vadd.f32 %v8197_v54, %v3521_v51  ;;  %v4989_v2 = vmax.f32 %v4988_v58, %v4468_v38 }
 0x15d   : > { %7387 = vmatmul.mubr.bf16.gmra.mrb[132].mxu1 %v7726_v42  ;;  %7134 = vmatprep.mubr.bf16.mxu0 %v7727_v43  ;;  %v5405_v3 = vmax.f32 %v5404_v59, %v4724_v44  ;;  %v4725_v4 = vmax.f32 %v3519_v47, 0.0  ;;  %v3530_v5 = vadd.f32 %v7281_v41, %v8197_v54  ;;  %v4470_v8 = vmax.f32 %v2498_v0, 0.0 }
 0x15e   : > { %7390 = vmatprep.mubr.bf16.mxu1 %v7728_v52  ;;  %v8292_v6 = vsel %vm6109_vm0, %v6046_v62, %v8259_v48  ;;  %v8296_v7 = vsel %vm6109_vm0, %v6078_v63, %v8261_v49  ;;  %v4726_v9 = vmax.f32 %v3522_v1, 0.0  ;;  %v4990_v13 = vrot.slane %v4989_v2, 4  ;;  %v7733_v63 = vld [vmem:[%s8054_s8 + $0x238] sm:$0xff]  }
 0x15f   : > { %v7028_v10 = vpop.f32.mrb[28].mxu0  ;;  %v7284_v11 = vpop.f32.mrb[28].mxu1  ;;  %v5406_v14 = vrot.slane %v5405_v3, 4  ;;  %v4727_v15 = vmax.f32 %v3527_v57, 0.0  ;;  %v4472_v16 = vmax.f32 %v2506_v61, 0.0  ;;  %v4996_v48 = vmax.f32 %v4469_v60, %v4470_v8  ;;  %v7734_v8 = vld [vmem:[%s8054_s8 + $0x638] sm:$0xff]  }
 0x160   : > { %v2510_v17 = vpop.f32.mrb[29].mxu0  ;;  %v3534_v18 = vpop.f32.mrb[29].mxu1  ;;  %v5412_v19 = vmax.f32 %v4725_v4, %v4726_v9  ;;  %v4991_v24 = vmax.f32 %v4989_v2, %v4990_v13  ;;  %v4728_v26 = vmax.f32 %v3530_v5, 0.0  ;;  %v2519_v27 = vadd.f32 %v7028_v10, %v8197_v54 }
 0x161   : > { %v2511_v20 = vadd.f32 %v8197_v54, %v2510_v17  ;;  %v3535_v49 = vadd.f32 %v8197_v54, %v3534_v18  ;;  %v7029_v21 = vpop.f32.mrb[30].mxu0  ;;  %v7285_v22 = vpop.f32.mrb[30].mxu1  ;;  %v5407_v25 = vmax.f32 %v5405_v3, %v5406_v14  ;;  %v4997_v32 = vmax.f32 %v4996_v48, %v4471_v56 }
 0x162   : > { %v2513_v28 = vpop.f32.mrb[31].mxu0  ;;  %v3537_v29 = vpop.f32.mrb[31].mxu1  ;;  %v5413_v33 = vmax.f32 %v5412_v19, %v4727_v15  ;;  %v4992_v36 = vrot.slane %v4991_v24, 2  ;;  %v3543_v38 = vadd.f32 %v7284_v11, %v8197_v54  ;;  %v2522_v39 = vadd.f32 %v7029_v21, %v8197_v54  ;;  %v7735_v15 = vld [vmem:[%s8054_s8 + $0x240] sm:$0xff]  }
 0x163   : > { %v4473_v34 = vmax.f32 %v2511_v20, 0.0  ;;  %v4729_v35 = vmax.f32 %v3535_v49, 0.0  ;;  %v5408_v37 = vrot.slane %v5407_v25, 2  ;;  %v4998_v40 = vmax.f32 %v4997_v32, %v4472_v16  ;;  %v7736_v16 = vld [vmem:[%s8054_s8 + $0x640] sm:$0xff]  }
 0x164   : > { %7135 = vmatmul.mubr.bf16.gmra.mrb[136].mxu0 %v7729_v12  ;;  %v5414_v41 = vmax.f32 %v5413_v33, %v4728_v26  ;;  %v2514_v42 = vadd.f32 %v8197_v54, %v2513_v28  ;;  %v3538_v43 = vadd.f32 %v8197_v54, %v3537_v29  ;;  %v4993_v44 = vmax.f32 %v4991_v24, %v4992_v36 }
 0x165   : > { %7391 = vmatmul.mubr.bf16.gmra.mrb[136].mxu1 %v7730_v23  ;;  %v5409_v45 = vmax.f32 %v5407_v25, %v5408_v37  ;;  %v4475_v46 = vmax.f32 %v2519_v27, 0.0  ;;  %v3546_v47 = vadd.f32 %v7285_v22, %v8197_v54  ;;  %7138 = vmatprep.mubr.bf16.mxu0 %v7731_v30  ;;  %v4999_v50 = vmax.f32 %v4998_v40, %v4473_v34 }
 0x166   : > { %7394 = vmatprep.mubr.bf16.mxu1 %v7732_v31  ;;  %v5415_v51 = vmax.f32 %v5414_v41, %v4729_v35  ;;  %v4474_v52 = vmax.f32 %v2514_v42, 0.0  ;;  %v4730_v53 = vmax.f32 %v3538_v43, 0.0  ;;  %v4994_v57 = vrot.slane %v4993_v44, 1  ;;  %v7737_v43 = vld [vmem:[%s8054_s8 + $0x248] sm:$0xff]  }
 0x167   : > { %v7032_v55 = vpop.f32.mrb[32].mxu0  ;;  %v7288_v56 = vpop.f32.mrb[32].mxu1  ;;  %v5410_v58 = vrot.slane %v5409_v45, 1  ;;  %v4731_v59 = vmax.f32 %v3543_v38, 0.0  ;;  %v4476_v0 = vmax.f32 %v2522_v39, 0.0  ;;  %v4732_v11 = vmax.f32 %v3546_v47, 0.0 }
 0x168   : > { %v8311_v60 = vadd.f32 %v7032_v55, %v8197_v54  ;;  %v2526_v61 = vpop.f32.mrb[33].mxu0  ;;  %v3550_v62 = vpop.f32.mrb[33].mxu1  ;;  %v5000_v1 = vmax.f32 %v4999_v50, %v4474_v52  ;;  %v5416_v2 = vmax.f32 %v5415_v51, %v4730_v53  ;;  %v4995_v9 = vmax.f32 %v4993_v44, %v4994_v57  ;;  %v7738_v52 = vld [vmem:[%s8054_s8 + $0x648] sm:$0xff]  }
 0x169   : > { %v2527_v3 = vadd.f32 %v8197_v54, %v2526_v61  ;;  %v7033_v4 = vpop.f32.mrb[34].mxu0  ;;  %v7289_v5 = vpop.f32.mrb[34].mxu1  ;;  %v5411_v10 = vmax.f32 %v5409_v45, %v5410_v58  ;;  %v3551_v12 = vadd.f32 %v8197_v54, %v3550_v62  ;;  %v3559_v19 = vadd.f32 %v7288_v56, %v8197_v54  ;;  %v7739_v58 = vld [vmem:[%s8054_s8 + $0x250] sm:$0xff]  }
 0x16a   : > { %v2529_v13 = vpop.f32.mrb[35].mxu0  ;;  %v3553_v14 = vpop.f32.mrb[35].mxu1  ;;  %v5001_v17 = vmax.f32 %v5000_v1, %v4475_v46  ;;  %v5417_v18 = vmax.f32 %v5416_v2, %v4731_v59  ;;  %v4479_v48 = vmax.f32 %v8311_v60, 0.0  ;;  %v6656_v20 = vpack.c.bf16 %v4995_v9, %v4995_v9  ;;  %v7740_v59 = vld [vmem:[%s8054_s8 + $0x650] sm:$0xff]  }
 0x16b   : > { %v6688_v49 = vpack.c.bf16 %v5411_v10, %v5411_v10  ;;  %v4477_v21 = vmax.f32 %v2527_v3, 0.0  ;;  %v2538_v22 = vadd.f32 %v7033_v4, %v8197_v54  ;;  %v2530_v25 = vadd.f32 %v8197_v54, %v2529_v13 }
 0x16c   : > { %7139 = vmatmul.mubr.bf16.gmra.mrb[140].mxu0 %v7733_v63  ;;  %v5002_v23 = vmax.f32 %v5001_v17, %v4476_v0  ;;  %v5418_v24 = vmax.f32 %v5417_v18, %v4732_v11  ;;  %v3554_v26 = vadd.f32 %v8197_v54, %v3553_v14  ;;  %v6047_v27 = vunpack.c.l.b16 %v6656_v20 }
 0x16d   : > { %7395 = vmatmul.mubr.bf16.gmra.mrb[140].mxu1 %v7734_v8  ;;  %v6079_v28 = vunpack.c.l.b16 %v6688_v49  ;;  %v4733_v29 = vmax.f32 %v3551_v12, 0.0  ;;  %v3562_v30 = vadd.f32 %v7289_v5, %v8197_v54  ;;  %7142 = vmatprep.mubr.bf16.mxu0 %v7735_v15  ;;  %v4478_v33 = vmax.f32 %v2530_v25, 0.0 }
 0x16e   : > { %7398 = vmatprep.mubr.bf16.mxu1 %v7736_v16  ;;  %v5003_v31 = vrot.slane %v5002_v23, 4  ;;  %v5419_v32 = vrot.slane %v5418_v24, 4  ;;  %v4734_v34 = vmax.f32 %v3554_v26, 0.0  ;;  %v8327_v37 = vsel %vm6111_vm1, %v6047_v27, %v8292_v6 }
 0x16f   : > { %v7036_v35 = vpop.f32.mrb[36].mxu0  ;;  %v7292_v36 = vpop.f32.mrb[36].mxu1  ;;  %v8331_v38 = vsel %vm6111_vm1, %v6079_v28, %v8296_v7  ;;  %v4735_v39 = vmax.f32 %v3559_v19, 0.0  ;;  %v4480_v40 = vmax.f32 %v2538_v22, 0.0  ;;  %v5009_v46 = vmax.f32 %v4477_v21, %v4478_v33 }
 0x170   : > { %v2542_v41 = vpop.f32.mrb[37].mxu0  ;;  %v3566_v42 = vpop.f32.mrb[37].mxu1  ;;  %v5004_v44 = vmax.f32 %v5002_v23, %v5003_v31  ;;  %v5420_v45 = vmax.f32 %v5418_v24, %v5419_v32  ;;  %v5425_v47 = vmax.f32 %v4733_v29, %v4734_v34  ;;  %v4736_v6 = vmax.f32 %v3562_v30, 0.0  ;;  %v7741_v24 = vld [vmem:[%s8054_s8 + $0x258] sm:$0xff]   ;;  %v7743_v32 = vld [vmem:[%s8054_s8 + $0x260] sm:$0xff]  }
 0x171   : > { %v7037_v50 = vpop.f32.mrb[38].mxu0  ;;  %v7293_v51 = vpop.f32.mrb[38].mxu1  ;;  %v2551_v53 = vadd.f32 %v7036_v35, %v8197_v54  ;;  %v2543_v7 = vadd.f32 %v8197_v54, %v2542_v41  ;;  %v3567_v55 = vadd.f32 %v8197_v54, %v3566_v42  ;;  %v5010_v62 = vmax.f32 %v5009_v46, %v4479_v48  ;;  %v7742_v31 = vld [vmem:[%s8054_s8 + $0x658] sm:$0xff]   ;;  %v7744_v41 = vld [vmem:[%s8054_s8 + $0x660] sm:$0xff]  }
 0x172   : > { %v2545_v56 = vpop.f32.mrb[39].mxu0  ;;  %v3569_v57 = vpop.f32.mrb[39].mxu1  ;;  %v5005_v60 = vrot.slane %v5004_v44, 2  ;;  %v5421_v61 = vrot.slane %v5420_v45, 2  ;;  %v5426_v63 = vmax.f32 %v5425_v47, %v4735_v39  ;;  %v3575_v0 = vadd.f32 %v7292_v36, %v8197_v54 }
 0x173   : > { %v4481_v1 = vmax.f32 %v2543_v7, 0.0  ;;  %v4737_v2 = vmax.f32 %v3567_v55, 0.0  ;;  %v2554_v3 = vadd.f32 %v7037_v50, %v8197_v54  ;;  %v5011_v8 = vmax.f32 %v5010_v62, %v4480_v40 }
 0x174   : > { %7143 = vmatmul.mubr.bf16.gmra.mrb[144].mxu0 %v7737_v43  ;;  %v5006_v4 = vmax.f32 %v5004_v44, %v5005_v60  ;;  %v5422_v5 = vmax.f32 %v5420_v45, %v5421_v61  ;;  %v5427_v9 = vmax.f32 %v5426_v63, %v4736_v6  ;;  %v4483_v10 = vmax.f32 %v2551_v53, 0.0 }
 0x175   : > { %7399 = vmatmul.mubr.bf16.gmra.mrb[144].mxu1 %v7738_v52  ;;  %v3578_v11 = vadd.f32 %v7293_v51, %v8197_v54  ;;  %v2546_v12 = vadd.f32 %v8197_v54, %v2545_v56  ;;  %v3570_v13 = vadd.f32 %v8197_v54, %v3569_v57  ;;  %7146 = vmatprep.mubr.bf16.mxu0 %v7739_v58  ;;  %v4739_v19 = vmax.f32 %v3575_v0, 0.0 }
 0x176   : > { %7402 = vmatprep.mubr.bf16.mxu1 %v7740_v59  ;;  %v5007_v14 = vrot.slane %v5006_v4, 1  ;;  %v5423_v15 = vrot.slane %v5422_v5, 1  ;;  %v5012_v16 = vmax.f32 %v5011_v8, %v4481_v1  ;;  %v5428_v17 = vmax.f32 %v5427_v9, %v4737_v2  ;;  %v7745_v1 = vld [vmem:[%s8054_s8 + $0x268] sm:$0xff]  }
 0x177   : > { %v7040_v18 = vpop.f32.mrb[40].mxu0  ;;  %v7296_v48 = vpop.f32.mrb[40].mxu1  ;;  %v4482_v20 = vmax.f32 %v2546_v12, 0.0  ;;  %v4738_v49 = vmax.f32 %v3570_v13, 0.0  ;;  %v4484_v27 = vmax.f32 %v2554_v3, 0.0  ;;  %v4740_v33 = vmax.f32 %v3578_v11, 0.0 }
 0x178   : > { %v8346_v21 = vadd.f32 %v7040_v18, %v8197_v54  ;;  %v2558_v22 = vpop.f32.mrb[41].mxu0  ;;  %v3582_v23 = vpop.f32.mrb[41].mxu1  ;;  %v5008_v25 = vmax.f32 %v5006_v4, %v5007_v14  ;;  %v5424_v26 = vmax.f32 %v5422_v5, %v5423_v15  ;;  %v3591_v45 = vadd.f32 %v7296_v48, %v8197_v54  ;;  %v7746_v14 = vld [vmem:[%s8054_s8 + $0x668] sm:$0xff]   ;;  %v8375_v18 = vld [vmem:[%s9195_s2] ss:$0 sm:$0xff] }
 0x179   : > { %v2559_v28 = vadd.f32 %v8197_v54, %v2558_v22  ;;  %v7041_v29 = vpop.f32.mrb[42].mxu0  ;;  %v7297_v30 = vpop.f32.mrb[42].mxu1  ;;  %v5013_v34 = vmax.f32 %v5012_v16, %v4482_v20  ;;  %v5429_v35 = vmax.f32 %v5428_v17, %v4738_v49  ;;  %v3583_v36 = vadd.f32 %v8197_v54, %v3582_v23  ;;  %v7747_v49 = vld [vmem:[%s8054_s8 + $0x270] sm:$0xff]  }
 0x17a   : > { %v2561_v39 = vpop.f32.mrb[43].mxu0  ;;  %v3585_v40 = vpop.f32.mrb[43].mxu1  ;;  %v6657_v42 = vpack.c.bf16 %v5008_v25, %v5008_v25  ;;  %v6689_v43 = vpack.c.bf16 %v5424_v26, %v5424_v26  ;;  %v4487_v44 = vmax.f32 %v8346_v21, 0.0  ;;  %v2570_v51 = vadd.f32 %v7041_v29, %v8197_v54  ;;  %v7748_v21 = vld [vmem:[%s8054_s8 + $0x670] sm:$0xff]  }
 0x17b   : > { %v5014_v46 = vmax.f32 %v5013_v34, %v4483_v10  ;;  %v5430_v47 = vmax.f32 %v5429_v35, %v4739_v19  ;;  %v4485_v50 = vmax.f32 %v2559_v28, 0.0  ;;  %v2562_v53 = vadd.f32 %v8197_v54, %v2561_v39 }
 0x17c   : > { %7147 = vmatmul.mubr.bf16.gmra.mrb[148].mxu0 %v7741_v24  ;;  %v6048_v52 = vunpack.c.l.b16 %v6657_v42  ;;  %v6080_v6 = vunpack.c.l.b16 %v6689_v43  ;;  %v3586_v7 = vadd.f32 %v8197_v54, %v3585_v40  ;;  %v4741_v57 = vmax.f32 %v3583_v36, 0.0 }
 0x17d   : > { %7403 = vmatmul.mubr.bf16.gmra.mrb[148].mxu1 %v7742_v31  ;;  %7150 = vmatprep.mubr.bf16.mxu0 %v7743_v32  ;;  %v5015_v55 = vmax.f32 %v5014_v46, %v4484_v27  ;;  %v5431_v56 = vmax.f32 %v5430_v47, %v4740_v33  ;;  %v3594_v58 = vadd.f32 %v7297_v30, %v8197_v54  ;;  %v4486_v61 = vmax.f32 %v2562_v53, 0.0 }
 0x17e   : > { %7406 = vmatprep.mubr.bf16.mxu1 %v7744_v41  ;;  %v8362_v59 = vsel %vm6113_vm2, %v6048_v52, %v8327_v37  ;;  %v8366_v60 = vsel %vm6113_vm2, %v6080_v6, %v8331_v38  ;;  %v4742_v62 = vmax.f32 %v3586_v7, 0.0  ;;  %v4743_v4 = vmax.f32 %v3591_v45, 0.0  ;;  %v7749_v6 = vld [vmem:[%s8054_s8 + $0x278] sm:$0xff]  }
 0x17f   : > { %v7044_v63 = vpop.f32.mrb[44].mxu0  ;;  %v7300_v0 = vpop.f32.mrb[44].mxu1  ;;  %v5016_v2 = vrot.slane %v5015_v55, 4  ;;  %v5432_v3 = vrot.slane %v5431_v56, 4  ;;  %v4488_v5 = vmax.f32 %v2570_v51, 0.0  ;;  %v5022_v37 = vmax.f32 %v4485_v50, %v4486_v61  ;;  %v7750_v61 = vld [vmem:[%s8054_s8 + $0x678] sm:$0xff]  }
 0x180   : > { %v2574_v8 = vpop.f32.mrb[45].mxu0  ;;  %v3598_v9 = vpop.f32.mrb[45].mxu1  ;;  %v5438_v10 = vmax.f32 %v4741_v57, %v4742_v62  ;;  %v4744_v17 = vmax.f32 %v3594_v58, 0.0  ;;  %v2583_v48 = vadd.f32 %v8375_v18, %v7044_v63  ;;  %v3607_v27 = vadd.f32 %v8375_v18, %v7300_v0 }
 0x181   : > { %v2575_v11 = vadd.f32 %v8197_v54, %v2574_v8  ;;  %v3599_v38 = vadd.f32 %v8197_v54, %v3598_v9  ;;  %v7045_v12 = vpop.f32.mrb[46].mxu0  ;;  %v7301_v13 = vpop.f32.mrb[46].mxu1  ;;  %v5017_v15 = vmax.f32 %v5015_v55, %v5016_v2  ;;  %v5433_v16 = vmax.f32 %v5431_v56, %v5432_v3 }
 0x182   : > { %v2577_v19 = vpop.f32.mrb[47].mxu0  ;;  %v3601_v20 = vpop.f32.mrb[47].mxu1  ;;  %v5023_v22 = vmax.f32 %v5022_v37, %v4487_v44  ;;  %v5439_v23 = vmax.f32 %v5438_v10, %v4743_v4  ;;  %v2586_v28 = vadd.f32 %v8375_v18, %v7045_v12  ;;  %v4491_v35 = vmax.f32 %v2583_v48, 0.0  ;;  %v7751_v4 = vld [vmem:[%s8054_s8 + $0x280] sm:$0xff]  }
 0x183   : > { %v4489_v54 = vmax.f32 %v2575_v11, 0.0  ;;  %v4745_v24 = vmax.f32 %v3599_v38, 0.0  ;;  %v5018_v25 = vrot.slane %v5017_v15, 2  ;;  %v5434_v26 = vrot.slane %v5433_v16, 2 }
 0x184   : > { %7151 = vmatmul.mubr.bf16.gmra.mrb[152].mxu0 %v7745_v1  ;;  %v5024_v29 = vmax.f32 %v5023_v22, %v4488_v5  ;;  %v5440_v30 = vmax.f32 %v5439_v23, %v4744_v17  ;;  %v2578_v31 = vadd.f32 %v8375_v18, %v2577_v19  ;;  %v3602_v32 = vadd.f32 %v8375_v18, %v3601_v20  ;;  %v7752_v5 = vld [vmem:[%s8054_s8 + $0x680] sm:$0xff]  }
 0x185   : > { %7407 = vmatmul.mubr.bf16.gmra.mrb[152].mxu1 %v7746_v14  ;;  %v5019_v33 = vmax.f32 %v5017_v15, %v5018_v25  ;;  %v5435_v34 = vmax.f32 %v5433_v16, %v5434_v26  ;;  %v3610_v36 = vadd.f32 %v8375_v18, %v7301_v13  ;;  %7154 = vmatprep.mubr.bf16.mxu0 %v7747_v49  ;;  %v4747_v47 = vmax.f32 %v3607_v27, 0.0 }
 0x186   : > { %7410 = vmatprep.mubr.bf16.mxu1 %v7748_v21  ;;  %v5025_v39 = vmax.f32 %v5024_v29, %v4489_v54  ;;  %v5441_v40 = vmax.f32 %v5440_v30, %v4745_v24  ;;  %v4490_v41 = vmax.f32 %v2578_v31, 0.0  ;;  %v4746_v42 = vmax.f32 %v3602_v32, 0.0  ;;  %v7753_v32 = vld [vmem:[%s8054_s8 + $0x288] sm:$0xff]  }
 0x187   : > { %v7048_v43 = vpop.f32.mrb[48].mxu0  ;;  %v7304_v44 = vpop.f32.mrb[48].mxu1  ;;  %v5020_v45 = vrot.slane %v5019_v33, 1  ;;  %v5436_v46 = vrot.slane %v5435_v34, 1  ;;  %v4492_v53 = vmax.f32 %v2586_v28, 0.0  ;;  %v4748_v0 = vmax.f32 %v3610_v36, 0.0 }
 0x188   : > { %v8386_v50 = vadd.f32 %v8375_v18, %v7048_v43  ;;  %v2590_v51 = vpop.f32.mrb[49].mxu0  ;;  %v3614_v52 = vpop.f32.mrb[49].mxu1  ;;  %v5026_v7 = vmax.f32 %v5025_v39, %v4490_v41  ;;  %v5442_v55 = vmax.f32 %v5441_v40, %v4746_v42  ;;  %v3623_v10 = vadd.f32 %v8375_v18, %v7304_v44  ;;  %v7754_v41 = vld [vmem:[%s8054_s8 + $0x688] sm:$0xff]  }
 0x189   : > { %v2591_v56 = vadd.f32 %v8375_v18, %v2590_v51  ;;  %v7049_v57 = vpop.f32.mrb[50].mxu0  ;;  %v7305_v58 = vpop.f32.mrb[50].mxu1  ;;  %v5021_v62 = vmax.f32 %v5019_v33, %v5020_v45  ;;  %v5437_v63 = vmax.f32 %v5435_v34, %v5436_v46  ;;  %v3615_v1 = vadd.f32 %v8375_v18, %v3614_v52  ;;  %v7755_v46 = vld [vmem:[%s8054_s8 + $0x290] sm:$0xff]  }
 0x18a   : > { %v2593_v2 = vpop.f32.mrb[51].mxu0  ;;  %v3617_v3 = vpop.f32.mrb[51].mxu1  ;;  %v5027_v8 = vmax.f32 %v5026_v7, %v4491_v35  ;;  %v5443_v9 = vmax.f32 %v5442_v55, %v4747_v47  ;;  %v4495_v37 = vmax.f32 %v8386_v50, 0.0  ;;  %v2602_v13 = vadd.f32 %v8375_v18, %v7049_v57  ;;  %v7756_v47 = vld [vmem:[%s8054_s8 + $0x690] sm:$0xff]  }
 0x18b   : > { %v6658_v11 = vpack.c.bf16 %v5021_v62, %v5021_v62  ;;  %v6690_v38 = vpack.c.bf16 %v5437_v63, %v5437_v63  ;;  %v4493_v12 = vmax.f32 %v2591_v56, 0.0  ;;  %v2594_v16 = vadd.f32 %v8375_v18, %v2593_v2 }
 0x18c   : > { %7155 = vmatmul.mubr.bf16.gmra.mrb[156].mxu0 %v7749_v6  ;;  %v5028_v14 = vmax.f32 %v5027_v8, %v4492_v53  ;;  %v5444_v15 = vmax.f32 %v5443_v9, %v4748_v0  ;;  %v3618_v17 = vadd.f32 %v8375_v18, %v3617_v3  ;;  %v4749_v20 = vmax.f32 %v3615_v1, 0.0 }
 0x18d   : > { %7411 = vmatmul.mubr.bf16.gmra.mrb[156].mxu1 %v7750_v61  ;;  %v6049_v48 = vunpack.c.l.b16 %v6658_v11  ;;  %v6081_v19 = vunpack.c.l.b16 %v6690_v38  ;;  %v3626_v49 = vadd.f32 %v8375_v18, %v7305_v58  ;;  %7158 = vmatprep.mubr.bf16.mxu0 %v7751_v4  ;;  %v4494_v23 = vmax.f32 %v2594_v16, 0.0 }
 0x18e   : > { %7414 = vmatprep.mubr.bf16.mxu1 %v7752_v5  ;;  %v5029_v21 = vrot.slane %v5028_v14, 4  ;;  %v5445_v22 = vrot.slane %v5444_v15, 4  ;;  %v4750_v54 = vmax.f32 %v3618_v17, 0.0  ;;  %v4751_v28 = vmax.f32 %v3623_v10, 0.0 }
 0x18f   : > { %v7052_v24 = vpop.f32.mrb[52].mxu0  ;;  %v7308_v25 = vpop.f32.mrb[52].mxu1  ;;  %v8402_v26 = vsel %vm6115_vm3, %v6049_v48, %v8362_v59  ;;  %v8406_v27 = vsel %vm6115_vm3, %v6081_v19, %v8366_v60  ;;  %v4496_v29 = vmax.f32 %v2602_v13, 0.0  ;;  %v5035_v35 = vmax.f32 %v4493_v12, %v4494_v23 }
 0x190   : > { %v2606_v30 = vpop.f32.mrb[53].mxu0  ;;  %v3630_v31 = vpop.f32.mrb[53].mxu1  ;;  %v5030_v33 = vmax.f32 %v5028_v14, %v5029_v21  ;;  %v5446_v34 = vmax.f32 %v5444_v15, %v5445_v22  ;;  %v5451_v36 = vmax.f32 %v4749_v20, %v4750_v54  ;;  %v4752_v59 = vmax.f32 %v3626_v49, 0.0  ;;  %v7757_v15 = vld [vmem:[%s8054_s8 + $0x298] sm:$0xff]   ;;  %v7759_v22 = vld [vmem:[%s8054_s8 + $0x2a0] sm:$0xff]  }
 0x191   : > { %v7053_v39 = vpop.f32.mrb[54].mxu0  ;;  %v7309_v40 = vpop.f32.mrb[54].mxu1  ;;  %v2615_v42 = vadd.f32 %v8375_v18, %v7052_v24  ;;  %v2607_v60 = vadd.f32 %v8375_v18, %v2606_v30  ;;  %v3631_v43 = vadd.f32 %v8375_v18, %v3630_v31  ;;  %v5036_v52 = vmax.f32 %v5035_v35, %v4495_v37  ;;  %v7758_v21 = vld [vmem:[%s8054_s8 + $0x698] sm:$0xff]   ;;  %v7760_v30 = vld [vmem:[%s8054_s8 + $0x6a0] sm:$0xff]  }
 0x192   : > { %v2609_v44 = vpop.f32.mrb[55].mxu0  ;;  %v3633_v45 = vpop.f32.mrb[55].mxu1  ;;  %v5031_v50 = vrot.slane %v5030_v33, 2  ;;  %v5447_v51 = vrot.slane %v5446_v34, 2  ;;  %v5452_v6 = vmax.f32 %v5451_v36, %v4751_v28  ;;  %v3639_v53 = vadd.f32 %v8375_v18, %v7308_v25 }
 0x193   : > { %v4497_v7 = vmax.f32 %v2607_v60, 0.0  ;;  %v4753_v55 = vmax.f32 %v3631_v43, 0.0  ;;  %v2618_v56 = vadd.f32 %v8375_v18, %v7053_v39  ;;  %v5037_v61 = vmax.f32 %v5036_v52, %v4496_v29 }
 0x194   : > { %7159 = vmatmul.mubr.bf16.gmra.mrb[160].mxu0 %v7753_v32  ;;  %v5032_v57 = vmax.f32 %v5030_v33, %v5031_v50  ;;  %v5448_v58 = vmax.f32 %v5446_v34, %v5447_v51  ;;  %v5453_v62 = vmax.f32 %v5452_v6, %v4752_v59  ;;  %v4499_v63 = vmax.f32 %v2615_v42, 0.0 }
 0x195   : > { %7415 = vmatmul.mubr.bf16.gmra.mrb[160].mxu1 %v7754_v41  ;;  %v3642_v0 = vadd.f32 %v8375_v18, %v7309_v40  ;;  %v2610_v1 = vadd.f32 %v8375_v18, %v2609_v44  ;;  %v3634_v2 = vadd.f32 %v8375_v18, %v3633_v45  ;;  %7162 = vmatprep.mubr.bf16.mxu0 %v7755_v46  ;;  %v4755_v10 = vmax.f32 %v3639_v53, 0.0 }
 0x196   : > { %7418 = vmatprep.mubr.bf16.mxu1 %v7756_v47  ;;  %v5033_v3 = vrot.slane %v5032_v57, 1  ;;  %v5449_v4 = vrot.slane %v5448_v58, 1  ;;  %v5038_v5 = vmax.f32 %v5037_v61, %v4497_v7  ;;  %v5454_v8 = vmax.f32 %v5453_v62, %v4753_v55  ;;  %v7761_v7 = vld [vmem:[%s8054_s8 + $0x2a8] sm:$0xff]  }
 0x197   : > { %v7056_v9 = vpop.f32.mrb[56].mxu0  ;;  %v7312_v37 = vpop.f32.mrb[56].mxu1  ;;  %v4498_v11 = vmax.f32 %v2610_v1, 0.0  ;;  %v4754_v38 = vmax.f32 %v3634_v2, 0.0  ;;  %v4500_v48 = vmax.f32 %v2618_v56, 0.0  ;;  %v4756_v23 = vmax.f32 %v3642_v0, 0.0 }
 0x198   : > { %v8421_v12 = vadd.f32 %v8375_v18, %v7056_v9  ;;  %v2622_v13 = vpop.f32.mrb[57].mxu0  ;;  %v3646_v14 = vpop.f32.mrb[57].mxu1  ;;  %v5034_v16 = vmax.f32 %v5032_v57, %v5033_v3  ;;  %v5450_v17 = vmax.f32 %v5448_v58, %v5449_v4  ;;  %v3655_v34 = vadd.f32 %v8375_v18, %v7312_v37  ;;  %v7762_v3 = vld [vmem:[%s8054_s8 + $0x6a8] sm:$0xff]  }
 0x199   : > { %v2623_v19 = vadd.f32 %v8375_v18, %v2622_v13  ;;  %v7057_v20 = vpop.f32.mrb[58].mxu0  ;;  %v7313_v49 = vpop.f32.mrb[58].mxu1  ;;  %v5039_v54 = vmax.f32 %v5038_v5, %v4498_v11  ;;  %v5455_v24 = vmax.f32 %v5454_v8, %v4754_v38  ;;  %v3647_v25 = vadd.f32 %v8375_v18, %v3646_v14  ;;  %v7763_v11 = vld [vmem:[%s8054_s8 + $0x2b0] sm:$0xff]  }
 0x19a   : > { %v2625_v28 = vpop.f32.mrb[59].mxu0  ;;  %v3649_v29 = vpop.f32.mrb[59].mxu1  ;;  %v6659_v31 = vpack.c.bf16 %v5034_v16, %v5034_v16  ;;  %v6691_v32 = vpack.c.bf16 %v5450_v17, %v5450_v17  ;;  %v4503_v33 = vmax.f32 %v8421_v12, 0.0  ;;  %v2634_v40 = vadd.f32 %v8375_v18, %v7057_v20  ;;  %v7764_v38 = vld [vmem:[%s8054_s8 + $0x6b0] sm:$0xff]  }
 0x19b   : > { %v5040_v35 = vmax.f32 %v5039_v54, %v4499_v63  ;;  %v5456_v36 = vmax.f32 %v5455_v24, %v4755_v10  ;;  %v4501_v39 = vmax.f32 %v2623_v19, 0.0  ;;  %v2626_v42 = vadd.f32 %v8375_v18, %v2625_v28 }
 0x19c   : > { %7163 = vmatmul.mubr.bf16.gmra.mrb[164].mxu0 %v7757_v15  ;;  %v6050_v41 = vunpack.c.l.b16 %v6659_v31  ;;  %v6082_v59 = vunpack.c.l.b16 %v6691_v32  ;;  %v3650_v60 = vadd.f32 %v8375_v18, %v3649_v29  ;;  %v4757_v45 = vmax.f32 %v3647_v25, 0.0 }
 0x19d   : > { %7419 = vmatmul.mubr.bf16.gmra.mrb[164].mxu1 %v7758_v21  ;;  %7166 = vmatprep.mubr.bf16.mxu0 %v7759_v22  ;;  %v5041_v43 = vmax.f32 %v5040_v35, %v4500_v48  ;;  %v5457_v44 = vmax.f32 %v5456_v36, %v4756_v23  ;;  %v3658_v46 = vadd.f32 %v8375_v18, %v7313_v49  ;;  %v4502_v51 = vmax.f32 %v2626_v42, 0.0 }
 0x19e   : > { %7422 = vmatprep.mubr.bf16.mxu1 %v7760_v30  ;;  %v8437_v47 = vsel %vm6117_vm4, %v6050_v41, %v8402_v26  ;;  %v8441_v50 = vsel %vm6117_vm4, %v6082_v59, %v8406_v27  ;;  %v4758_v52 = vmax.f32 %v3650_v60, 0.0  ;;  %v4759_v57 = vmax.f32 %v3655_v34, 0.0  ;;  %v7765_v59 = vld [vmem:[%s8054_s8 + $0x2b8] sm:$0xff]  }
 0x19f   : > { %v7060_v6 = vpop.f32.mrb[60].mxu0  ;;  %v7316_v53 = vpop.f32.mrb[60].mxu1  ;;  %v5042_v55 = vrot.slane %v5041_v43, 4  ;;  %v5458_v56 = vrot.slane %v5457_v44, 4  ;;  %v4504_v58 = vmax.f32 %v2634_v40, 0.0  ;;  %v5048_v26 = vmax.f32 %v4501_v39, %v4502_v51  ;;  %v7766_v51 = vld [vmem:[%s8054_s8 + $0x6b8] sm:$0xff]  }
 0x1a0   : > { %v2638_v61 = vpop.f32.mrb[61].mxu0  ;;  %v3662_v62 = vpop.f32.mrb[61].mxu1  ;;  %v5464_v63 = vmax.f32 %v4757_v45, %v4758_v52  ;;  %v4760_v8 = vmax.f32 %v3658_v46, 0.0  ;;  %v2647_v9 = vadd.f32 %v8375_v18, %v7060_v6  ;;  %v3671_v48 = vadd.f32 %v8375_v18, %v7316_v53 }
 0x1a1   : > { %v2639_v0 = vadd.f32 %v8375_v18, %v2638_v61  ;;  %v3663_v27 = vadd.f32 %v8375_v18, %v3662_v62  ;;  %v7061_v1 = vpop.f32.mrb[62].mxu0  ;;  %v7317_v2 = vpop.f32.mrb[62].mxu1  ;;  %v5043_v4 = vmax.f32 %v5041_v43, %v5042_v55  ;;  %v5459_v5 = vmax.f32 %v5457_v44, %v5458_v56 }
 0x1a2   : > { %v2641_v37 = vpop.f32.mrb[63].mxu0  ;;  %v3665_v10 = vpop.f32.mrb[63].mxu1  ;;  %v5049_v12 = vmax.f32 %v5048_v26, %v4503_v33  ;;  %v5465_v13 = vmax.f32 %v5464_v63, %v4759_v57  ;;  %v2650_v19 = vadd.f32 %v8375_v18, %v7061_v1  ;;  %v4507_v24 = vmax.f32 %v2647_v9, 0.0  ;;  %v7767_v57 = vld [vmem:[%s8054_s8 + $0x2c0] sm:$0xff]  }
 0x1a3   : > { %v4505_v14 = vmax.f32 %v2639_v0, 0.0  ;;  %v4761_v15 = vmax.f32 %v3663_v27, 0.0  ;;  %v5044_v16 = vrot.slane %v5043_v4, 2  ;;  %v5460_v17 = vrot.slane %v5459_v5, 2 }
 0x1a4   : > { %7167 = vmatmul.mubr.bf16.gmra.mrb[168].mxu0 %v7761_v7  ;;  %v5050_v20 = vmax.f32 %v5049_v12, %v4504_v58  ;;  %v5466_v49 = vmax.f32 %v5465_v13, %v4760_v8  ;;  %v2642_v21 = vadd.f32 %v8375_v18, %v2641_v37  ;;  %v3666_v22 = vadd.f32 %v8375_v18, %v3665_v10  ;;  %v7768_v58 = vld [vmem:[%s8054_s8 + $0x6c0] sm:$0xff]  }
 0x1a5   : > { %7423 = vmatmul.mubr.bf16.gmra.mrb[168].mxu1 %v7762_v3  ;;  %v5045_v23 = vmax.f32 %v5043_v4, %v5044_v16  ;;  %v5461_v54 = vmax.f32 %v5459_v5, %v5460_v17  ;;  %v3674_v25 = vadd.f32 %v8375_v18, %v7317_v2  ;;  %7170 = vmatprep.mubr.bf16.mxu0 %v7763_v11  ;;  %v4763_v36 = vmax.f32 %v3671_v48, 0.0 }
 0x1a6   : > { %7426 = vmatprep.mubr.bf16.mxu1 %v7764_v38  ;;  %v5051_v28 = vmax.f32 %v5050_v20, %v4505_v14  ;;  %v5467_v29 = vmax.f32 %v5466_v49, %v4761_v15  ;;  %v4506_v30 = vmax.f32 %v2642_v21, 0.0  ;;  %v4762_v31 = vmax.f32 %v3666_v22, 0.0  ;;  %v7769_v22 = vld [vmem:[%s8054_s8 + $0x2c8] sm:$0xff]  }
 0x1a7   : > { %v7064_v32 = vpop.f32.mrb[64].mxu0  ;;  %v7320_v33 = vpop.f32.mrb[64].mxu1  ;;  %v5046_v34 = vrot.slane %v5045_v23, 1  ;;  %v5462_v35 = vrot.slane %v5461_v54, 1  ;;  %v4508_v42 = vmax.f32 %v2650_v19, 0.0  ;;  %v4764_v53 = vmax.f32 %v3674_v25, 0.0 }
 0x1a8   : > { %v8456_v39 = vadd.f32 %v8375_v18, %v7064_v32  ;;  %v2654_v40 = vpop.f32.mrb[65].mxu0  ;;  %v3678_v41 = vpop.f32.mrb[65].mxu1  ;;  %v5052_v60 = vmax.f32 %v5051_v28, %v4506_v30  ;;  %v5468_v43 = vmax.f32 %v5467_v29, %v4762_v31  ;;  %v3687_v63 = vadd.f32 %v8375_v18, %v7320_v33  ;;  %v7770_v29 = vld [vmem:[%s8054_s8 + $0x6c8] sm:$0xff]  }
 0x1a9   : > { %v2655_v44 = vadd.f32 %v8375_v18, %v2654_v40  ;;  %v7065_v45 = vpop.f32.mrb[66].mxu0  ;;  %v7321_v46 = vpop.f32.mrb[66].mxu1  ;;  %v5047_v52 = vmax.f32 %v5045_v23, %v5046_v34  ;;  %v5463_v6 = vmax.f32 %v5461_v54, %v5462_v35  ;;  %v3679_v7 = vadd.f32 %v8375_v18, %v3678_v41  ;;  %v7771_v35 = vld [vmem:[%s8054_s8 + $0x2d0] sm:$0xff]  }
 0x1aa   : > { %v2657_v55 = vpop.f32.mrb[67].mxu0  ;;  %v3681_v56 = vpop.f32.mrb[67].mxu1  ;;  %v5053_v61 = vmax.f32 %v5052_v60, %v4507_v24  ;;  %v5469_v62 = vmax.f32 %v5468_v43, %v4763_v36  ;;  %v4511_v26 = vmax.f32 %v8456_v39, 0.0  ;;  %v2666_v2 = vadd.f32 %v8375_v18, %v7065_v45  ;;  %v7772_v36 = vld [vmem:[%s8054_s8 + $0x6d0] sm:$0xff]  }
 0x1ab   : > { %v6660_v0 = vpack.c.bf16 %v5047_v52, %v5047_v52  ;;  %v6692_v27 = vpack.c.bf16 %v5463_v6, %v5463_v6  ;;  %v4509_v1 = vmax.f32 %v2655_v44, 0.0  ;;  %v2658_v5 = vadd.f32 %v8375_v18, %v2657_v55 }
 0x1ac   : > { %7171 = vmatmul.mubr.bf16.gmra.mrb[172].mxu0 %v7765_v59  ;;  %v5054_v3 = vmax.f32 %v5053_v61, %v4508_v42  ;;  %v5470_v4 = vmax.f32 %v5469_v62, %v4764_v53  ;;  %v3682_v8 = vadd.f32 %v8375_v18, %v3681_v56  ;;  %v4765_v10 = vmax.f32 %v3679_v7, 0.0 }
 0x1ad   : > { %7427 = vmatmul.mubr.bf16.gmra.mrb[172].mxu1 %v7766_v51  ;;  %v6051_v9 = vunpack.c.l.b16 %v6660_v0  ;;  %v6083_v37 = vunpack.c.l.b16 %v6692_v27  ;;  %v3690_v11 = vadd.f32 %v8375_v18, %v7321_v46  ;;  %7174 = vmatprep.mubr.bf16.mxu0 %v7767_v57  ;;  %v4510_v13 = vmax.f32 %v2658_v5, 0.0 }
 0x1ae   : > { %7430 = vmatprep.mubr.bf16.mxu1 %v7768_v58  ;;  %v5055_v38 = vrot.slane %v5054_v3, 4  ;;  %v5471_v12 = vrot.slane %v5470_v4, 4  ;;  %v4766_v14 = vmax.f32 %v3682_v8, 0.0  ;;  %v4767_v19 = vmax.f32 %v3687_v63, 0.0 }
 0x1af   : > { %v7068_v15 = vpop.f32.mrb[68].mxu0  ;;  %v7324_v16 = vpop.f32.mrb[68].mxu1  ;;  %v8472_v17 = vsel %vm6119_vm5, %v6051_v9, %v8437_v47  ;;  %v8476_v48 = vsel %vm6119_vm5, %v6083_v37, %v8441_v50  ;;  %v4512_v20 = vmax.f32 %v2666_v2, 0.0  ;;  %v5061_v24 = vmax.f32 %v4509_v1, %v4510_v13 }
 0x1b0   : > { %v2670_v49 = vpop.f32.mrb[69].mxu0  ;;  %v3694_v21 = vpop.f32.mrb[69].mxu1  ;;  %v5056_v23 = vmax.f32 %v5054_v3, %v5055_v38  ;;  %v5472_v54 = vmax.f32 %v5470_v4, %v5471_v12  ;;  %v5477_v25 = vmax.f32 %v4765_v10, %v4766_v14  ;;  %v4768_v30 = vmax.f32 %v3690_v11, 0.0  ;;  %v7773_v4 = vld [vmem:[%s8054_s8 + $0x2d8] sm:$0xff]   ;;  %v7775_v12 = vld [vmem:[%s8054_s8 + $0x2e0] sm:$0xff]  }
 0x1b1   : > { %v7069_v28 = vpop.f32.mrb[70].mxu0  ;;  %v7325_v47 = vpop.f32.mrb[70].mxu1  ;;  %v8482_v50 = vadd.f32 %v8375_v18, %v7068_v15  ;;  %v2671_v31 = vadd.f32 %v8375_v18, %v2670_v49  ;;  %v3695_v32 = vadd.f32 %v8375_v18, %v3694_v21  ;;  %v5062_v41 = vmax.f32 %v5061_v24, %v4511_v26  ;;  %v7774_v38 = vld [vmem:[%s8054_s8 + $0x6d8] sm:$0xff]   ;;  %v7776_v49 = vld [vmem:[%s8054_s8 + $0x6e0] sm:$0xff]  }
 0x1b2   : > { %v2673_v33 = vpop.f32.mrb[71].mxu0  ;;  %v3697_v34 = vpop.f32.mrb[71].mxu1  ;;  %v5057_v39 = vrot.slane %v5056_v23, 2  ;;  %v5473_v40 = vrot.slane %v5472_v54, 2  ;;  %v5478_v59 = vmax.f32 %v5477_v25, %v4767_v19  ;;  %v3703_v42 = vadd.f32 %v8375_v18, %v7324_v16 }
 0x1b3   : > { %v4513_v60 = vmax.f32 %v2671_v31, 0.0  ;;  %v4769_v43 = vmax.f32 %v3695_v32, 0.0  ;;  %v2682_v44 = vadd.f32 %v8375_v18, %v7069_v28  ;;  %v5063_v51 = vmax.f32 %v5062_v41, %v4512_v20 }
 0x1b4   : > { %7175 = vmatmul.mubr.bf16.gmra.mrb[176].mxu0 %v7769_v22  ;;  %v5058_v45 = vmax.f32 %v5056_v23, %v5057_v39  ;;  %v5474_v46 = vmax.f32 %v5472_v54, %v5473_v40  ;;  %v5479_v52 = vmax.f32 %v5478_v59, %v4768_v30  ;;  %v4515_v6 = vmax.f32 %v8482_v50, 0.0 }
 0x1b5   : > { %7431 = vmatmul.mubr.bf16.gmra.mrb[176].mxu1 %v7770_v29  ;;  %v3706_v53 = vadd.f32 %v8375_v18, %v7325_v47  ;;  %v2674_v7 = vadd.f32 %v8375_v18, %v2673_v33  ;;  %v3698_v55 = vadd.f32 %v8375_v18, %v3697_v34  ;;  %7178 = vmatprep.mubr.bf16.mxu0 %v7771_v35  ;;  %v4771_v63 = vmax.f32 %v3703_v42, 0.0 }
 0x1b6   : > { %7434 = vmatprep.mubr.bf16.mxu1 %v7772_v36  ;;  %v5059_v56 = vrot.slane %v5058_v45, 1  ;;  %v5475_v57 = vrot.slane %v5474_v46, 1  ;;  %v5064_v58 = vmax.f32 %v5063_v51, %v4513_v60  ;;  %v5480_v61 = vmax.f32 %v5479_v52, %v4769_v43  ;;  %v7777_v52 = vld [vmem:[%s8054_s8 + $0x2e8] sm:$0xff]  }
 0x1b7   : > { %v7072_v62 = vpop.f32.mrb[72].mxu0  ;;  %v7328_v26 = vpop.f32.mrb[72].mxu1  ;;  %v4514_v0 = vmax.f32 %v2674_v7, 0.0  ;;  %v4770_v27 = vmax.f32 %v3698_v55, 0.0  ;;  %v4516_v13 = vmax.f32 %v2682_v44, 0.0  ;;  %v4772_v14 = vmax.f32 %v3706_v53, 0.0 }
 0x1b8   : > { %v8507_v1 = vadd.f32 %v8375_v18, %v7072_v62  ;;  %v2686_v2 = vpop.f32.mrb[73].mxu0  ;;  %v3710_v3 = vpop.f32.mrb[73].mxu1  ;;  %v5060_v5 = vmax.f32 %v5058_v45, %v5059_v56  ;;  %v5476_v8 = vmax.f32 %v5474_v46, %v5475_v57  ;;  %v3719_v54 = vadd.f32 %v8375_v18, %v7328_v26  ;;  %v7778_v56 = vld [vmem:[%s8054_s8 + $0x6e8] sm:$0xff]  }
 0x1b9   : > { %v2687_v9 = vadd.f32 %v8375_v18, %v2686_v2  ;;  %v3711_v37 = vadd.f32 %v8375_v18, %v3710_v3  ;;  %v7073_v10 = vpop.f32.mrb[74].mxu0  ;;  %v7329_v11 = vpop.f32.mrb[74].mxu1  ;;  %v5065_v15 = vmax.f32 %v5064_v58, %v4514_v0  ;;  %v5481_v16 = vmax.f32 %v5480_v61, %v4770_v27  ;;  %v7779_v0 = vld [vmem:[%s8054_s8 + $0x2f0] sm:$0xff]  }
 0x1ba   : > { %v2689_v19 = vpop.f32.mrb[75].mxu0  ;;  %v3713_v20 = vpop.f32.mrb[75].mxu1  ;;  %v6661_v21 = vpack.c.bf16 %v5060_v5, %v5060_v5  ;;  %v6693_v22 = vpack.c.bf16 %v5476_v8, %v5476_v8  ;;  %v4519_v23 = vmax.f32 %v8507_v1, 0.0  ;;  %v2698_v34 = vadd.f32 %v8375_v18, %v7073_v10 }
 0x1bb   : > { %v5066_v24 = vmax.f32 %v5065_v15, %v4515_v6  ;;  %v5482_v25 = vmax.f32 %v5481_v16, %v4771_v63  ;;  %v4517_v28 = vmax.f32 %v2687_v9, 0.0  ;;  %v4773_v47 = vmax.f32 %v3711_v37, 0.0 }
 0x1bc   : > { %7179 = vmatmul.mubr.bf16.gmra.mrb[180].mxu0 %v7773_v4  ;;  %v6052_v29 = vunpack.c.l.b16 %v6661_v21  ;;  %v6084_v30 = vunpack.c.l.b16 %v6693_v22  ;;  %v2690_v50 = vadd.f32 %v8375_v18, %v2689_v19  ;;  %v3714_v31 = vadd.f32 %v8375_v18, %v3713_v20  ;;  %v7780_v4 = vld [vmem:[%s8054_s8 + $0x6f0] sm:$0xff]  }
 0x1bd   : > { %7435 = vmatmul.mubr.bf16.gmra.mrb[180].mxu1 %v7774_v38  ;;  %7182 = vmatprep.mubr.bf16.mxu0 %v7775_v12  ;;  %v5067_v32 = vmax.f32 %v5066_v24, %v4516_v13  ;;  %v5483_v33 = vmax.f32 %v5482_v25, %v4772_v14  ;;  %v3722_v35 = vadd.f32 %v8375_v18, %v7329_v11  ;;  %v4775_v6 = vmax.f32 %v3719_v54, 0.0  ;;  %v7781_v54 = vld [vmem:[%s8054_s8 + $0x2f8] sm:$0xff]  }
 0x1be   : > { %7438 = vmatprep.mubr.bf16.mxu1 %v7776_v49  ;;  %v6122_v36 = vsel %vm6121_vm6, %v6052_v29, %v8472_v17  ;;  %v6150_v39 = vsel %vm6121_vm6, %v6084_v30, %v8476_v48  ;;  %v4518_v40 = vmax.f32 %v2690_v50, 0.0  ;;  %v4774_v41 = vmax.f32 %v3714_v31, 0.0 }
 0x1bf   : > { %v7076_v59 = vpop.f32.mrb[76].mxu0  ;;  %v7332_v42 = vpop.f32.mrb[76].mxu1  ;;  %v6172_v60 = vpack.c.b16 %v6122_v36, %v6122_v36  ;;  %v6176_v43 = vpack.c.b16 %v6150_v39, %v6150_v39  ;;  %v5068_v44 = vrot.slane %v5067_v32, 4  ;;  %v5484_v45 = vrot.slane %v5483_v33, 4  ;;  %v7782_v36 = vld [vmem:[%s8054_s8 + $0x6f8] sm:$0xff]  }
 0x1c0   : > { %v2702_v46 = vpop.f32.mrb[77].mxu0  ;;  %v3726_v51 = vpop.f32.mrb[77].mxu1  ;;  %v5074_v17 = vmax.f32 %v4517_v28, %v4518_v40  ;;  %v5490_v53 = vmax.f32 %v4773_v47, %v4774_v41  ;;  %v8533_v48 = vadd.f32 %v8375_v18, %v7076_v59  ;;  %v4520_v27 = vmax.f32 %v2698_v34, 0.0 }
 0x1c1   : > { %v7077_v7 = vpop.f32.mrb[78].mxu0  ;;  %v7333_v55 = vpop.f32.mrb[78].mxu1  ;;  %6188 = vst [vmem:[%s8525_s7] sm:$0xf] %v6172_v60  ;;  %6192 = vst [vmem:[%s8525_s7 + $0x10] sm:$0xf] %v6176_v43  ;;  %v5069_v57 = vmax.f32 %v5067_v32, %v5068_v44  ;;  %v5485_v58 = vmax.f32 %v5483_v33, %v5484_v45  ;;  %v2703_v61 = vadd.f32 %v8375_v18, %v2702_v46  ;;  %v4776_v1 = vmax.f32 %v3722_v35, 0.0 }
 0x1c2   : > { %v3727_v62 = vadd.f32 %v8375_v18, %v3726_v51  ;;  %v2705_v26 = vpop.f32.mrb[79].mxu0  ;;  %v3729_v63 = vpop.f32.mrb[79].mxu1  ;;  %v5075_v2 = vmax.f32 %v5074_v17, %v4519_v23  ;;  %v5491_v3 = vmax.f32 %v5490_v53, %v4775_v6  ;;  %v4523_v10 = vmax.f32 %v8533_v48, 0.0  ;;  %v7783_v43 = vld [vmem:[%s8054_s8 + $0x300] sm:$0xff]  }
 0x1c3   : > { %v5070_v5 = vrot.slane %v5069_v57, 2  ;;  %v5486_v8 = vrot.slane %v5485_v58, 2  ;;  %v4521_v9 = vmax.f32 %v2703_v61, 0.0  ;;  %v3735_v11 = vadd.f32 %v8375_v18, %v7332_v42  ;;  %v7784_v44 = vld [vmem:[%s8054_s8 + $0x700] sm:$0xff]  }
 0x1c4   : > { %v4777_v37 = vmax.f32 %v3727_v62, 0.0  ;;  %7183 = vmatmul.mubr.bf16.gmra.mrb[184].mxu0 %v7777_v52  ;;  %v5076_v38 = vmax.f32 %v5075_v2, %v4520_v27  ;;  %v5492_v12 = vmax.f32 %v5491_v3, %v4776_v1  ;;  %v2706_v15 = vadd.f32 %v8375_v18, %v2705_v26 }
 0x1c5   : > { %7439 = vmatmul.mubr.bf16.gmra.mrb[184].mxu1 %v7778_v56  ;;  %v5071_v13 = vmax.f32 %v5069_v57, %v5070_v5  ;;  %v5487_v14 = vmax.f32 %v5485_v58, %v5486_v8  ;;  %v3730_v16 = vadd.f32 %v8375_v18, %v3729_v63  ;;  %7186 = vmatprep.mubr.bf16.mxu0 %v7779_v0  ;;  %v4779_v50 = vmax.f32 %v3735_v11, 0.0  ;;  %v7785_v11 = vld [vmem:[%s8054_s8 + $0x308] sm:$0xff]  }
 0x1c6   : > { %v5077_v19 = vmax.f32 %v5076_v38, %v4521_v9  ;;  %v5493_v20 = vmax.f32 %v5492_v12, %v4777_v37  ;;  %v2714_v49 = vadd.f32 %v8375_v18, %v7077_v7  ;;  %v3738_v21 = vadd.f32 %v8375_v18, %v7333_v55  ;;  %7442 = vmatprep.mubr.bf16.mxu1 %v7780_v4 }
 0x1c7   : > { %v7080_v22 = vpop.f32.mrb[80].mxu0  ;;  %v7336_v23 = vpop.f32.mrb[80].mxu1  ;;  %v5072_v24 = vrot.slane %v5071_v13, 1  ;;  %v5488_v25 = vrot.slane %v5487_v14, 1  ;;  %v4522_v28 = vmax.f32 %v2706_v15, 0.0  ;;  %v4778_v47 = vmax.f32 %v3730_v16, 0.0 }
 0x1c8   : > { %v2718_v29 = vpop.f32.mrb[81].mxu0  ;;  %v3742_v30 = vpop.f32.mrb[81].mxu1  ;;  %v8550_v31 = vadd.f32 %v8375_v18, %v7080_v22  ;;  %v8553_v32 = vadd.f32 %v8375_v18, %v7336_v23  ;;  %v4524_v45 = vmax.f32 %v2714_v49, 0.0  ;;  %v4780_v46 = vmax.f32 %v3738_v21, 0.0 }
 0x1c9   : > { %v2719_v33 = vadd.f32 %v8375_v18, %v2718_v29  ;;  %v7081_v34 = vpop.f32.mrb[82].mxu0  ;;  %v7337_v35 = vpop.f32.mrb[82].mxu1  ;;  %v5073_v39 = vmax.f32 %v5071_v13, %v5072_v24  ;;  %v5489_v40 = vmax.f32 %v5487_v14, %v5488_v25  ;;  %v5078_v41 = vmax.f32 %v5077_v19, %v4522_v28  ;;  %v7786_v19 = vld [vmem:[%s8054_s8 + $0x708] sm:$0xff]   ;;  %v7787_v24 = vld [vmem:[%s8054_s8 + $0x310] sm:$0xff]  }
 0x1ca   : > { %v5494_v59 = vmax.f32 %v5493_v20, %v4778_v47  ;;  %v2721_v42 = vpop.f32.mrb[83].mxu0  ;;  %v3745_v60 = vpop.f32.mrb[83].mxu1  ;;  %v4527_v51 = vmax.f32 %v8550_v31, 0.0  ;;  %v3743_v52 = vadd.f32 %v8375_v18, %v3742_v30  ;;  %v4783_v7 = vmax.f32 %v8553_v32, 0.0  ;;  %v7788_v25 = vld [vmem:[%s8054_s8 + $0x710] sm:$0xff]  }
 0x1cb   : > { %v6662_v6 = vpack.c.bf16 %v5073_v39, %v5073_v39  ;;  %v6694_v17 = vpack.c.bf16 %v5489_v40, %v5489_v40  ;;  %v5079_v53 = vmax.f32 %v5078_v41, %v4523_v10  ;;  %v2730_v55 = vadd.f32 %v8375_v18, %v7081_v34 }
 0x1cc   : > { %v5495_v48 = vmax.f32 %v5494_v59, %v4779_v50  ;;  %7187 = vmatmul.mubr.bf16.gmra.mrb[188].mxu0 %v7781_v54  ;;  %v2722_v56 = vadd.f32 %v8375_v18, %v2721_v42  ;;  %v3746_v57 = vadd.f32 %v8375_v18, %v3745_v60  ;;  %v4525_v62 = vmax.f32 %v2719_v33, 0.0  ;;  %v8584_v42 = vld [vmem:[%s9195_s2] ss:$0 sm:$0xff] }
 0x1cd   : > { %7443 = vmatmul.mubr.bf16.gmra.mrb[188].mxu1 %v7782_v36  ;;  %v5080_v58 = vmax.f32 %v5079_v53, %v4524_v45  ;;  %v3754_v26 = vadd.f32 %v8375_v18, %v7337_v35  ;;  %7190 = vmatprep.mubr.bf16.mxu0 %v7783_v43  ;;  %v8566_v63 = vunpack.c.l.b16 %v6662_v6  ;;  %v4781_v0 = vmax.f32 %v3743_v52, 0.0 }
 0x1ce   : > { %v5496_v61 = vmax.f32 %v5495_v48, %v4780_v46  ;;  %7446 = vmatprep.mubr.bf16.mxu1 %v7784_v44  ;;  %v4526_v27 = vmax.f32 %v2722_v56, 0.0  ;;  %v4782_v1 = vmax.f32 %v3746_v57, 0.0  ;;  %v8568_v4 = vunpack.c.l.b16 %v6694_v17 }
 0x1cf   : > { %v7084_v2 = vpop.f32.mrb[84].mxu0  ;;  %v7340_v3 = vpop.f32.mrb[84].mxu1  ;;  %v5081_v5 = vrot.slane %v5080_v58, 4  ;;  %v4528_v9 = vmax.f32 %v2730_v55, 0.0  ;;  %v4784_v21 = vmax.f32 %v3754_v26, 0.0  ;;  %v7789_v55 = vld [vmem:[%s8054_s8 + $0x318] sm:$0xff]  }
 0x1d0   : > { %v5497_v8 = vrot.slane %v5496_v61, 4  ;;  %v2734_v37 = vpop.f32.mrb[85].mxu0  ;;  %v3758_v10 = vpop.f32.mrb[85].mxu1  ;;  %v5087_v38 = vmax.f32 %v4525_v62, %v4526_v27  ;;  %v5503_v12 = vmax.f32 %v4781_v0, %v4782_v1  ;;  %v2743_v22 = vadd.f32 %v8375_v18, %v7084_v2  ;;  %v7790_v0 = vld [vmem:[%s8054_s8 + $0x718] sm:$0xff]  }
 0x1d1   : > { %v2735_v13 = vadd.f32 %v8375_v18, %v2734_v37  ;;  %v3759_v14 = vadd.f32 %v8375_v18, %v3758_v10  ;;  %v7085_v15 = vpop.f32.mrb[86].mxu0  ;;  %v7341_v16 = vpop.f32.mrb[86].mxu1  ;;  %v5082_v20 = vmax.f32 %v5080_v58, %v5081_v5  ;;  %v3767_v32 = vadd.f32 %v8375_v18, %v7340_v3  ;;  %v7792_v37 = vld [vmem:[%s8054_s8 + $0x720] sm:$0xff]  }
 0x1d2   : > { %v5498_v49 = vmax.f32 %v5496_v61, %v5497_v8  ;;  %v2737_v23 = vpop.f32.mrb[87].mxu0  ;;  %v3761_v54 = vpop.f32.mrb[87].mxu1  ;;  %v5088_v28 = vmax.f32 %v5087_v38, %v4527_v51  ;;  %v5504_v47 = vmax.f32 %v5503_v12, %v4783_v7  ;;  %v2746_v33 = vadd.f32 %v8375_v18, %v7085_v15 }
 0x1d3   : > { %v4529_v29 = vmax.f32 %v2735_v13, 0.0  ;;  %v4785_v30 = vmax.f32 %v3759_v14, 0.0  ;;  %v5083_v50 = vrot.slane %v5082_v20, 2  ;;  %v2738_v36 = vadd.f32 %v8375_v18, %v2737_v23 }
 0x1d4   : > { %v5499_v31 = vrot.slane %v5498_v49, 2  ;;  %7191 = vmatmul.mubr.bf16.gmra.mrb[192].mxu0 %v7785_v11  ;;  %v5089_v34 = vmax.f32 %v5088_v28, %v4528_v9  ;;  %v5505_v35 = vmax.f32 %v5504_v47, %v4784_v21  ;;  %v3762_v39 = vadd.f32 %v8375_v18, %v3761_v54  ;;  %v7791_v9 = vld [vmem:[%s8054_s8 + $0x320] sm:$0xff]  }
 0x1d5   : > { %7447 = vmatmul.mubr.bf16.gmra.mrb[192].mxu1 %v7786_v19  ;;  %v5084_v40 = vmax.f32 %v5082_v20, %v5083_v50  ;;  %v4531_v59 = vmax.f32 %v2743_v22, 0.0  ;;  %v3770_v60 = vadd.f32 %v8584_v42, %v7341_v16  ;;  %7194 = vmatprep.mubr.bf16.mxu0 %v7787_v24  ;;  %v4530_v45 = vmax.f32 %v2738_v36, 0.0 }
 0x1d6   : > { %v5500_v41 = vmax.f32 %v5498_v49, %v5499_v31  ;;  %7450 = vmatprep.mubr.bf16.mxu1 %v7788_v25  ;;  %v5090_v43 = vmax.f32 %v5089_v34, %v4529_v29  ;;  %v5506_v44 = vmax.f32 %v5505_v35, %v4785_v30  ;;  %v4786_v46 = vmax.f32 %v3762_v39, 0.0  ;;  %v7793_v39 = vld [vmem:[%s8054_s8 + $0x328] sm:$0xff]  }
 0x1d7   : > { %v7088_v18 = vpop.f32.mrb[88].mxu0  ;;  %v7344_v51 = vpop.f32.mrb[88].mxu1  ;;  %v5085_v52 = vrot.slane %v5084_v40, 1  ;;  %v4787_v17 = vmax.f32 %v3767_v32, 0.0  ;;  %v4532_v56 = vmax.f32 %v2746_v33, 0.0  ;;  %v4788_v2 = vmax.f32 %v3770_v60, 0.0 }
 0x1d8   : > { %v5501_v6 = vrot.slane %v5500_v41, 1  ;;  %v8588_v53 = vadd.f32 %v8584_v42, %v7088_v18  ;;  %v2750_v48 = vpop.f32.mrb[89].mxu0  ;;  %v3774_v7 = vpop.f32.mrb[89].mxu1  ;;  %v5091_v57 = vmax.f32 %v5090_v43, %v4530_v45  ;;  %v5507_v58 = vmax.f32 %v5506_v44, %v4786_v46  ;;  %v7794_v45 = vld [vmem:[%s8054_s8 + $0x728] sm:$0xff]  }
 0x1d9   : > { %v2751_v61 = vadd.f32 %v8584_v42, %v2750_v48  ;;  %v7089_v62 = vpop.f32.mrb[90].mxu0  ;;  %v7345_v26 = vpop.f32.mrb[90].mxu1  ;;  %v5086_v27 = vmax.f32 %v5084_v40, %v5085_v52  ;;  %v3775_v3 = vadd.f32 %v8584_v42, %v3774_v7  ;;  %v3783_v12 = vadd.f32 %v8584_v42, %v7344_v51 }
 0x1da   : > { %v5502_v1 = vmax.f32 %v5500_v41, %v5501_v6  ;;  %v2753_v5 = vpop.f32.mrb[91].mxu0  ;;  %v3777_v8 = vpop.f32.mrb[91].mxu1  ;;  %v5092_v10 = vmax.f32 %v5091_v57, %v4531_v59  ;;  %v5508_v11 = vmax.f32 %v5507_v58, %v4787_v17  ;;  %v4535_v38 = vmax.f32 %v8588_v53, 0.0  ;;  %v7795_v6 = vld [vmem:[%s8054_s8 + $0x330] sm:$0xff]  }
 0x1db   : > { %v6663_v13 = vpack.c.bf16 %v5086_v27, %v5086_v27  ;;  %v4533_v15 = vmax.f32 %v2751_v61, 0.0  ;;  %v2762_v16 = vadd.f32 %v8584_v42, %v7089_v62  ;;  %v2754_v49 = vadd.f32 %v8584_v42, %v2753_v5  ;;  %v7796_v17 = vld [vmem:[%s8054_s8 + $0x730] sm:$0xff]  }
 0x1dc   : > { %v6695_v14 = vpack.c.bf16 %v5502_v1, %v5502_v1  ;;  %7195 = vmatmul.mubr.bf16.gmra.mrb[196].mxu0 %v7789_v55  ;;  %v5093_v19 = vmax.f32 %v5092_v10, %v4532_v56  ;;  %v5509_v20 = vmax.f32 %v5508_v11, %v4788_v2  ;;  %v3778_v21 = vadd.f32 %v8584_v42, %v3777_v8 }
 0x1dd   : > { %7451 = vmatmul.mubr.bf16.gmra.mrb[196].mxu1 %v7790_v0  ;;  %v6054_v22 = vunpack.c.l.b16 %v6663_v13  ;;  %v4789_v54 = vmax.f32 %v3775_v3, 0.0  ;;  %v3786_v24 = vadd.f32 %v8584_v42, %v7345_v26  ;;  %7198 = vmatprep.mubr.bf16.mxu0 %v7791_v9  ;;  %v4534_v47 = vmax.f32 %v2754_v49, 0.0 }
 0x1de   : > { %v6086_v23 = vunpack.c.l.b16 %v6695_v14  ;;  %7454 = vmatprep.mubr.bf16.mxu1 %v7792_v37  ;;  %v5094_v25 = vrot.slane %v5093_v19, 4  ;;  %v5510_v28 = vrot.slane %v5509_v20, 4  ;;  %v4790_v29 = vmax.f32 %v3778_v21, 0.0 }
 0x1df   : > { %v7092_v30 = vpop.f32.mrb[92].mxu0  ;;  %v7348_v50 = vpop.f32.mrb[92].mxu1  ;;  %v8604_v31 = vsel %vm6109_vm0, %v6054_v22, %v8566_v63  ;;  %v4791_v33 = vmax.f32 %v3783_v12, 0.0  ;;  %v4536_v34 = vmax.f32 %v2762_v16, 0.0  ;;  %v5100_v59 = vmax.f32 %v4533_v15, %v4534_v47 }
 0x1e0   : > { %v8608_v32 = vsel %vm6109_vm0, %v6086_v23, %v8568_v4  ;;  %v2766_v35 = vpop.f32.mrb[93].mxu0  ;;  %v3790_v36 = vpop.f32.mrb[93].mxu1  ;;  %v5095_v40 = vmax.f32 %v5093_v19, %v5094_v25  ;;  %v5511_v41 = vmax.f32 %v5509_v20, %v5510_v28  ;;  %v5516_v60 = vmax.f32 %v4789_v54, %v4790_v29  ;;  %v7797_v20 = vld [vmem:[%s8054_s8 + $0x338] sm:$0xff]   ;;  %v7799_v28 = vld [vmem:[%s8054_s8 + $0x340] sm:$0xff]  }
 0x1e1   : > { %v7093_v43 = vpop.f32.mrb[94].mxu0  ;;  %v7349_v44 = vpop.f32.mrb[94].mxu1  ;;  %v4792_v63 = vmax.f32 %v3786_v24, 0.0  ;;  %v2775_v46 = vadd.f32 %v8584_v42, %v7092_v30  ;;  %v2767_v4 = vadd.f32 %v8584_v42, %v2766_v35  ;;  %v3791_v18 = vadd.f32 %v8584_v42, %v3790_v36  ;;  %v7798_v25 = vld [vmem:[%s8054_s8 + $0x738] sm:$0xff]   ;;  %v7800_v35 = vld [vmem:[%s8054_s8 + $0x740] sm:$0xff]  }
 0x1e2   : > { %v2769_v51 = vpop.f32.mrb[95].mxu0  ;;  %v3793_v52 = vpop.f32.mrb[95].mxu1  ;;  %v5096_v53 = vrot.slane %v5095_v40, 2  ;;  %v5512_v48 = vrot.slane %v5511_v41, 2  ;;  %v5101_v7 = vmax.f32 %v5100_v59, %v4535_v38  ;;  %v5517_v55 = vmax.f32 %v5516_v60, %v4791_v33 }
 0x1e3   : > { %v3799_v56 = vadd.f32 %v8584_v42, %v7348_v50  ;;  %v4537_v57 = vmax.f32 %v2767_v4, 0.0  ;;  %v4793_v58 = vmax.f32 %v3791_v18, 0.0  ;;  %v2778_v61 = vadd.f32 %v8584_v42, %v7093_v43 }
 0x1e4   : > { %7199 = vmatmul.mubr.bf16.gmra.mrb[200].mxu0 %v7793_v39  ;;  %v5097_v62 = vmax.f32 %v5095_v40, %v5096_v53  ;;  %v5513_v26 = vmax.f32 %v5511_v41, %v5512_v48  ;;  %v5102_v0 = vmax.f32 %v5101_v7, %v4536_v34  ;;  %v5518_v27 = vmax.f32 %v5517_v55, %v4792_v63 }
 0x1e5   : > { %7455 = vmatmul.mubr.bf16.gmra.mrb[200].mxu1 %v7794_v45  ;;  %v4539_v1 = vmax.f32 %v2775_v46, 0.0  ;;  %v3802_v2 = vadd.f32 %v8584_v42, %v7349_v44  ;;  %v2770_v3 = vadd.f32 %v8584_v42, %v2769_v51  ;;  %v3794_v5 = vadd.f32 %v8584_v42, %v3793_v52  ;;  %7202 = vmatprep.mubr.bf16.mxu0 %v7795_v6 }
 0x1e6   : > { %7458 = vmatprep.mubr.bf16.mxu1 %v7796_v17  ;;  %v5098_v8 = vrot.slane %v5097_v62, 1  ;;  %v5514_v9 = vrot.slane %v5513_v26, 1  ;;  %v5103_v37 = vmax.f32 %v5102_v0, %v4537_v57  ;;  %v5519_v10 = vmax.f32 %v5518_v27, %v4793_v58  ;;  %v7801_v57 = vld [vmem:[%s8054_s8 + $0x348] sm:$0xff]  }
 0x1e7   : > { %v7096_v11 = vpop.f32.mrb[96].mxu0  ;;  %v7352_v38 = vpop.f32.mrb[96].mxu1  ;;  %v4795_v12 = vmax.f32 %v3799_v56, 0.0  ;;  %v4538_v13 = vmax.f32 %v2770_v3, 0.0  ;;  %v4794_v14 = vmax.f32 %v3794_v5, 0.0  ;;  %v4540_v22 = vmax.f32 %v2778_v61, 0.0 }
 0x1e8   : > { %v8623_v15 = vadd.f32 %v8584_v42, %v7096_v11  ;;  %v2782_v16 = vpop.f32.mrb[97].mxu0  ;;  %v3806_v19 = vpop.f32.mrb[97].mxu1  ;;  %v5099_v49 = vmax.f32 %v5097_v62, %v5098_v8  ;;  %v5515_v21 = vmax.f32 %v5513_v26, %v5514_v9  ;;  %v4796_v47 = vmax.f32 %v3802_v2, 0.0  ;;  %v7802_v8 = vld [vmem:[%s8054_s8 + $0x748] sm:$0xff]  }
 0x1e9   : > { %v2783_v23 = vadd.f32 %v8584_v42, %v2782_v16  ;;  %v7097_v54 = vpop.f32.mrb[98].mxu0  ;;  %v7353_v24 = vpop.f32.mrb[98].mxu1  ;;  %v5104_v29 = vmax.f32 %v5103_v37, %v4538_v13  ;;  %v5520_v30 = vmax.f32 %v5519_v10, %v4794_v14  ;;  %v3807_v50 = vadd.f32 %v8584_v42, %v3806_v19  ;;  %v7803_v13 = vld [vmem:[%s8054_s8 + $0x350] sm:$0xff]  }
 0x1ea   : > { %v2785_v33 = vpop.f32.mrb[99].mxu0  ;;  %v3809_v34 = vpop.f32.mrb[99].mxu1  ;;  %v6664_v36 = vpack.c.bf16 %v5099_v49, %v5099_v49  ;;  %v6696_v39 = vpack.c.bf16 %v5515_v21, %v5515_v21  ;;  %v4543_v40 = vmax.f32 %v8623_v15, 0.0  ;;  %v3815_v41 = vadd.f32 %v8584_v42, %v7352_v38  ;;  %v7804_v14 = vld [vmem:[%s8054_s8 + $0x750] sm:$0xff]  }
 0x1eb   : > { %v5105_v59 = vmax.f32 %v5104_v29, %v4539_v1  ;;  %v5521_v60 = vmax.f32 %v5520_v30, %v4795_v12  ;;  %v4541_v43 = vmax.f32 %v2783_v23, 0.0  ;;  %v2794_v44 = vadd.f32 %v8584_v42, %v7097_v54 }
 0x1ec   : > { %7203 = vmatmul.mubr.bf16.gmra.mrb[204].mxu0 %v7797_v20  ;;  %v6055_v45 = vunpack.c.l.b16 %v6664_v36  ;;  %v6087_v63 = vunpack.c.l.b16 %v6696_v39  ;;  %v2786_v46 = vadd.f32 %v8584_v42, %v2785_v33  ;;  %v3810_v4 = vadd.f32 %v8584_v42, %v3809_v34 }
 0x1ed   : > { %7459 = vmatmul.mubr.bf16.gmra.mrb[204].mxu1 %v7798_v25  ;;  %7206 = vmatprep.mubr.bf16.mxu0 %v7799_v28  ;;  %v5106_v18 = vmax.f32 %v5105_v59, %v4540_v22  ;;  %v5522_v51 = vmax.f32 %v5521_v60, %v4796_v47  ;;  %v4797_v52 = vmax.f32 %v3807_v50, 0.0  ;;  %v3818_v6 = vadd.f32 %v8584_v42, %v7353_v24 }
 0x1ee   : > { %7462 = vmatprep.mubr.bf16.mxu1 %v7800_v35  ;;  %v8639_v17 = vsel %vm6111_vm1, %v6055_v45, %v8604_v31  ;;  %v8643_v53 = vsel %vm6111_vm1, %v6087_v63, %v8608_v32  ;;  %v4542_v48 = vmax.f32 %v2786_v46, 0.0  ;;  %v4798_v7 = vmax.f32 %v3810_v4, 0.0  ;;  %v7805_v63 = vld [vmem:[%s8054_s8 + $0x358] sm:$0xff]  }
 0x1ef   : > { %v7100_v55 = vpop.f32.mrb[100].mxu0  ;;  %v7356_v56 = vpop.f32.mrb[100].mxu1  ;;  %v5107_v58 = vrot.slane %v5106_v18, 4  ;;  %v5523_v61 = vrot.slane %v5522_v51, 4  ;;  %v4799_v62 = vmax.f32 %v3815_v41, 0.0  ;;  %v4544_v26 = vmax.f32 %v2794_v44, 0.0 }
 0x1f0   : > { %v2798_v0 = vpop.f32.mrb[101].mxu0  ;;  %v3822_v27 = vpop.f32.mrb[101].mxu1  ;;  %v5113_v31 = vmax.f32 %v4541_v43, %v4542_v48  ;;  %v5529_v1 = vmax.f32 %v4797_v52, %v4798_v7  ;;  %v4800_v10 = vmax.f32 %v3818_v6, 0.0  ;;  %v2807_v11 = vadd.f32 %v8584_v42, %v7100_v55  ;;  %v7806_v48 = vld [vmem:[%s8054_s8 + $0x758] sm:$0xff]  }
 0x1f1   : > { %v2799_v2 = vadd.f32 %v8584_v42, %v2798_v0  ;;  %v3823_v32 = vadd.f32 %v8584_v42, %v3822_v27  ;;  %v7101_v3 = vpop.f32.mrb[102].mxu0  ;;  %v7357_v5 = vpop.f32.mrb[102].mxu1  ;;  %v5108_v9 = vmax.f32 %v5106_v18, %v5107_v58  ;;  %v5524_v37 = vmax.f32 %v5522_v51, %v5523_v61 }
 0x1f2   : > { %v2801_v38 = vpop.f32.mrb[103].mxu0  ;;  %v3825_v12 = vpop.f32.mrb[103].mxu1  ;;  %v5114_v15 = vmax.f32 %v5113_v31, %v4543_v40  ;;  %v5530_v16 = vmax.f32 %v5529_v1, %v4799_v62  ;;  %v3831_v22 = vadd.f32 %v8584_v42, %v7356_v56  ;;  %v2810_v23 = vadd.f32 %v8584_v42, %v7101_v3  ;;  %v7807_v62 = vld [vmem:[%s8054_s8 + $0x360] sm:$0xff]  }
 0x1f3   : > { %v4545_v19 = vmax.f32 %v2799_v2, 0.0  ;;  %v4801_v20 = vmax.f32 %v3823_v32, 0.0  ;;  %v5109_v49 = vrot.slane %v5108_v9, 2  ;;  %v5525_v21 = vrot.slane %v5524_v37, 2 }
 0x1f4   : > { %7207 = vmatmul.mubr.bf16.gmra.mrb[208].mxu0 %v7801_v57  ;;  %v5115_v54 = vmax.f32 %v5114_v15, %v4544_v26  ;;  %v5531_v24 = vmax.f32 %v5530_v16, %v4800_v10  ;;  %v2802_v25 = vadd.f32 %v8584_v42, %v2801_v38  ;;  %v3826_v28 = vadd.f32 %v8584_v42, %v3825_v12  ;;  %v7808_v26 = vld [vmem:[%s8054_s8 + $0x760] sm:$0xff]  }
 0x1f5   : > { %7463 = vmatmul.mubr.bf16.gmra.mrb[208].mxu1 %v7802_v8  ;;  %v5110_v47 = vmax.f32 %v5108_v9, %v5109_v49  ;;  %v5526_v29 = vmax.f32 %v5524_v37, %v5525_v21  ;;  %v4547_v30 = vmax.f32 %v2807_v11, 0.0  ;;  %v3834_v50 = vadd.f32 %v8584_v42, %v7357_v5  ;;  %7210 = vmatprep.mubr.bf16.mxu0 %v7803_v13 }
 0x1f6   : > { %7466 = vmatprep.mubr.bf16.mxu1 %v7804_v14  ;;  %v5116_v33 = vmax.f32 %v5115_v54, %v4545_v19  ;;  %v5532_v34 = vmax.f32 %v5531_v24, %v4801_v20  ;;  %v4546_v35 = vmax.f32 %v2802_v25, 0.0  ;;  %v4802_v36 = vmax.f32 %v3826_v28, 0.0  ;;  %v7809_v28 = vld [vmem:[%s8054_s8 + $0x368] sm:$0xff]  }
 0x1f7   : > { %v7104_v39 = vpop.f32.mrb[104].mxu0  ;;  %v7360_v40 = vpop.f32.mrb[104].mxu1  ;;  %v5111_v41 = vrot.slane %v5110_v47, 1  ;;  %v5527_v59 = vrot.slane %v5526_v29, 1  ;;  %v4803_v60 = vmax.f32 %v3831_v22, 0.0  ;;  %v4548_v46 = vmax.f32 %v2810_v23, 0.0 }
 0x1f8   : > { %v8658_v43 = vadd.f32 %v8584_v42, %v7104_v39  ;;  %v2814_v44 = vpop.f32.mrb[105].mxu0  ;;  %v3838_v45 = vpop.f32.mrb[105].mxu1  ;;  %v5117_v4 = vmax.f32 %v5116_v33, %v4546_v35  ;;  %v5533_v18 = vmax.f32 %v5532_v34, %v4802_v36  ;;  %v4804_v56 = vmax.f32 %v3834_v50, 0.0  ;;  %v7810_v35 = vld [vmem:[%s8054_s8 + $0x768] sm:$0xff]  }
 0x1f9   : > { %v2815_v51 = vadd.f32 %v8584_v42, %v2814_v44  ;;  %v7105_v52 = vpop.f32.mrb[106].mxu0  ;;  %v7361_v6 = vpop.f32.mrb[106].mxu1  ;;  %v5112_v7 = vmax.f32 %v5110_v47, %v5111_v41  ;;  %v5528_v55 = vmax.f32 %v5526_v29, %v5527_v59  ;;  %v3839_v57 = vadd.f32 %v8584_v42, %v3838_v45  ;;  %v7811_v59 = vld [vmem:[%s8054_s8 + $0x370] sm:$0xff]  }
 0x1fa   : > { %v2817_v58 = vpop.f32.mrb[107].mxu0  ;;  %v3841_v61 = vpop.f32.mrb[107].mxu1  ;;  %v5118_v0 = vmax.f32 %v5117_v4, %v4547_v30  ;;  %v5534_v27 = vmax.f32 %v5533_v18, %v4803_v60  ;;  %v4551_v31 = vmax.f32 %v8658_v43, 0.0  ;;  %v3847_v1 = vadd.f32 %v8584_v42, %v7360_v40  ;;  %v7812_v60 = vld [vmem:[%s8054_s8 + $0x770] sm:$0xff]  }
 0x1fb   : > { %v6665_v2 = vpack.c.bf16 %v5112_v7, %v5112_v7  ;;  %v6697_v32 = vpack.c.bf16 %v5528_v55, %v5528_v55  ;;  %v4549_v3 = vmax.f32 %v2815_v51, 0.0  ;;  %v2826_v5 = vadd.f32 %v8584_v42, %v7105_v52 }
 0x1fc   : > { %7211 = vmatmul.mubr.bf16.gmra.mrb[212].mxu0 %v7805_v63  ;;  %v5119_v8 = vmax.f32 %v5118_v0, %v4548_v46  ;;  %v5535_v9 = vmax.f32 %v5534_v27, %v4804_v56  ;;  %v2818_v37 = vadd.f32 %v8584_v42, %v2817_v58  ;;  %v3842_v10 = vadd.f32 %v8584_v42, %v3841_v61 }
 0x1fd   : > { %7467 = vmatmul.mubr.bf16.gmra.mrb[212].mxu1 %v7806_v48  ;;  %v6056_v11 = vunpack.c.l.b16 %v6665_v2  ;;  %v6088_v38 = vunpack.c.l.b16 %v6697_v32  ;;  %v4805_v12 = vmax.f32 %v3839_v57, 0.0  ;;  %v3850_v13 = vadd.f32 %v8584_v42, %v7361_v6  ;;  %7214 = vmatprep.mubr.bf16.mxu0 %v7807_v62 }
 0x1fe   : > { %7470 = vmatprep.mubr.bf16.mxu1 %v7808_v26  ;;  %v5120_v14 = vrot.slane %v5119_v8, 4  ;;  %v5536_v15 = vrot.slane %v5535_v9, 4  ;;  %v4550_v16 = vmax.f32 %v2818_v37, 0.0  ;;  %v4806_v19 = vmax.f32 %v3842_v10, 0.0 }
 0x1ff   : > { %v7108_v20 = vpop.f32.mrb[108].mxu0  ;;  %v7364_v49 = vpop.f32.mrb[108].mxu1  ;;  %v8674_v21 = vsel %vm6113_vm2, %v6056_v11, %v8639_v17  ;;  %v8678_v22 = vsel %vm6113_vm2, %v6088_v38, %v8643_v53  ;;  %v4807_v23 = vmax.f32 %v3847_v1, 0.0  ;;  %v4552_v54 = vmax.f32 %v2826_v5, 0.0 }
 0x200   : > { %v2830_v24 = vpop.f32.mrb[109].mxu0  ;;  %v3854_v25 = vpop.f32.mrb[109].mxu1  ;;  %v5121_v47 = vmax.f32 %v5119_v8, %v5120_v14  ;;  %v5537_v29 = vmax.f32 %v5535_v9, %v5536_v15  ;;  %v5126_v30 = vmax.f32 %v4549_v3, %v4550_v16  ;;  %v5542_v50 = vmax.f32 %v4805_v12, %v4806_v19  ;;  %v7815_v14 = vld [vmem:[%s8054_s8 + $0x380] sm:$0xff]  }
 0x201   : > { %v7109_v33 = vpop.f32.mrb[110].mxu0  ;;  %v7365_v34 = vpop.f32.mrb[110].mxu1  ;;  %v4808_v17 = vmax.f32 %v3850_v13, 0.0  ;;  %v2839_v36 = vadd.f32 %v8584_v42, %v7108_v20  ;;  %v2831_v53 = vadd.f32 %v8584_v42, %v2830_v24  ;;  %v3855_v39 = vadd.f32 %v8584_v42, %v3854_v25  ;;  %v7814_v13 = vld [vmem:[%s8054_s8 + $0x778] sm:$0xff]  }
 0x202   : > { %v2833_v40 = vpop.f32.mrb[111].mxu0  ;;  %v3857_v41 = vpop.f32.mrb[111].mxu1  ;;  %v5122_v43 = vrot.slane %v5121_v47, 2  ;;  %v5538_v44 = vrot.slane %v5537_v29, 2  ;;  %v5127_v45 = vmax.f32 %v5126_v30, %v4551_v31  ;;  %v5543_v63 = vmax.f32 %v5542_v50, %v4807_v23  ;;  %v7813_v31 = vld [vmem:[%s8054_s8 + $0x378] sm:$0xff]  }
 0x203   : > { %v3863_v46 = vadd.f32 %v8584_v42, %v7364_v49  ;;  %v4553_v4 = vmax.f32 %v2831_v53, 0.0  ;;  %v4809_v18 = vmax.f32 %v3855_v39, 0.0  ;;  %v2842_v51 = vadd.f32 %v8584_v42, %v7109_v33 }
 0x204   : > { %7215 = vmatmul.mubr.bf16.gmra.mrb[216].mxu0 %v7809_v28  ;;  %v5123_v52 = vmax.f32 %v5121_v47, %v5122_v43  ;;  %v5539_v6 = vmax.f32 %v5537_v29, %v5538_v44  ;;  %v5128_v48 = vmax.f32 %v5127_v45, %v4552_v54  ;;  %v5544_v7 = vmax.f32 %v5543_v63, %v4808_v17  ;;  %v7816_v54 = vld [vmem:[%s8054_s8 + $0x780] sm:$0xff]   ;;  %v7817_v63 = vld [vmem:[%s8054_s8 + $0x388] sm:$0xff]  }
 0x205   : > { %7471 = vmatmul.mubr.bf16.gmra.mrb[216].mxu1 %v7810_v35  ;;  %v3866_v55 = vadd.f32 %v8584_v42, %v7365_v34  ;;  %v2834_v56 = vadd.f32 %v8584_v42, %v2833_v40  ;;  %v3858_v57 = vadd.f32 %v8584_v42, %v3857_v41  ;;  %7218 = vmatprep.mubr.bf16.mxu0 %v7811_v59  ;;  %v4555_v1 = vmax.f32 %v2839_v36, 0.0 }
 0x206   : > { %7474 = vmatprep.mubr.bf16.mxu1 %v7812_v60  ;;  %v5124_v58 = vrot.slane %v5123_v52, 1  ;;  %v5540_v61 = vrot.slane %v5539_v6, 1  ;;  %v5129_v62 = vmax.f32 %v5128_v48, %v4553_v4  ;;  %v5545_v26 = vmax.f32 %v5544_v7, %v4809_v18 }
 0x207   : > { %v7112_v0 = vpop.f32.mrb[112].mxu0  ;;  %v7368_v27 = vpop.f32.mrb[112].mxu1  ;;  %v4811_v2 = vmax.f32 %v3863_v46, 0.0  ;;  %v4554_v32 = vmax.f32 %v2834_v56, 0.0  ;;  %v4810_v3 = vmax.f32 %v3858_v57, 0.0  ;;  %v4556_v10 = vmax.f32 %v2842_v51, 0.0 }
 0x208   : > { %v2846_v5 = vpop.f32.mrb[113].mxu0  ;;  %v3870_v8 = vpop.f32.mrb[113].mxu1  ;;  %v5125_v9 = vmax.f32 %v5123_v52, %v5124_v58  ;;  %v5541_v37 = vmax.f32 %v5539_v6, %v5540_v61  ;;  %v4812_v15 = vmax.f32 %v3866_v55, 0.0  ;;  %v2855_v28 = vadd.f32 %v8584_v42, %v7112_v0  ;;  %v7818_v57 = vld [vmem:[%s8054_s8 + $0x788] sm:$0xff]  }
 0x209   : > { %v2847_v11 = vadd.f32 %v8584_v42, %v2846_v5  ;;  %v7113_v38 = vpop.f32.mrb[114].mxu0  ;;  %v7369_v12 = vpop.f32.mrb[114].mxu1  ;;  %v5130_v16 = vmax.f32 %v5129_v62, %v4554_v32  ;;  %v5546_v19 = vmax.f32 %v5545_v26, %v4810_v3  ;;  %v3871_v20 = vadd.f32 %v8584_v42, %v3870_v8 }
 0x20a   : > { %v2849_v49 = vpop.f32.mrb[115].mxu0  ;;  %v3873_v23 = vpop.f32.mrb[115].mxu1  ;;  %v6666_v24 = vpack.c.bf16 %v5125_v9, %v5125_v9  ;;  %v6698_v25 = vpack.c.bf16 %v5541_v37, %v5541_v37  ;;  %v3879_v47 = vadd.f32 %v8584_v42, %v7368_v27  ;;  %v2858_v33 = vadd.f32 %v8584_v42, %v7113_v38 }
 0x20b   : > { %v5131_v29 = vmax.f32 %v5130_v16, %v4555_v1  ;;  %v5547_v30 = vmax.f32 %v5546_v19, %v4811_v2  ;;  %v4557_v50 = vmax.f32 %v2847_v11, 0.0  ;;  %v2850_v17 = vadd.f32 %v8584_v42, %v2849_v49  ;;  %v7820_v1 = vld [vmem:[%s8054_s8 + $0x790] sm:$0xff]  }
 0x20c   : > { %7219 = vmatmul.mubr.bf16.gmra.mrb[220].mxu0 %v7813_v31  ;;  %v6057_v34 = vunpack.c.l.b16 %v6666_v24  ;;  %v6089_v35 = vunpack.c.l.b16 %v6698_v25  ;;  %v3874_v36 = vadd.f32 %v8584_v42, %v3873_v23  ;;  %v4813_v40 = vmax.f32 %v3871_v20, 0.0  ;;  %v7819_v31 = vld [vmem:[%s8054_s8 + $0x390] sm:$0xff]  }
 0x20d   : > { %7475 = vmatmul.mubr.bf16.gmra.mrb[220].mxu1 %v7814_v13  ;;  %7222 = vmatprep.mubr.bf16.mxu0 %v7815_v14  ;;  %v5132_v53 = vmax.f32 %v5131_v29, %v4556_v10  ;;  %v5548_v39 = vmax.f32 %v5547_v30, %v4812_v15  ;;  %v3882_v41 = vadd.f32 %v8584_v42, %v7369_v12  ;;  %v4558_v43 = vmax.f32 %v2850_v17, 0.0 }
 0x20e   : > { %7478 = vmatprep.mubr.bf16.mxu1 %v7816_v54  ;;  %v8706_v59 = vsel %vm6115_vm3, %v6057_v34, %v8674_v21  ;;  %v8710_v60 = vsel %vm6115_vm3, %v6089_v35, %v8678_v22  ;;  %v4814_v44 = vmax.f32 %v3874_v36, 0.0  ;;  %v4559_v18 = vmax.f32 %v2855_v28, 0.0 }
 0x20f   : > { %v7116_v45 = vpop.f32.mrb[116].mxu0  ;;  %v5133_v46 = vrot.slane %v5132_v53, 4  ;;  %v5549_v4 = vrot.slane %v5548_v39, 4  ;;  %v4815_v51 = vmax.f32 %v3879_v47, 0.0  ;;  %v7372_v52 = vpop.f32.mrb[116].mxu1  ;;  %v4560_v48 = vmax.f32 %v2858_v33, 0.0 }
 0x210   : > { %v2862_v6 = vpop.f32.mrb[117].mxu0  ;;  %v5139_v21 = vmax.f32 %v4557_v50, %v4558_v43  ;;  %v5555_v7 = vmax.f32 %v4813_v40, %v4814_v44  ;;  %v3886_v22 = vpop.f32.mrb[117].mxu1  ;;  %v4816_v62 = vmax.f32 %v3882_v41, 0.0  ;;  %v2871_v3 = vadd.f32 %v8584_v42, %v7116_v45  ;;  %v7821_v33 = vld [vmem:[%s8054_s8 + $0x398] sm:$0xff]   ;;  %v7823_v41 = vld [vmem:[%s8054_s8 + $0x3a0] sm:$0xff]  }
 0x211   : > { %v2863_v55 = vadd.f32 %v8584_v42, %v2862_v6  ;;  %v7117_v56 = vpop.f32.mrb[118].mxu0  ;;  %v5134_v58 = vmax.f32 %v5132_v53, %v5133_v46  ;;  %v5550_v61 = vmax.f32 %v5548_v39, %v5549_v4  ;;  %v3887_v26 = vadd.f32 %v8584_v42, %v3886_v22  ;;  %v7373_v0 = vpop.f32.mrb[118].mxu1  ;;  %v7822_v40 = vld [vmem:[%s8054_s8 + $0x798] sm:$0xff]  }
 0x212   : > { %v2865_v27 = vpop.f32.mrb[119].mxu0  ;;  %v5140_v2 = vmax.f32 %v5139_v21, %v4559_v18  ;;  %v5556_v32 = vmax.f32 %v5555_v7, %v4815_v51  ;;  %v3889_v8 = vpop.f32.mrb[119].mxu1  ;;  %v3895_v10 = vadd.f32 %v8584_v42, %v7372_v52  ;;  %v2874_v13 = vadd.f32 %v8584_v42, %v7117_v56  ;;  %v7824_v18 = vld [vmem:[%s8054_s8 + $0x7a0] sm:$0xff]  }
 0x213   : > { %v4561_v5 = vmax.f32 %v2863_v55, 0.0  ;;  %v5135_v9 = vrot.slane %v5134_v58, 2  ;;  %v5551_v37 = vrot.slane %v5550_v61, 2  ;;  %v4817_v11 = vmax.f32 %v3887_v26, 0.0 }
 0x214   : > { %7223 = vmatmul.mubr.bf16.gmra.mrb[224].mxu0 %v7817_v63  ;;  %v5141_v38 = vmax.f32 %v5140_v2, %v4560_v48  ;;  %v5557_v12 = vmax.f32 %v5556_v32, %v4816_v62  ;;  %v2866_v14 = vadd.f32 %v8584_v42, %v2865_v27  ;;  %v3890_v19 = vadd.f32 %v8584_v42, %v3889_v8 }
 0x215   : > { %7479 = vmatmul.mubr.bf16.gmra.mrb[224].mxu1 %v7818_v57  ;;  %v5136_v15 = vmax.f32 %v5134_v58, %v5135_v9  ;;  %v5552_v16 = vmax.f32 %v5550_v61, %v5551_v37  ;;  %7226 = vmatprep.mubr.bf16.mxu0 %v7819_v31  ;;  %v3898_v23 = vadd.f32 %v8584_v42, %v7373_v0  ;;  %v4563_v34 = vmax.f32 %v2871_v3, 0.0 }
 0x216   : > { %7482 = vmatprep.mubr.bf16.mxu1 %v7820_v1  ;;  %v5142_v20 = vmax.f32 %v5141_v38, %v4561_v5  ;;  %v5558_v49 = vmax.f32 %v5557_v12, %v4817_v11  ;;  %v4562_v54 = vmax.f32 %v2866_v14, 0.0  ;;  %v4818_v47 = vmax.f32 %v3890_v19, 0.0  ;;  %v7825_v12 = vld [vmem:[%s8054_s8 + $0x3a8] sm:$0xff]  }
 0x217   : > { %v7120_v24 = vpop.f32.mrb[120].mxu0  ;;  %v5137_v25 = vrot.slane %v5136_v15, 1  ;;  %v5553_v28 = vrot.slane %v5552_v16, 1  ;;  %v4819_v35 = vmax.f32 %v3895_v10, 0.0  ;;  %v4564_v45 = vmax.f32 %v2874_v13, 0.0 }
 0x218   : > { %v8725_v29 = vadd.f32 %v8584_v42, %v7120_v24  ;;  %v7376_v30 = vpop.f32.mrb[120].mxu1  ;;  %v2878_v50 = vpop.f32.mrb[121].mxu0  ;;  %v5143_v17 = vmax.f32 %v5142_v20, %v4562_v54  ;;  %v5559_v63 = vmax.f32 %v5558_v49, %v4818_v47  ;;  %v4820_v51 = vmax.f32 %v3898_v23, 0.0  ;;  %v7826_v49 = vld [vmem:[%s8054_s8 + $0x7a8] sm:$0xff]   ;;  %v7828_v47 = vld [vmem:[%s8054_s8 + $0x7b0] sm:$0xff]  }
 0x219   : > { %v8729_v36 = vadd.f32 %v8584_v42, %v7376_v30  ;;  %v3902_v53 = vpop.f32.mrb[121].mxu1  ;;  %v7121_v39 = vpop.f32.mrb[122].mxu0  ;;  %v5138_v43 = vmax.f32 %v5136_v15, %v5137_v25  ;;  %v5554_v44 = vmax.f32 %v5552_v16, %v5553_v28  ;;  %v2879_v48 = vadd.f32 %v8584_v42, %v2878_v50  ;;  %v7827_v28 = vld [vmem:[%s8054_s8 + $0x3b0] sm:$0xff]  }
 0x21a   : > { %v7377_v46 = vpop.f32.mrb[122].mxu1  ;;  %v2881_v4 = vpop.f32.mrb[123].mxu0  ;;  %v5144_v52 = vmax.f32 %v5143_v17, %v4563_v34  ;;  %v4567_v6 = vmax.f32 %v8725_v29, 0.0  ;;  %v5560_v22 = vmax.f32 %v5559_v63, %v4819_v35  ;;  %v3903_v56 = vadd.f32 %v8584_v42, %v3902_v53 }
 0x21b   : > { %v3905_v21 = vpop.f32.mrb[123].mxu1  ;;  %v6667_v7 = vpack.c.bf16 %v5138_v43, %v5138_v43  ;;  %v6699_v55 = vpack.c.bf16 %v5554_v44, %v5554_v44  ;;  %v4823_v58 = vmax.f32 %v8729_v36, 0.0  ;;  %v2890_v61 = vadd.f32 %v8584_v42, %v7121_v39 }
 0x21c   : > { %7227 = vmatmul.mubr.bf16.gmra.mrb[228].mxu0 %v7821_v33  ;;  %v5145_v57 = vmax.f32 %v5144_v52, %v4564_v45  ;;  %v2882_v62 = vadd.f32 %v8584_v42, %v2881_v4  ;;  %v5561_v27 = vmax.f32 %v5560_v22, %v4820_v51  ;;  %v3914_v31 = vadd.f32 %v8584_v42, %v7377_v46 }
 0x21d   : > { %7483 = vmatmul.mubr.bf16.gmra.mrb[228].mxu1 %v7822_v40  ;;  %7230 = vmatprep.mubr.bf16.mxu0 %v7823_v41  ;;  %v6058_v26 = vunpack.c.l.b16 %v6667_v7  ;;  %v6090_v0 = vunpack.c.l.b16 %v6699_v55  ;;  %v4565_v2 = vmax.f32 %v2879_v48, 0.0  ;;  %v3906_v3 = vadd.f32 %v8584_v42, %v3905_v21 }
 0x21e   : > { %7486 = vmatprep.mubr.bf16.mxu1 %v7824_v18  ;;  %v5146_v1 = vrot.slane %v5145_v57, 4  ;;  %v4566_v32 = vmax.f32 %v2882_v62, 0.0  ;;  %v5562_v37 = vrot.slane %v5561_v27, 4  ;;  %v4821_v10 = vmax.f32 %v3903_v56, 0.0  ;;  %v7829_v56 = vld [vmem:[%s8054_s8 + $0x3b8] sm:$0xff]  }
 0x21f   : > { %v7124_v5 = vpop.f32.mrb[124].mxu0  ;;  %v8744_v8 = vsel %vm6117_vm4, %v6058_v26, %v8706_v59  ;;  %v8748_v9 = vsel %vm6117_vm4, %v6090_v0, %v8710_v60  ;;  %v4568_v14 = vmax.f32 %v2890_v61, 0.0  ;;  %v4822_v16 = vmax.f32 %v3906_v3, 0.0 }
 0x220   : > { %v7380_v11 = vpop.f32.mrb[124].mxu1  ;;  %v2894_v38 = vpop.f32.mrb[125].mxu0  ;;  %v5147_v13 = vmax.f32 %v5145_v57, %v5146_v1  ;;  %v5152_v15 = vmax.f32 %v4565_v2, %v4566_v32  ;;  %v5563_v59 = vmax.f32 %v5561_v27, %v5562_v37  ;;  %v4824_v23 = vmax.f32 %v3914_v31, 0.0  ;;  %v7830_v27 = vld [vmem:[%s8054_s8 + $0x7b8] sm:$0xff]   ;;  %v7831_v31 = vld [vmem:[%s8054_s8 + $0x3c0] sm:$0xff]  }
 0x221   : > { %v3918_v19 = vpop.f32.mrb[125].mxu1  ;;  %v7125_v20 = vpop.f32.mrb[126].mxu0  ;;  %v2895_v54 = vadd.f32 %v8584_v42, %v2894_v38  ;;  %v5568_v50 = vmax.f32 %v4821_v10, %v4822_v16  ;;  %v2903_v33 = vadd.f32 %v8584_v42, %v7124_v5  ;;  %v3927_v17 = vadd.f32 %v8584_v42, %v7380_v11  ;;  %v7832_v10 = vld [vmem:[%s8054_s8 + $0x7c0] sm:$0xff]  }
 0x222   : > { %v3919_v60 = vadd.f32 %v8584_v42, %v3918_v19  ;;  %v7381_v24 = vpop.f32.mrb[126].mxu1  ;;  %v2897_v25 = vpop.f32.mrb[127].mxu0  ;;  %v5148_v29 = vrot.slane %v5147_v13, 2  ;;  %v5153_v30 = vmax.f32 %v5152_v15, %v4567_v6  ;;  %v5564_v35 = vrot.slane %v5563_v59, 2 }
 0x223   : > { %v3921_v34 = vpop.f32.mrb[127].mxu1  ;;  %v4569_v36 = vmax.f32 %v2895_v54, 0.0  ;;  %v5569_v40 = vmax.f32 %v5568_v50, %v4823_v58  ;;  %v2906_v43 = vadd.f32 %v8584_v42, %v7125_v20  ;;  %v2898_v45 = vadd.f32 %v8584_v42, %v2897_v25  ;;  %v8775_v20 = vld [vmem:[%s9195_s2] ss:$0 sm:$0xff] }
 0x224   : > { %v4825_v53 = vmax.f32 %v3919_v60, 0.0  ;;  %7231 = vmatmul.mubr.bf16.gmra.mrb[232].mxu0 %v7825_v12  ;;  %v5149_v39 = vmax.f32 %v5147_v13, %v5148_v29  ;;  %v5154_v41 = vmax.f32 %v5153_v30, %v4568_v14  ;;  %v5565_v44 = vmax.f32 %v5563_v59, %v5564_v35 }
 0x225   : > { %7487 = vmatmul.mubr.bf16.gmra.mrb[232].mxu1 %v7826_v49  ;;  %v3922_v63 = vadd.f32 %v8584_v42, %v3921_v34  ;;  %7234 = vmatprep.mubr.bf16.mxu0 %v7827_v28  ;;  %v5570_v18 = vmax.f32 %v5569_v40, %v4824_v23  ;;  %v3930_v51 = vadd.f32 %v8584_v42, %v7381_v24  ;;  %v4570_v48 = vmax.f32 %v2898_v45, 0.0  ;;  %v7833_v40 = vld [vmem:[%s8054_s8 + $0x3c8] sm:$0xff]  }
 0x226   : > { %7490 = vmatprep.mubr.bf16.mxu1 %v7828_v47  ;;  %v5150_v46 = vrot.slane %v5149_v39, 1  ;;  %v5155_v4 = vmax.f32 %v5154_v41, %v4569_v36  ;;  %v5566_v6 = vrot.slane %v5565_v44, 1  ;;  %v4571_v58 = vmax.f32 %v2903_v33, 0.0 }
 0x227   : > { %v7128_v52 = vpop.f32.mrb[128].mxu0  ;;  %v4826_v21 = vmax.f32 %v3922_v63, 0.0  ;;  %v5571_v61 = vmax.f32 %v5570_v18, %v4825_v53  ;;  %v4827_v2 = vmax.f32 %v3927_v17, 0.0  ;;  %v4572_v32 = vmax.f32 %v2906_v43, 0.0 }
 0x228   : > { %v8763_v7 = vadd.f32 %v8584_v42, %v7128_v52  ;;  %v7384_v55 = vpop.f32.mrb[128].mxu1  ;;  %v2910_v22 = vpop.f32.mrb[129].mxu0  ;;  %v5151_v57 = vmax.f32 %v5149_v39, %v5150_v46  ;;  %v5567_v1 = vmax.f32 %v5565_v44, %v5566_v6  ;;  %v5156_v3 = vmax.f32 %v5155_v4, %v4570_v48  ;;  %v7834_v46 = vld [vmem:[%s8054_s8 + $0x7c8] sm:$0xff]   ;;  %v7835_v4 = vld [vmem:[%s8054_s8 + $0x3d0] sm:$0xff]  }
 0x229   : > { %v2911_v62 = vadd.f32 %v8584_v42, %v2910_v22  ;;  %v3934_v26 = vpop.f32.mrb[129].mxu1  ;;  %v7129_v0 = vpop.f32.mrb[130].mxu0  ;;  %v4828_v38 = vmax.f32 %v3930_v51, 0.0  ;;  %v5572_v12 = vmax.f32 %v5571_v61, %v4826_v21  ;;  %v3943_v13 = vadd.f32 %v8584_v42, %v7384_v55  ;;  %v7836_v21 = vld [vmem:[%s8054_s8 + $0x7d0] sm:$0xff]  }
 0x22a   : > { %v7385_v5 = vpop.f32.mrb[130].mxu1  ;;  %v2913_v37 = vpop.f32.mrb[131].mxu0  ;;  %v6668_v11 = vpack.c.bf16 %v5151_v57, %v5151_v57  ;;  %v6700_v15 = vpack.c.bf16 %v5567_v1, %v5567_v1  ;;  %v5157_v16 = vmax.f32 %v5156_v3, %v4571_v58  ;;  %v4575_v19 = vmax.f32 %v8763_v7, 0.0 }
 0x22b   : > { %v3937_v14 = vpop.f32.mrb[131].mxu1  ;;  %v3935_v49 = vadd.f32 %v8775_v20, %v3934_v26  ;;  %v5573_v23 = vmax.f32 %v5572_v12, %v4827_v2  ;;  %v4573_v54 = vmax.f32 %v2911_v62, 0.0  ;;  %v2914_v60 = vadd.f32 %v8775_v20, %v2913_v37 }
 0x22c   : > { %7235 = vmatmul.mubr.bf16.gmra.mrb[236].mxu0 %v7829_v56  ;;  %v6059_v59 = vunpack.c.l.b16 %v6668_v11  ;;  %v6091_v42 = vunpack.c.l.b16 %v6700_v15  ;;  %v5158_v24 = vmax.f32 %v5157_v16, %v4572_v32  ;;  %v2922_v25 = vadd.f32 %v8775_v20, %v7129_v0 }
 0x22d   : > { %7491 = vmatmul.mubr.bf16.gmra.mrb[236].mxu1 %v7830_v27  ;;  %7238 = vmatprep.mubr.bf16.mxu0 %v7831_v31  ;;  %v3938_v28 = vadd.f32 %v8775_v20, %v3937_v14  ;;  %v5574_v29 = vmax.f32 %v5573_v23, %v4828_v38  ;;  %v3946_v30 = vadd.f32 %v8775_v20, %v7385_v5  ;;  %v4574_v50 = vmax.f32 %v2914_v60, 0.0 }
 0x22e   : > { %7494 = vmatprep.mubr.bf16.mxu1 %v7832_v10  ;;  %v8783_v47 = vsel %vm6119_vm5, %v6059_v59, %v8744_v8  ;;  %v8788_v34 = vsel %vm6119_vm5, %v6091_v42, %v8748_v9  ;;  %v5159_v35 = vrot.slane %v5158_v24, 4  ;;  %v4829_v17 = vmax.f32 %v3935_v49, 0.0  ;;  %v7837_v59 = vld [vmem:[%s8054_s8 + $0x3d8] sm:$0xff]  }
 0x22f   : > { %v7132_v33 = vpop.f32.mrb[132].mxu0  ;;  %v4830_v36 = vmax.f32 %v3938_v28, 0.0  ;;  %v5575_v8 = vrot.slane %v5574_v29, 4  ;;  %v4831_v41 = vmax.f32 %v3943_v13, 0.0  ;;  %v5165_v43 = vmax.f32 %v4573_v54, %v4574_v50  ;;  %v7838_v28 = vld [vmem:[%s8054_s8 + $0x7d8] sm:$0xff]  }
 0x230   : > { %v7388_v53 = vpop.f32.mrb[132].mxu1  ;;  %v2926_v39 = vpop.f32.mrb[133].mxu0  ;;  %v5160_v18 = vmax.f32 %v5158_v24, %v5159_v35  ;;  %v4576_v51 = vmax.f32 %v2922_v25, 0.0  ;;  %v4832_v55 = vmax.f32 %v3946_v30, 0.0  ;;  %v2935_v62 = vadd.f32 %v8775_v20, %v7132_v33 }
 0x231   : > { %v2927_v44 = vadd.f32 %v8775_v20, %v2926_v39  ;;  %v3950_v45 = vpop.f32.mrb[133].mxu1  ;;  %v7133_v63 = vpop.f32.mrb[134].mxu0  ;;  %v5581_v9 = vmax.f32 %v4829_v17, %v4830_v36  ;;  %v5576_v7 = vmax.f32 %v5574_v29, %v5575_v8  ;;  %v5166_v22 = vmax.f32 %v5165_v43, %v4575_v19  ;;  %v7839_v36 = vld [vmem:[%s8054_s8 + $0x3e0] sm:$0xff]  }
 0x232   : > { %v3951_v52 = vadd.f32 %v8775_v20, %v3950_v45  ;;  %v7389_v6 = vpop.f32.mrb[134].mxu1  ;;  %v2929_v48 = vpop.f32.mrb[135].mxu0  ;;  %v5161_v58 = vrot.slane %v5160_v18, 2  ;;  %v3959_v27 = vadd.f32 %v8775_v20, %v7388_v53  ;;  %v2938_v3 = vadd.f32 %v8775_v20, %v7133_v63  ;;  %v7840_v53 = vld [vmem:[%s8054_s8 + $0x7e0] sm:$0xff]  }
 0x233   : > { %v4577_v56 = vmax.f32 %v2927_v44, 0.0  ;;  %v3953_v57 = vpop.f32.mrb[135].mxu1  ;;  %v5582_v61 = vmax.f32 %v5581_v9, %v4831_v41  ;;  %v5577_v0 = vrot.slane %v5576_v7, 2  ;;  %v5167_v31 = vmax.f32 %v5166_v22, %v4576_v51 }
 0x234   : > { %v4833_v26 = vmax.f32 %v3951_v52, 0.0  ;;  %7239 = vmatmul.mubr.bf16.gmra.mrb[240].mxu0 %v7833_v40  ;;  %v2930_v1 = vadd.f32 %v8775_v20, %v2929_v48  ;;  %v5162_v2 = vmax.f32 %v5160_v18, %v5161_v58  ;;  %v3954_v5 = vadd.f32 %v8775_v20, %v3953_v57 }
 0x235   : > { %7495 = vmatmul.mubr.bf16.gmra.mrb[240].mxu1 %v7834_v46  ;;  %7242 = vmatprep.mubr.bf16.mxu0 %v7835_v4  ;;  %v5583_v32 = vmax.f32 %v5582_v61, %v4832_v55  ;;  %v5578_v37 = vmax.f32 %v5576_v7, %v5577_v0  ;;  %v5168_v10 = vmax.f32 %v5167_v31, %v4577_v56  ;;  %v4579_v54 = vmax.f32 %v2935_v62, 0.0  ;;  %v7841_v31 = vld [vmem:[%s8054_s8 + $0x3e8] sm:$0xff]  }
 0x236   : > { %7498 = vmatprep.mubr.bf16.mxu1 %v7836_v21  ;;  %v3962_v11 = vadd.f32 %v8775_v20, %v7389_v6  ;;  %v4578_v38 = vmax.f32 %v2930_v1, 0.0  ;;  %v5163_v13 = vrot.slane %v5162_v2, 1  ;;  %v4834_v15 = vmax.f32 %v3954_v5, 0.0 }
 0x237   : > { %v7136_v12 = vpop.f32.mrb[136].mxu0  ;;  %v5584_v14 = vmax.f32 %v5583_v32, %v4833_v26  ;;  %v5579_v23 = vrot.slane %v5578_v37, 1  ;;  %v4835_v30 = vmax.f32 %v3959_v27, 0.0  ;;  %v4580_v40 = vmax.f32 %v2938_v3, 0.0 }
 0x238   : > { %v8803_v16 = vadd.f32 %v8775_v20, %v7136_v12  ;;  %v7392_v19 = vpop.f32.mrb[136].mxu1  ;;  %v2942_v49 = vpop.f32.mrb[137].mxu0  ;;  %v5169_v60 = vmax.f32 %v5168_v10, %v4578_v38  ;;  %v5164_v29 = vmax.f32 %v5162_v2, %v5163_v13  ;;  %v4836_v8 = vmax.f32 %v3962_v11, 0.0  ;;  %v7842_v10 = vld [vmem:[%s8054_s8 + $0x7e8] sm:$0xff]  }
 0x239   : > { %v2943_v42 = vadd.f32 %v8775_v20, %v2942_v49  ;;  %v3966_v24 = vpop.f32.mrb[137].mxu1  ;;  %v7137_v25 = vpop.f32.mrb[138].mxu0  ;;  %v5585_v50 = vmax.f32 %v5584_v14, %v4834_v15  ;;  %v5580_v39 = vmax.f32 %v5578_v37, %v5579_v23  ;;  %v3975_v46 = vadd.f32 %v8775_v20, %v7392_v19 }
 0x23a   : > { %v3967_v33 = vadd.f32 %v8775_v20, %v3966_v24  ;;  %v7393_v35 = vpop.f32.mrb[138].mxu1  ;;  %v2945_v17 = vpop.f32.mrb[139].mxu0  ;;  %v5170_v41 = vmax.f32 %v5169_v60, %v4579_v54  ;;  %v6669_v44 = vpack.c.bf16 %v5164_v29, %v5164_v29  ;;  %v4583_v63 = vmax.f32 %v8803_v16, 0.0  ;;  %v7844_v16 = vld [vmem:[%s8054_s8 + $0x7f0] sm:$0xff]  }
 0x23b   : > { %v3969_v43 = vpop.f32.mrb[139].mxu1  ;;  %v5586_v45 = vmax.f32 %v5585_v50, %v4835_v30  ;;  %v6701_v4 = vpack.c.bf16 %v5580_v39, %v5580_v39  ;;  %v4581_v51 = vmax.f32 %v2943_v42, 0.0  ;;  %v2946_v9 = vadd.f32 %v8775_v20, %v2945_v17 }
 0x23c   : > { %7243 = vmatmul.mubr.bf16.gmra.mrb[244].mxu0 %v7837_v59  ;;  %v5171_v18 = vmax.f32 %v5170_v41, %v4580_v40  ;;  %v6060_v52 = vunpack.c.l.b16 %v6669_v44  ;;  %v4837_v48 = vmax.f32 %v3967_v33, 0.0  ;;  %v3970_v21 = vadd.f32 %v8775_v20, %v3969_v43 }
 0x23d   : > { %7499 = vmatmul.mubr.bf16.gmra.mrb[244].mxu1 %v7838_v28  ;;  %v5587_v6 = vmax.f32 %v5586_v45, %v4836_v8  ;;  %7246 = vmatprep.mubr.bf16.mxu0 %v7839_v36  ;;  %v6092_v7 = vunpack.c.l.b16 %v6701_v4  ;;  %v2954_v22 = vadd.f32 %v8775_v20, %v7137_v25  ;;  %v4582_v56 = vmax.f32 %v2946_v9, 0.0 }
 0x23e   : > { %7502 = vmatprep.mubr.bf16.mxu1 %v7840_v53  ;;  %v5172_v55 = vrot.slane %v5171_v18, 4  ;;  %v6129_v58 = vsel %vm6121_vm6, %v6060_v52, %v8783_v47  ;;  %v3978_v62 = vadd.f32 %v8775_v20, %v7393_v35  ;;  %v4838_v26 = vmax.f32 %v3970_v21, 0.0  ;;  %v7843_v47 = vld [vmem:[%s8054_s8 + $0x3f0] sm:$0xff]  }
 0x23f   : > { %v7140_v57 = vpop.f32.mrb[140].mxu0  ;;  %v5588_v61 = vrot.slane %v5587_v6, 4  ;;  %v6173_v1 = vpack.c.b16 %v6129_v58, %v6129_v58  ;;  %v6157_v2 = vsel %vm6121_vm6, %v6092_v7, %v8788_v34  ;;  %v5178_v3 = vmax.f32 %v4581_v51, %v4582_v56 }
 0x240   : > { %v7396_v0 = vpop.f32.mrb[140].mxu1  ;;  %v2958_v27 = vpop.f32.mrb[141].mxu0  ;;  %v5173_v32 = vmax.f32 %v5171_v18, %v5172_v55  ;;  %v6177_v11 = vpack.c.b16 %v6157_v2, %v6157_v2  ;;  %v4839_v12 = vmax.f32 %v3975_v46, 0.0  ;;  %v5594_v13 = vmax.f32 %v4837_v48, %v4838_v26  ;;  %v7845_v46 = vld [vmem:[%s8054_s8 + $0x3f8] sm:$0xff]  }
 0x241   : > { %v3982_v5 = vpop.f32.mrb[141].mxu1  ;;  %v7141_v37 = vpop.f32.mrb[142].mxu0  ;;  %v5589_v38 = vmax.f32 %v5587_v6, %v5588_v61  ;;  %6189 = vst [vmem:[%s8525_s7 + $0x4] sm:$0xf] %v6173_v1  ;;  %v4584_v49 = vmax.f32 %v2954_v22, 0.0  ;;  %v5179_v59 = vmax.f32 %v5178_v3, %v4583_v63  ;;  %v2959_v34 = vadd.f32 %v8775_v20, %v2958_v27  ;;  %v7846_v48 = vld [vmem:[%s8054_s8 + $0x7f8] sm:$0xff]  }
 0x242   : > { %v7397_v14 = vpop.f32.mrb[142].mxu1  ;;  %v2961_v15 = vpop.f32.mrb[143].mxu0  ;;  %v5174_v19 = vrot.slane %v5173_v32, 2  ;;  %6193 = vst [vmem:[%s8525_s7 + $0x14] sm:$0xf] %v6177_v11  ;;  %v4840_v60 = vmax.f32 %v3978_v62, 0.0  ;;  %v5595_v42 = vmax.f32 %v5594_v13, %v4839_v12  ;;  %v3983_v24 = vadd.f32 %v8775_v20, %v3982_v5 }
 0x243   : > { %v3985_v23 = vpop.f32.mrb[143].mxu1  ;;  %v5590_v54 = vrot.slane %v5589_v38, 2  ;;  %v4585_v28 = vmax.f32 %v2959_v34, 0.0  ;;  %v5180_v29 = vmax.f32 %v5179_v59, %v4584_v49  ;;  %v2967_v50 = vadd.f32 %v8775_v20, %v7140_v57 }
 0x244   : > { %7247 = vmatmul.mubr.bf16.gmra.mrb[248].mxu0 %v7841_v31  ;;  %v5175_v25 = vmax.f32 %v5173_v32, %v5174_v19  ;;  %v4841_v33 = vmax.f32 %v3983_v24, 0.0  ;;  %v5596_v35 = vmax.f32 %v5595_v42, %v4840_v60  ;;  %v3991_v36 = vadd.f32 %v8775_v20, %v7396_v0 }
 0x245   : > { %7503 = vmatmul.mubr.bf16.gmra.mrb[248].mxu1 %v7842_v10  ;;  %7250 = vmatprep.mubr.bf16.mxu0 %v7843_v47  ;;  %v5591_v30 = vmax.f32 %v5589_v38, %v5590_v54  ;;  %v5181_v53 = vmax.f32 %v5180_v29, %v4585_v28  ;;  %v2962_v39 = vadd.f32 %v8775_v20, %v2961_v15  ;;  %v4587_v57 = vmax.f32 %v2967_v50, 0.0 }
 0x246   : > { %7506 = vmatprep.mubr.bf16.mxu1 %v7844_v16  ;;  %v5176_v17 = vrot.slane %v5175_v25, 1  ;;  %v5597_v41 = vmax.f32 %v5596_v35, %v4841_v33  ;;  %v2970_v43 = vadd.f32 %v8775_v20, %v7141_v37  ;;  %v3986_v44 = vadd.f32 %v8775_v20, %v3985_v23 }
 0x247   : > { %v7144_v40 = vpop.f32.mrb[144].mxu0  ;;  %v5592_v8 = vrot.slane %v5591_v30, 1  ;;  %v3994_v18 = vadd.f32 %v8775_v20, %v7397_v14  ;;  %v4586_v51 = vmax.f32 %v2962_v39, 0.0  ;;  %v4843_v58 = vmax.f32 %v3991_v36, 0.0 }
 0x248   : > { %v7400_v45 = vpop.f32.mrb[144].mxu1  ;;  %v2974_v63 = vpop.f32.mrb[145].mxu0  ;;  %v5177_v4 = vmax.f32 %v5175_v25, %v5176_v17  ;;  %v2983_v9 = vadd.f32 %v8775_v20, %v7144_v40  ;;  %v4842_v7 = vmax.f32 %v3986_v44, 0.0  ;;  %v4588_v27 = vmax.f32 %v2970_v43, 0.0 }
 0x249   : > { %v3998_v52 = vpop.f32.mrb[145].mxu1  ;;  %v7145_v6 = vpop.f32.mrb[146].mxu0  ;;  %v5593_v21 = vmax.f32 %v5591_v30, %v5592_v8  ;;  %v4007_v55 = vadd.f32 %v8775_v20, %v7400_v45  ;;  %v5182_v61 = vmax.f32 %v5181_v53, %v4586_v51  ;;  %v2975_v62 = vadd.f32 %v8775_v20, %v2974_v63 }
 0x24a   : > { %v7401_v22 = vpop.f32.mrb[146].mxu1  ;;  %v2977_v56 = vpop.f32.mrb[147].mxu0  ;;  %v6670_v0 = vpack.c.bf16 %v5177_v4, %v5177_v4  ;;  %v5598_v31 = vmax.f32 %v5597_v41, %v4842_v7  ;;  %v3999_v1 = vadd.f32 %v8775_v20, %v3998_v52  ;;  %v4844_v32 = vmax.f32 %v3994_v18, 0.0 }
 0x24b   : > { %v4001_v26 = vpop.f32.mrb[147].mxu1  ;;  %v6702_v2 = vpack.c.bf16 %v5593_v21, %v5593_v21  ;;  %v5183_v3 = vmax.f32 %v5182_v61, %v4587_v57  ;;  %v4591_v5 = vmax.f32 %v2983_v9, 0.0  ;;  %v4847_v10 = vmax.f32 %v4007_v55, 0.0 }
 0x24c   : > { %7251 = vmatmul.mubr.bf16.gmra.mrb[252].mxu0 %v7845_v46  ;;  %v5599_v37 = vmax.f32 %v5598_v31, %v4843_v58  ;;  %v2986_v47 = vadd.f32 %v8775_v20, %v7145_v6  ;;  %v2978_v11 = vadd.f32 %v8775_v20, %v2977_v56  ;;  %v4589_v12 = vmax.f32 %v2975_v62, 0.0 }
 0x24d   : > { %7507 = vmatmul.mubr.bf16.gmra.mrb[252].mxu1 %v7846_v48  ;;  %v5184_v38 = vmax.f32 %v5183_v3, %v4588_v27  ;;  %v4010_v13 = vadd.f32 %v8775_v20, %v7401_v22  ;;  %v4002_v14 = vadd.f32 %v8775_v20, %v4001_v26  ;;  %v8845_v16 = vunpack.c.l.b16 %v6670_v0 }
 0x24e   : > { %v5600_v19 = vmax.f32 %v5599_v37, %v4844_v32  ;;  %v4845_v49 = vmax.f32 %v3999_v1, 0.0  ;;  %v4590_v59 = vmax.f32 %v2978_v11, 0.0  ;;  %v8847_v54 = vunpack.c.l.b16 %v6702_v2 }
 0x24f   : > { %v7148_v15 = vpop.f32.mrb[148].mxu0  ;;  %v5185_v60 = vrot.slane %v5184_v38, 4  ;;  %v4846_v42 = vmax.f32 %v4002_v14, 0.0  ;;  %v4592_v30 = vmax.f32 %v2986_v47, 0.0  ;;  %v4848_v53 = vmax.f32 %v4010_v13, 0.0 }
 0x250   : > { %v7404_v34 = vpop.f32.mrb[148].mxu1  ;;  %v2990_v23 = vpop.f32.mrb[149].mxu0  ;;  %v5601_v29 = vrot.slane %v5600_v19, 4  ;;  %v5191_v50 = vmax.f32 %v4589_v12, %v4590_v59  ;;  %v2999_v40 = vadd.f32 %v8775_v20, %v7148_v15 }
 0x251   : > { %v2991_v24 = vadd.f32 %v8775_v20, %v2990_v23  ;;  %v4014_v25 = vpop.f32.mrb[149].mxu1  ;;  %v7149_v28 = vpop.f32.mrb[150].mxu0  ;;  %v5186_v36 = vmax.f32 %v5184_v38, %v5185_v60  ;;  %v5607_v39 = vmax.f32 %v4845_v49, %v4846_v42  ;;  %v4023_v44 = vadd.f32 %v8775_v20, %v7404_v34 }
 0x252   : > { %v4015_v33 = vadd.f32 %v8775_v20, %v4014_v25  ;;  %v7405_v35 = vpop.f32.mrb[150].mxu1  ;;  %v2993_v17 = vpop.f32.mrb[151].mxu0  ;;  %v5602_v41 = vmax.f32 %v5600_v19, %v5601_v29  ;;  %v5192_v43 = vmax.f32 %v5191_v50, %v4591_v5  ;;  %v3002_v52 = vadd.f32 %v8775_v20, %v7149_v28 }
 0x253   : > { %v4017_v8 = vpop.f32.mrb[151].mxu1  ;;  %v4593_v45 = vmax.f32 %v2991_v24, 0.0  ;;  %v5187_v63 = vrot.slane %v5186_v36, 2  ;;  %v5608_v46 = vmax.f32 %v5607_v39, %v4847_v10  ;;  %v2994_v18 = vadd.f32 %v8775_v20, %v2993_v17 }
 0x254   : > { %v4849_v4 = vmax.f32 %v4015_v33, 0.0  ;;  %v5603_v51 = vrot.slane %v5602_v41, 2  ;;  %v5193_v9 = vmax.f32 %v5192_v43, %v4592_v30  ;;  %v4018_v6 = vadd.f32 %v8775_v20, %v4017_v8 }
 0x255   : > { %v5188_v48 = vmax.f32 %v5186_v36, %v5187_v63  ;;  %v5609_v21 = vmax.f32 %v5608_v46, %v4848_v53  ;;  %v4026_v7 = vadd.f32 %v8775_v20, %v7405_v35  ;;  %v4594_v55 = vmax.f32 %v2994_v18, 0.0 }
 0x256   : > { %v5604_v56 = vmax.f32 %v5602_v41, %v5603_v51  ;;  %v5194_v57 = vmax.f32 %v5193_v9, %v4593_v45  ;;  %v4850_v58 = vmax.f32 %v4018_v6, 0.0  ;;  %v4595_v27 = vmax.f32 %v2999_v40, 0.0 }
 0x257   : > { %v7152_v22 = vpop.f32.mrb[152].mxu0  ;;  %v5189_v0 = vrot.slane %v5188_v48, 1  ;;  %v5610_v31 = vmax.f32 %v5609_v21, %v4849_v4  ;;  %v4851_v5 = vmax.f32 %v4023_v44, 0.0  ;;  %v4596_v37 = vmax.f32 %v3002_v52, 0.0 }
 0x258   : > { %v3015_v61 = vadd.f32 %v8775_v20, %v7152_v22  ;;  %v7408_v62 = vpop.f32.mrb[152].mxu1  ;;  %v3006_v26 = vpop.f32.mrb[153].mxu0  ;;  %v5605_v3 = vrot.slane %v5604_v56, 1  ;;  %v5195_v10 = vmax.f32 %v5194_v57, %v4594_v55  ;;  %v4852_v12 = vmax.f32 %v4026_v7, 0.0 }
 0x259   : > { %v3007_v1 = vadd.f32 %v8775_v20, %v3006_v26  ;;  %v4030_v2 = vpop.f32.mrb[153].mxu1  ;;  %v7153_v32 = vpop.f32.mrb[154].mxu0  ;;  %v5190_v38 = vmax.f32 %v5188_v48, %v5189_v0  ;;  %v5611_v13 = vmax.f32 %v5610_v31, %v4850_v58  ;;  %v4039_v14 = vadd.f32 %v8775_v20, %v7408_v62 }
 0x25a   : > { %v7409_v47 = vpop.f32.mrb[154].mxu1  ;;  %v3009_v11 = vpop.f32.mrb[155].mxu0  ;;  %v5606_v19 = vmax.f32 %v5604_v56, %v5605_v3  ;;  %v5196_v49 = vmax.f32 %v5195_v10, %v4595_v27  ;;  %v4599_v59 = vmax.f32 %v3015_v61, 0.0  ;;  %v4031_v34 = vadd.f32 %v8775_v20, %v4030_v2 }
 0x25b   : > { %v4033_v15 = vpop.f32.mrb[155].mxu1  ;;  %v6671_v23 = vpack.c.bf16 %v5190_v38, %v5190_v38  ;;  %v5612_v60 = vmax.f32 %v5611_v13, %v4851_v5  ;;  %v4597_v42 = vmax.f32 %v3007_v1, 0.0  ;;  %v3010_v24 = vadd.f32 %v8775_v20, %v3009_v11 }
 0x25c   : > { %v6703_v25 = vpack.c.bf16 %v5606_v19, %v5606_v19  ;;  %v5197_v28 = vmax.f32 %v5196_v49, %v4596_v37  ;;  %v3018_v29 = vadd.f32 %v8775_v20, %v7153_v32  ;;  %v4034_v30 = vadd.f32 %v8775_v20, %v4033_v15 }
 0x25d   : > { %v6062_v50 = vunpack.c.l.b16 %v6671_v23  ;;  %v5613_v33 = vmax.f32 %v5612_v60, %v4852_v12  ;;  %v4042_v35 = vadd.f32 %v8775_v20, %v7409_v47  ;;  %v4598_v17 = vmax.f32 %v3010_v24, 0.0 }
 0x25e   : > { %v6094_v53 = vunpack.c.l.b16 %v6703_v25  ;;  %v5198_v39 = vrot.slane %v5197_v28, 4  ;;  %v4853_v40 = vmax.f32 %v4031_v34, 0.0  ;;  %v4854_v8 = vmax.f32 %v4034_v30, 0.0 }
 0x25f   : > { %v7156_v36 = vpop.f32.mrb[156].mxu0  ;;  %v8867_v44 = vsel %vm6109_vm0, %v6062_v50, %v8845_v16  ;;  %v5614_v45 = vrot.slane %v5613_v33, 4  ;;  %v4855_v63 = vmax.f32 %v4039_v14, 0.0  ;;  %v5204_v46 = vmax.f32 %v4597_v42, %v4598_v17 }
 0x260   : > { %v7412_v41 = vpop.f32.mrb[156].mxu1  ;;  %v3022_v43 = vpop.f32.mrb[157].mxu0  ;;  %v8871_v51 = vsel %vm6109_vm0, %v6094_v53, %v8847_v54  ;;  %v5199_v9 = vmax.f32 %v5197_v28, %v5198_v39  ;;  %v4600_v52 = vmax.f32 %v3018_v29, 0.0  ;;  %v5620_v6 = vmax.f32 %v4853_v40, %v4854_v8 }
 0x261   : > { %v4046_v4 = vpop.f32.mrb[157].mxu1  ;;  %v7157_v18 = vpop.f32.mrb[158].mxu0  ;;  %v5615_v7 = vmax.f32 %v5613_v33, %v5614_v45  ;;  %v4856_v55 = vmax.f32 %v4042_v35, 0.0  ;;  %v5205_v22 = vmax.f32 %v5204_v46, %v4599_v59  ;;  %v3023_v16 = vadd.f32 %v8775_v20, %v3022_v43 }
 0x262   : > { %v7413_v48 = vpop.f32.mrb[158].mxu1  ;;  %v3025_v21 = vpop.f32.mrb[159].mxu0  ;;  %v5200_v57 = vrot.slane %v5199_v9, 2  ;;  %v5621_v58 = vmax.f32 %v5620_v6, %v4855_v63  ;;  %v3031_v61 = vadd.f32 %v8775_v20, %v7156_v36  ;;  %v4047_v62 = vadd.f32 %v8775_v20, %v4046_v4 }
 0x263   : > { %v4049_v56 = vpop.f32.mrb[159].mxu1  ;;  %v5616_v26 = vrot.slane %v5615_v7, 2  ;;  %v4055_v54 = vadd.f32 %v8775_v20, %v7412_v41  ;;  %v4601_v0 = vmax.f32 %v3023_v16, 0.0  ;;  %v5206_v27 = vmax.f32 %v5205_v22, %v4600_v52 }
 0x264   : > { %v5201_v31 = vmax.f32 %v5199_v9, %v5200_v57  ;;  %v4857_v1 = vmax.f32 %v4047_v62, 0.0  ;;  %v5622_v2 = vmax.f32 %v5621_v58, %v4856_v55  ;;  %v3034_v32 = vadd.f32 %v8775_v20, %v7157_v18 }
 0x265   : > { %v5617_v3 = vmax.f32 %v5615_v7, %v5616_v26  ;;  %v5207_v5 = vmax.f32 %v5206_v27, %v4601_v0  ;;  %v4058_v37 = vadd.f32 %v8775_v20, %v7413_v48  ;;  %v3026_v10 = vadd.f32 %v8775_v20, %v3025_v21 }
 0x266   : > { %v5202_v11 = vrot.slane %v5201_v31, 1  ;;  %v5623_v38 = vmax.f32 %v5622_v2, %v4857_v1  ;;  %v4050_v12 = vadd.f32 %v8775_v20, %v4049_v56  ;;  %v4603_v49 = vmax.f32 %v3031_v61, 0.0 }
 0x267   : > { %v7160_v47 = vpop.f32.mrb[160].mxu0  ;;  %v5618_v19 = vrot.slane %v5617_v3, 1  ;;  %v4602_v59 = vmax.f32 %v3026_v10, 0.0  ;;  %v4859_v24 = vmax.f32 %v4055_v54, 0.0  ;;  %v4604_v25 = vmax.f32 %v3034_v32, 0.0 }
 0x268   : > { %v3047_v13 = vadd.f32 %v8775_v20, %v7160_v47  ;;  %v7416_v14 = vpop.f32.mrb[160].mxu1  ;;  %v3038_v15 = vpop.f32.mrb[161].mxu0  ;;  %v5203_v42 = vmax.f32 %v5201_v31, %v5202_v11  ;;  %v4858_v28 = vmax.f32 %v4050_v12, 0.0  ;;  %v4860_v33 = vmax.f32 %v4058_v37, 0.0 }
 0x269   : > { %v3039_v34 = vadd.f32 %v8775_v20, %v3038_v15  ;;  %v4062_v23 = vpop.f32.mrb[161].mxu1  ;;  %v7161_v60 = vpop.f32.mrb[162].mxu0  ;;  %v5619_v50 = vmax.f32 %v5617_v3, %v5618_v19  ;;  %v5208_v35 = vmax.f32 %v5207_v5, %v4602_v59  ;;  %v4071_v17 = vadd.f32 %v8775_v20, %v7416_v14 }
 0x26a   : > { %v7417_v29 = vpop.f32.mrb[162].mxu1  ;;  %v3041_v30 = vpop.f32.mrb[163].mxu0  ;;  %v6672_v53 = vpack.c.bf16 %v5203_v42, %v5203_v42  ;;  %v5624_v39 = vmax.f32 %v5623_v38, %v4858_v28  ;;  %v4607_v40 = vmax.f32 %v3047_v13, 0.0  ;;  %v4063_v8 = vadd.f32 %v8775_v20, %v4062_v23 }
 0x26b   : > { %v4065_v36 = vpop.f32.mrb[163].mxu1  ;;  %v6704_v41 = vpack.c.bf16 %v5619_v50, %v5619_v50  ;;  %v5209_v43 = vmax.f32 %v5208_v35, %v4603_v49  ;;  %v4605_v45 = vmax.f32 %v3039_v34, 0.0  ;;  %v3042_v63 = vadd.f32 %v8775_v20, %v3041_v30 }
 0x26c   : > { %v6063_v46 = vunpack.c.l.b16 %v6672_v53  ;;  %v5625_v4 = vmax.f32 %v5624_v39, %v4859_v24  ;;  %v3050_v18 = vadd.f32 %v8775_v20, %v7161_v60  ;;  %v4066_v9 = vadd.f32 %v8775_v20, %v4065_v36 }
 0x26d   : > { %v6095_v52 = vunpack.c.l.b16 %v6704_v41  ;;  %v5210_v6 = vmax.f32 %v5209_v43, %v4604_v25  ;;  %v4074_v48 = vadd.f32 %v8775_v20, %v7417_v29  ;;  %v4606_v21 = vmax.f32 %v3042_v63, 0.0 }
 0x26e   : > { %v8891_v55 = vsel %vm6111_vm1, %v6063_v46, %v8867_v44  ;;  %v5626_v22 = vmax.f32 %v5625_v4, %v4860_v33  ;;  %v4861_v16 = vmax.f32 %v4063_v8, 0.0  ;;  %v4862_v56 = vmax.f32 %v4066_v9, 0.0 }
 0x26f   : > { %v7164_v7 = vpop.f32.mrb[164].mxu0  ;;  %v8895_v61 = vsel %vm6111_vm1, %v6095_v52, %v8871_v51  ;;  %v5211_v62 = vrot.slane %v5210_v6, 4  ;;  %v4863_v26 = vmax.f32 %v4071_v17, 0.0  ;;  %v5217_v54 = vmax.f32 %v4605_v45, %v4606_v21 }
 0x270   : > { %v7420_v57 = vpop.f32.mrb[164].mxu1  ;;  %v3054_v58 = vpop.f32.mrb[165].mxu0  ;;  %v5627_v31 = vrot.slane %v5626_v22, 4  ;;  %v4608_v1 = vmax.f32 %v3050_v18, 0.0  ;;  %v5633_v2 = vmax.f32 %v4861_v16, %v4862_v56  ;;  %v4864_v37 = vmax.f32 %v4074_v48, 0.0 }
 0x271   : > { %v4078_v0 = vpop.f32.mrb[165].mxu1  ;;  %v7165_v27 = vpop.f32.mrb[166].mxu0  ;;  %v3055_v44 = vadd.f32 %v8775_v20, %v3054_v58  ;;  %v5212_v5 = vmax.f32 %v5210_v6, %v5211_v62  ;;  %v5218_v10 = vmax.f32 %v5217_v54, %v4607_v40  ;;  %v3063_v12 = vadd.f32 %v8775_v20, %v7164_v7 }
 0x272   : > { %v7421_v32 = vpop.f32.mrb[166].mxu1  ;;  %v3057_v3 = vpop.f32.mrb[167].mxu0  ;;  %v4079_v47 = vadd.f32 %v8775_v20, %v4078_v0  ;;  %v5628_v51 = vmax.f32 %v5626_v22, %v5627_v31  ;;  %v5634_v38 = vmax.f32 %v5633_v2, %v4863_v26  ;;  %v4087_v15 = vadd.f32 %v8775_v20, %v7420_v57 }
 0x273   : > { %v4081_v11 = vpop.f32.mrb[167].mxu1  ;;  %v4609_v13 = vmax.f32 %v3055_v44, 0.0  ;;  %v5213_v14 = vrot.slane %v5212_v5, 2  ;;  %v5219_v19 = vmax.f32 %v5218_v10, %v4608_v1  ;;  %v3066_v23 = vadd.f32 %v8775_v20, %v7165_v27 }
 0x274   : > { %v4865_v49 = vmax.f32 %v4079_v47, 0.0  ;;  %v5629_v59 = vrot.slane %v5628_v51, 2  ;;  %v5635_v34 = vmax.f32 %v5634_v38, %v4864_v37  ;;  %v3058_v60 = vadd.f32 %v8775_v20, %v3057_v3 }
 0x275   : > { %v5214_v42 = vmax.f32 %v5212_v5, %v5213_v14  ;;  %v5220_v24 = vmax.f32 %v5219_v19, %v4609_v13  ;;  %v4090_v25 = vadd.f32 %v8775_v20, %v7421_v32  ;;  %v4082_v28 = vadd.f32 %v8775_v20, %v4081_v11 }
 0x276   : > { %v5630_v30 = vmax.f32 %v5628_v51, %v5629_v59  ;;  %v5636_v50 = vmax.f32 %v5635_v34, %v4865_v49  ;;  %v4610_v33 = vmax.f32 %v3058_v60, 0.0  ;;  %v4611_v39 = vmax.f32 %v3063_v12, 0.0 }
 0x277   : > { %v7168_v29 = vpop.f32.mrb[168].mxu0  ;;  %v5215_v53 = vrot.slane %v5214_v42, 1  ;;  %v4866_v40 = vmax.f32 %v4082_v28, 0.0  ;;  %v4867_v63 = vmax.f32 %v4087_v15, 0.0  ;;  %v4612_v46 = vmax.f32 %v3066_v23, 0.0 }
 0x278   : > { %v3079_v35 = vadd.f32 %v8775_v20, %v7168_v29  ;;  %v7424_v17 = vpop.f32.mrb[168].mxu1  ;;  %v3070_v36 = vpop.f32.mrb[169].mxu0  ;;  %v5631_v45 = vrot.slane %v5630_v30, 1  ;;  %v5221_v4 = vmax.f32 %v5220_v24, %v4610_v33  ;;  %v4868_v6 = vmax.f32 %v4090_v25, 0.0 }
 0x279   : > { %v3071_v8 = vadd.f32 %v8775_v20, %v3070_v36  ;;  %v4094_v41 = vpop.f32.mrb[169].mxu1  ;;  %v7169_v43 = vpop.f32.mrb[170].mxu0  ;;  %v5216_v52 = vmax.f32 %v5214_v42, %v5215_v53  ;;  %v5637_v48 = vmax.f32 %v5636_v50, %v4866_v40  ;;  %v4103_v21 = vadd.f32 %v8775_v20, %v7424_v17 }
 0x27a   : > { %v7425_v18 = vpop.f32.mrb[170].mxu1  ;;  %v3073_v9 = vpop.f32.mrb[171].mxu0  ;;  %v5632_v22 = vmax.f32 %v5630_v30, %v5631_v45  ;;  %v5222_v16 = vmax.f32 %v5221_v4, %v4611_v39  ;;  %v4615_v56 = vmax.f32 %v3079_v35, 0.0  ;;  %v4095_v57 = vadd.f32 %v8775_v20, %v4094_v41 }
 0x27b   : > { %v4097_v7 = vpop.f32.mrb[171].mxu1  ;;  %v6673_v58 = vpack.c.bf16 %v5216_v52, %v5216_v52  ;;  %v5638_v62 = vmax.f32 %v5637_v48, %v4867_v63  ;;  %v4613_v26 = vmax.f32 %v3071_v8, 0.0  ;;  %v3074_v54 = vadd.f32 %v8775_v20, %v3073_v9 }
 0x27c   : > { %v6705_v0 = vpack.c.bf16 %v5632_v22, %v5632_v22  ;;  %v5223_v27 = vmax.f32 %v5222_v16, %v4612_v46  ;;  %v3082_v31 = vadd.f32 %v8775_v20, %v7169_v43  ;;  %v4098_v1 = vadd.f32 %v8775_v20, %v4097_v7 }
 0x27d   : > { %v6064_v2 = vunpack.c.l.b16 %v6673_v58  ;;  %v5639_v44 = vmax.f32 %v5638_v62, %v4868_v6  ;;  %v4106_v32 = vadd.f32 %v8775_v20, %v7425_v18  ;;  %v4614_v3 = vmax.f32 %v3074_v54, 0.0 }
 0x27e   : > { %v6096_v37 = vunpack.c.l.b16 %v6705_v0  ;;  %v5224_v10 = vrot.slane %v5223_v27, 4  ;;  %v4869_v47 = vmax.f32 %v4095_v57, 0.0  ;;  %v4870_v11 = vmax.f32 %v4098_v1, 0.0 }
 0x27f   : > { %v7172_v5 = vpop.f32.mrb[172].mxu0  ;;  %v8915_v12 = vsel %vm6113_vm2, %v6064_v2, %v8891_v55  ;;  %v5640_v13 = vrot.slane %v5639_v44, 4  ;;  %v4871_v14 = vmax.f32 %v4103_v21, 0.0  ;;  %v5230_v15 = vmax.f32 %v4613_v26, %v4614_v3 }
 0x280   : > { %v7428_v51 = vpop.f32.mrb[172].mxu1  ;;  %v3086_v38 = vpop.f32.mrb[173].mxu0  ;;  %v8919_v59 = vsel %vm6113_vm2, %v6096_v37, %v8895_v61  ;;  %v5225_v34 = vmax.f32 %v5223_v27, %v5224_v10  ;;  %v4616_v23 = vmax.f32 %v3082_v31, 0.0  ;;  %v5646_v60 = vmax.f32 %v4869_v47, %v4870_v11  ;;  %v8935_v11 = vld [vmem:[%s9195_s2] ss:$0 sm:$0xff] }
 0x281   : > { %v4110_v19 = vpop.f32.mrb[173].mxu1  ;;  %v7173_v49 = vpop.f32.mrb[174].mxu0  ;;  %v5641_v25 = vmax.f32 %v5639_v44, %v5640_v13  ;;  %v4872_v28 = vmax.f32 %v4106_v32, 0.0  ;;  %v5231_v29 = vmax.f32 %v5230_v15, %v4615_v56  ;;  %v3087_v55 = vadd.f32 %v8775_v20, %v3086_v38 }
 0x282   : > { %v7429_v42 = vpop.f32.mrb[174].mxu1  ;;  %v3089_v24 = vpop.f32.mrb[175].mxu0  ;;  %v5226_v50 = vrot.slane %v5225_v34, 2  ;;  %v5647_v33 = vmax.f32 %v5646_v60, %v4871_v14  ;;  %v3095_v35 = vadd.f32 %v8775_v20, %v7172_v5  ;;  %v4111_v17 = vadd.f32 %v8775_v20, %v4110_v19 }
 0x283   : > { %v4113_v30 = vpop.f32.mrb[175].mxu1  ;;  %v5642_v36 = vrot.slane %v5641_v25, 2  ;;  %v4119_v61 = vadd.f32 %v8775_v20, %v7428_v51  ;;  %v4617_v53 = vmax.f32 %v3087_v55, 0.0  ;;  %v5232_v39 = vmax.f32 %v5231_v29, %v4616_v23 }
 0x284   : > { %v5227_v40 = vmax.f32 %v5225_v34, %v5226_v50  ;;  %v4873_v8 = vmax.f32 %v4111_v17, 0.0  ;;  %v5648_v41 = vmax.f32 %v5647_v33, %v4872_v28  ;;  %v3098_v43 = vadd.f32 %v8775_v20, %v7173_v49 }
 0x285   : > { %v5643_v45 = vmax.f32 %v5641_v25, %v5642_v36  ;;  %v5233_v63 = vmax.f32 %v5232_v39, %v4617_v53  ;;  %v4122_v46 = vadd.f32 %v8775_v20, %v7429_v42  ;;  %v3090_v4 = vadd.f32 %v8775_v20, %v3089_v24 }
 0x286   : > { %v5228_v9 = vrot.slane %v5227_v40, 1  ;;  %v5649_v52 = vmax.f32 %v5648_v41, %v4873_v8  ;;  %v4114_v6 = vadd.f32 %v8775_v20, %v4113_v30  ;;  %v4619_v16 = vmax.f32 %v3095_v35, 0.0 }
 0x287   : > { %v7176_v18 = vpop.f32.mrb[176].mxu0  ;;  %v5644_v22 = vrot.slane %v5643_v45, 1  ;;  %v4618_v56 = vmax.f32 %v3090_v4, 0.0  ;;  %v4875_v54 = vmax.f32 %v4119_v61, 0.0  ;;  %v4620_v0 = vmax.f32 %v3098_v43, 0.0 }
 0x288   : > { %v3111_v48 = vadd.f32 %v8775_v20, %v7176_v18  ;;  %v7432_v21 = vpop.f32.mrb[176].mxu1  ;;  %v3102_v7 = vpop.f32.mrb[177].mxu0  ;;  %v5229_v26 = vmax.f32 %v5227_v40, %v5228_v9  ;;  %v4874_v27 = vmax.f32 %v4114_v6, 0.0  ;;  %v4876_v44 = vmax.f32 %v4122_v46, 0.0 }
 0x289   : > { %v3103_v57 = vadd.f32 %v8775_v20, %v3102_v7  ;;  %v4126_v58 = vpop.f32.mrb[177].mxu1  ;;  %v7177_v62 = vpop.f32.mrb[178].mxu0  ;;  %v5645_v2 = vmax.f32 %v5643_v45, %v5644_v22  ;;  %v5234_v32 = vmax.f32 %v5233_v63, %v4618_v56  ;;  %v4135_v3 = vadd.f32 %v8775_v20, %v7432_v21 }
 0x28a   : > { %v7433_v31 = vpop.f32.mrb[178].mxu1  ;;  %v3105_v1 = vpop.f32.mrb[179].mxu0  ;;  %v6674_v37 = vpack.c.bf16 %v5229_v26, %v5229_v26  ;;  %v5650_v10 = vmax.f32 %v5649_v52, %v4874_v27  ;;  %v4623_v47 = vmax.f32 %v3111_v48, 0.0  ;;  %v4127_v51 = vadd.f32 %v8935_v11, %v4126_v58 }
 0x28b   : > { %v4129_v5 = vpop.f32.mrb[179].mxu1  ;;  %v6706_v38 = vpack.c.bf16 %v5645_v2, %v5645_v2  ;;  %v5235_v13 = vmax.f32 %v5234_v32, %v4619_v16  ;;  %v4621_v14 = vmax.f32 %v3103_v57, 0.0  ;;  %v3106_v15 = vadd.f32 %v8935_v11, %v3105_v1 }
 0x28c   : > { %v6065_v19 = vunpack.c.l.b16 %v6674_v37  ;;  %v5651_v49 = vmax.f32 %v5650_v10, %v4875_v54  ;;  %v3114_v20 = vadd.f32 %v8935_v11, %v7177_v62  ;;  %v4130_v34 = vadd.f32 %v8935_v11, %v4129_v5 }
 0x28d   : > { %v6097_v23 = vunpack.c.l.b16 %v6706_v38  ;;  %v5236_v60 = vmax.f32 %v5235_v13, %v4620_v0  ;;  %v4138_v42 = vadd.f32 %v8935_v11, %v7433_v31  ;;  %v4622_v24 = vmax.f32 %v3106_v15, 0.0 }
 0x28e   : > { %v8944_v28 = vsel %vm6115_vm3, %v6065_v19, %v8915_v12  ;;  %v5652_v29 = vmax.f32 %v5651_v49, %v4876_v44  ;;  %v4877_v55 = vmax.f32 %v4127_v51, 0.0  ;;  %v4878_v30 = vmax.f32 %v4130_v34, 0.0 }
 0x28f   : > { %v7180_v25 = vpop.f32.mrb[180].mxu0  ;;  %v8948_v35 = vsel %vm6115_vm3, %v6097_v23, %v8919_v59  ;;  %v5237_v17 = vrot.slane %v5236_v60, 4  ;;  %v4879_v36 = vmax.f32 %v4135_v3, 0.0  ;;  %v5243_v61 = vmax.f32 %v4621_v14, %v4622_v24 }
 0x290   : > { %v7436_v50 = vpop.f32.mrb[180].mxu1  ;;  %v3118_v33 = vpop.f32.mrb[181].mxu0  ;;  %v5653_v40 = vrot.slane %v5652_v29, 4  ;;  %v4624_v8 = vmax.f32 %v3114_v20, 0.0  ;;  %v5659_v41 = vmax.f32 %v4877_v55, %v4878_v30  ;;  %v4880_v46 = vmax.f32 %v4138_v42, 0.0 }
 0x291   : > { %v4142_v53 = vpop.f32.mrb[181].mxu1  ;;  %v7181_v39 = vpop.f32.mrb[182].mxu0  ;;  %v3119_v12 = vadd.f32 %v8935_v11, %v3118_v33  ;;  %v5238_v63 = vmax.f32 %v5236_v60, %v5237_v17  ;;  %v5244_v4 = vmax.f32 %v5243_v61, %v4623_v47  ;;  %v3127_v6 = vadd.f32 %v8935_v11, %v7180_v25 }
 0x292   : > { %v7437_v43 = vpop.f32.mrb[182].mxu1  ;;  %v3121_v45 = vpop.f32.mrb[183].mxu0  ;;  %v4143_v18 = vadd.f32 %v8935_v11, %v4142_v53  ;;  %v5654_v59 = vmax.f32 %v5652_v29, %v5653_v40  ;;  %v5660_v52 = vmax.f32 %v5659_v41, %v4879_v36  ;;  %v4151_v7 = vadd.f32 %v8935_v11, %v7436_v50 }
 0x293   : > { %v4145_v9 = vpop.f32.mrb[183].mxu1  ;;  %v4625_v48 = vmax.f32 %v3119_v12, 0.0  ;;  %v5239_v21 = vrot.slane %v5238_v63, 2  ;;  %v5245_v22 = vmax.f32 %v5244_v4, %v4624_v8  ;;  %v3130_v58 = vadd.f32 %v8935_v11, %v7181_v39 }
 0x294   : > { %v4881_v16 = vmax.f32 %v4143_v18, 0.0  ;;  %v5655_v56 = vrot.slane %v5654_v59, 2  ;;  %v5661_v57 = vmax.f32 %v5660_v52, %v4880_v46  ;;  %v3122_v62 = vadd.f32 %v8935_v11, %v3121_v45 }
 0x295   : > { %v5240_v26 = vmax.f32 %v5238_v63, %v5239_v21  ;;  %v5246_v54 = vmax.f32 %v5245_v22, %v4625_v48  ;;  %v4154_v0 = vadd.f32 %v8935_v11, %v7437_v43  ;;  %v4146_v27 = vadd.f32 %v8935_v11, %v4145_v9 }
 0x296   : > { %v5656_v1 = vmax.f32 %v5654_v59, %v5655_v56  ;;  %v5662_v2 = vmax.f32 %v5661_v57, %v4881_v16  ;;  %v4626_v44 = vmax.f32 %v3122_v62, 0.0  ;;  %v4627_v10 = vmax.f32 %v3127_v6, 0.0 }
 0x297   : > { %v7184_v31 = vpop.f32.mrb[184].mxu0  ;;  %v5241_v37 = vrot.slane %v5240_v26, 1  ;;  %v4882_v47 = vmax.f32 %v4146_v27, 0.0  ;;  %v4883_v15 = vmax.f32 %v4151_v7, 0.0  ;;  %v4628_v19 = vmax.f32 %v3130_v58, 0.0 }
 0x298   : > { %v3143_v32 = vadd.f32 %v8935_v11, %v7184_v31  ;;  %v7440_v3 = vpop.f32.mrb[184].mxu1  ;;  %v3134_v5 = vpop.f32.mrb[185].mxu0  ;;  %v5657_v14 = vrot.slane %v5656_v1, 1  ;;  %v5247_v49 = vmax.f32 %v5246_v54, %v4626_v44  ;;  %v4884_v60 = vmax.f32 %v4154_v0, 0.0 }
 0x299   : > { %v3135_v51 = vadd.f32 %v8935_v11, %v3134_v5  ;;  %v4158_v38 = vpop.f32.mrb[185].mxu1  ;;  %v7185_v13 = vpop.f32.mrb[186].mxu0  ;;  %v5242_v23 = vmax.f32 %v5240_v26, %v5241_v37  ;;  %v5663_v42 = vmax.f32 %v5662_v2, %v4882_v47  ;;  %v4167_v24 = vadd.f32 %v8935_v11, %v7440_v3 }
 0x29a   : > { %v7441_v20 = vpop.f32.mrb[186].mxu1  ;;  %v3137_v34 = vpop.f32.mrb[187].mxu0  ;;  %v5658_v29 = vmax.f32 %v5656_v1, %v5657_v14  ;;  %v5248_v55 = vmax.f32 %v5247_v49, %v4627_v10  ;;  %v4631_v30 = vmax.f32 %v3143_v32, 0.0  ;;  %v4159_v50 = vadd.f32 %v8935_v11, %v4158_v38 }
 0x29b   : > { %v4161_v25 = vpop.f32.mrb[187].mxu1  ;;  %v6675_v33 = vpack.c.bf16 %v5242_v23, %v5242_v23  ;;  %v5664_v17 = vmax.f32 %v5663_v42, %v4883_v15  ;;  %v4629_v36 = vmax.f32 %v3135_v51, 0.0  ;;  %v3138_v61 = vadd.f32 %v8935_v11, %v3137_v34 }
 0x29c   : > { %v6707_v53 = vpack.c.bf16 %v5658_v29, %v5658_v29  ;;  %v5249_v39 = vmax.f32 %v5248_v55, %v4628_v19  ;;  %v3146_v40 = vadd.f32 %v8935_v11, %v7185_v13  ;;  %v4162_v8 = vadd.f32 %v8935_v11, %v4161_v25 }
 0x29d   : > { %v6066_v41 = vunpack.c.l.b16 %v6675_v33  ;;  %v5665_v12 = vmax.f32 %v5664_v17, %v4884_v60  ;;  %v4170_v43 = vadd.f32 %v8935_v11, %v7441_v20  ;;  %v4630_v45 = vmax.f32 %v3138_v61, 0.0 }
 0x29e   : > { %v6098_v46 = vunpack.c.l.b16 %v6707_v53  ;;  %v5250_v4 = vrot.slane %v5249_v39, 4  ;;  %v4885_v18 = vmax.f32 %v4159_v50, 0.0  ;;  %v4886_v9 = vmax.f32 %v4162_v8, 0.0 }
 0x29f   : > { %v7188_v63 = vpop.f32.mrb[188].mxu0  ;;  %v8968_v6 = vsel %vm6117_vm4, %v6066_v41, %v8944_v28  ;;  %v5666_v48 = vrot.slane %v5665_v12, 4  ;;  %v4887_v21 = vmax.f32 %v4167_v24, 0.0  ;;  %v5256_v7 = vmax.f32 %v4629_v36, %v4630_v45 }
 0x2a0   : > { %v7444_v59 = vpop.f32.mrb[188].mxu1  ;;  %v3150_v52 = vpop.f32.mrb[189].mxu0  ;;  %v8972_v56 = vsel %vm6117_vm4, %v6098_v46, %v8948_v35  ;;  %v5251_v57 = vmax.f32 %v5249_v39, %v5250_v4  ;;  %v4632_v58 = vmax.f32 %v3146_v40, 0.0  ;;  %v5672_v62 = vmax.f32 %v4885_v18, %v4886_v9 }
 0x2a1   : > { %v4174_v22 = vpop.f32.mrb[189].mxu1  ;;  %v7189_v16 = vpop.f32.mrb[190].mxu0  ;;  %v5667_v0 = vmax.f32 %v5665_v12, %v5666_v48  ;;  %v4888_v27 = vmax.f32 %v4170_v43, 0.0  ;;  %v5257_v31 = vmax.f32 %v5256_v7, %v4631_v30  ;;  %v3151_v28 = vadd.f32 %v8935_v11, %v3150_v52 }
 0x2a2   : > { %v7445_v26 = vpop.f32.mrb[190].mxu1  ;;  %v3153_v54 = vpop.f32.mrb[191].mxu0  ;;  %v5252_v2 = vrot.slane %v5251_v57, 2  ;;  %v5673_v44 = vmax.f32 %v5672_v62, %v4887_v21  ;;  %v3159_v32 = vadd.f32 %v8935_v11, %v7188_v63  ;;  %v4175_v3 = vadd.f32 %v8935_v11, %v4174_v22 }
 0x2a3   : > { %v4177_v1 = vpop.f32.mrb[191].mxu1  ;;  %v5668_v5 = vrot.slane %v5667_v0, 2  ;;  %v4183_v35 = vadd.f32 %v8935_v11, %v7444_v59  ;;  %v4633_v37 = vmax.f32 %v3151_v28, 0.0  ;;  %v5258_v10 = vmax.f32 %v5257_v31, %v4632_v58 }
 0x2a4   : > { %v5253_v47 = vmax.f32 %v5251_v57, %v5252_v2  ;;  %v4889_v51 = vmax.f32 %v4175_v3, 0.0  ;;  %v5674_v38 = vmax.f32 %v5673_v44, %v4888_v27  ;;  %v3162_v13 = vadd.f32 %v8935_v11, %v7189_v16 }
 0x2a5   : > { %v5669_v14 = vmax.f32 %v5667_v0, %v5668_v5  ;;  %v5259_v15 = vmax.f32 %v5258_v10, %v4633_v37  ;;  %v4186_v19 = vadd.f32 %v8935_v11, %v7445_v26  ;;  %v3154_v49 = vadd.f32 %v8935_v11, %v3153_v54 }
 0x2a6   : > { %v5254_v34 = vrot.slane %v5253_v47, 1  ;;  %v5675_v23 = vmax.f32 %v5674_v38, %v4889_v51  ;;  %v4178_v60 = vadd.f32 %v8935_v11, %v4177_v1  ;;  %v4635_v55 = vmax.f32 %v3159_v32, 0.0 }
 0x2a7   : > { %v7192_v20 = vpop.f32.mrb[192].mxu0  ;;  %v5670_v29 = vrot.slane %v5669_v14, 1  ;;  %v4634_v30 = vmax.f32 %v3154_v49, 0.0  ;;  %v4891_v61 = vmax.f32 %v4183_v35, 0.0  ;;  %v4636_v53 = vmax.f32 %v3162_v13, 0.0 }
 0x2a8   : > { %v3175_v42 = vadd.f32 %v8935_v11, %v7192_v20  ;;  %v7448_v24 = vpop.f32.mrb[192].mxu1  ;;  %v3166_v25 = vpop.f32.mrb[193].mxu0  ;;  %v5255_v36 = vmax.f32 %v5253_v47, %v5254_v34  ;;  %v4890_v39 = vmax.f32 %v4178_v60, 0.0  ;;  %v4892_v12 = vmax.f32 %v4186_v19, 0.0 }
 0x2a9   : > { %v3167_v50 = vadd.f32 %v8935_v11, %v3166_v25  ;;  %v4190_v33 = vpop.f32.mrb[193].mxu1  ;;  %v7193_v17 = vpop.f32.mrb[194].mxu0  ;;  %v5671_v41 = vmax.f32 %v5669_v14, %v5670_v29  ;;  %v5260_v43 = vmax.f32 %v5259_v15, %v4634_v30  ;;  %v4199_v45 = vadd.f32 %v8935_v11, %v7448_v24 }
 0x2aa   : > { %v7449_v40 = vpop.f32.mrb[194].mxu1  ;;  %v3169_v8 = vpop.f32.mrb[195].mxu0  ;;  %v6676_v46 = vpack.c.bf16 %v5255_v36, %v5255_v36  ;;  %v5676_v4 = vmax.f32 %v5675_v23, %v4890_v39  ;;  %v4639_v18 = vmax.f32 %v3175_v42, 0.0  ;;  %v4191_v9 = vadd.f32 %v8935_v11, %v4190_v33 }
 0x2ab   : > { %v4193_v63 = vpop.f32.mrb[195].mxu1  ;;  %v6708_v59 = vpack.c.bf16 %v5671_v41, %v5671_v41  ;;  %v5261_v52 = vmax.f32 %v5260_v43, %v4635_v55  ;;  %v4637_v48 = vmax.f32 %v3167_v50, 0.0  ;;  %v3170_v21 = vadd.f32 %v8935_v11, %v3169_v8 }
 0x2ac   : > { %v6067_v7 = vunpack.c.l.b16 %v6676_v46  ;;  %v5677_v22 = vmax.f32 %v5676_v4, %v4891_v61  ;;  %v3178_v16 = vadd.f32 %v8935_v11, %v7193_v17  ;;  %v4194_v57 = vadd.f32 %v8935_v11, %v4193_v63 }
 0x2ad   : > { %v6099_v58 = vunpack.c.l.b16 %v6708_v59  ;;  %v5262_v62 = vmax.f32 %v5261_v52, %v4636_v53  ;;  %v4202_v26 = vadd.f32 %v8935_v11, %v7449_v40  ;;  %v4638_v54 = vmax.f32 %v3170_v21, 0.0 }
 0x2ae   : > { %v8992_v27 = vsel %vm6119_vm5, %v6067_v7, %v8968_v6  ;;  %v5678_v31 = vmax.f32 %v5677_v22, %v4892_v12  ;;  %v4893_v28 = vmax.f32 %v4191_v9, 0.0  ;;  %v4894_v1 = vmax.f32 %v4194_v57, 0.0 }
 0x2af   : > { %v7196_v0 = vpop.f32.mrb[196].mxu0  ;;  %v8996_v32 = vsel %vm6119_vm5, %v6099_v58, %v8972_v56  ;;  %v5263_v3 = vrot.slane %v5262_v62, 4  ;;  %v4895_v5 = vmax.f32 %v4199_v45, 0.0  ;;  %v5269_v35 = vmax.f32 %v4637_v48, %v4638_v54 }
 0x2b0   : > { %v7452_v2 = vpop.f32.mrb[196].mxu1  ;;  %v3182_v44 = vpop.f32.mrb[197].mxu0  ;;  %v5679_v47 = vrot.slane %v5678_v31, 4  ;;  %v4640_v51 = vmax.f32 %v3178_v16, 0.0  ;;  %v5685_v38 = vmax.f32 %v4893_v28, %v4894_v1  ;;  %v4896_v19 = vmax.f32 %v4202_v26, 0.0 }
 0x2b1   : > { %v4206_v37 = vpop.f32.mrb[197].mxu1  ;;  %v7197_v10 = vpop.f32.mrb[198].mxu0  ;;  %v3183_v6 = vadd.f32 %v8935_v11, %v3182_v44  ;;  %v5264_v15 = vmax.f32 %v5262_v62, %v5263_v3  ;;  %v5270_v49 = vmax.f32 %v5269_v35, %v4639_v18  ;;  %v3191_v60 = vadd.f32 %v8935_v11, %v7196_v0 }
 0x2b2   : > { %v7453_v13 = vpop.f32.mrb[198].mxu1  ;;  %v3185_v14 = vpop.f32.mrb[199].mxu0  ;;  %v4207_v20 = vadd.f32 %v8935_v11, %v4206_v37  ;;  %v5680_v56 = vmax.f32 %v5678_v31, %v5679_v47  ;;  %v5686_v23 = vmax.f32 %v5685_v38, %v4895_v5  ;;  %v4215_v25 = vadd.f32 %v8935_v11, %v7452_v2 }
 0x2b3   : > { %v4209_v34 = vpop.f32.mrb[199].mxu1  ;;  %v4641_v42 = vmax.f32 %v3183_v6, 0.0  ;;  %v5265_v24 = vrot.slane %v5264_v15, 2  ;;  %v5271_v29 = vmax.f32 %v5270_v49, %v4640_v51  ;;  %v3194_v33 = vadd.f32 %v8935_v11, %v7197_v10 }
 0x2b4   : > { %v4897_v55 = vmax.f32 %v4207_v20, 0.0  ;;  %v5681_v30 = vrot.slane %v5680_v56, 2  ;;  %v5687_v50 = vmax.f32 %v5686_v23, %v4896_v19  ;;  %v3186_v17 = vadd.f32 %v8935_v11, %v3185_v14 }
 0x2b5   : > { %v5266_v36 = vmax.f32 %v5264_v15, %v5265_v24  ;;  %v5272_v61 = vmax.f32 %v5271_v29, %v4641_v42  ;;  %v4218_v53 = vadd.f32 %v8935_v11, %v7453_v13  ;;  %v4210_v39 = vadd.f32 %v8935_v11, %v4209_v34 }
 0x2b6   : > { %v5682_v8 = vmax.f32 %v5680_v56, %v5681_v30  ;;  %v5688_v41 = vmax.f32 %v5687_v50, %v4897_v55  ;;  %v4642_v12 = vmax.f32 %v3186_v17, 0.0  ;;  %v4643_v4 = vmax.f32 %v3191_v60, 0.0 }
 0x2b7   : > { %v7200_v40 = vpop.f32.mrb[200].mxu0  ;;  %v5267_v46 = vrot.slane %v5266_v36, 1  ;;  %v4898_v18 = vmax.f32 %v4210_v39, 0.0  ;;  %v4899_v21 = vmax.f32 %v4215_v25, 0.0  ;;  %v4644_v62 = vmax.f32 %v3194_v33, 0.0 }
 0x2b8   : > { %v3207_v43 = vadd.f32 %v8935_v11, %v7200_v40  ;;  %v7456_v45 = vpop.f32.mrb[200].mxu1  ;;  %v3198_v63 = vpop.f32.mrb[201].mxu0  ;;  %v5683_v48 = vrot.slane %v5682_v8, 1  ;;  %v5273_v7 = vmax.f32 %v5272_v61, %v4642_v12  ;;  %v4900_v26 = vmax.f32 %v4218_v53, 0.0 }
 0x2b9   : > { %v3199_v9 = vadd.f32 %v8935_v11, %v3198_v63  ;;  %v4222_v59 = vpop.f32.mrb[201].mxu1  ;;  %v7201_v52 = vpop.f32.mrb[202].mxu0  ;;  %v5268_v58 = vmax.f32 %v5266_v36, %v5267_v46  ;;  %v5689_v54 = vmax.f32 %v5688_v41, %v4898_v18  ;;  %v4231_v2 = vadd.f32 %v8935_v11, %v7456_v45 }
 0x2ba   : > { %v4223_v22 = vadd.f32 %v8935_v11, %v4222_v59  ;;  %v7457_v16 = vpop.f32.mrb[202].mxu1  ;;  %v3201_v57 = vpop.f32.mrb[203].mxu0  ;;  %v5684_v31 = vmax.f32 %v5682_v8, %v5683_v48  ;;  %v5274_v28 = vmax.f32 %v5273_v7, %v4643_v4  ;;  %v4647_v1 = vmax.f32 %v3207_v43, 0.0 }
 0x2bb   : > { %v4225_v0 = vpop.f32.mrb[203].mxu1  ;;  %v6677_v44 = vpack.c.bf16 %v5268_v58, %v5268_v58  ;;  %v5690_v3 = vmax.f32 %v5689_v54, %v4899_v21  ;;  %v4645_v5 = vmax.f32 %v3199_v9, 0.0  ;;  %v3202_v35 = vadd.f32 %v8935_v11, %v3201_v57 }
 0x2bc   : > { %v6709_v37 = vpack.c.bf16 %v5684_v31, %v5684_v31  ;;  %v5275_v10 = vmax.f32 %v5274_v28, %v4644_v62  ;;  %v4901_v47 = vmax.f32 %v4223_v22, 0.0  ;;  %v4226_v51 = vadd.f32 %v8935_v11, %v4225_v0 }
 0x2bd   : > { %v6068_v38 = vunpack.c.l.b16 %v6677_v44  ;;  %v5691_v6 = vmax.f32 %v5690_v3, %v4900_v26  ;;  %v3210_v13 = vadd.f32 %v8935_v11, %v7201_v52  ;;  %v4646_v14 = vmax.f32 %v3202_v35, 0.0 }
 0x2be   : > { %v6100_v19 = vunpack.c.l.b16 %v6709_v37  ;;  %v5276_v49 = vrot.slane %v5275_v10, 4  ;;  %v4234_v20 = vadd.f32 %v8935_v11, %v7457_v16  ;;  %v4902_v34 = vmax.f32 %v4226_v51, 0.0 }
 0x2bf   : > { %v7204_v15 = vpop.f32.mrb[204].mxu0  ;;  %v6136_v60 = vsel %vm6121_vm6, %v6068_v38, %v8992_v27  ;;  %v5692_v42 = vrot.slane %v5691_v6, 4  ;;  %v4903_v24 = vmax.f32 %v4231_v2, 0.0  ;;  %v5282_v25 = vmax.f32 %v4645_v5, %v4646_v14 }
 0x2c0   : > { %v7460_v56 = vpop.f32.mrb[204].mxu1  ;;  %v3214_v23 = vpop.f32.mrb[205].mxu0  ;;  %v6174_v30 = vpack.c.b16 %v6136_v60, %v6136_v60  ;;  %v6164_v50 = vsel %vm6121_vm6, %v6100_v19, %v8996_v32  ;;  %v5277_v33 = vmax.f32 %v5275_v10, %v5276_v49  ;;  %v5698_v17 = vmax.f32 %v4901_v47, %v4902_v34 }
 0x2c1   : > { %v4238_v29 = vpop.f32.mrb[205].mxu1  ;;  %v7205_v55 = vpop.f32.mrb[206].mxu0  ;;  %v6178_v53 = vpack.c.b16 %v6164_v50, %v6164_v50  ;;  %v5693_v39 = vmax.f32 %v5691_v6, %v5692_v42  ;;  %v4648_v40 = vmax.f32 %v3210_v13, 0.0  ;;  %v5283_v8 = vmax.f32 %v5282_v25, %v4647_v1 }
 0x2c2   : > { %v7461_v36 = vpop.f32.mrb[206].mxu1  ;;  %v3217_v61 = vpop.f32.mrb[207].mxu0  ;;  %6190 = vst [vmem:[%s8525_s7 + $0x8] sm:$0xf] %v6174_v30  ;;  %v5278_v41 = vrot.slane %v5277_v33, 2  ;;  %v4904_v12 = vmax.f32 %v4234_v20, 0.0  ;;  %v5699_v43 = vmax.f32 %v5698_v17, %v4903_v24  ;;  %v3215_v45 = vadd.f32 %v8935_v11, %v3214_v23 }
 0x2c3   : > { %v4241_v27 = vpop.f32.mrb[207].mxu1  ;;  %6194 = vst [vmem:[%s8525_s7 + $0x18] sm:$0xf] %v6178_v53  ;;  %v5694_v63 = vrot.slane %v5693_v39, 2  ;;  %v3223_v46 = vadd.f32 %v8935_v11, %v7204_v15  ;;  %v5284_v32 = vmax.f32 %v5283_v8, %v4648_v40  ;;  %v4239_v4 = vadd.f32 %v8935_v11, %v4238_v29 }
 0x2c4   : > { %v5279_v18 = vmax.f32 %v5277_v33, %v5278_v41  ;;  %v4247_v9 = vadd.f32 %v8935_v11, %v7460_v56  ;;  %v4649_v59 = vmax.f32 %v3215_v45, 0.0  ;;  %v5700_v52 = vmax.f32 %v5699_v43, %v4904_v12 }
 0x2c5   : > { %v5695_v48 = vmax.f32 %v5693_v39, %v5694_v63  ;;  %v4905_v21 = vmax.f32 %v4239_v4, 0.0  ;;  %v3226_v7 = vadd.f32 %v8935_v11, %v7205_v55  ;;  %v3218_v22 = vadd.f32 %v8935_v11, %v3217_v61 }
 0x2c6   : > { %v5280_v57 = vrot.slane %v5279_v18, 1  ;;  %v5285_v58 = vmax.f32 %v5284_v32, %v4649_v59  ;;  %v4250_v62 = vadd.f32 %v8935_v11, %v7461_v36  ;;  %v4242_v26 = vadd.f32 %v8935_v11, %v4241_v27 }
 0x2c7   : > { %v7208_v16 = vpop.f32.mrb[208].mxu0  ;;  %v5696_v31 = vrot.slane %v5695_v48, 1  ;;  %v5701_v28 = vmax.f32 %v5700_v52, %v4905_v21  ;;  %v4650_v1 = vmax.f32 %v3218_v22, 0.0  ;;  %v4651_v35 = vmax.f32 %v3223_v46, 0.0 }
 0x2c8   : > { %v7464_v54 = vpop.f32.mrb[208].mxu1  ;;  %v3230_v0 = vpop.f32.mrb[209].mxu0  ;;  %v3239_v2 = vadd.f32 %v8935_v11, %v7208_v16  ;;  %v5281_v5 = vmax.f32 %v5279_v18, %v5280_v57  ;;  %v4906_v37 = vmax.f32 %v4242_v26, 0.0  ;;  %v4907_v6 = vmax.f32 %v4247_v9, 0.0 }
 0x2c9   : > { %v4254_v44 = vpop.f32.mrb[209].mxu1  ;;  %v7209_v3 = vpop.f32.mrb[210].mxu0  ;;  %v4263_v10 = vadd.f32 %v8935_v11, %v7464_v54  ;;  %v5697_v38 = vmax.f32 %v5695_v48, %v5696_v31  ;;  %v5286_v13 = vmax.f32 %v5285_v58, %v4650_v1  ;;  %v3231_v14 = vadd.f32 %v8935_v11, %v3230_v0 }
 0x2ca   : > { %v7465_v47 = vpop.f32.mrb[210].mxu1  ;;  %v3233_v51 = vpop.f32.mrb[211].mxu0  ;;  %v6678_v19 = vpack.c.bf16 %v5281_v5, %v5281_v5  ;;  %v4652_v49 = vmax.f32 %v3226_v7, 0.0  ;;  %v5702_v20 = vmax.f32 %v5701_v28, %v4906_v37  ;;  %v4255_v34 = vadd.f32 %v8935_v11, %v4254_v44 }
 0x2cb   : > { %v4257_v15 = vpop.f32.mrb[211].mxu1  ;;  %v6710_v56 = vpack.c.bf16 %v5697_v38, %v5697_v38  ;;  %v4908_v23 = vmax.f32 %v4250_v62, 0.0  ;;  %v5287_v60 = vmax.f32 %v5286_v13, %v4651_v35  ;;  %v4655_v42 = vmax.f32 %v3239_v2, 0.0 }
 0x2cc   : > { %v5703_v24 = vmax.f32 %v5702_v20, %v4907_v6  ;;  %v4911_v25 = vmax.f32 %v4263_v10, 0.0  ;;  %v3242_v29 = vadd.f32 %v8935_v11, %v7209_v3  ;;  %v3234_v55 = vadd.f32 %v8935_v11, %v3233_v51 }
 0x2cd   : > { %v5288_v30 = vmax.f32 %v5287_v60, %v4652_v49  ;;  %v4653_v50 = vmax.f32 %v3231_v14, 0.0  ;;  %v4266_v33 = vadd.f32 %v8935_v11, %v7465_v47  ;;  %v4258_v17 = vadd.f32 %v8935_v11, %v4257_v15 }
 0x2ce   : > { %v9036_v61 = vunpack.c.l.b16 %v6678_v19  ;;  %v5704_v53 = vmax.f32 %v5703_v24, %v4908_v23  ;;  %v4909_v39 = vmax.f32 %v4255_v34, 0.0  ;;  %v4654_v40 = vmax.f32 %v3234_v55, 0.0 }
 0x2cf   : > { %v7212_v36 = vpop.f32.mrb[212].mxu0  ;;  %v9038_v41 = vunpack.c.l.b16 %v6710_v56  ;;  %v5289_v12 = vrot.slane %v5288_v30, 4  ;;  %v4910_v43 = vmax.f32 %v4258_v17, 0.0  ;;  %v4656_v4 = vmax.f32 %v3242_v29, 0.0 }
 0x2d0   : > { %v7468_v8 = vpop.f32.mrb[212].mxu1  ;;  %v3246_v27 = vpop.f32.mrb[213].mxu0  ;;  %v5705_v32 = vrot.slane %v5704_v53, 4  ;;  %v5295_v18 = vmax.f32 %v4653_v50, %v4654_v40  ;;  %v4912_v21 = vmax.f32 %v4266_v33, 0.0  ;;  %v3255_v22 = vadd.f32 %v8935_v11, %v7212_v36 }
 0x2d1   : > { %v3247_v45 = vadd.f32 %v8935_v11, %v3246_v27  ;;  %v4270_v63 = vpop.f32.mrb[213].mxu1  ;;  %v7213_v46 = vpop.f32.mrb[214].mxu0  ;;  %v5290_v48 = vmax.f32 %v5288_v30, %v5289_v12  ;;  %v5711_v7 = vmax.f32 %v4909_v39, %v4910_v43  ;;  %v4279_v62 = vadd.f32 %v8935_v11, %v7468_v8 }
 0x2d2   : > { %v4271_v9 = vadd.f32 %v8935_v11, %v4270_v63  ;;  %v7469_v59 = vpop.f32.mrb[214].mxu1  ;;  %v3249_v52 = vpop.f32.mrb[215].mxu0  ;;  %v5706_v57 = vmax.f32 %v5704_v53, %v5705_v32  ;;  %v5296_v58 = vmax.f32 %v5295_v18, %v4655_v42  ;;  %v3258_v44 = vadd.f32 %v8935_v11, %v7213_v46 }
 0x2d3   : > { %v4273_v16 = vpop.f32.mrb[215].mxu1  ;;  %v4657_v26 = vmax.f32 %v3247_v45, 0.0  ;;  %v5291_v54 = vrot.slane %v5290_v48, 2  ;;  %v5712_v0 = vmax.f32 %v5711_v7, %v4911_v25  ;;  %v3250_v28 = vadd.f32 %v8935_v11, %v3249_v52 }
 0x2d4   : > { %v4913_v31 = vmax.f32 %v4271_v9, 0.0  ;;  %v5707_v1 = vrot.slane %v5706_v57, 2  ;;  %v5297_v2 = vmax.f32 %v5296_v58, %v4656_v4  ;;  %v4274_v3 = vadd.f32 %v8935_v11, %v4273_v16 }
 0x2d5   : > { %v5292_v5 = vmax.f32 %v5290_v48, %v5291_v54  ;;  %v5713_v35 = vmax.f32 %v5712_v0, %v4912_v21  ;;  %v4282_v37 = vadd.f32 %v8935_v11, %v7469_v59  ;;  %v4658_v10 = vmax.f32 %v3250_v28, 0.0 }
 0x2d6   : > { %v5708_v51 = vmax.f32 %v5706_v57, %v5707_v1  ;;  %v5298_v38 = vmax.f32 %v5297_v2, %v4657_v26  ;;  %v4914_v6 = vmax.f32 %v4274_v3, 0.0  ;;  %v4659_v49 = vmax.f32 %v3255_v22, 0.0 }
 0x2d7   : > { %v7216_v47 = vpop.f32.mrb[216].mxu0  ;;  %v5293_v19 = vrot.slane %v5292_v5, 1  ;;  %v5714_v20 = vmax.f32 %v5713_v35, %v4913_v31  ;;  %v4915_v42 = vmax.f32 %v4279_v62, 0.0  ;;  %v4660_v24 = vmax.f32 %v3258_v44, 0.0 }
 0x2d8   : > { %v3271_v13 = vadd.f32 %v8935_v11, %v7216_v47  ;;  %v7472_v14 = vpop.f32.mrb[216].mxu1  ;;  %v3262_v15 = vpop.f32.mrb[217].mxu0  ;;  %v5709_v60 = vrot.slane %v5708_v51, 1  ;;  %v5299_v25 = vmax.f32 %v5298_v38, %v4658_v10  ;;  %v4916_v50 = vmax.f32 %v4282_v37, 0.0 }
 0x2d9   : > { %v3263_v34 = vadd.f32 %v8935_v11, %v3262_v15  ;;  %v4286_v56 = vpop.f32.mrb[217].mxu1  ;;  %v7217_v23 = vpop.f32.mrb[218].mxu0  ;;  %v5294_v30 = vmax.f32 %v5292_v5, %v5293_v19  ;;  %v5715_v33 = vmax.f32 %v5714_v20, %v4914_v6  ;;  %v4295_v17 = vadd.f32 %v8935_v11, %v7472_v14 }
 0x2da   : > { %v7473_v29 = vpop.f32.mrb[218].mxu1  ;;  %v3265_v55 = vpop.f32.mrb[219].mxu0  ;;  %v5710_v53 = vmax.f32 %v5708_v51, %v5709_v60  ;;  %v5300_v39 = vmax.f32 %v5299_v25, %v4659_v49  ;;  %v4663_v40 = vmax.f32 %v3271_v13, 0.0  ;;  %v4287_v8 = vadd.f32 %v8935_v11, %v4286_v56 }
 0x2db   : > { %v4289_v36 = vpop.f32.mrb[219].mxu1  ;;  %v6679_v27 = vpack.c.bf16 %v5294_v30, %v5294_v30  ;;  %v5716_v12 = vmax.f32 %v5715_v33, %v4915_v42  ;;  %v4661_v43 = vmax.f32 %v3263_v34, 0.0  ;;  %v3266_v45 = vadd.f32 %v8935_v11, %v3265_v55 }
 0x2dc   : > { %v6711_v63 = vpack.c.bf16 %v5710_v53, %v5710_v53  ;;  %v5301_v46 = vmax.f32 %v5300_v39, %v4660_v24  ;;  %v3274_v32 = vadd.f32 %v8935_v11, %v7217_v23  ;;  %v4290_v4 = vadd.f32 %v8935_v11, %v4289_v36 }
 0x2dd   : > { %v6070_v18 = vunpack.c.l.b16 %v6679_v27  ;;  %v5717_v9 = vmax.f32 %v5716_v12, %v4916_v50  ;;  %v4298_v59 = vadd.f32 %v8935_v11, %v7473_v29  ;;  %v4662_v52 = vmax.f32 %v3266_v45, 0.0 }
 0x2de   : > { %v6102_v21 = vunpack.c.l.b16 %v6711_v63  ;;  %v5302_v7 = vrot.slane %v5301_v46, 4  ;;  %v4917_v22 = vmax.f32 %v4287_v8, 0.0  ;;  %v4918_v16 = vmax.f32 %v4290_v4, 0.0 }
 0x2df   : > { %v7220_v48 = vpop.f32.mrb[220].mxu0  ;;  %v9058_v62 = vsel %vm6109_vm0, %v6070_v18, %v9036_v61  ;;  %v5718_v26 = vrot.slane %v5717_v9, 4  ;;  %v4919_v54 = vmax.f32 %v4295_v17, 0.0  ;;  %v5308_v0 = vmax.f32 %v4661_v43, %v4662_v52 }
 0x2e0   : > { %v7476_v57 = vpop.f32.mrb[220].mxu1  ;;  %v3278_v58 = vpop.f32.mrb[221].mxu0  ;;  %v9062_v1 = vsel %vm6109_vm0, %v6102_v21, %v9038_v41  ;;  %v5303_v2 = vmax.f32 %v5301_v46, %v5302_v7  ;;  %v4664_v44 = vmax.f32 %v3274_v32, 0.0  ;;  %v5724_v3 = vmax.f32 %v4917_v22, %v4918_v16 }
 0x2e1   : > { %v4302_v31 = vpop.f32.mrb[221].mxu1  ;;  %v7221_v28 = vpop.f32.mrb[222].mxu0  ;;  %v5719_v37 = vmax.f32 %v5717_v9, %v5718_v26  ;;  %v4920_v10 = vmax.f32 %v4298_v59, 0.0  ;;  %v5309_v47 = vmax.f32 %v5308_v0, %v4663_v40  ;;  %v3279_v61 = vadd.f32 %v8935_v11, %v3278_v58 }
 0x2e2   : > { %v7477_v5 = vpop.f32.mrb[222].mxu1  ;;  %v3281_v35 = vpop.f32.mrb[223].mxu0  ;;  %v5304_v38 = vrot.slane %v5303_v2, 2  ;;  %v5725_v6 = vmax.f32 %v5724_v3, %v4919_v54  ;;  %v3287_v13 = vadd.f32 %v8935_v11, %v7220_v48  ;;  %v4303_v14 = vadd.f32 %v8935_v11, %v4302_v31 }
 0x2e3   : > { %v4305_v51 = vpop.f32.mrb[223].mxu1  ;;  %v5720_v15 = vrot.slane %v5719_v37, 2  ;;  %v4311_v41 = vadd.f32 %v8935_v11, %v7476_v57  ;;  %v4665_v19 = vmax.f32 %v3279_v61, 0.0  ;;  %v5310_v49 = vmax.f32 %v5309_v47, %v4664_v44 }
 0x2e4   : > { %v5305_v20 = vmax.f32 %v5303_v2, %v5304_v38  ;;  %v4921_v34 = vmax.f32 %v4303_v14, 0.0  ;;  %v5726_v56 = vmax.f32 %v5725_v6, %v4920_v10  ;;  %v3290_v23 = vadd.f32 %v8935_v11, %v7221_v28 }
 0x2e5   : > { %v5721_v60 = vmax.f32 %v5719_v37, %v5720_v15  ;;  %v5311_v42 = vmax.f32 %v5310_v49, %v4665_v19  ;;  %v4314_v24 = vadd.f32 %v8935_v11, %v7477_v5  ;;  %v3282_v25 = vadd.f32 %v8935_v11, %v3281_v35 }
 0x2e6   : > { %v5306_v55 = vrot.slane %v5305_v20, 1  ;;  %v5727_v30 = vmax.f32 %v5726_v56, %v4921_v34  ;;  %v4306_v50 = vadd.f32 %v8935_v11, %v4305_v51  ;;  %v4667_v39 = vmax.f32 %v3287_v13, 0.0 }
 0x2e7   : > { %v7224_v29 = vpop.f32.mrb[224].mxu0  ;;  %v5722_v53 = vrot.slane %v5721_v60, 1  ;;  %v4666_v40 = vmax.f32 %v3282_v25, 0.0  ;;  %v4923_v45 = vmax.f32 %v4311_v41, 0.0  ;;  %v4668_v63 = vmax.f32 %v3290_v23, 0.0 }
 0x2e8   : > { %v3303_v33 = vadd.f32 %v8935_v11, %v7224_v29  ;;  %v7480_v17 = vpop.f32.mrb[224].mxu1  ;;  %v3294_v36 = vpop.f32.mrb[225].mxu0  ;;  %v5307_v43 = vmax.f32 %v5305_v20, %v5306_v55  ;;  %v4922_v46 = vmax.f32 %v4306_v50, 0.0  ;;  %v4924_v9 = vmax.f32 %v4314_v24, 0.0 }
 0x2e9   : > { %v3295_v8 = vadd.f32 %v8935_v11, %v3294_v36  ;;  %v4318_v27 = vpop.f32.mrb[225].mxu1  ;;  %v7225_v12 = vpop.f32.mrb[226].mxu0  ;;  %v5723_v18 = vmax.f32 %v5721_v60, %v5722_v53  ;;  %v5312_v59 = vmax.f32 %v5311_v42, %v4666_v40  ;;  %v4327_v52 = vadd.f32 %v8935_v11, %v7480_v17 }
 0x2ea   : > { %v7481_v32 = vpop.f32.mrb[226].mxu1  ;;  %v3297_v4 = vpop.f32.mrb[227].mxu0  ;;  %v6680_v21 = vpack.c.bf16 %v5307_v43, %v5307_v43  ;;  %v5728_v7 = vmax.f32 %v5727_v30, %v4922_v46  ;;  %v4671_v22 = vmax.f32 %v3303_v33, 0.0  ;;  %v4319_v16 = vadd.f32 %v8935_v11, %v4318_v27 }
 0x2eb   : > { %v4321_v48 = vpop.f32.mrb[227].mxu1  ;;  %v6712_v57 = vpack.c.bf16 %v5723_v18, %v5723_v18  ;;  %v5313_v58 = vmax.f32 %v5312_v59, %v4667_v39  ;;  %v4669_v26 = vmax.f32 %v3295_v8, 0.0  ;;  %v3298_v54 = vadd.f32 %v8935_v11, %v3297_v4 }
 0x2ec   : > { %v6071_v0 = vunpack.c.l.b16 %v6680_v21  ;;  %v5729_v31 = vmax.f32 %v5728_v7, %v4923_v45  ;;  %v3306_v28 = vadd.f32 %v8935_v11, %v7225_v12  ;;  %v4322_v2 = vadd.f32 %v8935_v11, %v4321_v48 }
 0x2ed   : > { %v6103_v44 = vunpack.c.l.b16 %v6712_v57  ;;  %v5314_v3 = vmax.f32 %v5313_v58, %v4668_v63  ;;  %v4330_v5 = vadd.f32 %v8935_v11, %v7481_v32  ;;  %v4670_v35 = vmax.f32 %v3298_v54, 0.0 }
 0x2ee   : > { %v9082_v10 = vsel %vm6111_vm1, %v6071_v0, %v9058_v62  ;;  %v5730_v47 = vmax.f32 %v5729_v31, %v4924_v9  ;;  %v4925_v61 = vmax.f32 %v4319_v16, 0.0  ;;  %v4926_v51 = vmax.f32 %v4322_v2, 0.0 }
 0x2ef   : > { %v7228_v37 = vpop.f32.mrb[228].mxu0  ;;  %v9086_v13 = vsel %vm6111_vm1, %v6103_v44, %v9062_v1  ;;  %v5315_v14 = vrot.slane %v5314_v3, 4  ;;  %v4927_v15 = vmax.f32 %v4327_v52, 0.0  ;;  %v5321_v41 = vmax.f32 %v4669_v26, %v4670_v35  ;;  %v9092_v1 = vld [vmem:[%s9195_s2] ss:$0 sm:$0xff] }
 0x2f0   : > { %v7484_v38 = vpop.f32.mrb[228].mxu1  ;;  %v3310_v6 = vpop.f32.mrb[229].mxu0  ;;  %v5731_v20 = vrot.slane %v5730_v47, 4  ;;  %v4672_v34 = vmax.f32 %v3306_v28, 0.0  ;;  %v5737_v56 = vmax.f32 %v4925_v61, %v4926_v51  ;;  %v4928_v24 = vmax.f32 %v4330_v5, 0.0 }
 0x2f1   : > { %v4334_v19 = vpop.f32.mrb[229].mxu1  ;;  %v7229_v49 = vpop.f32.mrb[230].mxu0  ;;  %v3311_v62 = vadd.f32 %v8935_v11, %v3310_v6  ;;  %v5316_v42 = vmax.f32 %v5314_v3, %v5315_v14  ;;  %v5322_v25 = vmax.f32 %v5321_v41, %v4671_v22  ;;  %v3319_v33 = vadd.f32 %v9092_v1, %v7228_v37 }
 0x2f2   : > { %v7485_v23 = vpop.f32.mrb[230].mxu1  ;;  %v3313_v60 = vpop.f32.mrb[231].mxu0  ;;  %v4335_v29 = vadd.f32 %v9092_v1, %v4334_v19  ;;  %v5732_v30 = vmax.f32 %v5730_v47, %v5731_v20  ;;  %v5738_v50 = vmax.f32 %v5737_v56, %v4927_v15  ;;  %v4343_v11 = vadd.f32 %v9092_v1, %v7484_v38 }
 0x2f3   : > { %v4337_v55 = vpop.f32.mrb[231].mxu1  ;;  %v4673_v17 = vmax.f32 %v3311_v62, 0.0  ;;  %v5317_v36 = vrot.slane %v5316_v42, 2  ;;  %v5323_v53 = vmax.f32 %v5322_v25, %v4672_v34  ;;  %v3322_v27 = vadd.f32 %v9092_v1, %v7229_v49 }
 0x2f4   : > { %v4929_v39 = vmax.f32 %v4335_v29, 0.0  ;;  %v5733_v40 = vrot.slane %v5732_v30, 2  ;;  %v5739_v8 = vmax.f32 %v5738_v50, %v4928_v24  ;;  %v3314_v12 = vadd.f32 %v9092_v1, %v3313_v60 }
 0x2f5   : > { %v5318_v43 = vmax.f32 %v5316_v42, %v5317_v36  ;;  %v5324_v45 = vmax.f32 %v5323_v53, %v4673_v17  ;;  %v4346_v63 = vadd.f32 %v9092_v1, %v7485_v23  ;;  %v4338_v46 = vadd.f32 %v9092_v1, %v4337_v55 }
 0x2f6   : > { %v5734_v4 = vmax.f32 %v5732_v30, %v5733_v40  ;;  %v5740_v18 = vmax.f32 %v5739_v8, %v4929_v39  ;;  %v4674_v9 = vmax.f32 %v3314_v12, 0.0  ;;  %v4675_v7 = vmax.f32 %v3319_v33, 0.0 }
 0x2f7   : > { %v7232_v32 = vpop.f32.mrb[232].mxu0  ;;  %v5319_v21 = vrot.slane %v5318_v43, 1  ;;  %v4930_v22 = vmax.f32 %v4338_v46, 0.0  ;;  %v4931_v54 = vmax.f32 %v4343_v11, 0.0  ;;  %v4676_v0 = vmax.f32 %v3322_v27, 0.0 }
 0x2f8   : > { %v3335_v59 = vadd.f32 %v9092_v1, %v7232_v32  ;;  %v7488_v52 = vpop.f32.mrb[232].mxu1  ;;  %v3326_v48 = vpop.f32.mrb[233].mxu0  ;;  %v5735_v26 = vrot.slane %v5734_v4, 1  ;;  %v5325_v31 = vmax.f32 %v5324_v45, %v4674_v9  ;;  %v4932_v3 = vmax.f32 %v4346_v63, 0.0 }
 0x2f9   : > { %v3327_v16 = vadd.f32 %v9092_v1, %v3326_v48  ;;  %v4350_v57 = vpop.f32.mrb[233].mxu1  ;;  %v7233_v58 = vpop.f32.mrb[234].mxu0  ;;  %v5320_v44 = vmax.f32 %v5318_v43, %v5319_v21  ;;  %v5741_v5 = vmax.f32 %v5740_v18, %v4930_v22  ;;  %v4359_v35 = vadd.f32 %v9092_v1, %v7488_v52 }
 0x2fa   : > { %v7489_v28 = vpop.f32.mrb[234].mxu1  ;;  %v3329_v2 = vpop.f32.mrb[235].mxu0  ;;  %v5736_v47 = vmax.f32 %v5734_v4, %v5735_v26  ;;  %v5326_v61 = vmax.f32 %v5325_v31, %v4675_v7  ;;  %v4679_v51 = vmax.f32 %v3335_v59, 0.0  ;;  %v4351_v38 = vadd.f32 %v9092_v1, %v4350_v57 }
 0x2fb   : > { %v4353_v37 = vpop.f32.mrb[235].mxu1  ;;  %v6681_v6 = vpack.c.bf16 %v5320_v44, %v5320_v44  ;;  %v5742_v14 = vmax.f32 %v5741_v5, %v4931_v54  ;;  %v4677_v15 = vmax.f32 %v3327_v16, 0.0  ;;  %v3330_v41 = vadd.f32 %v9092_v1, %v3329_v2 }
 0x2fc   : > { %v6713_v19 = vpack.c.bf16 %v5736_v47, %v5736_v47  ;;  %v5327_v49 = vmax.f32 %v5326_v61, %v4676_v0  ;;  %v3338_v20 = vadd.f32 %v9092_v1, %v7233_v58  ;;  %v4354_v34 = vadd.f32 %v9092_v1, %v4353_v37 }
 0x2fd   : > { %v6072_v56 = vunpack.c.l.b16 %v6681_v6  ;;  %v5743_v62 = vmax.f32 %v5742_v14, %v4932_v3  ;;  %v4362_v23 = vadd.f32 %v9092_v1, %v7489_v28  ;;  %v4678_v60 = vmax.f32 %v3330_v41, 0.0 }
 0x2fe   : > { %v6104_v24 = vunpack.c.l.b16 %v6713_v19  ;;  %v5328_v25 = vrot.slane %v5327_v49, 4  ;;  %v4933_v29 = vmax.f32 %v4351_v38, 0.0  ;;  %v4934_v55 = vmax.f32 %v4354_v34, 0.0 }
 0x2ff   : > { %v7236_v42 = vpop.f32.mrb[236].mxu0  ;;  %v9111_v33 = vsel %vm6113_vm2, %v6072_v56, %v9082_v10  ;;  %v5744_v17 = vrot.slane %v5743_v62, 4  ;;  %v4935_v36 = vmax.f32 %v4359_v35, 0.0  ;;  %v5334_v11 = vmax.f32 %v4677_v15, %v4678_v60 }
 0x300   : > { %v7492_v30 = vpop.f32.mrb[236].mxu1  ;;  %v3342_v50 = vpop.f32.mrb[237].mxu0  ;;  %v9115_v40 = vsel %vm6113_vm2, %v6104_v24, %v9086_v13  ;;  %v5329_v8 = vmax.f32 %v5327_v49, %v5328_v25  ;;  %v4680_v27 = vmax.f32 %v3338_v20, 0.0  ;;  %v5750_v12 = vmax.f32 %v4933_v29, %v4934_v55 }
 0x301   : > { %v4366_v53 = vpop.f32.mrb[237].mxu1  ;;  %v7237_v39 = vpop.f32.mrb[238].mxu0  ;;  %v5745_v63 = vmax.f32 %v5743_v62, %v5744_v17  ;;  %v4936_v46 = vmax.f32 %v4362_v23, 0.0  ;;  %v5335_v32 = vmax.f32 %v5334_v11, %v4679_v51  ;;  %v3343_v10 = vadd.f32 %v9092_v1, %v3342_v50 }
 0x302   : > { %v7493_v43 = vpop.f32.mrb[238].mxu1  ;;  %v3345_v45 = vpop.f32.mrb[239].mxu0  ;;  %v5330_v18 = vrot.slane %v5329_v8, 2  ;;  %v5751_v9 = vmax.f32 %v5750_v12, %v4935_v36  ;;  %v3351_v59 = vadd.f32 %v9092_v1, %v7236_v42  ;;  %v4367_v52 = vadd.f32 %v9092_v1, %v4366_v53 }
 0x303   : > { %v4369_v4 = vpop.f32.mrb[239].mxu1  ;;  %v5746_v48 = vrot.slane %v5745_v63, 2  ;;  %v4375_v13 = vadd.f32 %v9092_v1, %v7492_v30  ;;  %v4681_v21 = vmax.f32 %v3343_v10, 0.0  ;;  %v5336_v7 = vmax.f32 %v5335_v32, %v4680_v27 }
 0x304   : > { %v5331_v22 = vmax.f32 %v5329_v8, %v5330_v18  ;;  %v4937_v16 = vmax.f32 %v4367_v52, 0.0  ;;  %v5752_v57 = vmax.f32 %v5751_v9, %v4936_v46  ;;  %v3354_v58 = vadd.f32 %v9092_v1, %v7237_v39 }
 0x305   : > { %v5747_v26 = vmax.f32 %v5745_v63, %v5746_v48  ;;  %v5337_v54 = vmax.f32 %v5336_v7, %v4681_v21  ;;  %v4378_v0 = vadd.f32 %v9092_v1, %v7493_v43  ;;  %v3346_v31 = vadd.f32 %v9092_v1, %v3345_v45 }
 0x306   : > { %v5332_v2 = vrot.slane %v5331_v22, 1  ;;  %v5753_v44 = vmax.f32 %v5752_v57, %v4937_v16  ;;  %v4370_v3 = vadd.f32 %v9092_v1, %v4369_v4  ;;  %v4683_v61 = vmax.f32 %v3351_v59, 0.0 }
 0x307   : > { %v7240_v28 = vpop.f32.mrb[240].mxu0  ;;  %v5748_v47 = vrot.slane %v5747_v26, 1  ;;  %v4682_v51 = vmax.f32 %v3346_v31, 0.0  ;;  %v4939_v41 = vmax.f32 %v4375_v13, 0.0  ;;  %v4684_v19 = vmax.f32 %v3354_v58, 0.0 }
 0x308   : > { %v3367_v5 = vadd.f32 %v9092_v1, %v7240_v28  ;;  %v7496_v35 = vpop.f32.mrb[240].mxu1  ;;  %v3358_v37 = vpop.f32.mrb[241].mxu0  ;;  %v5333_v15 = vmax.f32 %v5331_v22, %v5332_v2  ;;  %v4938_v49 = vmax.f32 %v4370_v3, 0.0  ;;  %v4940_v62 = vmax.f32 %v4378_v0, 0.0 }
 0x309   : > { %v3359_v38 = vadd.f32 %v9092_v1, %v3358_v37  ;;  %v4382_v6 = vpop.f32.mrb[241].mxu1  ;;  %v7241_v14 = vpop.f32.mrb[242].mxu0  ;;  %v5749_v56 = vmax.f32 %v5747_v26, %v5748_v47  ;;  %v5338_v23 = vmax.f32 %v5337_v54, %v4682_v51  ;;  %v4391_v60 = vadd.f32 %v9092_v1, %v7496_v35 }
 0x30a   : > { %v7497_v20 = vpop.f32.mrb[242].mxu1  ;;  %v3361_v34 = vpop.f32.mrb[243].mxu0  ;;  %v6682_v24 = vpack.c.bf16 %v5333_v15, %v5333_v15  ;;  %v5754_v25 = vmax.f32 %v5753_v44, %v4938_v49  ;;  %v4687_v29 = vmax.f32 %v3367_v5, 0.0  ;;  %v4383_v55 = vadd.f32 %v9092_v1, %v4382_v6 }
 0x30b   : > { %v4385_v42 = vpop.f32.mrb[243].mxu1  ;;  %v6714_v30 = vpack.c.bf16 %v5749_v56, %v5749_v56  ;;  %v5339_v50 = vmax.f32 %v5338_v23, %v4683_v61  ;;  %v4685_v17 = vmax.f32 %v3359_v38, 0.0  ;;  %v3362_v36 = vadd.f32 %v9092_v1, %v3361_v34 }
 0x30c   : > { %v6073_v11 = vunpack.c.l.b16 %v6682_v24  ;;  %v5755_v53 = vmax.f32 %v5754_v25, %v4939_v41  ;;  %v3370_v39 = vadd.f32 %v9092_v1, %v7241_v14  ;;  %v4386_v8 = vadd.f32 %v9092_v1, %v4385_v42 }
 0x30d   : > { %v6105_v27 = vunpack.c.l.b16 %v6714_v30  ;;  %v5340_v12 = vmax.f32 %v5339_v50, %v4684_v19  ;;  %v4394_v43 = vadd.f32 %v9092_v1, %v7497_v20  ;;  %v4686_v45 = vmax.f32 %v3362_v36, 0.0 }
 0x30e   : > { %v9135_v46 = vsel %vm6115_vm3, %v6073_v11, %v9111_v33  ;;  %v5756_v32 = vmax.f32 %v5755_v53, %v4940_v62  ;;  %v4941_v10 = vmax.f32 %v4383_v55, 0.0  ;;  %v4942_v4 = vmax.f32 %v4386_v8, 0.0 }
 0x30f   : > { %v7244_v63 = vpop.f32.mrb[244].mxu0  ;;  %v9139_v59 = vsel %vm6115_vm3, %v6105_v27, %v9115_v40  ;;  %v5341_v52 = vrot.slane %v5340_v12, 4  ;;  %v4943_v48 = vmax.f32 %v4391_v60, 0.0  ;;  %v5347_v13 = vmax.f32 %v4685_v17, %v4686_v45 }
 0x310   : > { %v7500_v18 = vpop.f32.mrb[244].mxu1  ;;  %v3374_v9 = vpop.f32.mrb[245].mxu0  ;;  %v5757_v22 = vrot.slane %v5756_v32, 4  ;;  %v4688_v16 = vmax.f32 %v3370_v39, 0.0  ;;  %v5763_v57 = vmax.f32 %v4941_v10, %v4942_v4  ;;  %v4944_v0 = vmax.f32 %v4394_v43, 0.0 }
 0x311   : > { %v4398_v21 = vpop.f32.mrb[245].mxu1  ;;  %v7245_v7 = vpop.f32.mrb[246].mxu0  ;;  %v3375_v33 = vadd.f32 %v9092_v1, %v3374_v9  ;;  %v5342_v54 = vmax.f32 %v5340_v12, %v5341_v52  ;;  %v5348_v31 = vmax.f32 %v5347_v13, %v4687_v29  ;;  %v3383_v3 = vadd.f32 %v9092_v1, %v7244_v63 }
 0x312   : > { %v7501_v58 = vpop.f32.mrb[246].mxu1  ;;  %v3377_v26 = vpop.f32.mrb[247].mxu0  ;;  %v4399_v28 = vadd.f32 %v9092_v1, %v4398_v21  ;;  %v5758_v40 = vmax.f32 %v5756_v32, %v5757_v22  ;;  %v5764_v44 = vmax.f32 %v5763_v57, %v4943_v48  ;;  %v4407_v37 = vadd.f32 %v9092_v1, %v7500_v18 }
 0x313   : > { %v4401_v2 = vpop.f32.mrb[247].mxu1  ;;  %v4689_v5 = vmax.f32 %v3375_v33, 0.0  ;;  %v5343_v35 = vrot.slane %v5342_v54, 2  ;;  %v5349_v47 = vmax.f32 %v5348_v31, %v4688_v16  ;;  %v3386_v6 = vadd.f32 %v9092_v1, %v7245_v7 }
 0x314   : > { %v4945_v61 = vmax.f32 %v4399_v28, 0.0  ;;  %v5759_v51 = vrot.slane %v5758_v40, 2  ;;  %v5765_v38 = vmax.f32 %v5764_v44, %v4944_v0  ;;  %v3378_v14 = vadd.f32 %v9092_v1, %v3377_v26 }
 0x315   : > { %v5344_v15 = vmax.f32 %v5342_v54, %v5343_v35  ;;  %v5350_v41 = vmax.f32 %v5349_v47, %v4689_v5  ;;  %v4410_v19 = vadd.f32 %v9092_v1, %v7501_v58  ;;  %v4402_v49 = vadd.f32 %v9092_v1, %v4401_v2 }
 0x316   : > { %v5760_v34 = vmax.f32 %v5758_v40, %v5759_v51  ;;  %v5766_v56 = vmax.f32 %v5765_v38, %v4945_v61  ;;  %v4690_v62 = vmax.f32 %v3378_v14, 0.0  ;;  %v4691_v24 = vmax.f32 %v3383_v3, 0.0 }
 0x317   : > { %v7248_v20 = vpop.f32.mrb[248].mxu0  ;;  %v5345_v42 = vrot.slane %v5344_v15, 1  ;;  %v4946_v25 = vmax.f32 %v4402_v49, 0.0  ;;  %v4947_v17 = vmax.f32 %v4407_v37, 0.0  ;;  %v4692_v27 = vmax.f32 %v3386_v6, 0.0 }
 0x318   : > { %v7504_v23 = vpop.f32.mrb[248].mxu1  ;;  %v3390_v60 = vpop.f32.mrb[249].mxu0  ;;  %v5761_v50 = vrot.slane %v5760_v34, 1  ;;  %v5351_v36 = vmax.f32 %v5350_v41, %v4690_v62  ;;  %v4948_v12 = vmax.f32 %v4410_v19, 0.0  ;;  %v3399_v10 = vadd.f32 %v9092_v1, %v7248_v20 }
 0x319   : > { %v3391_v29 = vadd.f32 %v9092_v1, %v3390_v60  ;;  %v4414_v55 = vpop.f32.mrb[249].mxu1  ;;  %v7249_v30 = vpop.f32.mrb[250].mxu0  ;;  %v5346_v8 = vmax.f32 %v5344_v15, %v5345_v42  ;;  %v5767_v43 = vmax.f32 %v5766_v56, %v4946_v25  ;;  %v4423_v4 = vadd.f32 %v9092_v1, %v7504_v23 }
 0x31a   : > { %v4415_v11 = vadd.f32 %v9092_v1, %v4414_v55  ;;  %v7505_v53 = vpop.f32.mrb[250].mxu1  ;;  %v3393_v39 = vpop.f32.mrb[251].mxu0  ;;  %v5762_v63 = vmax.f32 %v5760_v34, %v5761_v50  ;;  %v5352_v32 = vmax.f32 %v5351_v36, %v4691_v24  ;;  %v3402_v33 = vadd.f32 %v9092_v1, %v7249_v30 }
 0x31b   : > { %v4417_v45 = vpop.f32.mrb[251].mxu1  ;;  %v6683_v18 = vpack.c.bf16 %v5346_v8, %v5346_v8  ;;  %v5768_v9 = vmax.f32 %v5767_v43, %v4947_v17  ;;  %v4693_v52 = vmax.f32 %v3391_v29, 0.0  ;;  %v3394_v48 = vadd.f32 %v9092_v1, %v3393_v39 }
 0x31c   : > { %v6715_v13 = vpack.c.bf16 %v5762_v63, %v5762_v63  ;;  %v5353_v21 = vmax.f32 %v5352_v32, %v4692_v27  ;;  %v4949_v7 = vmax.f32 %v4415_v11, 0.0  ;;  %v4418_v22 = vadd.f32 %v9092_v1, %v4417_v45 }
 0x31d   : > { %v6074_v16 = vunpack.c.l.b16 %v6683_v18  ;;  %v5769_v57 = vmax.f32 %v5768_v9, %v4948_v12  ;;  %v4694_v58 = vmax.f32 %v3394_v48, 0.0  ;;  %v4426_v31 = vadd.f32 %v9092_v1, %v7505_v53 }
 0x31e   : > { %v6106_v54 = vunpack.c.l.b16 %v6715_v13  ;;  %v5354_v0 = vrot.slane %v5353_v21, 4  ;;  %v4950_v28 = vmax.f32 %v4418_v22, 0.0  ;;  %v4695_v5 = vmax.f32 %v3399_v10, 0.0 }
 0x31f   : > { %v7252_v26 = vpop.f32.mrb[252].mxu0  ;;  %v6141_v44 = vsel %vm6117_vm4, %v6074_v16, %v9135_v46  ;;  %v5770_v3 = vrot.slane %v5769_v57, 4  ;;  %v5360_v35 = vmax.f32 %v4693_v52, %v4694_v58  ;;  %v4951_v38 = vmax.f32 %v4423_v4, 0.0 }
 0x320   : > { %v7508_v2 = vpop.f32.mrb[252].mxu1  ;;  %v3406_v40 = vpop.f32.mrb[253].mxu0  ;;  %v6169_v61 = vsel %vm6117_vm4, %v6106_v54, %v9139_v59  ;;  %v5355_v51 = vmax.f32 %v5353_v21, %v5354_v0  ;;  %v5776_v6 = vmax.f32 %v4949_v7, %v4950_v28  ;;  %v4696_v19 = vmax.f32 %v3402_v33, 0.0 }
 0x321   : > { %v4430_v37 = vpop.f32.mrb[253].mxu1  ;;  %v7253_v47 = vpop.f32.mrb[254].mxu0  ;;  %v5771_v41 = vmax.f32 %v5769_v57, %v5770_v3  ;;  %v5361_v49 = vmax.f32 %v5360_v35, %v4695_v5  ;;  %v3407_v20 = vadd.f32 %v9092_v1, %v3406_v40  ;;  %v4952_v56 = vmax.f32 %v4426_v31, 0.0 }
 0x322   : > { %v7509_v14 = vpop.f32.mrb[254].mxu1  ;;  %v3409_v15 = vpop.f32.mrb[255].mxu0  ;;  %v5356_v46 = vrot.slane %v5355_v51, 2  ;;  %v5777_v62 = vmax.f32 %v5776_v6, %v4951_v38  ;;  %v4431_v23 = vadd.f32 %v9092_v1, %v4430_v37  ;;  %v3415_v30 = vadd.f32 %v9092_v1, %v7252_v26 }
 0x323   : > { %v4433_v34 = vpop.f32.mrb[255].mxu1  ;;  %v5772_v60 = vrot.slane %v5771_v41, 2  ;;  %v4697_v42 = vmax.f32 %v3407_v20, 0.0  ;;  %v5362_v24 = vmax.f32 %v5361_v49, %v4696_v19  ;;  %v3410_v17 = vadd.f32 %v9092_v1, %v3409_v15 }
 0x324   : > { %v5357_v59 = vmax.f32 %v5355_v51, %v5356_v46  ;;  %v4953_v25 = vmax.f32 %v4431_v23, 0.0  ;;  %v5778_v29 = vmax.f32 %v5777_v62, %v4952_v56  ;;  %v4439_v11 = vadd.f32 %v9092_v1, %v7508_v2 }
 0x325   : > { %v5773_v55 = vmax.f32 %v5771_v41, %v5772_v60  ;;  %v5363_v50 = vmax.f32 %v5362_v24, %v4697_v42  ;;  %v4434_v39 = vadd.f32 %v9092_v1, %v4433_v34  ;;  %v3418_v27 = vadd.f32 %v9092_v1, %v7253_v47 }
 0x326   : > { %v5358_v36 = vrot.slane %v5357_v59, 1  ;;  %v5779_v53 = vmax.f32 %v5778_v29, %v4953_v25  ;;  %v4698_v12 = vmax.f32 %v3410_v17, 0.0  ;;  %v4442_v45 = vadd.f32 %v9092_v1, %v7509_v14 }
 0x327   : > { %v5774_v8 = vrot.slane %v5773_v55, 1  ;;  %v4954_v63 = vmax.f32 %v4434_v39, 0.0  ;;  %v4699_v10 = vmax.f32 %v3415_v30, 0.0  ;;  %v4955_v9 = vmax.f32 %v4439_v11, 0.0 }
 0x328   : > { %v5359_v43 = vmax.f32 %v5357_v59, %v5358_v36  ;;  %v5364_v4 = vmax.f32 %v5363_v50, %v4698_v12  ;;  %v4700_v13 = vmax.f32 %v3418_v27, 0.0  ;;  %v4956_v22 = vmax.f32 %v4442_v45, 0.0 }
 0x329   : > { %v5775_v32 = vmax.f32 %v5773_v55, %v5774_v8  ;;  %v5780_v52 = vmax.f32 %v5779_v53, %v4954_v63 }
 0x32a   : > { %v6684_v18 = vpack.c.bf16 %v5359_v43, %v5359_v43  ;;  %v5365_v21 = vmax.f32 %v5364_v4, %v4699_v10 }
 0x32b   : > { %v6716_v48 = vpack.c.bf16 %v5775_v32, %v5775_v32  ;;  %v5781_v16 = vmax.f32 %v5780_v52, %v4955_v9 }
 0x32c   : > { %v6075_v7 = vunpack.c.l.b16 %v6684_v18  ;;  %v5366_v33 = vmax.f32 %v5365_v21, %v4700_v13 }
 0x32d   : > { %v6107_v57 = vunpack.c.l.b16 %v6716_v48  ;;  %v5782_v26 = vmax.f32 %v5781_v16, %v4956_v22 }
 0x32e   : > { %v6142_v58 = vsel %vm6119_vm5, %v6075_v7, %v6141_v44  ;;  %v5367_v54 = vrot.slane %v5366_v33, 4 }
 0x32f   : > { %v6170_v1 = vsel %vm6119_vm5, %v6107_v57, %v6169_v61  ;;  %v5783_v0 = vrot.slane %v5782_v26, 4 }
 0x330   : > { %v5368_v31 = vmax.f32 %v5366_v33, %v5367_v54 }
 0x331   : > { %v5784_v28 = vmax.f32 %v5782_v26, %v5783_v0 }
 0x332   : > { %v5369_v2 = vrot.slane %v5368_v31, 2 }
 0x333   : > { %v5785_v40 = vrot.slane %v5784_v28, 2 }
 0x334   : > { %v5370_v3 = vmax.f32 %v5368_v31, %v5369_v2 }
 0x335   : > { %v5786_v5 = vmax.f32 %v5784_v28, %v5785_v40 }
 0x336   : > { %v5371_v35 = vrot.slane %v5370_v3, 1 }
 0x337   : > { %v5787_v37 = vrot.slane %v5786_v5, 1 }
 0x338   : > { %v5372_v47 = vmax.f32 %v5370_v3, %v5371_v35 }
 0x339   : > { %v5788_v51 = vmax.f32 %v5786_v5, %v5787_v37 }
 0x33a   : > { %v6685_v38 = vpack.c.bf16 %v5372_v47, %v5372_v47 }
 0x33b   : > { %v6717_v6 = vpack.c.bf16 %v5788_v51, %v5788_v51 }
 0x33c   : > { %v6076_v44 = vunpack.c.l.b16 %v6685_v38 }
 0x33d   : > { %v6108_v14 = vunpack.c.l.b16 %v6717_v6 }
 0x33e   : > { %v6143_v61 = vsel %vm6121_vm6, %v6076_v44, %v6142_v58 }
 0x33f   : > { %v6175_v15 = vpack.c.b16 %v6143_v61, %v6143_v61  ;;  %v6171_v41 = vsel %vm6121_vm6, %v6108_v14, %v6170_v1 }
 0x340   : > { %v6179_v19 = vpack.c.b16 %v6171_v41, %v6171_v41 }
 0x341   : > { %6191 = vst [vmem:[%s8525_s7 + $0xc] sm:$0xf] %v6175_v15 }
 0x342   : > { %6195 = vst [vmem:[%s8525_s7 + $0x1c] sm:$0xf] %v6179_v19 }
 0x343 PF: > { %s16_s17 = sadd.s32 1, %s7932_s17   ;;  %s9201_s12 = smov %s7916_s13 }
 0x344   : > { %p13_p9 = scmp.ge.s32.totalorder %s16_s17, 34   ;;  %s9202_s13 = smov %s7920_s14 }
 0x345   : > { %s9203_s14 = smov %s8006_s24  ;;  %s9204_s15 = smov %s7928_s16 }
 0x346   : > { %s9205_s16 = smov %s9207_s19  ;;  %15 = sbr.rel (!%p13_p9) target bundleno = 4 (0x4), region = 78 }
 0x34d   :  { %6224 = vsyncpa [#allocation3], 1 }
 0x34e   :  { %6226 = vsyncpa [#allocation3 + $0x1], 1 }

// kernel: forward.3
= control target key start
LH: loop header
LB: loop body
LE: loop exit
PB: predicated region body
PF: predicated region fallthrough
CT: control target
= control target key end

     0   :  { %8 = vsyncpa [#allocation5], 0  ;;  %s8156_s0 = inlined_call_operand.vmem [shape: bf16[2048,4096], index: 0, kind: input, shape index: {}]   ;;  %s8157_s1 = inlined_call_operand.hbm [shape: bf16[4096,128], index: 1, kind: input, shape index: {}]   ;;  %s8158_s2 = inlined_call_operand.hbm [shape: f32[1,128], index: 2, kind: input, shape index: {}]   ;;  %s8159_s3 = inlined_call_operand.hbm [shape: f32[32,128], index: 3, kind: output, shape index: {}]  }
   0x1   :  { %10 = vsyncpa [#allocation5 + $0x1], 0 }
   0x2   :  { %11 = vsyncpa [#allocation8], 0 }
   0x3   :  { %12 = vsyncpa [#allocation6], 0 }
   0x4   :  { %14 = vsyncpa [#allocation6 + $0x1], 0  ;;  %s6066_s12 = smov 0   ;;  %s6068_s13 = smov 0  }
   0x5   :  { %s6070_s14 = smov 0   ;;  %s6072_s15 = smov 0  }
   0x6   :  { %s6074_s16 = smov 0   ;;  %s6076_s17 = smov 0  }
   0x7   :  { %s6078_s18 = smov 0   ;;  %s6080_s19 = smov 0  }
   0x8   :  { %s6082_s20 = smov 0   ;;  %s6084_s21 = smov 0  }
   0x9   :  { %s6086_s22 = smov 0   ;;  %s6088_s23 = smov 0  }
   0xa   :  { %s6090_s24 = smov 0  }
   0xb LB: > { %8269 = sst [smem:[#allocation13_spill]] %s5987_s12  ;;  %s4974_s25 = sadd.s32 4294967295, %s6035_s24   ;;  %s6035_s24 = sphi %s6090_s24, %s20_s24   ;;  %s6031_s23 = sphi %s6088_s23, %s8690_s23   ;;  %s6027_s22 = sphi %s6086_s22, %s8689_s22   ;;  %s6023_s21 = sphi %s6084_s21, %s8688_s21   ;;  %s6019_s20 = sphi %s6082_s20, %s8687_s20   ;;  %s6015_s19 = sphi %s6080_s19, %s8686_s19   ;;  %s6011_s18 = sphi %s6078_s18, %s8685_s18   ;;  %s6007_s17 = sphi %s6076_s17, %s8684_s17   ;;  %s6003_s16 = sphi %s6074_s16, %s8683_s16   ;;  %s5999_s15 = sphi %s6072_s15, %s8682_s15   ;;  %s5995_s14 = sphi %s6070_s14, %s8674_s14   ;;  %s5991_s13 = sphi %s6068_s13, %s8681_s13   ;;  %s5987_s12 = sphi %s6066_s12, %s8680_s12  }
   0xc   : > { %8270 = sst [smem:[#allocation14_spill]] %s5995_s14  ;;  %s32_s27 = sadd.s32 1, %s6027_s22 }
   0xd   : > { %s39_s28 = sadd.s32 1, %s6031_s23  ;;  %p33_p0 = scmp.ge.s32.totalorder %s32_s27, 8 }
   0xe   : > { %s48_s29 = sadd.s32 1, %s6015_s19  ;;  %p55_p1 = scmp.ne.s32.totalorder %s6015_s19, %s6011_s18 }
   0xf   : > { %p56_p2 = scmp.eq.s32.totalorder %s6035_s24, 0  ;;  %s8692_s27 = smov (%p33_p0, %s32_s27), 0 }
  0x10   : > { %8271 = sst [smem:[#allocation15_spill]] %s8692_s27  ;;  %s8694_s28 = smov (!%p33_p0, %s39_s28), %s6031_s23 }
  0x11   : > { %s44_s30 = ssub.s32 %s6027_s22, %s8692_s27  ;;  %p6144_p3 = por %p56_p2, %p55_p1 }
  0x12   : > { %p41_p4 = scmp.ge.s32.totalorder %s8694_s28, 2  ;;  %p74_p5 = scmp.eq.s32.totalorder %s44_s30, 0 }
  0x13   : > { %s8272_s4 = scalar_select %p6144_p3, 1, 0 }
  0x14   : > { %s76_s5 = sadd.s32 1, %s6007_s17  ;;  %p83_p6 = scmp.ne.s32.totalorder %s6007_s17, %s6003_s16 }
  0x15   : > { %s8696_s28 = smov (%p41_p4, %s8694_s28), 0  ;;  %p89_p8 = scmp.ne.s32.totalorder %s6003_s16, %s5999_s15 }
  0x16   : > { %8273 = sst [smem:[#allocation16_spill]] %s8696_s28  ;;  %s43_s7 = ssub.s32 %s6031_s23, %s8696_s28 }
  0x17   : > { %s6154_s6 = scalar_select %p74_p5, %s6007_s17, %s76_s5  }
  0x18   : > { %p6158_p7 = por %p83_p6, %p56_p2  ;;  %s45_s9 = sor.u32 %s44_s30, %s43_s7 }
  0x19   : > { %8274 = sst [smem:[#allocation17_spill]] %s6154_s6  ;;  %p46_p9 = scmp.eq.s32.totalorder %s45_s9, 0 }
  0x1a   : > { %s8275_s8 = scalar_select %p6158_p7, 1, 0 }
  0x1b   : > { %p6166_p10 = scmp.eq.s32.totalorder %s4974_s25, 0  ;;  %p128_p11 = scmp.eq.s32.totalorder %s43_s7, 0 }
  0x1c   : > { %s130_s11 = sadd.s32 1, %s5995_s14  ;;  %p140_p13 = scmp.ne.s32.totalorder %s5995_s14, %s5991_s13 }
  0x1d   : > { %s8276_s10 = scalar_select %p6166_p10, 1, 0 }
  0x1e   : > { %s6172_s5 = scalar_select %p46_p9, %s6015_s19, %s48_s29  }
  0x1f   : > { %p6176_p12 = por %p6166_p10, %p89_p8  ;;  %p141_p0 = scmp.eq.s32.totalorder %s4974_s25, 15 }
  0x20   : > { %8277 = sst [smem:[#allocation18_spill]] %s6172_s5  ;;  %p146_p1 = scmp.ne.s32.totalorder %s5991_s13, %s5987_s12 }
  0x21   : > { %s8278_s26 = scalar_select %p6176_p12, 1, 0 }
  0x22   : > { %s6183_s30 = scalar_select %p128_p11, %s5995_s14, %s130_s11  }
  0x23   : > { %s8280_s15 = sadd.s32 4294967294, %s6035_s24   ;;  %p4976_p4 = scmp.ge.s32.totalorder %s6035_s24, 1 }
  0x24   : > { %8279 = sst [smem:[#allocation19_spill]] %s6183_s30  ;;  %p147_p2 = scmp.eq.s32.totalorder %s8280_s15, 15 }
  0x25   : > { %p6192_p5 = por %p141_p0, %p140_p13  ;;  %p154_p6 = scmp.lt.s32.totalorder %s6035_s24, 17 }
  0x26   : > { %p6197_p9 = por %p147_p2, %p146_p1  ;;  %s6037_s11 = smov [#allocation7]  }
  0x27   : > { %s8281_s7 = scalar_select %p6192_p5, 1, 0 }
  0x28   : > { %s8282_s29 = scalar_select %p6197_p9, 1, 0 }
  0x29   : > { %p6201_p8 = pnand %p4976_p4, %p154_p6  ;;  %s169_s25 = sshll.u32 %s6037_s11, 4  ;;  %s170_s25 = int_to_ptr.vmem [resolvable:$true] %s169_s25 }
  0x2a   : > { %8283 = sst [smem:[#allocation20_spill]] %s8282_s29  ;;  %s5837_s5 = scalar_lea.hbm %s8158_s2, 16 }
  0x2b   : > { %s8284_s9 = scalar_select %p6201_p8, 1, 0 }
  0x2c   : > { %p5299_p11 = pneg %p6201_p8  ;;  %p5838_p0 = scmp.ne.s32.totalorder %s8158_s2, %s5837_s5 }
  0x2d   : > { %p5844_p6 = scmp.lt.u32.totalorder %s5837_s5, %s8158_s2 }
  0x2e   : > { %p6209_p13 = pnand %p5299_p11, %p6166_p10 }
  0x30   : > { %p5839_p1 = pneg %p6209_p13 }
  0x32   : > { %p5840_p2 = pnand %p5839_p1, %p5838_p0 }
  0x34   : > { %p5841_p4 = pneg %p5840_p2 }
  0x36   : > { %p5846_p11 = pnand %p5844_p6, %p5841_p4 }
  0x38   : > { %5849 = shalt.err (!%p5846_p11)
}
  0x39   : > { %s5850_s29 = scalar_lea.vmem %s170_s25, 16  ;;  %s5857_s27 = scalar_lea.vmem %s170_s25, 32 }
  0x3a   : > { %p5851_p9 = scmp.ne.s32.totalorder %s170_s25, %s5850_s29  ;;  %p5858_p12 = scmp.lt.s32.totalorder %s170_s25, %s170_s25 }
  0x3b   : > { %p5859_p8 = scmp.lt.s32.totalorder %s5857_s27, %s5850_s29 }
  0x3c   : > { %p5853_p5 = pnand %p5851_p9, %p5839_p1 }
  0x3d   : > { %p5860_p7 = por %p5859_p8, %p5858_p12 }
  0x3e   : > { %p5854_p10 = pneg %p5853_p5 }
  0x40   : > { %p5861_p3 = pnand %p5860_p7, %p5854_p10 }
  0x42   : > { %5864 = shalt.err (!%p5861_p3)
}
  0x43   : > { %5302 = dma.hbm_to_vmem [thread:$0]  (!%p6209_p13), %s8158_s2, 16, %s170_s25, [#allocation8]  }
  0x44   : > { %p4978_p0 = scmp.ge.s32.totalorder %s6035_s24, 16 }
  0x45   : > { %p8286_p2 = scmp.ne.s32.totalorder (!%p4978_p0), %s8272_s4, 0 }
  0x46   : > { %176 = sbr.rel (%p4978_p0) target bundleno = 239 (0xef), region = 20 }
  0x4d   : > { %179 = sbr.rel (!%p8286_p2) target bundleno = 212 (0xd4), region = 24  ;;  %s181_s14 = sand.u32 (%p8286_p2), 1, %s6015_s19  }
  0x4e   : > { %s4981_s5 = sshll.u32 (%p8286_p2), %s6027_s22, 2  ;;  %s4979_s30 = sshll.u32 (%p8286_p2), %s181_s14, 11 }
  0x4f   : > { %s5288_s29 = sshll.u32 (%p8286_p2), %s6031_s23, 12  ;;  %s6243_s4 = scalar_lea.vmem (%p8286_p2), [#allocation3], %s4979_s30 }
  0x50   : > { %s187_s11 = sadd.s32 (%p8286_p2), %s5288_s29, %s4981_s5 }
  0x51   : > { %s4983_s27 = sshll.u32 (%p8286_p2), %s187_s11, 2 }
  0x52   : > { %s6238_s28 = scalar_lea.vmem (%p8286_p2), %s8156_s0, %s4983_s27 }
  0x53   : > { %v202_v0 = vld [vmem:[%s6238_s28] sm:$0xff] (%p8286_p2)  ;;  %v204_v1 = vld [vmem:[%s6238_s28 + $0x8] sm:$0xff] (%p8286_p2) }
  0x54   : > { %v206_v2 = vld [vmem:[%s6238_s28 + $0x80] sm:$0xff]  ;;  %203 = vst [vmem:[%s6243_s4] sm:$0xff] %v202_v0  ;;  %205 = vst [vmem:[%s6243_s4 + $0x8] sm:$0xff] %v204_v1  ;;  %v208_v3 = vld [vmem:[%s6238_s28 + $0x88] sm:$0xff] }
  0x55   : > { %207 = vst [vmem:[%s6243_s4 + $0x10] sm:$0xff] %v206_v2  ;;  %v210_v4 = vld [vmem:[%s6238_s28 + $0x100] sm:$0xff]  ;;  %v212_v5 = vld [vmem:[%s6238_s28 + $0x108] sm:$0xff]  ;;  %209 = vst [vmem:[%s6243_s4 + $0x18] sm:$0xff] %v208_v3 }
  0x56   : > { %211 = vst [vmem:[%s6243_s4 + $0x20] sm:$0xff] %v210_v4  ;;  %213 = vst [vmem:[%s6243_s4 + $0x28] sm:$0xff] %v212_v5  ;;  %v214_v6 = vld [vmem:[%s6238_s28 + $0x180] sm:$0xff]  ;;  %v216_v7 = vld [vmem:[%s6238_s28 + $0x188] sm:$0xff] }
  0x57   : > { %v218_v8 = vld [vmem:[%s6238_s28 + $0x200] sm:$0xff]  ;;  %215 = vst [vmem:[%s6243_s4 + $0x30] sm:$0xff] %v214_v6  ;;  %217 = vst [vmem:[%s6243_s4 + $0x38] sm:$0xff] %v216_v7  ;;  %v220_v9 = vld [vmem:[%s6238_s28 + $0x208] sm:$0xff] }
  0x58   : > { %219 = vst [vmem:[%s6243_s4 + $0x40] sm:$0xff] %v218_v8  ;;  %v222_v10 = vld [vmem:[%s6238_s28 + $0x280] sm:$0xff]  ;;  %v224_v11 = vld [vmem:[%s6238_s28 + $0x288] sm:$0xff]  ;;  %221 = vst [vmem:[%s6243_s4 + $0x48] sm:$0xff] %v220_v9 }
  0x59   : > { %223 = vst [vmem:[%s6243_s4 + $0x50] sm:$0xff] %v222_v10  ;;  %225 = vst [vmem:[%s6243_s4 + $0x58] sm:$0xff] %v224_v11  ;;  %v226_v12 = vld [vmem:[%s6238_s28 + $0x300] sm:$0xff]  ;;  %v228_v13 = vld [vmem:[%s6238_s28 + $0x308] sm:$0xff] }
  0x5a   : > { %v230_v14 = vld [vmem:[%s6238_s28 + $0x380] sm:$0xff]  ;;  %227 = vst [vmem:[%s6243_s4 + $0x60] sm:$0xff] %v226_v12  ;;  %229 = vst [vmem:[%s6243_s4 + $0x68] sm:$0xff] %v228_v13  ;;  %v232_v15 = vld [vmem:[%s6238_s28 + $0x388] sm:$0xff] }
  0x5b   : > { %231 = vst [vmem:[%s6243_s4 + $0x70] sm:$0xff] %v230_v14  ;;  %v234_v16 = vld [vmem:[%s6238_s28 + $0x400] sm:$0xff]  ;;  %v236_v17 = vld [vmem:[%s6238_s28 + $0x408] sm:$0xff]  ;;  %233 = vst [vmem:[%s6243_s4 + $0x78] sm:$0xff] %v232_v15 }
  0x5c   : > { %235 = vst [vmem:[%s6243_s4 + $0x80] sm:$0xff] %v234_v16  ;;  %237 = vst [vmem:[%s6243_s4 + $0x88] sm:$0xff] %v236_v17  ;;  %v238_v18 = vld [vmem:[%s6238_s28 + $0x480] sm:$0xff]  ;;  %v240_v19 = vld [vmem:[%s6238_s28 + $0x488] sm:$0xff] }
  0x5d   : > { %v242_v20 = vld [vmem:[%s6238_s28 + $0x500] sm:$0xff]  ;;  %239 = vst [vmem:[%s6243_s4 + $0x90] sm:$0xff] %v238_v18  ;;  %241 = vst [vmem:[%s6243_s4 + $0x98] sm:$0xff] %v240_v19  ;;  %v244_v21 = vld [vmem:[%s6238_s28 + $0x508] sm:$0xff] }
  0x5e   : > { %243 = vst [vmem:[%s6243_s4 + $0xa0] sm:$0xff] %v242_v20  ;;  %v246_v22 = vld [vmem:[%s6238_s28 + $0x580] sm:$0xff]  ;;  %v248_v23 = vld [vmem:[%s6238_s28 + $0x588] sm:$0xff]  ;;  %245 = vst [vmem:[%s6243_s4 + $0xa8] sm:$0xff] %v244_v21 }
  0x5f   : > { %247 = vst [vmem:[%s6243_s4 + $0xb0] sm:$0xff] %v246_v22  ;;  %249 = vst [vmem:[%s6243_s4 + $0xb8] sm:$0xff] %v248_v23  ;;  %v250_v24 = vld [vmem:[%s6238_s28 + $0x600] sm:$0xff]  ;;  %v252_v25 = vld [vmem:[%s6238_s28 + $0x608] sm:$0xff] }
  0x60   : > { %v254_v26 = vld [vmem:[%s6238_s28 + $0x680] sm:$0xff]  ;;  %251 = vst [vmem:[%s6243_s4 + $0xc0] sm:$0xff] %v250_v24  ;;  %253 = vst [vmem:[%s6243_s4 + $0xc8] sm:$0xff] %v252_v25  ;;  %v256_v27 = vld [vmem:[%s6238_s28 + $0x688] sm:$0xff] }
  0x61   : > { %255 = vst [vmem:[%s6243_s4 + $0xd0] sm:$0xff] %v254_v26  ;;  %v258_v28 = vld [vmem:[%s6238_s28 + $0x700] sm:$0xff]  ;;  %v260_v29 = vld [vmem:[%s6238_s28 + $0x708] sm:$0xff]  ;;  %257 = vst [vmem:[%s6243_s4 + $0xd8] sm:$0xff] %v256_v27 }
  0x62   : > { %259 = vst [vmem:[%s6243_s4 + $0xe0] sm:$0xff] %v258_v28  ;;  %261 = vst [vmem:[%s6243_s4 + $0xe8] sm:$0xff] %v260_v29  ;;  %v262_v30 = vld [vmem:[%s6238_s28 + $0x780] sm:$0xff]  ;;  %v264_v31 = vld [vmem:[%s6238_s28 + $0x788] sm:$0xff] }
  0x63   : > { %v266_v32 = vld [vmem:[%s6238_s28 + $0x800] sm:$0xff]  ;;  %263 = vst [vmem:[%s6243_s4 + $0xf0] sm:$0xff] %v262_v30  ;;  %265 = vst [vmem:[%s6243_s4 + $0xf8] sm:$0xff] %v264_v31  ;;  %v268_v33 = vld [vmem:[%s6238_s28 + $0x808] sm:$0xff] }
  0x64   : > { %267 = vst [vmem:[%s6243_s4 + $0x100] sm:$0xff] %v266_v32  ;;  %v270_v34 = vld [vmem:[%s6238_s28 + $0x880] sm:$0xff]  ;;  %v272_v35 = vld [vmem:[%s6238_s28 + $0x888] sm:$0xff]  ;;  %269 = vst [vmem:[%s6243_s4 + $0x108] sm:$0xff] %v268_v33 }
  0x65   : > { %271 = vst [vmem:[%s6243_s4 + $0x110] sm:$0xff] %v270_v34  ;;  %273 = vst [vmem:[%s6243_s4 + $0x118] sm:$0xff] %v272_v35  ;;  %v274_v36 = vld [vmem:[%s6238_s28 + $0x900] sm:$0xff]  ;;  %v276_v37 = vld [vmem:[%s6238_s28 + $0x908] sm:$0xff] }
  0x66   : > { %v278_v38 = vld [vmem:[%s6238_s28 + $0x980] sm:$0xff]  ;;  %275 = vst [vmem:[%s6243_s4 + $0x120] sm:$0xff] %v274_v36  ;;  %277 = vst [vmem:[%s6243_s4 + $0x128] sm:$0xff] %v276_v37  ;;  %v280_v39 = vld [vmem:[%s6238_s28 + $0x988] sm:$0xff] }
  0x67   : > { %279 = vst [vmem:[%s6243_s4 + $0x130] sm:$0xff] %v278_v38  ;;  %v282_v40 = vld [vmem:[%s6238_s28 + $0xa00] sm:$0xff]  ;;  %v284_v41 = vld [vmem:[%s6238_s28 + $0xa08] sm:$0xff]  ;;  %281 = vst [vmem:[%s6243_s4 + $0x138] sm:$0xff] %v280_v39 }
  0x68   : > { %283 = vst [vmem:[%s6243_s4 + $0x140] sm:$0xff] %v282_v40  ;;  %285 = vst [vmem:[%s6243_s4 + $0x148] sm:$0xff] %v284_v41  ;;  %v286_v42 = vld [vmem:[%s6238_s28 + $0xa80] sm:$0xff]  ;;  %v288_v43 = vld [vmem:[%s6238_s28 + $0xa88] sm:$0xff] }
  0x69   : > { %v290_v44 = vld [vmem:[%s6238_s28 + $0xb00] sm:$0xff]  ;;  %287 = vst [vmem:[%s6243_s4 + $0x150] sm:$0xff] %v286_v42  ;;  %289 = vst [vmem:[%s6243_s4 + $0x158] sm:$0xff] %v288_v43  ;;  %v292_v45 = vld [vmem:[%s6238_s28 + $0xb08] sm:$0xff] }
  0x6a   : > { %291 = vst [vmem:[%s6243_s4 + $0x160] sm:$0xff] %v290_v44  ;;  %v294_v46 = vld [vmem:[%s6238_s28 + $0xb80] sm:$0xff]  ;;  %v296_v47 = vld [vmem:[%s6238_s28 + $0xb88] sm:$0xff]  ;;  %293 = vst [vmem:[%s6243_s4 + $0x168] sm:$0xff] %v292_v45 }
  0x6b   : > { %295 = vst [vmem:[%s6243_s4 + $0x170] sm:$0xff] %v294_v46  ;;  %297 = vst [vmem:[%s6243_s4 + $0x178] sm:$0xff] %v296_v47  ;;  %v298_v48 = vld [vmem:[%s6238_s28 + $0xc00] sm:$0xff]  ;;  %v300_v49 = vld [vmem:[%s6238_s28 + $0xc08] sm:$0xff] }
  0x6c   : > { %v302_v50 = vld [vmem:[%s6238_s28 + $0xc80] sm:$0xff]  ;;  %299 = vst [vmem:[%s6243_s4 + $0x180] sm:$0xff] %v298_v48  ;;  %301 = vst [vmem:[%s6243_s4 + $0x188] sm:$0xff] %v300_v49  ;;  %v304_v51 = vld [vmem:[%s6238_s28 + $0xc88] sm:$0xff] }
  0x6d   : > { %303 = vst [vmem:[%s6243_s4 + $0x190] sm:$0xff] %v302_v50  ;;  %v306_v52 = vld [vmem:[%s6238_s28 + $0xd00] sm:$0xff]  ;;  %v308_v53 = vld [vmem:[%s6238_s28 + $0xd08] sm:$0xff]  ;;  %305 = vst [vmem:[%s6243_s4 + $0x198] sm:$0xff] %v304_v51 }
  0x6e   : > { %307 = vst [vmem:[%s6243_s4 + $0x1a0] sm:$0xff] %v306_v52  ;;  %309 = vst [vmem:[%s6243_s4 + $0x1a8] sm:$0xff] %v308_v53  ;;  %v310_v54 = vld [vmem:[%s6238_s28 + $0xd80] sm:$0xff]  ;;  %v312_v55 = vld [vmem:[%s6238_s28 + $0xd88] sm:$0xff] }
  0x6f   : > { %v314_v56 = vld [vmem:[%s6238_s28 + $0xe00] sm:$0xff]  ;;  %311 = vst [vmem:[%s6243_s4 + $0x1b0] sm:$0xff] %v310_v54  ;;  %313 = vst [vmem:[%s6243_s4 + $0x1b8] sm:$0xff] %v312_v55  ;;  %v316_v57 = vld [vmem:[%s6238_s28 + $0xe08] sm:$0xff] }
  0x70   : > { %315 = vst [vmem:[%s6243_s4 + $0x1c0] sm:$0xff] %v314_v56  ;;  %v318_v58 = vld [vmem:[%s6238_s28 + $0xe80] sm:$0xff]  ;;  %v320_v59 = vld [vmem:[%s6238_s28 + $0xe88] sm:$0xff]  ;;  %317 = vst [vmem:[%s6243_s4 + $0x1c8] sm:$0xff] %v316_v57 }
  0x71   : > { %319 = vst [vmem:[%s6243_s4 + $0x1d0] sm:$0xff] %v318_v58  ;;  %321 = vst [vmem:[%s6243_s4 + $0x1d8] sm:$0xff] %v320_v59  ;;  %v322_v60 = vld [vmem:[%s6238_s28 + $0xf00] sm:$0xff]  ;;  %v324_v61 = vld [vmem:[%s6238_s28 + $0xf08] sm:$0xff] }
  0x72   : > { %v326_v62 = vld [vmem:[%s6238_s28 + $0xf80] sm:$0xff]  ;;  %323 = vst [vmem:[%s6243_s4 + $0x1e0] sm:$0xff] %v322_v60  ;;  %325 = vst [vmem:[%s6243_s4 + $0x1e8] sm:$0xff] %v324_v61  ;;  %v328_v63 = vld [vmem:[%s6238_s28 + $0xf88] sm:$0xff] }
  0x73   : > { %327 = vst [vmem:[%s6243_s4 + $0x1f0] sm:$0xff] %v326_v62  ;;  %v330_v0 = vld [vmem:[%s6238_s28 + $0x1000] sm:$0xff]  ;;  %v332_v1 = vld [vmem:[%s6238_s28 + $0x1008] sm:$0xff]  ;;  %329 = vst [vmem:[%s6243_s4 + $0x1f8] sm:$0xff] %v328_v63 }
  0x74   : > { %331 = vst [vmem:[%s6243_s4 + $0x200] sm:$0xff] %v330_v0  ;;  %333 = vst [vmem:[%s6243_s4 + $0x208] sm:$0xff] %v332_v1  ;;  %v334_v2 = vld [vmem:[%s6238_s28 + $0x1080] sm:$0xff]  ;;  %v336_v3 = vld [vmem:[%s6238_s28 + $0x1088] sm:$0xff] }
  0x75   : > { %v338_v4 = vld [vmem:[%s6238_s28 + $0x1100] sm:$0xff]  ;;  %335 = vst [vmem:[%s6243_s4 + $0x210] sm:$0xff] %v334_v2  ;;  %337 = vst [vmem:[%s6243_s4 + $0x218] sm:$0xff] %v336_v3  ;;  %v340_v5 = vld [vmem:[%s6238_s28 + $0x1108] sm:$0xff] }
  0x76   : > { %339 = vst [vmem:[%s6243_s4 + $0x220] sm:$0xff] %v338_v4  ;;  %v342_v6 = vld [vmem:[%s6238_s28 + $0x1180] sm:$0xff]  ;;  %v344_v7 = vld [vmem:[%s6238_s28 + $0x1188] sm:$0xff]  ;;  %341 = vst [vmem:[%s6243_s4 + $0x228] sm:$0xff] %v340_v5 }
  0x77   : > { %343 = vst [vmem:[%s6243_s4 + $0x230] sm:$0xff] %v342_v6  ;;  %345 = vst [vmem:[%s6243_s4 + $0x238] sm:$0xff] %v344_v7  ;;  %v346_v8 = vld [vmem:[%s6238_s28 + $0x1200] sm:$0xff]  ;;  %v348_v9 = vld [vmem:[%s6238_s28 + $0x1208] sm:$0xff] }
  0x78   : > { %v350_v10 = vld [vmem:[%s6238_s28 + $0x1280] sm:$0xff]  ;;  %347 = vst [vmem:[%s6243_s4 + $0x240] sm:$0xff] %v346_v8  ;;  %349 = vst [vmem:[%s6243_s4 + $0x248] sm:$0xff] %v348_v9  ;;  %v352_v11 = vld [vmem:[%s6238_s28 + $0x1288] sm:$0xff] }
  0x79   : > { %351 = vst [vmem:[%s6243_s4 + $0x250] sm:$0xff] %v350_v10  ;;  %v354_v12 = vld [vmem:[%s6238_s28 + $0x1300] sm:$0xff]  ;;  %v356_v13 = vld [vmem:[%s6238_s28 + $0x1308] sm:$0xff]  ;;  %353 = vst [vmem:[%s6243_s4 + $0x258] sm:$0xff] %v352_v11 }
  0x7a   : > { %355 = vst [vmem:[%s6243_s4 + $0x260] sm:$0xff] %v354_v12  ;;  %357 = vst [vmem:[%s6243_s4 + $0x268] sm:$0xff] %v356_v13  ;;  %v358_v14 = vld [vmem:[%s6238_s28 + $0x1380] sm:$0xff]  ;;  %v360_v15 = vld [vmem:[%s6238_s28 + $0x1388] sm:$0xff] }
  0x7b   : > { %v362_v16 = vld [vmem:[%s6238_s28 + $0x1400] sm:$0xff]  ;;  %359 = vst [vmem:[%s6243_s4 + $0x270] sm:$0xff] %v358_v14  ;;  %361 = vst [vmem:[%s6243_s4 + $0x278] sm:$0xff] %v360_v15  ;;  %v364_v17 = vld [vmem:[%s6238_s28 + $0x1408] sm:$0xff] }
  0x7c   : > { %363 = vst [vmem:[%s6243_s4 + $0x280] sm:$0xff] %v362_v16  ;;  %v366_v18 = vld [vmem:[%s6238_s28 + $0x1480] sm:$0xff]  ;;  %v368_v19 = vld [vmem:[%s6238_s28 + $0x1488] sm:$0xff]  ;;  %365 = vst [vmem:[%s6243_s4 + $0x288] sm:$0xff] %v364_v17 }
  0x7d   : > { %367 = vst [vmem:[%s6243_s4 + $0x290] sm:$0xff] %v366_v18  ;;  %369 = vst [vmem:[%s6243_s4 + $0x298] sm:$0xff] %v368_v19  ;;  %v370_v20 = vld [vmem:[%s6238_s28 + $0x1500] sm:$0xff]  ;;  %v372_v21 = vld [vmem:[%s6238_s28 + $0x1508] sm:$0xff] }
  0x7e   : > { %v374_v22 = vld [vmem:[%s6238_s28 + $0x1580] sm:$0xff]  ;;  %371 = vst [vmem:[%s6243_s4 + $0x2a0] sm:$0xff] %v370_v20  ;;  %373 = vst [vmem:[%s6243_s4 + $0x2a8] sm:$0xff] %v372_v21  ;;  %v376_v23 = vld [vmem:[%s6238_s28 + $0x1588] sm:$0xff] }
  0x7f   : > { %375 = vst [vmem:[%s6243_s4 + $0x2b0] sm:$0xff] %v374_v22  ;;  %v378_v24 = vld [vmem:[%s6238_s28 + $0x1600] sm:$0xff]  ;;  %v380_v25 = vld [vmem:[%s6238_s28 + $0x1608] sm:$0xff]  ;;  %377 = vst [vmem:[%s6243_s4 + $0x2b8] sm:$0xff] %v376_v23 }
  0x80   : > { %379 = vst [vmem:[%s6243_s4 + $0x2c0] sm:$0xff] %v378_v24  ;;  %381 = vst [vmem:[%s6243_s4 + $0x2c8] sm:$0xff] %v380_v25  ;;  %v382_v26 = vld [vmem:[%s6238_s28 + $0x1680] sm:$0xff]  ;;  %v384_v27 = vld [vmem:[%s6238_s28 + $0x1688] sm:$0xff] }
  0x81   : > { %v386_v28 = vld [vmem:[%s6238_s28 + $0x1700] sm:$0xff]  ;;  %383 = vst [vmem:[%s6243_s4 + $0x2d0] sm:$0xff] %v382_v26  ;;  %385 = vst [vmem:[%s6243_s4 + $0x2d8] sm:$0xff] %v384_v27  ;;  %v388_v29 = vld [vmem:[%s6238_s28 + $0x1708] sm:$0xff] }
  0x82   : > { %387 = vst [vmem:[%s6243_s4 + $0x2e0] sm:$0xff] %v386_v28  ;;  %v390_v30 = vld [vmem:[%s6238_s28 + $0x1780] sm:$0xff]  ;;  %v392_v31 = vld [vmem:[%s6238_s28 + $0x1788] sm:$0xff]  ;;  %389 = vst [vmem:[%s6243_s4 + $0x2e8] sm:$0xff] %v388_v29 }
  0x83   : > { %391 = vst [vmem:[%s6243_s4 + $0x2f0] sm:$0xff] %v390_v30  ;;  %393 = vst [vmem:[%s6243_s4 + $0x2f8] sm:$0xff] %v392_v31  ;;  %v394_v32 = vld [vmem:[%s6238_s28 + $0x1800] sm:$0xff]  ;;  %v396_v33 = vld [vmem:[%s6238_s28 + $0x1808] sm:$0xff] }
  0x84   : > { %v398_v34 = vld [vmem:[%s6238_s28 + $0x1880] sm:$0xff]  ;;  %395 = vst [vmem:[%s6243_s4 + $0x300] sm:$0xff] %v394_v32  ;;  %397 = vst [vmem:[%s6243_s4 + $0x308] sm:$0xff] %v396_v33  ;;  %v400_v35 = vld [vmem:[%s6238_s28 + $0x1888] sm:$0xff] }
  0x85   : > { %399 = vst [vmem:[%s6243_s4 + $0x310] sm:$0xff] %v398_v34  ;;  %v402_v36 = vld [vmem:[%s6238_s28 + $0x1900] sm:$0xff]  ;;  %v404_v37 = vld [vmem:[%s6238_s28 + $0x1908] sm:$0xff]  ;;  %401 = vst [vmem:[%s6243_s4 + $0x318] sm:$0xff] %v400_v35 }
  0x86   : > { %403 = vst [vmem:[%s6243_s4 + $0x320] sm:$0xff] %v402_v36  ;;  %405 = vst [vmem:[%s6243_s4 + $0x328] sm:$0xff] %v404_v37  ;;  %v406_v38 = vld [vmem:[%s6238_s28 + $0x1980] sm:$0xff]  ;;  %v408_v39 = vld [vmem:[%s6238_s28 + $0x1988] sm:$0xff] }
  0x87   : > { %v410_v40 = vld [vmem:[%s6238_s28 + $0x1a00] sm:$0xff]  ;;  %407 = vst [vmem:[%s6243_s4 + $0x330] sm:$0xff] %v406_v38  ;;  %409 = vst [vmem:[%s6243_s4 + $0x338] sm:$0xff] %v408_v39  ;;  %v412_v41 = vld [vmem:[%s6238_s28 + $0x1a08] sm:$0xff] }
  0x88   : > { %411 = vst [vmem:[%s6243_s4 + $0x340] sm:$0xff] %v410_v40  ;;  %v414_v42 = vld [vmem:[%s6238_s28 + $0x1a80] sm:$0xff]  ;;  %v416_v43 = vld [vmem:[%s6238_s28 + $0x1a88] sm:$0xff]  ;;  %413 = vst [vmem:[%s6243_s4 + $0x348] sm:$0xff] %v412_v41 }
  0x89   : > { %415 = vst [vmem:[%s6243_s4 + $0x350] sm:$0xff] %v414_v42  ;;  %417 = vst [vmem:[%s6243_s4 + $0x358] sm:$0xff] %v416_v43  ;;  %v418_v44 = vld [vmem:[%s6238_s28 + $0x1b00] sm:$0xff]  ;;  %v420_v45 = vld [vmem:[%s6238_s28 + $0x1b08] sm:$0xff] }
  0x8a   : > { %v422_v46 = vld [vmem:[%s6238_s28 + $0x1b80] sm:$0xff]  ;;  %419 = vst [vmem:[%s6243_s4 + $0x360] sm:$0xff] %v418_v44  ;;  %421 = vst [vmem:[%s6243_s4 + $0x368] sm:$0xff] %v420_v45  ;;  %v424_v47 = vld [vmem:[%s6238_s28 + $0x1b88] sm:$0xff] }
  0x8b   : > { %423 = vst [vmem:[%s6243_s4 + $0x370] sm:$0xff] %v422_v46  ;;  %v426_v48 = vld [vmem:[%s6238_s28 + $0x1c00] sm:$0xff]  ;;  %v428_v49 = vld [vmem:[%s6238_s28 + $0x1c08] sm:$0xff]  ;;  %425 = vst [vmem:[%s6243_s4 + $0x378] sm:$0xff] %v424_v47 }
  0x8c   : > { %427 = vst [vmem:[%s6243_s4 + $0x380] sm:$0xff] %v426_v48  ;;  %429 = vst [vmem:[%s6243_s4 + $0x388] sm:$0xff] %v428_v49  ;;  %v430_v50 = vld [vmem:[%s6238_s28 + $0x1c80] sm:$0xff]  ;;  %v432_v51 = vld [vmem:[%s6238_s28 + $0x1c88] sm:$0xff] }
  0x8d   : > { %v434_v52 = vld [vmem:[%s6238_s28 + $0x1d00] sm:$0xff]  ;;  %431 = vst [vmem:[%s6243_s4 + $0x390] sm:$0xff] %v430_v50  ;;  %433 = vst [vmem:[%s6243_s4 + $0x398] sm:$0xff] %v432_v51  ;;  %v436_v53 = vld [vmem:[%s6238_s28 + $0x1d08] sm:$0xff] }
  0x8e   : > { %435 = vst [vmem:[%s6243_s4 + $0x3a0] sm:$0xff] %v434_v52  ;;  %v438_v54 = vld [vmem:[%s6238_s28 + $0x1d80] sm:$0xff]  ;;  %v440_v55 = vld [vmem:[%s6238_s28 + $0x1d88] sm:$0xff]  ;;  %437 = vst [vmem:[%s6243_s4 + $0x3a8] sm:$0xff] %v436_v53 }
  0x8f   : > { %439 = vst [vmem:[%s6243_s4 + $0x3b0] sm:$0xff] %v438_v54  ;;  %441 = vst [vmem:[%s6243_s4 + $0x3b8] sm:$0xff] %v440_v55  ;;  %v442_v56 = vld [vmem:[%s6238_s28 + $0x1e00] sm:$0xff]  ;;  %v444_v57 = vld [vmem:[%s6238_s28 + $0x1e08] sm:$0xff] }
  0x90   : > { %v446_v58 = vld [vmem:[%s6238_s28 + $0x1e80] sm:$0xff]  ;;  %443 = vst [vmem:[%s6243_s4 + $0x3c0] sm:$0xff] %v442_v56  ;;  %445 = vst [vmem:[%s6243_s4 + $0x3c8] sm:$0xff] %v444_v57  ;;  %v448_v59 = vld [vmem:[%s6238_s28 + $0x1e88] sm:$0xff] }
  0x91   : > { %447 = vst [vmem:[%s6243_s4 + $0x3d0] sm:$0xff] %v446_v58  ;;  %v450_v60 = vld [vmem:[%s6238_s28 + $0x1f00] sm:$0xff]  ;;  %v452_v61 = vld [vmem:[%s6238_s28 + $0x1f08] sm:$0xff]  ;;  %449 = vst [vmem:[%s6243_s4 + $0x3d8] sm:$0xff] %v448_v59 }
  0x92   : > { %451 = vst [vmem:[%s6243_s4 + $0x3e0] sm:$0xff] %v450_v60  ;;  %453 = vst [vmem:[%s6243_s4 + $0x3e8] sm:$0xff] %v452_v61  ;;  %v454_v62 = vld [vmem:[%s6238_s28 + $0x1f80] sm:$0xff]  ;;  %v456_v63 = vld [vmem:[%s6238_s28 + $0x1f88] sm:$0xff] }
  0x93   : > { %v458_v0 = vld [vmem:[%s6238_s28 + $0x2000] sm:$0xff]  ;;  %455 = vst [vmem:[%s6243_s4 + $0x3f0] sm:$0xff] %v454_v62  ;;  %457 = vst [vmem:[%s6243_s4 + $0x3f8] sm:$0xff] %v456_v63  ;;  %v460_v1 = vld [vmem:[%s6238_s28 + $0x2008] sm:$0xff] }
  0x94   : > { %459 = vst [vmem:[%s6243_s4 + $0x400] sm:$0xff] %v458_v0  ;;  %v462_v2 = vld [vmem:[%s6238_s28 + $0x2080] sm:$0xff]  ;;  %v464_v3 = vld [vmem:[%s6238_s28 + $0x2088] sm:$0xff]  ;;  %461 = vst [vmem:[%s6243_s4 + $0x408] sm:$0xff] %v460_v1 }
  0x95   : > { %463 = vst [vmem:[%s6243_s4 + $0x410] sm:$0xff] %v462_v2  ;;  %465 = vst [vmem:[%s6243_s4 + $0x418] sm:$0xff] %v464_v3  ;;  %v466_v4 = vld [vmem:[%s6238_s28 + $0x2100] sm:$0xff]  ;;  %v468_v5 = vld [vmem:[%s6238_s28 + $0x2108] sm:$0xff] }
  0x96   : > { %v470_v6 = vld [vmem:[%s6238_s28 + $0x2180] sm:$0xff]  ;;  %467 = vst [vmem:[%s6243_s4 + $0x420] sm:$0xff] %v466_v4  ;;  %469 = vst [vmem:[%s6243_s4 + $0x428] sm:$0xff] %v468_v5  ;;  %v472_v7 = vld [vmem:[%s6238_s28 + $0x2188] sm:$0xff] }
  0x97   : > { %471 = vst [vmem:[%s6243_s4 + $0x430] sm:$0xff] %v470_v6  ;;  %v474_v8 = vld [vmem:[%s6238_s28 + $0x2200] sm:$0xff]  ;;  %v476_v9 = vld [vmem:[%s6238_s28 + $0x2208] sm:$0xff]  ;;  %473 = vst [vmem:[%s6243_s4 + $0x438] sm:$0xff] %v472_v7 }
  0x98   : > { %475 = vst [vmem:[%s6243_s4 + $0x440] sm:$0xff] %v474_v8  ;;  %477 = vst [vmem:[%s6243_s4 + $0x448] sm:$0xff] %v476_v9  ;;  %v478_v10 = vld [vmem:[%s6238_s28 + $0x2280] sm:$0xff]  ;;  %v480_v11 = vld [vmem:[%s6238_s28 + $0x2288] sm:$0xff] }
  0x99   : > { %v482_v12 = vld [vmem:[%s6238_s28 + $0x2300] sm:$0xff]  ;;  %479 = vst [vmem:[%s6243_s4 + $0x450] sm:$0xff] %v478_v10  ;;  %481 = vst [vmem:[%s6243_s4 + $0x458] sm:$0xff] %v480_v11  ;;  %v484_v13 = vld [vmem:[%s6238_s28 + $0x2308] sm:$0xff] }
  0x9a   : > { %483 = vst [vmem:[%s6243_s4 + $0x460] sm:$0xff] %v482_v12  ;;  %v486_v14 = vld [vmem:[%s6238_s28 + $0x2380] sm:$0xff]  ;;  %v488_v15 = vld [vmem:[%s6238_s28 + $0x2388] sm:$0xff]  ;;  %485 = vst [vmem:[%s6243_s4 + $0x468] sm:$0xff] %v484_v13 }
  0x9b   : > { %487 = vst [vmem:[%s6243_s4 + $0x470] sm:$0xff] %v486_v14  ;;  %489 = vst [vmem:[%s6243_s4 + $0x478] sm:$0xff] %v488_v15  ;;  %v490_v16 = vld [vmem:[%s6238_s28 + $0x2400] sm:$0xff]  ;;  %v492_v17 = vld [vmem:[%s6238_s28 + $0x2408] sm:$0xff] }
  0x9c   : > { %v494_v18 = vld [vmem:[%s6238_s28 + $0x2480] sm:$0xff]  ;;  %491 = vst [vmem:[%s6243_s4 + $0x480] sm:$0xff] %v490_v16  ;;  %493 = vst [vmem:[%s6243_s4 + $0x488] sm:$0xff] %v492_v17  ;;  %v496_v19 = vld [vmem:[%s6238_s28 + $0x2488] sm:$0xff] }
  0x9d   : > { %495 = vst [vmem:[%s6243_s4 + $0x490] sm:$0xff] %v494_v18  ;;  %v498_v20 = vld [vmem:[%s6238_s28 + $0x2500] sm:$0xff]  ;;  %v500_v21 = vld [vmem:[%s6238_s28 + $0x2508] sm:$0xff]  ;;  %497 = vst [vmem:[%s6243_s4 + $0x498] sm:$0xff] %v496_v19 }
  0x9e   : > { %499 = vst [vmem:[%s6243_s4 + $0x4a0] sm:$0xff] %v498_v20  ;;  %501 = vst [vmem:[%s6243_s4 + $0x4a8] sm:$0xff] %v500_v21  ;;  %v502_v22 = vld [vmem:[%s6238_s28 + $0x2580] sm:$0xff]  ;;  %v504_v23 = vld [vmem:[%s6238_s28 + $0x2588] sm:$0xff] }
  0x9f   : > { %v506_v24 = vld [vmem:[%s6238_s28 + $0x2600] sm:$0xff]  ;;  %503 = vst [vmem:[%s6243_s4 + $0x4b0] sm:$0xff] %v502_v22  ;;  %505 = vst [vmem:[%s6243_s4 + $0x4b8] sm:$0xff] %v504_v23  ;;  %v508_v25 = vld [vmem:[%s6238_s28 + $0x2608] sm:$0xff] }
  0xa0   : > { %507 = vst [vmem:[%s6243_s4 + $0x4c0] sm:$0xff] %v506_v24  ;;  %v510_v26 = vld [vmem:[%s6238_s28 + $0x2680] sm:$0xff]  ;;  %v512_v27 = vld [vmem:[%s6238_s28 + $0x2688] sm:$0xff]  ;;  %509 = vst [vmem:[%s6243_s4 + $0x4c8] sm:$0xff] %v508_v25 }
  0xa1   : > { %511 = vst [vmem:[%s6243_s4 + $0x4d0] sm:$0xff] %v510_v26  ;;  %513 = vst [vmem:[%s6243_s4 + $0x4d8] sm:$0xff] %v512_v27  ;;  %v514_v28 = vld [vmem:[%s6238_s28 + $0x2700] sm:$0xff]  ;;  %v516_v29 = vld [vmem:[%s6238_s28 + $0x2708] sm:$0xff] }
  0xa2   : > { %v518_v30 = vld [vmem:[%s6238_s28 + $0x2780] sm:$0xff]  ;;  %515 = vst [vmem:[%s6243_s4 + $0x4e0] sm:$0xff] %v514_v28  ;;  %517 = vst [vmem:[%s6243_s4 + $0x4e8] sm:$0xff] %v516_v29  ;;  %v520_v31 = vld [vmem:[%s6238_s28 + $0x2788] sm:$0xff] }
  0xa3   : > { %519 = vst [vmem:[%s6243_s4 + $0x4f0] sm:$0xff] %v518_v30  ;;  %v522_v32 = vld [vmem:[%s6238_s28 + $0x2800] sm:$0xff]  ;;  %v524_v33 = vld [vmem:[%s6238_s28 + $0x2808] sm:$0xff]  ;;  %521 = vst [vmem:[%s6243_s4 + $0x4f8] sm:$0xff] %v520_v31 }
  0xa4   : > { %523 = vst [vmem:[%s6243_s4 + $0x500] sm:$0xff] %v522_v32  ;;  %525 = vst [vmem:[%s6243_s4 + $0x508] sm:$0xff] %v524_v33  ;;  %v526_v34 = vld [vmem:[%s6238_s28 + $0x2880] sm:$0xff]  ;;  %v528_v35 = vld [vmem:[%s6238_s28 + $0x2888] sm:$0xff] }
  0xa5   : > { %v530_v36 = vld [vmem:[%s6238_s28 + $0x2900] sm:$0xff]  ;;  %527 = vst [vmem:[%s6243_s4 + $0x510] sm:$0xff] %v526_v34  ;;  %529 = vst [vmem:[%s6243_s4 + $0x518] sm:$0xff] %v528_v35  ;;  %v532_v37 = vld [vmem:[%s6238_s28 + $0x2908] sm:$0xff] }
  0xa6   : > { %531 = vst [vmem:[%s6243_s4 + $0x520] sm:$0xff] %v530_v36  ;;  %v534_v38 = vld [vmem:[%s6238_s28 + $0x2980] sm:$0xff]  ;;  %v536_v39 = vld [vmem:[%s6238_s28 + $0x2988] sm:$0xff]  ;;  %533 = vst [vmem:[%s6243_s4 + $0x528] sm:$0xff] %v532_v37 }
  0xa7   : > { %535 = vst [vmem:[%s6243_s4 + $0x530] sm:$0xff] %v534_v38  ;;  %537 = vst [vmem:[%s6243_s4 + $0x538] sm:$0xff] %v536_v39  ;;  %v538_v40 = vld [vmem:[%s6238_s28 + $0x2a00] sm:$0xff]  ;;  %v540_v41 = vld [vmem:[%s6238_s28 + $0x2a08] sm:$0xff] }
  0xa8   : > { %v542_v42 = vld [vmem:[%s6238_s28 + $0x2a80] sm:$0xff]  ;;  %539 = vst [vmem:[%s6243_s4 + $0x540] sm:$0xff] %v538_v40  ;;  %541 = vst [vmem:[%s6243_s4 + $0x548] sm:$0xff] %v540_v41  ;;  %v544_v43 = vld [vmem:[%s6238_s28 + $0x2a88] sm:$0xff] }
  0xa9   : > { %543 = vst [vmem:[%s6243_s4 + $0x550] sm:$0xff] %v542_v42  ;;  %v546_v44 = vld [vmem:[%s6238_s28 + $0x2b00] sm:$0xff]  ;;  %v548_v45 = vld [vmem:[%s6238_s28 + $0x2b08] sm:$0xff]  ;;  %545 = vst [vmem:[%s6243_s4 + $0x558] sm:$0xff] %v544_v43 }
  0xaa   : > { %547 = vst [vmem:[%s6243_s4 + $0x560] sm:$0xff] %v546_v44  ;;  %549 = vst [vmem:[%s6243_s4 + $0x568] sm:$0xff] %v548_v45  ;;  %v550_v46 = vld [vmem:[%s6238_s28 + $0x2b80] sm:$0xff]  ;;  %v552_v47 = vld [vmem:[%s6238_s28 + $0x2b88] sm:$0xff] }
  0xab   : > { %v554_v48 = vld [vmem:[%s6238_s28 + $0x2c00] sm:$0xff]  ;;  %551 = vst [vmem:[%s6243_s4 + $0x570] sm:$0xff] %v550_v46  ;;  %553 = vst [vmem:[%s6243_s4 + $0x578] sm:$0xff] %v552_v47  ;;  %v556_v49 = vld [vmem:[%s6238_s28 + $0x2c08] sm:$0xff] }
  0xac   : > { %555 = vst [vmem:[%s6243_s4 + $0x580] sm:$0xff] %v554_v48  ;;  %v558_v50 = vld [vmem:[%s6238_s28 + $0x2c80] sm:$0xff]  ;;  %v560_v51 = vld [vmem:[%s6238_s28 + $0x2c88] sm:$0xff]  ;;  %557 = vst [vmem:[%s6243_s4 + $0x588] sm:$0xff] %v556_v49 }
  0xad   : > { %559 = vst [vmem:[%s6243_s4 + $0x590] sm:$0xff] %v558_v50  ;;  %561 = vst [vmem:[%s6243_s4 + $0x598] sm:$0xff] %v560_v51  ;;  %v562_v52 = vld [vmem:[%s6238_s28 + $0x2d00] sm:$0xff]  ;;  %v564_v53 = vld [vmem:[%s6238_s28 + $0x2d08] sm:$0xff] }
  0xae   : > { %v566_v54 = vld [vmem:[%s6238_s28 + $0x2d80] sm:$0xff]  ;;  %563 = vst [vmem:[%s6243_s4 + $0x5a0] sm:$0xff] %v562_v52  ;;  %565 = vst [vmem:[%s6243_s4 + $0x5a8] sm:$0xff] %v564_v53  ;;  %v568_v55 = vld [vmem:[%s6238_s28 + $0x2d88] sm:$0xff] }
  0xaf   : > { %567 = vst [vmem:[%s6243_s4 + $0x5b0] sm:$0xff] %v566_v54  ;;  %v570_v56 = vld [vmem:[%s6238_s28 + $0x2e00] sm:$0xff]  ;;  %v572_v57 = vld [vmem:[%s6238_s28 + $0x2e08] sm:$0xff]  ;;  %569 = vst [vmem:[%s6243_s4 + $0x5b8] sm:$0xff] %v568_v55 }
  0xb0   : > { %571 = vst [vmem:[%s6243_s4 + $0x5c0] sm:$0xff] %v570_v56  ;;  %573 = vst [vmem:[%s6243_s4 + $0x5c8] sm:$0xff] %v572_v57  ;;  %v574_v58 = vld [vmem:[%s6238_s28 + $0x2e80] sm:$0xff]  ;;  %v576_v59 = vld [vmem:[%s6238_s28 + $0x2e88] sm:$0xff] }
  0xb1   : > { %v578_v60 = vld [vmem:[%s6238_s28 + $0x2f00] sm:$0xff]  ;;  %575 = vst [vmem:[%s6243_s4 + $0x5d0] sm:$0xff] %v574_v58  ;;  %577 = vst [vmem:[%s6243_s4 + $0x5d8] sm:$0xff] %v576_v59  ;;  %v580_v61 = vld [vmem:[%s6238_s28 + $0x2f08] sm:$0xff] }
  0xb2   : > { %579 = vst [vmem:[%s6243_s4 + $0x5e0] sm:$0xff] %v578_v60  ;;  %v582_v62 = vld [vmem:[%s6238_s28 + $0x2f80] sm:$0xff]  ;;  %v584_v63 = vld [vmem:[%s6238_s28 + $0x2f88] sm:$0xff]  ;;  %581 = vst [vmem:[%s6243_s4 + $0x5e8] sm:$0xff] %v580_v61 }
  0xb3   : > { %583 = vst [vmem:[%s6243_s4 + $0x5f0] sm:$0xff] %v582_v62  ;;  %585 = vst [vmem:[%s6243_s4 + $0x5f8] sm:$0xff] %v584_v63  ;;  %v586_v0 = vld [vmem:[%s6238_s28 + $0x3000] sm:$0xff]  ;;  %v588_v1 = vld [vmem:[%s6238_s28 + $0x3008] sm:$0xff] }
  0xb4   : > { %v590_v2 = vld [vmem:[%s6238_s28 + $0x3080] sm:$0xff]  ;;  %587 = vst [vmem:[%s6243_s4 + $0x600] sm:$0xff] %v586_v0  ;;  %589 = vst [vmem:[%s6243_s4 + $0x608] sm:$0xff] %v588_v1  ;;  %v592_v3 = vld [vmem:[%s6238_s28 + $0x3088] sm:$0xff] }
  0xb5   : > { %591 = vst [vmem:[%s6243_s4 + $0x610] sm:$0xff] %v590_v2  ;;  %v594_v4 = vld [vmem:[%s6238_s28 + $0x3100] sm:$0xff]  ;;  %v596_v5 = vld [vmem:[%s6238_s28 + $0x3108] sm:$0xff]  ;;  %593 = vst [vmem:[%s6243_s4 + $0x618] sm:$0xff] %v592_v3 }
  0xb6   : > { %595 = vst [vmem:[%s6243_s4 + $0x620] sm:$0xff] %v594_v4  ;;  %597 = vst [vmem:[%s6243_s4 + $0x628] sm:$0xff] %v596_v5  ;;  %v598_v6 = vld [vmem:[%s6238_s28 + $0x3180] sm:$0xff]  ;;  %v600_v7 = vld [vmem:[%s6238_s28 + $0x3188] sm:$0xff] }
  0xb7   : > { %v602_v8 = vld [vmem:[%s6238_s28 + $0x3200] sm:$0xff]  ;;  %599 = vst [vmem:[%s6243_s4 + $0x630] sm:$0xff] %v598_v6  ;;  %601 = vst [vmem:[%s6243_s4 + $0x638] sm:$0xff] %v600_v7  ;;  %v604_v9 = vld [vmem:[%s6238_s28 + $0x3208] sm:$0xff] }
  0xb8   : > { %603 = vst [vmem:[%s6243_s4 + $0x640] sm:$0xff] %v602_v8  ;;  %v606_v10 = vld [vmem:[%s6238_s28 + $0x3280] sm:$0xff]  ;;  %v608_v11 = vld [vmem:[%s6238_s28 + $0x3288] sm:$0xff]  ;;  %605 = vst [vmem:[%s6243_s4 + $0x648] sm:$0xff] %v604_v9 }
  0xb9   : > { %607 = vst [vmem:[%s6243_s4 + $0x650] sm:$0xff] %v606_v10  ;;  %609 = vst [vmem:[%s6243_s4 + $0x658] sm:$0xff] %v608_v11  ;;  %v610_v12 = vld [vmem:[%s6238_s28 + $0x3300] sm:$0xff]  ;;  %v612_v13 = vld [vmem:[%s6238_s28 + $0x3308] sm:$0xff] }
  0xba   : > { %v614_v14 = vld [vmem:[%s6238_s28 + $0x3380] sm:$0xff]  ;;  %611 = vst [vmem:[%s6243_s4 + $0x660] sm:$0xff] %v610_v12  ;;  %613 = vst [vmem:[%s6243_s4 + $0x668] sm:$0xff] %v612_v13  ;;  %v616_v15 = vld [vmem:[%s6238_s28 + $0x3388] sm:$0xff] }
  0xbb   : > { %615 = vst [vmem:[%s6243_s4 + $0x670] sm:$0xff] %v614_v14  ;;  %v618_v16 = vld [vmem:[%s6238_s28 + $0x3400] sm:$0xff]  ;;  %v620_v17 = vld [vmem:[%s6238_s28 + $0x3408] sm:$0xff]  ;;  %617 = vst [vmem:[%s6243_s4 + $0x678] sm:$0xff] %v616_v15 }
  0xbc   : > { %619 = vst [vmem:[%s6243_s4 + $0x680] sm:$0xff] %v618_v16  ;;  %621 = vst [vmem:[%s6243_s4 + $0x688] sm:$0xff] %v620_v17  ;;  %v622_v18 = vld [vmem:[%s6238_s28 + $0x3480] sm:$0xff]  ;;  %v624_v19 = vld [vmem:[%s6238_s28 + $0x3488] sm:$0xff] }
  0xbd   : > { %v626_v20 = vld [vmem:[%s6238_s28 + $0x3500] sm:$0xff]  ;;  %623 = vst [vmem:[%s6243_s4 + $0x690] sm:$0xff] %v622_v18  ;;  %625 = vst [vmem:[%s6243_s4 + $0x698] sm:$0xff] %v624_v19  ;;  %v628_v21 = vld [vmem:[%s6238_s28 + $0x3508] sm:$0xff] }
  0xbe   : > { %627 = vst [vmem:[%s6243_s4 + $0x6a0] sm:$0xff] %v626_v20  ;;  %v630_v22 = vld [vmem:[%s6238_s28 + $0x3580] sm:$0xff]  ;;  %v632_v23 = vld [vmem:[%s6238_s28 + $0x3588] sm:$0xff]  ;;  %629 = vst [vmem:[%s6243_s4 + $0x6a8] sm:$0xff] %v628_v21 }
  0xbf   : > { %631 = vst [vmem:[%s6243_s4 + $0x6b0] sm:$0xff] %v630_v22  ;;  %633 = vst [vmem:[%s6243_s4 + $0x6b8] sm:$0xff] %v632_v23  ;;  %v634_v24 = vld [vmem:[%s6238_s28 + $0x3600] sm:$0xff]  ;;  %v636_v25 = vld [vmem:[%s6238_s28 + $0x3608] sm:$0xff] }
  0xc0   : > { %v638_v26 = vld [vmem:[%s6238_s28 + $0x3680] sm:$0xff]  ;;  %635 = vst [vmem:[%s6243_s4 + $0x6c0] sm:$0xff] %v634_v24  ;;  %637 = vst [vmem:[%s6243_s4 + $0x6c8] sm:$0xff] %v636_v25  ;;  %v640_v27 = vld [vmem:[%s6238_s28 + $0x3688] sm:$0xff] }
  0xc1   : > { %639 = vst [vmem:[%s6243_s4 + $0x6d0] sm:$0xff] %v638_v26  ;;  %v642_v28 = vld [vmem:[%s6238_s28 + $0x3700] sm:$0xff]  ;;  %v644_v29 = vld [vmem:[%s6238_s28 + $0x3708] sm:$0xff]  ;;  %641 = vst [vmem:[%s6243_s4 + $0x6d8] sm:$0xff] %v640_v27 }
  0xc2   : > { %643 = vst [vmem:[%s6243_s4 + $0x6e0] sm:$0xff] %v642_v28  ;;  %645 = vst [vmem:[%s6243_s4 + $0x6e8] sm:$0xff] %v644_v29  ;;  %v646_v30 = vld [vmem:[%s6238_s28 + $0x3780] sm:$0xff]  ;;  %v648_v31 = vld [vmem:[%s6238_s28 + $0x3788] sm:$0xff] }
  0xc3   : > { %v650_v32 = vld [vmem:[%s6238_s28 + $0x3800] sm:$0xff]  ;;  %647 = vst [vmem:[%s6243_s4 + $0x6f0] sm:$0xff] %v646_v30  ;;  %649 = vst [vmem:[%s6243_s4 + $0x6f8] sm:$0xff] %v648_v31  ;;  %v652_v33 = vld [vmem:[%s6238_s28 + $0x3808] sm:$0xff] }
  0xc4   : > { %651 = vst [vmem:[%s6243_s4 + $0x700] sm:$0xff] %v650_v32  ;;  %v654_v34 = vld [vmem:[%s6238_s28 + $0x3880] sm:$0xff]  ;;  %v656_v35 = vld [vmem:[%s6238_s28 + $0x3888] sm:$0xff]  ;;  %653 = vst [vmem:[%s6243_s4 + $0x708] sm:$0xff] %v652_v33 }
  0xc5   : > { %655 = vst [vmem:[%s6243_s4 + $0x710] sm:$0xff] %v654_v34  ;;  %657 = vst [vmem:[%s6243_s4 + $0x718] sm:$0xff] %v656_v35  ;;  %v658_v36 = vld [vmem:[%s6238_s28 + $0x3900] sm:$0xff]  ;;  %v660_v37 = vld [vmem:[%s6238_s28 + $0x3908] sm:$0xff] }
  0xc6   : > { %v662_v38 = vld [vmem:[%s6238_s28 + $0x3980] sm:$0xff]  ;;  %659 = vst [vmem:[%s6243_s4 + $0x720] sm:$0xff] %v658_v36  ;;  %661 = vst [vmem:[%s6243_s4 + $0x728] sm:$0xff] %v660_v37  ;;  %v664_v39 = vld [vmem:[%s6238_s28 + $0x3988] sm:$0xff] }
  0xc7   : > { %663 = vst [vmem:[%s6243_s4 + $0x730] sm:$0xff] %v662_v38  ;;  %v666_v40 = vld [vmem:[%s6238_s28 + $0x3a00] sm:$0xff]  ;;  %v668_v41 = vld [vmem:[%s6238_s28 + $0x3a08] sm:$0xff]  ;;  %665 = vst [vmem:[%s6243_s4 + $0x738] sm:$0xff] %v664_v39 }
  0xc8   : > { %667 = vst [vmem:[%s6243_s4 + $0x740] sm:$0xff] %v666_v40  ;;  %669 = vst [vmem:[%s6243_s4 + $0x748] sm:$0xff] %v668_v41  ;;  %v670_v42 = vld [vmem:[%s6238_s28 + $0x3a80] sm:$0xff]  ;;  %v672_v43 = vld [vmem:[%s6238_s28 + $0x3a88] sm:$0xff] }
  0xc9   : > { %v674_v44 = vld [vmem:[%s6238_s28 + $0x3b00] sm:$0xff]  ;;  %671 = vst [vmem:[%s6243_s4 + $0x750] sm:$0xff] %v670_v42  ;;  %673 = vst [vmem:[%s6243_s4 + $0x758] sm:$0xff] %v672_v43  ;;  %v676_v45 = vld [vmem:[%s6238_s28 + $0x3b08] sm:$0xff] }
  0xca   : > { %675 = vst [vmem:[%s6243_s4 + $0x760] sm:$0xff] %v674_v44  ;;  %v678_v46 = vld [vmem:[%s6238_s28 + $0x3b80] sm:$0xff]  ;;  %v680_v47 = vld [vmem:[%s6238_s28 + $0x3b88] sm:$0xff]  ;;  %677 = vst [vmem:[%s6243_s4 + $0x768] sm:$0xff] %v676_v45 }
  0xcb   : > { %679 = vst [vmem:[%s6243_s4 + $0x770] sm:$0xff] %v678_v46  ;;  %681 = vst [vmem:[%s6243_s4 + $0x778] sm:$0xff] %v680_v47  ;;  %v682_v48 = vld [vmem:[%s6238_s28 + $0x3c00] sm:$0xff]  ;;  %v684_v49 = vld [vmem:[%s6238_s28 + $0x3c08] sm:$0xff] }
  0xcc   : > { %v686_v50 = vld [vmem:[%s6238_s28 + $0x3c80] sm:$0xff]  ;;  %683 = vst [vmem:[%s6243_s4 + $0x780] sm:$0xff] %v682_v48  ;;  %685 = vst [vmem:[%s6243_s4 + $0x788] sm:$0xff] %v684_v49  ;;  %v688_v51 = vld [vmem:[%s6238_s28 + $0x3c88] sm:$0xff] }
  0xcd   : > { %687 = vst [vmem:[%s6243_s4 + $0x790] sm:$0xff] %v686_v50  ;;  %v690_v52 = vld [vmem:[%s6238_s28 + $0x3d00] sm:$0xff]  ;;  %v692_v53 = vld [vmem:[%s6238_s28 + $0x3d08] sm:$0xff]  ;;  %689 = vst [vmem:[%s6243_s4 + $0x798] sm:$0xff] %v688_v51 }
  0xce   : > { %691 = vst [vmem:[%s6243_s4 + $0x7a0] sm:$0xff] %v690_v52  ;;  %693 = vst [vmem:[%s6243_s4 + $0x7a8] sm:$0xff] %v692_v53  ;;  %v694_v54 = vld [vmem:[%s6238_s28 + $0x3d80] sm:$0xff]  ;;  %v696_v55 = vld [vmem:[%s6238_s28 + $0x3d88] sm:$0xff] }
  0xcf   : > { %v698_v56 = vld [vmem:[%s6238_s28 + $0x3e00] sm:$0xff]  ;;  %695 = vst [vmem:[%s6243_s4 + $0x7b0] sm:$0xff] %v694_v54  ;;  %697 = vst [vmem:[%s6243_s4 + $0x7b8] sm:$0xff] %v696_v55  ;;  %v700_v57 = vld [vmem:[%s6238_s28 + $0x3e08] sm:$0xff] }
  0xd0   : > { %699 = vst [vmem:[%s6243_s4 + $0x7c0] sm:$0xff] %v698_v56  ;;  %v702_v58 = vld [vmem:[%s6238_s28 + $0x3e80] sm:$0xff]  ;;  %v704_v59 = vld [vmem:[%s6238_s28 + $0x3e88] sm:$0xff]  ;;  %701 = vst [vmem:[%s6243_s4 + $0x7c8] sm:$0xff] %v700_v57 }
  0xd1   : > { %703 = vst [vmem:[%s6243_s4 + $0x7d0] sm:$0xff] %v702_v58  ;;  %705 = vst [vmem:[%s6243_s4 + $0x7d8] sm:$0xff] %v704_v59  ;;  %v706_v60 = vld [vmem:[%s6238_s28 + $0x3f00] sm:$0xff]  ;;  %v708_v61 = vld [vmem:[%s6238_s28 + $0x3f08] sm:$0xff] }
  0xd2   : > { %v710_v62 = vld [vmem:[%s6238_s28 + $0x3f80] sm:$0xff]  ;;  %707 = vst [vmem:[%s6243_s4 + $0x7e0] sm:$0xff] %v706_v60  ;;  %709 = vst [vmem:[%s6243_s4 + $0x7e8] sm:$0xff] %v708_v61  ;;  %v712_v63 = vld [vmem:[%s6238_s28 + $0x3f88] sm:$0xff] }
  0xd3   : > { %711 = vst [vmem:[%s6243_s4 + $0x7f0] sm:$0xff] %v710_v62  ;;  %713 = vst [vmem:[%s6243_s4 + $0x7f8] sm:$0xff] %v712_v63 }
  0xd4 PF: > { %s720_s12 = sand.u32 1, %s6007_s17   ;;  %s5289_s25 = sshll.u32 %s6027_s22, 12 }
  0xd5   : > { %s4984_s6 = sshll.u32 %s720_s12, 8  ;;  %s6759_s30 = scalar_lea.hbm %s8157_s1, %s5289_s25 }
  0xd6   : > { %s724_s29 = scalar_lea.vmem [#allocation4], %s4984_s6  ;;  %s6763_s27 = scalar_lea.sflag [#allocation5], %s720_s12 }
  0xd7   : > { %s732_s11 = sshll.u32 %s724_s29, 4  ;;  %s5865_s15 = scalar_lea.hbm %s6759_s30, 4096  ;;  %s6761_s11 = int_to_ptr.vmem [resolvable:$true] %s732_s11 }
  0xd8   : > { %p5866_p3 = scmp.ne.s32.totalorder %s6759_s30, %s5865_s15  ;;  %p8287_p7 = scmp.ne.s32.totalorder %s8275_s8, 0 }
  0xd9   : > { %s5869_s25 = scalar_lea.hbm %s8157_s1, 32768  ;;  %p5870_p5 = scmp.lt.u32.totalorder %s6759_s30, %s8157_s1 }
  0xda   : > { %p5867_p10 = pnand %p5866_p3, %p8287_p7  ;;  %p5871_p9 = scmp.lt.u32.totalorder %s5869_s25, %s5865_s15 }
  0xdb   : > { %p5873_p13 = scmp.lt.u32.totalorder %s5865_s15, %s6759_s30 }
  0xdc   : > { %p5868_p12 = pneg %p5867_p10  ;;  %p5872_p8 = por %p5871_p9, %p5870_p5 }
  0xde   : > { %p5874_p1 = por %p5873_p13, %p5872_p8 }
  0xe0   : > { %p5875_p4 = pnand %p5874_p1, %p5868_p12 }
  0xe2   : > { %5878 = shalt.err (!%p5875_p4)
}
  0xe3   : > { %s5879_s12 = scalar_lea.vmem %s6761_s11, 4096  ;;  %s6038_s6 = smov [#allocation4]  }
  0xe4   : > { %p5880_p6 = scmp.ne.s32.totalorder %s6761_s11, %s5879_s12  ;;  %s5883_s29 = sshll.u32 %s6038_s6, 4  ;;  %s5884_s29 = int_to_ptr.vmem [resolvable:$false] %s5883_s29 }
  0xe5   : > { %s5885_s28 = scalar_lea.vmem %s5884_s29, 8192  ;;  %p5886_p2 = scmp.lt.s32.totalorder %s6761_s11, %s5884_s29 }
  0xe6   : > { %p5881_p11 = pnand %p5880_p6, %p8287_p7  ;;  %p5887_p3 = scmp.lt.s32.totalorder %s5885_s28, %s5879_s12 }
  0xe8   : > { %p5882_p0 = pneg %p5881_p11  ;;  %p5888_p10 = por %p5887_p3, %p5886_p2 }
  0xea   : > { %p5889_p5 = pnand %p5888_p10, %p5882_p0 }
  0xec   : > { %5892 = shalt.err (!%p5889_p5)
}
  0xed   : > { %s6039_s15 = smov 64   ;;  %s6040_s4 = smov 4  }
  0xee   : > { %5293 = dma.hbm_to_vmem [thread:$0]  (%p8287_p7), %s6759_s30, 4096, %s6761_s11, %s6763_s27, %s6039_s15, %s6039_s15, %s6040_s4  }
  0xef PF: > { %p8288_p12 = scmp.ne.s32.totalorder %s8284_s9, 0 }
  0xf0   : > { %s747_s25 = sand.u32 (!%p8288_p12), 1, %s6011_s18   ;;  %s753_s14 = sand.u32 (!%p8288_p12), 1, %s6003_s16  }
  0xf1   : > { %744 = sbr.rel (%p8288_p12) target bundleno = 1283 (0x503), region = 51  ;;  %s4988_s5 = sshll.u32 (!%p8288_p12), %s747_s25, 11 }
  0xf2   : > { %s4989_s12 = sshll.u32 (!%p8288_p12), %s753_s14, 8  ;;  %s6791_s6 = scalar_lea.vmem (!%p8288_p12), [#allocation3], %s4988_s5 }
  0xf3   : > { %s754_s29 = scalar_lea.sflag (!%p8288_p12), [#allocation5], %s753_s14  ;;  %s6793_s28 = scalar_lea.vmem (!%p8288_p12), [#allocation4], %s4989_s12 }
  0xf4   : > { %p8289_p9 = scmp.ne.s32.totalorder (!%p8288_p12), %s8278_s26, 0 }
  0xf8   : > { %5974 = dma.done.wait (%p8289_p9), %s754_s29, 4096  }
  0xf9   : > { %5976 = vsyncadd (%p8289_p9), %s754_s29, 4294963200  ;;  %p8290_p7 = scmp.ne.s32.totalorder %s8276_s10, 0 }
  0xfb   : > { %5978 = dma.done.wait (%p8290_p7), [#allocation8], 16  }
  0xfc   : > { %5980 = vsyncadd (%p8290_p7), [#allocation8], 4294967280  ;;  %s785_s18 = sand.u32 1, %s5991_s13   ;;  %p4992_p8 = scmp.ne.s32.totalorder %s6019_s20, 0 }
  0xfd   : > { %s4991_s8 = sshll.u32 %s785_s18, 4  ;;  %v6041_v0 = vmov (!%p4992_p8), 0.0  }
  0xfe   : > { %s6806_s9 = scalar_lea.vmem [#allocation9], %s4991_s8  ;;  %796 = sbr.rel (%p4992_p8) target bundleno = 318 (0x13e), region = 67  ;;  %797 = vst [vmem:[#allocation2] sm:$0xff] (!%p4992_p8), %v6041_v0  ;;  %798 = vst [vmem:[#allocation2 + $0x8] sm:$0xff] (!%p4992_p8), %v6041_v0 }
  0xff   : > { %799 = vst [vmem:[#allocation2 + $0x10] sm:$0xff] (!%p4992_p8), %v6041_v0  ;;  %800 = vst [vmem:[#allocation2 + $0x18] sm:$0xff] (!%p4992_p8), %v6041_v0 }
 0x100   : > { %801 = vst [vmem:[#allocation2 + $0x20] sm:$0xff] (!%p4992_p8), %v6041_v0  ;;  %802 = vst [vmem:[#allocation2 + $0x28] sm:$0xff] (!%p4992_p8), %v6041_v0 }
 0x101   : > { %803 = vst [vmem:[#allocation2 + $0x30] sm:$0xff] (!%p4992_p8), %v6041_v0  ;;  %804 = vst [vmem:[#allocation2 + $0x38] sm:$0xff] (!%p4992_p8), %v6041_v0 }
 0x102   : > { %805 = vst [vmem:[#allocation2 + $0x40] sm:$0xff] (!%p4992_p8), %v6041_v0  ;;  %806 = vst [vmem:[#allocation2 + $0x48] sm:$0xff] (!%p4992_p8), %v6041_v0 }
 0x103   : > { %807 = vst [vmem:[#allocation2 + $0x50] sm:$0xff] (!%p4992_p8), %v6041_v0  ;;  %808 = vst [vmem:[#allocation2 + $0x58] sm:$0xff] (!%p4992_p8), %v6041_v0 }
 0x104   : > { %809 = vst [vmem:[#allocation2 + $0x60] sm:$0xff] (!%p4992_p8), %v6041_v0  ;;  %810 = vst [vmem:[#allocation2 + $0x68] sm:$0xff] (!%p4992_p8), %v6041_v0 }
 0x105   : > { %811 = vst [vmem:[#allocation2 + $0x70] sm:$0xff] %v6041_v0  ;;  %812 = vst [vmem:[#allocation2 + $0x78] sm:$0xff] %v6041_v0 }
 0x106   : > { %813 = vst [vmem:[#allocation2 + $0x80] sm:$0xff] %v6041_v0  ;;  %814 = vst [vmem:[#allocation2 + $0x88] sm:$0xff] %v6041_v0 }
 0x107   : > { %815 = vst [vmem:[#allocation2 + $0x90] sm:$0xff] %v6041_v0  ;;  %816 = vst [vmem:[#allocation2 + $0x98] sm:$0xff] %v6041_v0 }
 0x108   : > { %817 = vst [vmem:[#allocation2 + $0xa0] sm:$0xff] %v6041_v0  ;;  %818 = vst [vmem:[#allocation2 + $0xa8] sm:$0xff] %v6041_v0 }
 0x109   : > { %819 = vst [vmem:[#allocation2 + $0xb0] sm:$0xff] %v6041_v0  ;;  %820 = vst [vmem:[#allocation2 + $0xb8] sm:$0xff] %v6041_v0 }
 0x10a   : > { %821 = vst [vmem:[#allocation2 + $0xc0] sm:$0xff] %v6041_v0  ;;  %822 = vst [vmem:[#allocation2 + $0xc8] sm:$0xff] %v6041_v0 }
 0x10b   : > { %823 = vst [vmem:[#allocation2 + $0xd0] sm:$0xff] %v6041_v0  ;;  %824 = vst [vmem:[#allocation2 + $0xd8] sm:$0xff] %v6041_v0 }
 0x10c   : > { %825 = vst [vmem:[#allocation2 + $0xe0] sm:$0xff] %v6041_v0  ;;  %826 = vst [vmem:[#allocation2 + $0xe8] sm:$0xff] %v6041_v0 }
 0x10d   : > { %827 = vst [vmem:[#allocation2 + $0xf0] sm:$0xff] %v6041_v0  ;;  %828 = vst [vmem:[#allocation2 + $0xf8] sm:$0xff] %v6041_v0 }
 0x10e   : > { %829 = vst [vmem:[#allocation2 + $0x100] sm:$0xff] %v6041_v0  ;;  %830 = vst [vmem:[#allocation2 + $0x108] sm:$0xff] %v6041_v0 }
 0x10f   : > { %831 = vst [vmem:[#allocation2 + $0x110] sm:$0xff] %v6041_v0  ;;  %832 = vst [vmem:[#allocation2 + $0x118] sm:$0xff] %v6041_v0 }
 0x110   : > { %833 = vst [vmem:[#allocation2 + $0x120] sm:$0xff] %v6041_v0  ;;  %834 = vst [vmem:[#allocation2 + $0x128] sm:$0xff] %v6041_v0 }
 0x111   : > { %835 = vst [vmem:[#allocation2 + $0x130] sm:$0xff] %v6041_v0  ;;  %836 = vst [vmem:[#allocation2 + $0x138] sm:$0xff] %v6041_v0 }
 0x112   : > { %837 = vst [vmem:[#allocation2 + $0x140] sm:$0xff] %v6041_v0  ;;  %838 = vst [vmem:[#allocation2 + $0x148] sm:$0xff] %v6041_v0 }
 0x113   : > { %839 = vst [vmem:[#allocation2 + $0x150] sm:$0xff] %v6041_v0  ;;  %840 = vst [vmem:[#allocation2 + $0x158] sm:$0xff] %v6041_v0 }
 0x114   : > { %841 = vst [vmem:[#allocation2 + $0x160] sm:$0xff] %v6041_v0  ;;  %842 = vst [vmem:[#allocation2 + $0x168] sm:$0xff] %v6041_v0 }
 0x115   : > { %843 = vst [vmem:[#allocation2 + $0x170] sm:$0xff] %v6041_v0  ;;  %844 = vst [vmem:[#allocation2 + $0x178] sm:$0xff] %v6041_v0 }
 0x116   : > { %845 = vst [vmem:[#allocation2 + $0x180] sm:$0xff] %v6041_v0  ;;  %846 = vst [vmem:[#allocation2 + $0x188] sm:$0xff] %v6041_v0 }
 0x117   : > { %847 = vst [vmem:[#allocation2 + $0x190] sm:$0xff] %v6041_v0  ;;  %848 = vst [vmem:[#allocation2 + $0x198] sm:$0xff] %v6041_v0 }
 0x118   : > { %849 = vst [vmem:[#allocation2 + $0x1a0] sm:$0xff] %v6041_v0  ;;  %850 = vst [vmem:[#allocation2 + $0x1a8] sm:$0xff] %v6041_v0 }
 0x119   : > { %851 = vst [vmem:[#allocation2 + $0x1b0] sm:$0xff] %v6041_v0  ;;  %852 = vst [vmem:[#allocation2 + $0x1b8] sm:$0xff] %v6041_v0 }
 0x11a   : > { %853 = vst [vmem:[#allocation2 + $0x1c0] sm:$0xff] %v6041_v0  ;;  %854 = vst [vmem:[#allocation2 + $0x1c8] sm:$0xff] %v6041_v0 }
 0x11b   : > { %855 = vst [vmem:[#allocation2 + $0x1d0] sm:$0xff] %v6041_v0  ;;  %856 = vst [vmem:[#allocation2 + $0x1d8] sm:$0xff] %v6041_v0 }
 0x11c   : > { %857 = vst [vmem:[#allocation2 + $0x1e0] sm:$0xff] %v6041_v0  ;;  %858 = vst [vmem:[#allocation2 + $0x1e8] sm:$0xff] %v6041_v0 }
 0x11d   : > { %859 = vst [vmem:[#allocation2 + $0x1f0] sm:$0xff] %v6041_v0  ;;  %860 = vst [vmem:[#allocation2 + $0x1f8] sm:$0xff] %v6041_v0 }
 0x11e   : > { %861 = vst [vmem:[#allocation2 + $0x200] sm:$0xff] %v6041_v0  ;;  %862 = vst [vmem:[#allocation2 + $0x208] sm:$0xff] %v6041_v0 }
 0x11f   : > { %863 = vst [vmem:[#allocation2 + $0x210] sm:$0xff] %v6041_v0  ;;  %864 = vst [vmem:[#allocation2 + $0x218] sm:$0xff] %v6041_v0 }
 0x120   : > { %865 = vst [vmem:[#allocation2 + $0x220] sm:$0xff] %v6041_v0  ;;  %866 = vst [vmem:[#allocation2 + $0x228] sm:$0xff] %v6041_v0 }
 0x121   : > { %867 = vst [vmem:[#allocation2 + $0x230] sm:$0xff] %v6041_v0  ;;  %868 = vst [vmem:[#allocation2 + $0x238] sm:$0xff] %v6041_v0 }
 0x122   : > { %869 = vst [vmem:[#allocation2 + $0x240] sm:$0xff] %v6041_v0  ;;  %870 = vst [vmem:[#allocation2 + $0x248] sm:$0xff] %v6041_v0 }
 0x123   : > { %871 = vst [vmem:[#allocation2 + $0x250] sm:$0xff] %v6041_v0  ;;  %872 = vst [vmem:[#allocation2 + $0x258] sm:$0xff] %v6041_v0 }
 0x124   : > { %873 = vst [vmem:[#allocation2 + $0x260] sm:$0xff] %v6041_v0  ;;  %874 = vst [vmem:[#allocation2 + $0x268] sm:$0xff] %v6041_v0 }
 0x125   : > { %875 = vst [vmem:[#allocation2 + $0x270] sm:$0xff] %v6041_v0  ;;  %876 = vst [vmem:[#allocation2 + $0x278] sm:$0xff] %v6041_v0 }
 0x126   : > { %877 = vst [vmem:[#allocation2 + $0x280] sm:$0xff] %v6041_v0  ;;  %878 = vst [vmem:[#allocation2 + $0x288] sm:$0xff] %v6041_v0 }
 0x127   : > { %879 = vst [vmem:[#allocation2 + $0x290] sm:$0xff] %v6041_v0  ;;  %880 = vst [vmem:[#allocation2 + $0x298] sm:$0xff] %v6041_v0 }
 0x128   : > { %881 = vst [vmem:[#allocation2 + $0x2a0] sm:$0xff] %v6041_v0  ;;  %882 = vst [vmem:[#allocation2 + $0x2a8] sm:$0xff] %v6041_v0 }
 0x129   : > { %883 = vst [vmem:[#allocation2 + $0x2b0] sm:$0xff] %v6041_v0  ;;  %884 = vst [vmem:[#allocation2 + $0x2b8] sm:$0xff] %v6041_v0 }
 0x12a   : > { %885 = vst [vmem:[#allocation2 + $0x2c0] sm:$0xff] %v6041_v0  ;;  %886 = vst [vmem:[#allocation2 + $0x2c8] sm:$0xff] %v6041_v0 }
 0x12b   : > { %887 = vst [vmem:[#allocation2 + $0x2d0] sm:$0xff] %v6041_v0  ;;  %888 = vst [vmem:[#allocation2 + $0x2d8] sm:$0xff] %v6041_v0 }
 0x12c   : > { %889 = vst [vmem:[#allocation2 + $0x2e0] sm:$0xff] %v6041_v0  ;;  %890 = vst [vmem:[#allocation2 + $0x2e8] sm:$0xff] %v6041_v0 }
 0x12d   : > { %891 = vst [vmem:[#allocation2 + $0x2f0] sm:$0xff] %v6041_v0  ;;  %892 = vst [vmem:[#allocation2 + $0x2f8] sm:$0xff] %v6041_v0 }
 0x12e   : > { %893 = vst [vmem:[#allocation2 + $0x300] sm:$0xff] %v6041_v0  ;;  %894 = vst [vmem:[#allocation2 + $0x308] sm:$0xff] %v6041_v0 }
 0x12f   : > { %895 = vst [vmem:[#allocation2 + $0x310] sm:$0xff] %v6041_v0  ;;  %896 = vst [vmem:[#allocation2 + $0x318] sm:$0xff] %v6041_v0 }
 0x130   : > { %897 = vst [vmem:[#allocation2 + $0x320] sm:$0xff] %v6041_v0  ;;  %898 = vst [vmem:[#allocation2 + $0x328] sm:$0xff] %v6041_v0 }
 0x131   : > { %899 = vst [vmem:[#allocation2 + $0x330] sm:$0xff] %v6041_v0  ;;  %900 = vst [vmem:[#allocation2 + $0x338] sm:$0xff] %v6041_v0 }
 0x132   : > { %901 = vst [vmem:[#allocation2 + $0x340] sm:$0xff] %v6041_v0  ;;  %902 = vst [vmem:[#allocation2 + $0x348] sm:$0xff] %v6041_v0 }
 0x133   : > { %903 = vst [vmem:[#allocation2 + $0x350] sm:$0xff] %v6041_v0  ;;  %904 = vst [vmem:[#allocation2 + $0x358] sm:$0xff] %v6041_v0 }
 0x134   : > { %905 = vst [vmem:[#allocation2 + $0x360] sm:$0xff] %v6041_v0  ;;  %906 = vst [vmem:[#allocation2 + $0x368] sm:$0xff] %v6041_v0 }
 0x135   : > { %907 = vst [vmem:[#allocation2 + $0x370] sm:$0xff] %v6041_v0  ;;  %908 = vst [vmem:[#allocation2 + $0x378] sm:$0xff] %v6041_v0 }
 0x136   : > { %909 = vst [vmem:[#allocation2 + $0x380] sm:$0xff] %v6041_v0  ;;  %910 = vst [vmem:[#allocation2 + $0x388] sm:$0xff] %v6041_v0 }
 0x137   : > { %911 = vst [vmem:[#allocation2 + $0x390] sm:$0xff] %v6041_v0  ;;  %912 = vst [vmem:[#allocation2 + $0x398] sm:$0xff] %v6041_v0 }
 0x138   : > { %913 = vst [vmem:[#allocation2 + $0x3a0] sm:$0xff] %v6041_v0  ;;  %914 = vst [vmem:[#allocation2 + $0x3a8] sm:$0xff] %v6041_v0 }
 0x139   : > { %915 = vst [vmem:[#allocation2 + $0x3b0] sm:$0xff] %v6041_v0  ;;  %916 = vst [vmem:[#allocation2 + $0x3b8] sm:$0xff] %v6041_v0 }
 0x13a   : > { %917 = vst [vmem:[#allocation2 + $0x3c0] sm:$0xff] %v6041_v0  ;;  %918 = vst [vmem:[#allocation2 + $0x3c8] sm:$0xff] %v6041_v0 }
 0x13b   : > { %919 = vst [vmem:[#allocation2 + $0x3d0] sm:$0xff] %v6041_v0  ;;  %920 = vst [vmem:[#allocation2 + $0x3d8] sm:$0xff] %v6041_v0 }
 0x13c   : > { %921 = vst [vmem:[#allocation2 + $0x3e0] sm:$0xff] %v6041_v0  ;;  %922 = vst [vmem:[#allocation2 + $0x3e8] sm:$0xff] %v6041_v0 }
 0x13d   : > { %923 = vst [vmem:[#allocation2 + $0x3f0] sm:$0xff] %v6041_v0  ;;  %924 = vst [vmem:[#allocation2 + $0x3f8] sm:$0xff] %v6041_v0 }
 0x13e PF: > { %v5421_v1 = vld [vmem:[%s6793_s28] sm:$0xff]   ;;  %v6042_v2 = vmov 0   ;;  %v5423_v4 = vld [vmem:[%s6793_s28 + $0x8] sm:$0xff]   ;;  %v5425_v6 = vld [vmem:[%s6793_s28 + $0x10] sm:$0xff]   ;;  %p5281_p13 = scmp.ne.s32.totalorder %s6019_s20, 7 }
 0x13f   : > { %2845 = vmatprep.subr.bf16.mxu0 %v6042_v2  ;;  %3390 = vmatprep.subr.bf16.mxu1 %v6042_v2  ;;  %v5422_v3 = vld [vmem:[%s6793_s28 + $0x80] sm:$0xff]   ;;  %v5424_v5 = vld [vmem:[%s6793_s28 + $0x88] sm:$0xff]   ;;  %v5426_v7 = vld [vmem:[%s6793_s28 + $0x90] sm:$0xff]  }
 0x140   : > { %2846 = vmatpush1.bf16.msra.mxu0 %v5421_v1  ;;  %3391 = vmatpush1.bf16.msra.mxu1 %v5422_v3  ;;  %v5427_v8 = vld [vmem:[%s6793_s28 + $0x18] sm:$0xff]   ;;  %v5429_v10 = vld [vmem:[%s6793_s28 + $0x20] sm:$0xff]   ;;  %v5431_v12 = vld [vmem:[%s6793_s28 + $0x28] sm:$0xff]  }
 0x141   : > { %2847 = vmatprep.subr.bf16.mxu0 %v6042_v2  ;;  %3392 = vmatprep.subr.bf16.mxu1 %v6042_v2  ;;  %v5428_v9 = vld [vmem:[%s6793_s28 + $0x98] sm:$0xff]   ;;  %v5430_v11 = vld [vmem:[%s6793_s28 + $0xa0] sm:$0xff]   ;;  %v5432_v13 = vld [vmem:[%s6793_s28 + $0xa8] sm:$0xff]  }
 0x142   : > { %v5433_v14 = vld [vmem:[%s6793_s28 + $0x30] sm:$0xff]   ;;  %v5435_v16 = vld [vmem:[%s6793_s28 + $0x38] sm:$0xff]   ;;  %v5437_v18 = vld [vmem:[%s6793_s28 + $0x40] sm:$0xff]  }
 0x143   : > { %v5434_v15 = vld [vmem:[%s6793_s28 + $0xb0] sm:$0xff]   ;;  %v5436_v17 = vld [vmem:[%s6793_s28 + $0xb8] sm:$0xff]   ;;  %v5438_v19 = vld [vmem:[%s6793_s28 + $0xc0] sm:$0xff]  }
 0x144   : > { %2848 = vmatpush1.bf16.msra.mxu0 %v5423_v4  ;;  %3393 = vmatpush1.bf16.msra.mxu1 %v5424_v5  ;;  %v5455_v20 = vld [vmem:[%s6791_s6 + $0x4] ss:$16 sps:$4 sm:$0xff]   ;;  %v5439_v21 = vld [vmem:[%s6793_s28 + $0x48] sm:$0xff]   ;;  %v5443_v26 = vld [vmem:[%s6793_s28 + $0x58] sm:$0xff]  }
 0x145   : > { %2849 = vmatprep.subr.bf16.mxu0 %v6042_v2  ;;  %3394 = vmatprep.subr.bf16.mxu1 %v6042_v2  ;;  %v5458_v22 = vld [vmem:[%s6791_s6 + $0xc] ss:$16 sps:$4 sm:$0xff]   ;;  %v5441_v24 = vld [vmem:[%s6793_s28 + $0x50] sm:$0xff]   ;;  %v5445_v28 = vld [vmem:[%s6793_s28 + $0x60] sm:$0xff]  }
 0x146   : > { %v5440_v23 = vld [vmem:[%s6793_s28 + $0xc8] sm:$0xff]   ;;  %2877 = vmatprep.mubr.bf16.mxu0 %v5455_v20  ;;  %3422 = vmatprep.mubr.bf16.mxu1 %v5458_v22  ;;  %v5442_v25 = vld [vmem:[%s6793_s28 + $0xd0] sm:$0xff]   ;;  %v5444_v27 = vld [vmem:[%s6793_s28 + $0xd8] sm:$0xff]  }
 0x147   : > { %v5446_v29 = vld [vmem:[%s6793_s28 + $0xe0] sm:$0xff]   ;;  %v5447_v30 = vld [vmem:[%s6793_s28 + $0x68] sm:$0xff]   ;;  %v5449_v32 = vld [vmem:[%s6793_s28 + $0x70] sm:$0xff]  }
 0x148   : > { %2850 = vmatpush1.bf16.msra.mxu0 %v5425_v6  ;;  %3395 = vmatpush1.bf16.msra.mxu1 %v5426_v7  ;;  %v5448_v31 = vld [vmem:[%s6793_s28 + $0xe8] sm:$0xff]   ;;  %v5450_v33 = vld [vmem:[%s6793_s28 + $0xf0] sm:$0xff]   ;;  %v5451_v34 = vld [vmem:[%s6793_s28 + $0x78] sm:$0xff]  }
 0x149   : > { %2851 = vmatprep.subr.bf16.mxu0 %v6042_v2  ;;  %3396 = vmatprep.subr.bf16.mxu1 %v6042_v2  ;;  %v5452_v35 = vld [vmem:[%s6793_s28 + $0xf8] sm:$0xff]   ;;  %v5453_v36 = vld [vmem:[%s6791_s6] ss:$16 sps:$4 sm:$0xff]   ;;  %v5459_v38 = vld [vmem:[%s6791_s6 + $0x24] ss:$16 sps:$4 sm:$0xff]  }
 0x14a   : > { %v5456_v37 = vld [vmem:[%s6791_s6 + $0x8] ss:$16 sps:$4 sm:$0xff]   ;;  %v5461_v39 = vld [vmem:[%s6791_s6 + $0x2c] ss:$16 sps:$4 sm:$0xff]   ;;  %v5463_v40 = vld [vmem:[%s6791_s6 + $0x20] ss:$16 sps:$4 sm:$0xff]  }
 0x14b   : > { %v5464_v41 = vld [vmem:[%s6791_s6 + $0x28] ss:$16 sps:$4 sm:$0xff]   ;;  %v5465_v42 = vld [vmem:[%s6791_s6 + $0x44] ss:$16 sps:$4 sm:$0xff]   ;;  %v5467_v43 = vld [vmem:[%s6791_s6 + $0x4c] ss:$16 sps:$4 sm:$0xff]  }
 0x14c   : > { %2852 = vmatpush1.bf16.msra.mxu0 %v5427_v8  ;;  %3397 = vmatpush1.bf16.msra.mxu1 %v5428_v9  ;;  %v5469_v44 = vld [vmem:[%s6791_s6 + $0x40] ss:$16 sps:$4 sm:$0xff]   ;;  %v5470_v45 = vld [vmem:[%s6791_s6 + $0x48] ss:$16 sps:$4 sm:$0xff]   ;;  %v5471_v46 = vld [vmem:[%s6791_s6 + $0x64] ss:$16 sps:$4 sm:$0xff]  }
 0x14d   : > { %2853 = vmatprep.subr.bf16.mxu0 %v6042_v2  ;;  %3398 = vmatprep.subr.bf16.mxu1 %v6042_v2  ;;  %v5473_v47 = vld [vmem:[%s6791_s6 + $0x6c] ss:$16 sps:$4 sm:$0xff]   ;;  %v5475_v48 = vld [vmem:[%s6791_s6 + $0x60] ss:$16 sps:$4 sm:$0xff]   ;;  %v5476_v49 = vld [vmem:[%s6791_s6 + $0x68] ss:$16 sps:$4 sm:$0xff]  }
 0x14e   : > { %v5477_v50 = vld [vmem:[%s6791_s6 + $0x84] ss:$16 sps:$4 sm:$0xff]   ;;  %v5479_v51 = vld [vmem:[%s6791_s6 + $0x8c] ss:$16 sps:$4 sm:$0xff]   ;;  %v5481_v52 = vld [vmem:[%s6791_s6 + $0x80] ss:$16 sps:$4 sm:$0xff]  }
 0x14f   : > { %v5482_v53 = vld [vmem:[%s6791_s6 + $0x88] ss:$16 sps:$4 sm:$0xff]   ;;  %v5483_v54 = vld [vmem:[%s6791_s6 + $0xa4] ss:$16 sps:$4 sm:$0xff]   ;;  %v5485_v55 = vld [vmem:[%s6791_s6 + $0xac] ss:$16 sps:$4 sm:$0xff]  }
 0x150   : > { %2854 = vmatpush1.bf16.msra.mxu0 %v5429_v10  ;;  %3399 = vmatpush1.bf16.msra.mxu1 %v5430_v11  ;;  %v5487_v56 = vld [vmem:[%s6791_s6 + $0xa0] ss:$16 sps:$4 sm:$0xff]   ;;  %v5488_v57 = vld [vmem:[%s6791_s6 + $0xa8] ss:$16 sps:$4 sm:$0xff]   ;;  %v5489_v58 = vld [vmem:[%s6791_s6 + $0xc4] ss:$16 sps:$4 sm:$0xff]  }
 0x151   : > { %2855 = vmatprep.subr.bf16.mxu0 %v6042_v2  ;;  %3400 = vmatprep.subr.bf16.mxu1 %v6042_v2  ;;  %v5491_v59 = vld [vmem:[%s6791_s6 + $0xcc] ss:$16 sps:$4 sm:$0xff]   ;;  %v5493_v60 = vld [vmem:[%s6791_s6 + $0xc0] ss:$16 sps:$4 sm:$0xff]   ;;  %v5494_v61 = vld [vmem:[%s6791_s6 + $0xc8] ss:$16 sps:$4 sm:$0xff]  }
 0x152   : > { %v5495_v62 = vld [vmem:[%s6791_s6 + $0xe4] ss:$16 sps:$4 sm:$0xff]   ;;  %v5497_v63 = vld [vmem:[%s6791_s6 + $0xec] ss:$16 sps:$4 sm:$0xff]   ;;  %v5499_v0 = vld [vmem:[%s6791_s6 + $0xe0] ss:$16 sps:$4 sm:$0xff]  }
 0x153   : > { %v5500_v1 = vld [vmem:[%s6791_s6 + $0xe8] ss:$16 sps:$4 sm:$0xff]   ;;  %v5503_v3 = vld [vmem:[%s6791_s6 + $0x10c] ss:$16 sps:$4 sm:$0xff]   ;;  %v5505_v4 = vld [vmem:[%s6791_s6 + $0x100] ss:$16 sps:$4 sm:$0xff]  }
 0x154   : > { %2856 = vmatpush1.bf16.msra.mxu0 %v5431_v12  ;;  %3401 = vmatpush1.bf16.msra.mxu1 %v5432_v13  ;;  %v5506_v5 = vld [vmem:[%s6791_s6 + $0x108] ss:$16 sps:$4 sm:$0xff]   ;;  %v5507_v6 = vld [vmem:[%s6791_s6 + $0x124] ss:$16 sps:$4 sm:$0xff]   ;;  %v5509_v7 = vld [vmem:[%s6791_s6 + $0x12c] ss:$16 sps:$4 sm:$0xff]  }
 0x155   : > { %2857 = vmatprep.subr.bf16.mxu0 %v6042_v2  ;;  %3402 = vmatprep.subr.bf16.mxu1 %v6042_v2  ;;  %v5511_v8 = vld [vmem:[%s6791_s6 + $0x120] ss:$16 sps:$4 sm:$0xff]   ;;  %v5512_v9 = vld [vmem:[%s6791_s6 + $0x128] ss:$16 sps:$4 sm:$0xff]   ;;  %v5513_v10 = vld [vmem:[%s6791_s6 + $0x144] ss:$16 sps:$4 sm:$0xff]  }
 0x156   : > { %v5515_v11 = vld [vmem:[%s6791_s6 + $0x14c] ss:$16 sps:$4 sm:$0xff]   ;;  %v5517_v12 = vld [vmem:[%s6791_s6 + $0x140] ss:$16 sps:$4 sm:$0xff]   ;;  %v5518_v13 = vld [vmem:[%s6791_s6 + $0x148] ss:$16 sps:$4 sm:$0xff]  }
 0x157   : > { %v5529_v20 = vld [vmem:[%s6791_s6 + $0x180] ss:$16 sps:$4 sm:$0xff]   ;;  %v5531_v22 = vld [vmem:[%s6791_s6 + $0x1a4] ss:$16 sps:$4 sm:$0xff]  }
 0x158   : > { %2858 = vmatpush1.bf16.msra.mxu0 %v5433_v14  ;;  %3403 = vmatpush1.bf16.msra.mxu1 %v5434_v15  ;;  %v5519_v14 = vld [vmem:[%s6791_s6 + $0x164] ss:$16 sps:$4 sm:$0xff]   ;;  %v5521_v15 = vld [vmem:[%s6791_s6 + $0x16c] ss:$16 sps:$4 sm:$0xff]  }
 0x159   : > { %2859 = vmatprep.subr.bf16.mxu0 %v6042_v2  ;;  %3404 = vmatprep.subr.bf16.mxu1 %v6042_v2 }
 0x15c   : > { %2860 = vmatpush1.bf16.msra.mxu0 %v5435_v16  ;;  %3405 = vmatpush1.bf16.msra.mxu1 %v5436_v17  ;;  %v5523_v16 = vld [vmem:[%s6791_s6 + $0x160] ss:$16 sps:$4 sm:$0xff]   ;;  %v5524_v17 = vld [vmem:[%s6791_s6 + $0x168] ss:$16 sps:$4 sm:$0xff]  }
 0x15d   : > { %2861 = vmatprep.subr.bf16.mxu0 %v6042_v2  ;;  %3406 = vmatprep.subr.bf16.mxu1 %v6042_v2 }
 0x160   : > { %2862 = vmatpush1.bf16.msra.mxu0 %v5437_v18  ;;  %3407 = vmatpush1.bf16.msra.mxu1 %v5438_v19  ;;  %v5525_v18 = vld [vmem:[%s6791_s6 + $0x184] ss:$16 sps:$4 sm:$0xff]   ;;  %v5527_v19 = vld [vmem:[%s6791_s6 + $0x18c] ss:$16 sps:$4 sm:$0xff]  }
 0x161   : > { %2863 = vmatprep.subr.bf16.mxu0 %v6042_v2  ;;  %3408 = vmatprep.subr.bf16.mxu1 %v6042_v2 }
 0x164   : > { %2864 = vmatpush1.bf16.msra.mxu0 %v5439_v21  ;;  %3409 = vmatpush1.bf16.msra.mxu1 %v5440_v23  ;;  %v5530_v21 = vld [vmem:[%s6791_s6 + $0x188] ss:$16 sps:$4 sm:$0xff]   ;;  %v5533_v23 = vld [vmem:[%s6791_s6 + $0x1ac] ss:$16 sps:$4 sm:$0xff]  }
 0x165   : > { %2865 = vmatprep.subr.bf16.mxu0 %v6042_v2  ;;  %3410 = vmatprep.subr.bf16.mxu1 %v6042_v2 }
 0x168   : > { %2866 = vmatpush1.bf16.msra.mxu0 %v5441_v24  ;;  %3411 = vmatpush1.bf16.msra.mxu1 %v5442_v25  ;;  %v5535_v24 = vld [vmem:[%s6791_s6 + $0x1a0] ss:$16 sps:$4 sm:$0xff]   ;;  %v5536_v25 = vld [vmem:[%s6791_s6 + $0x1a8] ss:$16 sps:$4 sm:$0xff]  }
 0x169   : > { %2867 = vmatprep.subr.bf16.mxu0 %v6042_v2  ;;  %3412 = vmatprep.subr.bf16.mxu1 %v6042_v2 }
 0x16c   : > { %2868 = vmatpush1.bf16.msra.mxu0 %v5443_v26  ;;  %3413 = vmatpush1.bf16.msra.mxu1 %v5444_v27  ;;  %v5537_v26 = vld [vmem:[%s6791_s6 + $0x1c4] ss:$16 sps:$4 sm:$0xff]   ;;  %v5539_v27 = vld [vmem:[%s6791_s6 + $0x1cc] ss:$16 sps:$4 sm:$0xff]  }
 0x16d   : > { %2869 = vmatprep.subr.bf16.mxu0 %v6042_v2  ;;  %3414 = vmatprep.subr.bf16.mxu1 %v6042_v2 }
 0x170   : > { %2870 = vmatpush1.bf16.msra.mxu0 %v5445_v28  ;;  %3415 = vmatpush1.bf16.msra.mxu1 %v5446_v29  ;;  %v5541_v28 = vld [vmem:[%s6791_s6 + $0x1c0] ss:$16 sps:$4 sm:$0xff]   ;;  %v5542_v29 = vld [vmem:[%s6791_s6 + $0x1c8] ss:$16 sps:$4 sm:$0xff]  }
 0x171   : > { %2871 = vmatprep.subr.bf16.mxu0 %v6042_v2  ;;  %3416 = vmatprep.subr.bf16.mxu1 %v6042_v2 }
 0x174   : > { %2872 = vmatpush1.bf16.msra.mxu0 %v5447_v30  ;;  %3417 = vmatpush1.bf16.msra.mxu1 %v5448_v31  ;;  %v5543_v30 = vld [vmem:[%s6791_s6 + $0x1e4] ss:$16 sps:$4 sm:$0xff]   ;;  %v5545_v31 = vld [vmem:[%s6791_s6 + $0x1ec] ss:$16 sps:$4 sm:$0xff]  }
 0x175   : > { %2873 = vmatprep.subr.bf16.mxu0 %v6042_v2  ;;  %3418 = vmatprep.subr.bf16.mxu1 %v6042_v2 }
 0x178   : > { %2874 = vmatpush1.bf16.msra.mxu0 %v5449_v32  ;;  %3419 = vmatpush1.bf16.msra.mxu1 %v5450_v33  ;;  %v5547_v32 = vld [vmem:[%s6791_s6 + $0x1e0] ss:$16 sps:$4 sm:$0xff]   ;;  %v5548_v33 = vld [vmem:[%s6791_s6 + $0x1e8] ss:$16 sps:$4 sm:$0xff]  }
 0x179   : > { %2875 = vmatprep.subr.bf16.mxu0 %v6042_v2  ;;  %3420 = vmatprep.subr.bf16.mxu1 %v6042_v2  ;;  %v5501_v2 = vld [vmem:[%s6791_s6 + $0x104] ss:$16 sps:$4 sm:$0xff]  }
 0x17c   : > { %2876 = vmatpush1.bf16.msra.mxu0 %v5451_v34  ;;  %3421 = vmatpush1.bf16.msra.mxu1 %v5452_v35  ;;  %v5549_v34 = vld [vmem:[%s6791_s6 + $0x204] ss:$16 sps:$4 sm:$0xff]   ;;  %v5551_v35 = vld [vmem:[%s6791_s6 + $0x20c] ss:$16 sps:$4 sm:$0xff]  }
 0x17f   : > { %2878 = vmatmul.mubr.bf16.vlgmr.msra.gmra.mrb[0].mxu0 %v5453_v36  ;;  %3423 = vmatmul.mubr.bf16.vlgmr.msra.gmra.mrb[0].mxu1 %v5456_v37  ;;  %v5553_v36 = vld [vmem:[%s6791_s6 + $0x200] ss:$16 sps:$4 sm:$0xff]   ;;  %v5554_v37 = vld [vmem:[%s6791_s6 + $0x208] ss:$16 sps:$4 sm:$0xff]  }
 0x180   : > { %2885 = vmatprep.mubr.bf16.mxu0 %v5459_v38  ;;  %3430 = vmatprep.mubr.bf16.mxu1 %v5461_v39  ;;  %v5555_v38 = vld [vmem:[%s6791_s6 + $0x224] ss:$16 sps:$4 sm:$0xff]   ;;  %v5557_v39 = vld [vmem:[%s6791_s6 + $0x22c] ss:$16 sps:$4 sm:$0xff]  }
 0x187   : > { %2886 = vmatmul.mubr.bf16.gmra.mrb[4].mxu0 %v5463_v40  ;;  %3431 = vmatmul.mubr.bf16.gmra.mrb[4].mxu1 %v5464_v41  ;;  %v5559_v40 = vld [vmem:[%s6791_s6 + $0x220] ss:$16 sps:$4 sm:$0xff]   ;;  %v5560_v41 = vld [vmem:[%s6791_s6 + $0x228] ss:$16 sps:$4 sm:$0xff]  }
 0x188   : > { %2893 = vmatprep.mubr.bf16.mxu0 %v5465_v42  ;;  %3438 = vmatprep.mubr.bf16.mxu1 %v5467_v43  ;;  %v5561_v42 = vld [vmem:[%s6791_s6 + $0x244] ss:$16 sps:$4 sm:$0xff]   ;;  %v5563_v43 = vld [vmem:[%s6791_s6 + $0x24c] ss:$16 sps:$4 sm:$0xff]  }
 0x18f   : > { %2894 = vmatmul.mubr.bf16.gmra.mrb[8].mxu0 %v5469_v44  ;;  %3439 = vmatmul.mubr.bf16.gmra.mrb[8].mxu1 %v5470_v45  ;;  %v5565_v44 = vld [vmem:[%s6791_s6 + $0x240] ss:$16 sps:$4 sm:$0xff]   ;;  %v5566_v45 = vld [vmem:[%s6791_s6 + $0x248] ss:$16 sps:$4 sm:$0xff]  }
 0x190   : > { %2901 = vmatprep.mubr.bf16.mxu0 %v5471_v46  ;;  %3446 = vmatprep.mubr.bf16.mxu1 %v5473_v47  ;;  %v5567_v46 = vld [vmem:[%s6791_s6 + $0x264] ss:$16 sps:$4 sm:$0xff]   ;;  %v5569_v47 = vld [vmem:[%s6791_s6 + $0x26c] ss:$16 sps:$4 sm:$0xff]  }
 0x197   : > { %2902 = vmatmul.mubr.bf16.gmra.mrb[12].mxu0 %v5475_v48  ;;  %3447 = vmatmul.mubr.bf16.gmra.mrb[12].mxu1 %v5476_v49  ;;  %v5571_v48 = vld [vmem:[%s6791_s6 + $0x260] ss:$16 sps:$4 sm:$0xff]   ;;  %v5572_v49 = vld [vmem:[%s6791_s6 + $0x268] ss:$16 sps:$4 sm:$0xff]  }
 0x198   : > { %2909 = vmatprep.mubr.bf16.mxu0 %v5477_v50  ;;  %3454 = vmatprep.mubr.bf16.mxu1 %v5479_v51  ;;  %v5573_v50 = vld [vmem:[%s6791_s6 + $0x284] ss:$16 sps:$4 sm:$0xff]   ;;  %v5575_v51 = vld [vmem:[%s6791_s6 + $0x28c] ss:$16 sps:$4 sm:$0xff]  }
 0x19f   : > { %2910 = vmatmul.mubr.bf16.gmra.mrb[16].mxu0 %v5481_v52  ;;  %3455 = vmatmul.mubr.bf16.gmra.mrb[16].mxu1 %v5482_v53  ;;  %v5577_v52 = vld [vmem:[%s6791_s6 + $0x280] ss:$16 sps:$4 sm:$0xff]   ;;  %v5578_v53 = vld [vmem:[%s6791_s6 + $0x288] ss:$16 sps:$4 sm:$0xff]  }
 0x1a0   : > { %2917 = vmatprep.mubr.bf16.mxu0 %v5483_v54  ;;  %3462 = vmatprep.mubr.bf16.mxu1 %v5485_v55  ;;  %v5579_v54 = vld [vmem:[%s6791_s6 + $0x2a4] ss:$16 sps:$4 sm:$0xff]   ;;  %v5581_v55 = vld [vmem:[%s6791_s6 + $0x2ac] ss:$16 sps:$4 sm:$0xff]  }
 0x1a7   : > { %2918 = vmatmul.mubr.bf16.gmra.mrb[20].mxu0 %v5487_v56  ;;  %3463 = vmatmul.mubr.bf16.gmra.mrb[20].mxu1 %v5488_v57  ;;  %v5583_v56 = vld [vmem:[%s6791_s6 + $0x2a0] ss:$16 sps:$4 sm:$0xff]   ;;  %v5584_v57 = vld [vmem:[%s6791_s6 + $0x2a8] ss:$16 sps:$4 sm:$0xff]  }
 0x1a8   : > { %2925 = vmatprep.mubr.bf16.mxu0 %v5489_v58  ;;  %3470 = vmatprep.mubr.bf16.mxu1 %v5491_v59  ;;  %v5585_v58 = vld [vmem:[%s6791_s6 + $0x2c4] ss:$16 sps:$4 sm:$0xff]   ;;  %v5587_v59 = vld [vmem:[%s6791_s6 + $0x2cc] ss:$16 sps:$4 sm:$0xff]  }
 0x1af   : > { %2926 = vmatmul.mubr.bf16.gmra.mrb[24].mxu0 %v5493_v60  ;;  %3471 = vmatmul.mubr.bf16.gmra.mrb[24].mxu1 %v5494_v61  ;;  %v5589_v60 = vld [vmem:[%s6791_s6 + $0x2c0] ss:$16 sps:$4 sm:$0xff]   ;;  %v5590_v61 = vld [vmem:[%s6791_s6 + $0x2c8] ss:$16 sps:$4 sm:$0xff]  }
 0x1b0   : > { %2933 = vmatprep.mubr.bf16.mxu0 %v5495_v62  ;;  %3478 = vmatprep.mubr.bf16.mxu1 %v5497_v63  ;;  %v5591_v62 = vld [vmem:[%s6791_s6 + $0x2e4] ss:$16 sps:$4 sm:$0xff]   ;;  %v5593_v63 = vld [vmem:[%s6791_s6 + $0x2ec] ss:$16 sps:$4 sm:$0xff]  }
 0x1b7   : > { %2934 = vmatmul.mubr.bf16.gmra.mrb[28].mxu0 %v5499_v0  ;;  %3479 = vmatmul.mubr.bf16.gmra.mrb[28].mxu1 %v5500_v1  ;;  %v5595_v0 = vld [vmem:[%s6791_s6 + $0x2e0] ss:$16 sps:$4 sm:$0xff]   ;;  %v5596_v1 = vld [vmem:[%s6791_s6 + $0x2e8] ss:$16 sps:$4 sm:$0xff]  }
 0x1b8   : > { %2941 = vmatprep.mubr.bf16.mxu0 %v5501_v2  ;;  %3486 = vmatprep.mubr.bf16.mxu1 %v5503_v3  ;;  %v5597_v2 = vld [vmem:[%s6791_s6 + $0x304] ss:$16 sps:$4 sm:$0xff]   ;;  %v5599_v3 = vld [vmem:[%s6791_s6 + $0x30c] ss:$16 sps:$4 sm:$0xff]  }
 0x1bf   : > { %2942 = vmatmul.mubr.bf16.gmra.mrb[32].mxu0 %v5505_v4  ;;  %3487 = vmatmul.mubr.bf16.gmra.mrb[32].mxu1 %v5506_v5  ;;  %v5601_v4 = vld [vmem:[%s6791_s6 + $0x300] ss:$16 sps:$4 sm:$0xff]   ;;  %v5602_v5 = vld [vmem:[%s6791_s6 + $0x308] ss:$16 sps:$4 sm:$0xff]  }
 0x1c0   : > { %2949 = vmatprep.mubr.bf16.mxu0 %v5507_v6  ;;  %3494 = vmatprep.mubr.bf16.mxu1 %v5509_v7  ;;  %v5603_v6 = vld [vmem:[%s6791_s6 + $0x324] ss:$16 sps:$4 sm:$0xff]   ;;  %v5605_v7 = vld [vmem:[%s6791_s6 + $0x32c] ss:$16 sps:$4 sm:$0xff]  }
 0x1c7   : > { %2950 = vmatmul.mubr.bf16.gmra.mrb[36].mxu0 %v5511_v8  ;;  %3495 = vmatmul.mubr.bf16.gmra.mrb[36].mxu1 %v5512_v9  ;;  %v5607_v8 = vld [vmem:[%s6791_s6 + $0x320] ss:$16 sps:$4 sm:$0xff]   ;;  %v5608_v9 = vld [vmem:[%s6791_s6 + $0x328] ss:$16 sps:$4 sm:$0xff]  }
 0x1c8   : > { %2957 = vmatprep.mubr.bf16.mxu0 %v5513_v10  ;;  %3502 = vmatprep.mubr.bf16.mxu1 %v5515_v11  ;;  %v5609_v10 = vld [vmem:[%s6791_s6 + $0x344] ss:$16 sps:$4 sm:$0xff]   ;;  %v5611_v11 = vld [vmem:[%s6791_s6 + $0x34c] ss:$16 sps:$4 sm:$0xff]  }
 0x1cf   : > { %2958 = vmatmul.mubr.bf16.gmra.mrb[40].mxu0 %v5517_v12  ;;  %3503 = vmatmul.mubr.bf16.gmra.mrb[40].mxu1 %v5518_v13  ;;  %v5613_v12 = vld [vmem:[%s6791_s6 + $0x340] ss:$16 sps:$4 sm:$0xff]   ;;  %v5614_v13 = vld [vmem:[%s6791_s6 + $0x348] ss:$16 sps:$4 sm:$0xff]  }
 0x1d0   : > { %2965 = vmatprep.mubr.bf16.mxu0 %v5519_v14  ;;  %3510 = vmatprep.mubr.bf16.mxu1 %v5521_v15  ;;  %v5615_v14 = vld [vmem:[%s6791_s6 + $0x364] ss:$16 sps:$4 sm:$0xff]   ;;  %v5617_v15 = vld [vmem:[%s6791_s6 + $0x36c] ss:$16 sps:$4 sm:$0xff]  }
 0x1d7   : > { %2966 = vmatmul.mubr.bf16.gmra.mrb[44].mxu0 %v5523_v16  ;;  %3511 = vmatmul.mubr.bf16.gmra.mrb[44].mxu1 %v5524_v17  ;;  %v925_v17 = vld [vmem:[#allocation2] sm:$0xff] }
 0x1d8   : > { %2973 = vmatprep.mubr.bf16.mxu0 %v5525_v18  ;;  %3518 = vmatprep.mubr.bf16.mxu1 %v5527_v19 }
 0x1df   : > { %2974 = vmatmul.mubr.bf16.gmra.mrb[48].mxu0 %v5529_v20  ;;  %3519 = vmatmul.mubr.bf16.gmra.mrb[48].mxu1 %v5530_v21  ;;  %v5619_v20 = vld [vmem:[%s6791_s6 + $0x360] ss:$16 sps:$4 sm:$0xff]  }
 0x1e0   : > { %2981 = vmatprep.mubr.bf16.mxu0 %v5531_v22  ;;  %3526 = vmatprep.mubr.bf16.mxu1 %v5533_v23 }
 0x1e7   : > { %2982 = vmatmul.mubr.bf16.gmra.mrb[52].mxu0 %v5535_v24  ;;  %3527 = vmatmul.mubr.bf16.gmra.mrb[52].mxu1 %v5536_v25  ;;  %v5620_v24 = vld [vmem:[%s6791_s6 + $0x368] ss:$16 sps:$4 sm:$0xff]   ;;  %v5621_v25 = vld [vmem:[%s6791_s6 + $0x384] ss:$16 sps:$4 sm:$0xff]  }
 0x1e8   : > { %2989 = vmatprep.mubr.bf16.mxu0 %v5537_v26  ;;  %3534 = vmatprep.mubr.bf16.mxu1 %v5539_v27  ;;  %v926_v26 = vld [vmem:[#allocation2 + $0x8] sm:$0xff] }
 0x1ef   : > { %2990 = vmatmul.mubr.bf16.gmra.mrb[56].mxu0 %v5541_v28  ;;  %3535 = vmatmul.mubr.bf16.gmra.mrb[56].mxu1 %v5542_v29  ;;  %v5623_v29 = vld [vmem:[%s6791_s6 + $0x38c] ss:$16 sps:$4 sm:$0xff]  }
 0x1f0   : > { %2997 = vmatprep.mubr.bf16.mxu0 %v5543_v30  ;;  %3542 = vmatprep.mubr.bf16.mxu1 %v5545_v31 }
 0x1f7   : > { %2998 = vmatmul.mubr.bf16.gmra.mrb[60].mxu0 %v5547_v32  ;;  %3543 = vmatmul.mubr.bf16.gmra.mrb[60].mxu1 %v5548_v33 }
 0x1f8   : > { %3005 = vmatprep.mubr.bf16.mxu0 %v5549_v34  ;;  %3550 = vmatprep.mubr.bf16.mxu1 %v5551_v35  ;;  %v927_v35 = vld [vmem:[#allocation2 + $0x10] sm:$0xff] }
 0x1ff   : > { %3006 = vmatmul.mubr.bf16.gmra.mrb[64].mxu0 %v5553_v36  ;;  %3551 = vmatmul.mubr.bf16.gmra.mrb[64].mxu1 %v5554_v37 }
 0x200   : > { %3013 = vmatprep.mubr.bf16.mxu0 %v5555_v38  ;;  %3558 = vmatprep.mubr.bf16.mxu1 %v5557_v39  ;;  %v5625_v38 = vld [vmem:[%s6791_s6 + $0x380] ss:$16 sps:$4 sm:$0xff]  }
 0x207   : > { %3014 = vmatmul.mubr.bf16.gmra.mrb[68].mxu0 %v5559_v40  ;;  %3559 = vmatmul.mubr.bf16.gmra.mrb[68].mxu1 %v5560_v41 }
 0x208   : > { %3021 = vmatprep.mubr.bf16.mxu0 %v5561_v42  ;;  %3566 = vmatprep.mubr.bf16.mxu1 %v5563_v43  ;;  %v5626_v42 = vld [vmem:[%s6791_s6 + $0x388] ss:$16 sps:$4 sm:$0xff]   ;;  %v5627_v43 = vld [vmem:[%s6791_s6 + $0x3a4] ss:$16 sps:$4 sm:$0xff]  }
 0x20f   : > { %3022 = vmatmul.mubr.bf16.gmra.mrb[72].mxu0 %v5565_v44  ;;  %3567 = vmatmul.mubr.bf16.gmra.mrb[72].mxu1 %v5566_v45  ;;  %v928_v44 = vld [vmem:[#allocation2 + $0x18] sm:$0xff] }
 0x210   : > { %3029 = vmatprep.mubr.bf16.mxu0 %v5567_v46  ;;  %3574 = vmatprep.mubr.bf16.mxu1 %v5569_v47  ;;  %v5629_v47 = vld [vmem:[%s6791_s6 + $0x3ac] ss:$16 sps:$4 sm:$0xff]  }
 0x217   : > { %3030 = vmatmul.mubr.bf16.gmra.mrb[76].mxu0 %v5571_v48  ;;  %3575 = vmatmul.mubr.bf16.gmra.mrb[76].mxu1 %v5572_v49 }
 0x218   : > { %3037 = vmatprep.mubr.bf16.mxu0 %v5573_v50  ;;  %3582 = vmatprep.mubr.bf16.mxu1 %v5575_v51 }
 0x21f   : > { %3038 = vmatmul.mubr.bf16.gmra.mrb[80].mxu0 %v5577_v52  ;;  %3583 = vmatmul.mubr.bf16.gmra.mrb[80].mxu1 %v5578_v53  ;;  %v929_v53 = vld [vmem:[#allocation2 + $0x20] sm:$0xff] }
 0x220   : > { %3045 = vmatprep.mubr.bf16.mxu0 %v5579_v54  ;;  %3590 = vmatprep.mubr.bf16.mxu1 %v5581_v55 }
 0x227   : > { %3046 = vmatmul.mubr.bf16.gmra.mrb[84].mxu0 %v5583_v56  ;;  %3591 = vmatmul.mubr.bf16.gmra.mrb[84].mxu1 %v5584_v57  ;;  %v5631_v56 = vld [vmem:[%s6791_s6 + $0x3a0] ss:$16 sps:$4 sm:$0xff]  }
 0x228   : > { %3053 = vmatprep.mubr.bf16.mxu0 %v5585_v58  ;;  %3598 = vmatprep.mubr.bf16.mxu1 %v5587_v59 }
 0x22f   : > { %3054 = vmatmul.mubr.bf16.gmra.mrb[88].mxu0 %v5589_v60  ;;  %3599 = vmatmul.mubr.bf16.gmra.mrb[88].mxu1 %v5590_v61  ;;  %v5632_v60 = vld [vmem:[%s6791_s6 + $0x3a8] ss:$16 sps:$4 sm:$0xff]   ;;  %v5633_v61 = vld [vmem:[%s6791_s6 + $0x3c4] ss:$16 sps:$4 sm:$0xff]  }
 0x230   : > { %3061 = vmatprep.mubr.bf16.mxu0 %v5591_v62  ;;  %3606 = vmatprep.mubr.bf16.mxu1 %v5593_v63  ;;  %v930_v62 = vld [vmem:[#allocation2 + $0x28] sm:$0xff] }
 0x237   : > { %3062 = vmatmul.mubr.bf16.gmra.mrb[92].mxu0 %v5595_v0  ;;  %3607 = vmatmul.mubr.bf16.gmra.mrb[92].mxu1 %v5596_v1  ;;  %v5635_v1 = vld [vmem:[%s6791_s6 + $0x3cc] ss:$16 sps:$4 sm:$0xff]  }
 0x238   : > { %3069 = vmatprep.mubr.bf16.mxu0 %v5597_v2  ;;  %3614 = vmatprep.mubr.bf16.mxu1 %v5599_v3 }
 0x23f   : > { %3070 = vmatmul.mubr.bf16.gmra.mrb[96].mxu0 %v5601_v4  ;;  %3615 = vmatmul.mubr.bf16.gmra.mrb[96].mxu1 %v5602_v5 }
 0x240   : > { %3077 = vmatprep.mubr.bf16.mxu0 %v5603_v6  ;;  %3622 = vmatprep.mubr.bf16.mxu1 %v5605_v7  ;;  %v931_v7 = vld [vmem:[#allocation2 + $0x30] sm:$0xff] }
 0x247   : > { %3078 = vmatmul.mubr.bf16.gmra.mrb[100].mxu0 %v5607_v8  ;;  %3623 = vmatmul.mubr.bf16.gmra.mrb[100].mxu1 %v5608_v9 }
 0x248   : > { %3085 = vmatprep.mubr.bf16.mxu0 %v5609_v10  ;;  %3630 = vmatprep.mubr.bf16.mxu1 %v5611_v11  ;;  %v5637_v10 = vld [vmem:[%s6791_s6 + $0x3c0] ss:$16 sps:$4 sm:$0xff]  }
 0x24f   : > { %3086 = vmatmul.mubr.bf16.gmra.mrb[104].mxu0 %v5613_v12  ;;  %3631 = vmatmul.mubr.bf16.gmra.mrb[104].mxu1 %v5614_v13 }
 0x250   : > { %3093 = vmatprep.mubr.bf16.mxu0 %v5615_v14  ;;  %3638 = vmatprep.mubr.bf16.mxu1 %v5617_v15  ;;  %v5638_v14 = vld [vmem:[%s6791_s6 + $0x3c8] ss:$16 sps:$4 sm:$0xff]   ;;  %v5639_v15 = vld [vmem:[%s6791_s6 + $0x3e4] ss:$16 sps:$4 sm:$0xff]  }
 0x252   : > { %v2879_v16 = vpop.f32.mrb[0].mxu0  ;;  %v3424_v18 = vpop.f32.mrb[0].mxu1 }
 0x253   : > { %v2881_v19 = vpop.f32.mrb[1].mxu0  ;;  %v3425_v21 = vadd.f32 %v3424_v18, %v2879_v16  ;;  %v3426_v22 = vpop.f32.mrb[1].mxu1  ;;  %v932_v16 = vld [vmem:[#allocation2 + $0x38] sm:$0xff] }
 0x254   : > { %v2882_v23 = vpop.f32.mrb[2].mxu0  ;;  %v3427_v27 = vpop.f32.mrb[2].mxu1  ;;  %v5641_v19 = vld [vmem:[%s6791_s6 + $0x3ec] ss:$16 sps:$4 sm:$0xff]  }
 0x255   : > { %v2884_v28 = vpop.f32.mrb[3].mxu0  ;;  %v3935_v30 = vadd.f32 %v3425_v21, %v925_v17  ;;  %v3428_v31 = vadd.f32 %v3427_v27, %v2882_v23  ;;  %v3429_v32 = vpop.f32.mrb[3].mxu1 }
 0x256   : > { %v5643_v28 = vld [vmem:[%s6791_s6 + $0x3e0] ss:$16 sps:$4 sm:$0xff]   ;;  %v5644_v32 = vld [vmem:[%s6791_s6 + $0x3e8] ss:$16 sps:$4 sm:$0xff]  }
 0x257   : > { %3094 = vmatmul.mubr.bf16.gmra.mrb[108].mxu0 %v5619_v20  ;;  %4063 = vst [vmem:[#allocation2] sm:$0xff] %v3935_v30  ;;  %v3936_v33 = vadd.f32 %v3428_v31, %v926_v26  ;;  %3639 = vmatmul.mubr.bf16.gmra.mrb[108].mxu1 %v5620_v24 }
 0x258   : > { %3101 = vmatprep.mubr.bf16.mxu0 %v5621_v25  ;;  %3646 = vmatprep.mubr.bf16.mxu1 %v5623_v29  ;;  %v933_v25 = vld [vmem:[#allocation2 + $0x40] sm:$0xff] }
 0x259   : > { %4064 = vst [vmem:[#allocation2 + $0x8] sm:$0xff] %v3936_v33  ;;  %v5645_v33 = vld [vmem:[%s6791_s6 + $0x404] ss:$16 sps:$4 sm:$0xff]  }
 0x25a   : > { %v2887_v34 = vpop.f32.mrb[4].mxu0  ;;  %v3432_v36 = vpop.f32.mrb[4].mxu1 }
 0x25b   : > { %v2889_v37 = vpop.f32.mrb[5].mxu0  ;;  %v3433_v39 = vadd.f32 %v3432_v36, %v2887_v34  ;;  %v3434_v40 = vpop.f32.mrb[5].mxu1  ;;  %v934_v34 = vld [vmem:[#allocation2 + $0x48] sm:$0xff] }
 0x25c   : > { %v2890_v41 = vpop.f32.mrb[6].mxu0  ;;  %v3435_v45 = vpop.f32.mrb[6].mxu1  ;;  %v5647_v37 = vld [vmem:[%s6791_s6 + $0x40c] ss:$16 sps:$4 sm:$0xff]  }
 0x25d   : > { %v2892_v46 = vpop.f32.mrb[7].mxu0  ;;  %v3937_v48 = vadd.f32 %v3433_v39, %v927_v35  ;;  %v3436_v49 = vadd.f32 %v3435_v45, %v2890_v41  ;;  %v3437_v50 = vpop.f32.mrb[7].mxu1 }
 0x25e   : > { %v5649_v46 = vld [vmem:[%s6791_s6 + $0x400] ss:$16 sps:$4 sm:$0xff]   ;;  %v5650_v50 = vld [vmem:[%s6791_s6 + $0x408] ss:$16 sps:$4 sm:$0xff]  }
 0x25f   : > { %3102 = vmatmul.mubr.bf16.gmra.mrb[112].mxu0 %v5625_v38  ;;  %4065 = vst [vmem:[#allocation2 + $0x10] sm:$0xff] %v3937_v48  ;;  %v3938_v51 = vadd.f32 %v3436_v49, %v928_v44  ;;  %3647 = vmatmul.mubr.bf16.gmra.mrb[112].mxu1 %v5626_v42 }
 0x260   : > { %3109 = vmatprep.mubr.bf16.mxu0 %v5627_v43  ;;  %3654 = vmatprep.mubr.bf16.mxu1 %v5629_v47  ;;  %v935_v43 = vld [vmem:[#allocation2 + $0x50] sm:$0xff] }
 0x261   : > { %4066 = vst [vmem:[#allocation2 + $0x18] sm:$0xff] %v3938_v51  ;;  %v5651_v51 = vld [vmem:[%s6791_s6 + $0x424] ss:$16 sps:$4 sm:$0xff]  }
 0x262   : > { %v2895_v52 = vpop.f32.mrb[8].mxu0  ;;  %v3440_v54 = vpop.f32.mrb[8].mxu1 }
 0x263   : > { %v2897_v55 = vpop.f32.mrb[9].mxu0  ;;  %v3441_v57 = vadd.f32 %v3440_v54, %v2895_v52  ;;  %v3442_v58 = vpop.f32.mrb[9].mxu1  ;;  %v936_v52 = vld [vmem:[#allocation2 + $0x58] sm:$0xff] }
 0x264   : > { %v2898_v59 = vpop.f32.mrb[10].mxu0  ;;  %v3443_v63 = vpop.f32.mrb[10].mxu1  ;;  %v5653_v55 = vld [vmem:[%s6791_s6 + $0x42c] ss:$16 sps:$4 sm:$0xff]  }
 0x265   : > { %v2900_v0 = vpop.f32.mrb[11].mxu0  ;;  %v3939_v2 = vadd.f32 %v3441_v57, %v929_v53  ;;  %v3444_v3 = vadd.f32 %v3443_v63, %v2898_v59  ;;  %v3445_v4 = vpop.f32.mrb[11].mxu1 }
 0x266   : > { %v5655_v0 = vld [vmem:[%s6791_s6 + $0x420] ss:$16 sps:$4 sm:$0xff]   ;;  %v5656_v4 = vld [vmem:[%s6791_s6 + $0x428] ss:$16 sps:$4 sm:$0xff]  }
 0x267   : > { %3110 = vmatmul.mubr.bf16.gmra.mrb[116].mxu0 %v5631_v56  ;;  %4067 = vst [vmem:[#allocation2 + $0x20] sm:$0xff] %v3939_v2  ;;  %v3940_v5 = vadd.f32 %v3444_v3, %v930_v62  ;;  %3655 = vmatmul.mubr.bf16.gmra.mrb[116].mxu1 %v5632_v60 }
 0x268   : > { %3117 = vmatprep.mubr.bf16.mxu0 %v5633_v61  ;;  %3662 = vmatprep.mubr.bf16.mxu1 %v5635_v1  ;;  %v937_v61 = vld [vmem:[#allocation2 + $0x60] sm:$0xff] }
 0x269   : > { %4068 = vst [vmem:[#allocation2 + $0x28] sm:$0xff] %v3940_v5  ;;  %v5657_v5 = vld [vmem:[%s6791_s6 + $0x444] ss:$16 sps:$4 sm:$0xff]  }
 0x26a   : > { %v2903_v6 = vpop.f32.mrb[12].mxu0  ;;  %v3448_v8 = vpop.f32.mrb[12].mxu1 }
 0x26b   : > { %v2905_v9 = vpop.f32.mrb[13].mxu0  ;;  %v3449_v11 = vadd.f32 %v3448_v8, %v2903_v6  ;;  %v3450_v12 = vpop.f32.mrb[13].mxu1  ;;  %v938_v6 = vld [vmem:[#allocation2 + $0x68] sm:$0xff] }
 0x26c   : > { %v2906_v13 = vpop.f32.mrb[14].mxu0  ;;  %v3451_v17 = vpop.f32.mrb[14].mxu1  ;;  %v5659_v9 = vld [vmem:[%s6791_s6 + $0x44c] ss:$16 sps:$4 sm:$0xff]  }
 0x26d   : > { %v2908_v18 = vpop.f32.mrb[15].mxu0  ;;  %v3941_v20 = vadd.f32 %v3449_v11, %v931_v7  ;;  %v3452_v21 = vadd.f32 %v3451_v17, %v2906_v13  ;;  %v3453_v22 = vpop.f32.mrb[15].mxu1 }
 0x26e   : > { %v5661_v18 = vld [vmem:[%s6791_s6 + $0x440] ss:$16 sps:$4 sm:$0xff]   ;;  %v5662_v22 = vld [vmem:[%s6791_s6 + $0x448] ss:$16 sps:$4 sm:$0xff]  }
 0x26f   : > { %3118 = vmatmul.mubr.bf16.gmra.mrb[120].mxu0 %v5637_v10  ;;  %4069 = vst [vmem:[#allocation2 + $0x30] sm:$0xff] %v3941_v20  ;;  %v3942_v23 = vadd.f32 %v3452_v21, %v932_v16  ;;  %3663 = vmatmul.mubr.bf16.gmra.mrb[120].mxu1 %v5638_v14 }
 0x270   : > { %3125 = vmatprep.mubr.bf16.mxu0 %v5639_v15  ;;  %3670 = vmatprep.mubr.bf16.mxu1 %v5641_v19  ;;  %v939_v15 = vld [vmem:[#allocation2 + $0x70] sm:$0xff] }
 0x271   : > { %4070 = vst [vmem:[#allocation2 + $0x38] sm:$0xff] %v3942_v23  ;;  %v5663_v23 = vld [vmem:[%s6791_s6 + $0x464] ss:$16 sps:$4 sm:$0xff]  }
 0x272   : > { %v2911_v24 = vpop.f32.mrb[16].mxu0  ;;  %v3456_v26 = vpop.f32.mrb[16].mxu1 }
 0x273   : > { %v2913_v27 = vpop.f32.mrb[17].mxu0  ;;  %v3457_v29 = vadd.f32 %v3456_v26, %v2911_v24  ;;  %v3458_v30 = vpop.f32.mrb[17].mxu1  ;;  %v940_v24 = vld [vmem:[#allocation2 + $0x78] sm:$0xff] }
 0x274   : > { %v2914_v31 = vpop.f32.mrb[18].mxu0  ;;  %v3459_v35 = vpop.f32.mrb[18].mxu1  ;;  %v5665_v27 = vld [vmem:[%s6791_s6 + $0x46c] ss:$16 sps:$4 sm:$0xff]  }
 0x275   : > { %v2916_v36 = vpop.f32.mrb[19].mxu0  ;;  %v3943_v38 = vadd.f32 %v3457_v29, %v933_v25  ;;  %v3460_v39 = vadd.f32 %v3459_v35, %v2914_v31  ;;  %v3461_v40 = vpop.f32.mrb[19].mxu1 }
 0x276   : > { %v5667_v36 = vld [vmem:[%s6791_s6 + $0x460] ss:$16 sps:$4 sm:$0xff]   ;;  %v5668_v40 = vld [vmem:[%s6791_s6 + $0x468] ss:$16 sps:$4 sm:$0xff]  }
 0x277   : > { %3126 = vmatmul.mubr.bf16.gmra.mrb[124].mxu0 %v5643_v28  ;;  %4071 = vst [vmem:[#allocation2 + $0x40] sm:$0xff] %v3943_v38  ;;  %v3944_v41 = vadd.f32 %v3460_v39, %v934_v34  ;;  %3671 = vmatmul.mubr.bf16.gmra.mrb[124].mxu1 %v5644_v32 }
 0x278   : > { %3133 = vmatprep.mubr.bf16.mxu0 %v5645_v33  ;;  %3678 = vmatprep.mubr.bf16.mxu1 %v5647_v37  ;;  %v941_v33 = vld [vmem:[#allocation2 + $0x80] sm:$0xff] }
 0x279   : > { %4072 = vst [vmem:[#allocation2 + $0x48] sm:$0xff] %v3944_v41  ;;  %v5669_v41 = vld [vmem:[%s6791_s6 + $0x484] ss:$16 sps:$4 sm:$0xff]  }
 0x27a   : > { %v2919_v42 = vpop.f32.mrb[20].mxu0  ;;  %v3464_v44 = vpop.f32.mrb[20].mxu1 }
 0x27b   : > { %v2921_v45 = vpop.f32.mrb[21].mxu0  ;;  %v3465_v47 = vadd.f32 %v3464_v44, %v2919_v42  ;;  %v3466_v48 = vpop.f32.mrb[21].mxu1  ;;  %v942_v42 = vld [vmem:[#allocation2 + $0x88] sm:$0xff] }
 0x27c   : > { %v2922_v49 = vpop.f32.mrb[22].mxu0  ;;  %v3467_v53 = vpop.f32.mrb[22].mxu1  ;;  %v5671_v45 = vld [vmem:[%s6791_s6 + $0x48c] ss:$16 sps:$4 sm:$0xff]  }
 0x27d   : > { %v2924_v54 = vpop.f32.mrb[23].mxu0  ;;  %v3945_v56 = vadd.f32 %v3465_v47, %v935_v43  ;;  %v3468_v57 = vadd.f32 %v3467_v53, %v2922_v49  ;;  %v3469_v58 = vpop.f32.mrb[23].mxu1 }
 0x27e   : > { %v5673_v54 = vld [vmem:[%s6791_s6 + $0x480] ss:$16 sps:$4 sm:$0xff]   ;;  %v5674_v58 = vld [vmem:[%s6791_s6 + $0x488] ss:$16 sps:$4 sm:$0xff]  }
 0x27f   : > { %3134 = vmatmul.mubr.bf16.gmra.mrb[128].mxu0 %v5649_v46  ;;  %4073 = vst [vmem:[#allocation2 + $0x50] sm:$0xff] %v3945_v56  ;;  %v3946_v59 = vadd.f32 %v3468_v57, %v936_v52  ;;  %3679 = vmatmul.mubr.bf16.gmra.mrb[128].mxu1 %v5650_v50 }
 0x280   : > { %3141 = vmatprep.mubr.bf16.mxu0 %v5651_v51  ;;  %3686 = vmatprep.mubr.bf16.mxu1 %v5653_v55  ;;  %v943_v51 = vld [vmem:[#allocation2 + $0x90] sm:$0xff] }
 0x281   : > { %4074 = vst [vmem:[#allocation2 + $0x58] sm:$0xff] %v3946_v59  ;;  %v5675_v59 = vld [vmem:[%s6791_s6 + $0x4a4] ss:$16 sps:$4 sm:$0xff]  }
 0x282   : > { %v2927_v60 = vpop.f32.mrb[24].mxu0  ;;  %v3472_v62 = vpop.f32.mrb[24].mxu1 }
 0x283   : > { %v2929_v63 = vpop.f32.mrb[25].mxu0  ;;  %v3473_v1 = vadd.f32 %v3472_v62, %v2927_v60  ;;  %v3474_v2 = vpop.f32.mrb[25].mxu1  ;;  %v944_v60 = vld [vmem:[#allocation2 + $0x98] sm:$0xff] }
 0x284   : > { %v2930_v3 = vpop.f32.mrb[26].mxu0  ;;  %v3475_v7 = vpop.f32.mrb[26].mxu1  ;;  %v5677_v63 = vld [vmem:[%s6791_s6 + $0x4ac] ss:$16 sps:$4 sm:$0xff]  }
 0x285   : > { %v2932_v8 = vpop.f32.mrb[27].mxu0  ;;  %v3947_v10 = vadd.f32 %v3473_v1, %v937_v61  ;;  %v3476_v11 = vadd.f32 %v3475_v7, %v2930_v3  ;;  %v3477_v12 = vpop.f32.mrb[27].mxu1 }
 0x286   : > { %v5679_v8 = vld [vmem:[%s6791_s6 + $0x4a0] ss:$16 sps:$4 sm:$0xff]   ;;  %v5680_v12 = vld [vmem:[%s6791_s6 + $0x4a8] ss:$16 sps:$4 sm:$0xff]  }
 0x287   : > { %3142 = vmatmul.mubr.bf16.gmra.mrb[132].mxu0 %v5655_v0  ;;  %4075 = vst [vmem:[#allocation2 + $0x60] sm:$0xff] %v3947_v10  ;;  %v3948_v13 = vadd.f32 %v3476_v11, %v938_v6  ;;  %3687 = vmatmul.mubr.bf16.gmra.mrb[132].mxu1 %v5656_v4 }
 0x288   : > { %3149 = vmatprep.mubr.bf16.mxu0 %v5657_v5  ;;  %3694 = vmatprep.mubr.bf16.mxu1 %v5659_v9  ;;  %v945_v5 = vld [vmem:[#allocation2 + $0xa0] sm:$0xff] }
 0x289   : > { %4076 = vst [vmem:[#allocation2 + $0x68] sm:$0xff] %v3948_v13  ;;  %v5681_v13 = vld [vmem:[%s6791_s6 + $0x4c4] ss:$16 sps:$4 sm:$0xff]  }
 0x28a   : > { %v2935_v14 = vpop.f32.mrb[28].mxu0  ;;  %v3480_v16 = vpop.f32.mrb[28].mxu1 }
 0x28b   : > { %v2937_v17 = vpop.f32.mrb[29].mxu0  ;;  %v3481_v19 = vadd.f32 %v3480_v16, %v2935_v14  ;;  %v3482_v20 = vpop.f32.mrb[29].mxu1  ;;  %v946_v14 = vld [vmem:[#allocation2 + $0xa8] sm:$0xff] }
 0x28c   : > { %v2938_v21 = vpop.f32.mrb[30].mxu0  ;;  %v3483_v25 = vpop.f32.mrb[30].mxu1  ;;  %v5683_v17 = vld [vmem:[%s6791_s6 + $0x4cc] ss:$16 sps:$4 sm:$0xff]  }
 0x28d   : > { %v2940_v26 = vpop.f32.mrb[31].mxu0  ;;  %v3949_v28 = vadd.f32 %v3481_v19, %v939_v15  ;;  %v3484_v29 = vadd.f32 %v3483_v25, %v2938_v21  ;;  %v3485_v30 = vpop.f32.mrb[31].mxu1 }
 0x28e   : > { %v5685_v26 = vld [vmem:[%s6791_s6 + $0x4c0] ss:$16 sps:$4 sm:$0xff]   ;;  %v5686_v30 = vld [vmem:[%s6791_s6 + $0x4c8] ss:$16 sps:$4 sm:$0xff]  }
 0x28f   : > { %3150 = vmatmul.mubr.bf16.gmra.mrb[136].mxu0 %v5661_v18  ;;  %4077 = vst [vmem:[#allocation2 + $0x70] sm:$0xff] %v3949_v28  ;;  %v3950_v31 = vadd.f32 %v3484_v29, %v940_v24  ;;  %3695 = vmatmul.mubr.bf16.gmra.mrb[136].mxu1 %v5662_v22 }
 0x290   : > { %3157 = vmatprep.mubr.bf16.mxu0 %v5663_v23  ;;  %3702 = vmatprep.mubr.bf16.mxu1 %v5665_v27  ;;  %v947_v23 = vld [vmem:[#allocation2 + $0xb0] sm:$0xff] }
 0x291   : > { %4078 = vst [vmem:[#allocation2 + $0x78] sm:$0xff] %v3950_v31  ;;  %v5687_v31 = vld [vmem:[%s6791_s6 + $0x4e4] ss:$16 sps:$4 sm:$0xff]  }
 0x292   : > { %v2943_v32 = vpop.f32.mrb[32].mxu0  ;;  %v3488_v34 = vpop.f32.mrb[32].mxu1 }
 0x293   : > { %v2945_v35 = vpop.f32.mrb[33].mxu0  ;;  %v3489_v37 = vadd.f32 %v3488_v34, %v2943_v32  ;;  %v3490_v38 = vpop.f32.mrb[33].mxu1  ;;  %v948_v32 = vld [vmem:[#allocation2 + $0xb8] sm:$0xff] }
 0x294   : > { %v2946_v39 = vpop.f32.mrb[34].mxu0  ;;  %v3491_v43 = vpop.f32.mrb[34].mxu1  ;;  %v5689_v35 = vld [vmem:[%s6791_s6 + $0x4ec] ss:$16 sps:$4 sm:$0xff]  }
 0x295   : > { %v2948_v44 = vpop.f32.mrb[35].mxu0  ;;  %v3951_v46 = vadd.f32 %v3489_v37, %v941_v33  ;;  %v3492_v47 = vadd.f32 %v3491_v43, %v2946_v39  ;;  %v3493_v48 = vpop.f32.mrb[35].mxu1 }
 0x296   : > { %v5691_v44 = vld [vmem:[%s6791_s6 + $0x4e0] ss:$16 sps:$4 sm:$0xff]   ;;  %v5692_v48 = vld [vmem:[%s6791_s6 + $0x4e8] ss:$16 sps:$4 sm:$0xff]  }
 0x297   : > { %3158 = vmatmul.mubr.bf16.gmra.mrb[140].mxu0 %v5667_v36  ;;  %4079 = vst [vmem:[#allocation2 + $0x80] sm:$0xff] %v3951_v46  ;;  %v3952_v49 = vadd.f32 %v3492_v47, %v942_v42  ;;  %3703 = vmatmul.mubr.bf16.gmra.mrb[140].mxu1 %v5668_v40 }
 0x298   : > { %3165 = vmatprep.mubr.bf16.mxu0 %v5669_v41  ;;  %3710 = vmatprep.mubr.bf16.mxu1 %v5671_v45  ;;  %v949_v41 = vld [vmem:[#allocation2 + $0xc0] sm:$0xff] }
 0x299   : > { %4080 = vst [vmem:[#allocation2 + $0x88] sm:$0xff] %v3952_v49  ;;  %v5693_v49 = vld [vmem:[%s6791_s6 + $0x504] ss:$16 sps:$4 sm:$0xff]  }
 0x29a   : > { %v2951_v50 = vpop.f32.mrb[36].mxu0  ;;  %v3496_v52 = vpop.f32.mrb[36].mxu1 }
 0x29b   : > { %v2953_v53 = vpop.f32.mrb[37].mxu0  ;;  %v3497_v55 = vadd.f32 %v3496_v52, %v2951_v50  ;;  %v3498_v56 = vpop.f32.mrb[37].mxu1  ;;  %v950_v50 = vld [vmem:[#allocation2 + $0xc8] sm:$0xff] }
 0x29c   : > { %v2954_v57 = vpop.f32.mrb[38].mxu0  ;;  %v3499_v61 = vpop.f32.mrb[38].mxu1  ;;  %v5695_v53 = vld [vmem:[%s6791_s6 + $0x50c] ss:$16 sps:$4 sm:$0xff]  }
 0x29d   : > { %v2956_v62 = vpop.f32.mrb[39].mxu0  ;;  %v3953_v0 = vadd.f32 %v3497_v55, %v943_v51  ;;  %v3500_v1 = vadd.f32 %v3499_v61, %v2954_v57  ;;  %v3501_v2 = vpop.f32.mrb[39].mxu1 }
 0x29e   : > { %v5697_v62 = vld [vmem:[%s6791_s6 + $0x500] ss:$16 sps:$4 sm:$0xff]   ;;  %v5698_v2 = vld [vmem:[%s6791_s6 + $0x508] ss:$16 sps:$4 sm:$0xff]  }
 0x29f   : > { %3166 = vmatmul.mubr.bf16.gmra.mrb[144].mxu0 %v5673_v54  ;;  %4081 = vst [vmem:[#allocation2 + $0x90] sm:$0xff] %v3953_v0  ;;  %v3954_v3 = vadd.f32 %v3500_v1, %v944_v60  ;;  %3711 = vmatmul.mubr.bf16.gmra.mrb[144].mxu1 %v5674_v58 }
 0x2a0   : > { %3173 = vmatprep.mubr.bf16.mxu0 %v5675_v59  ;;  %3718 = vmatprep.mubr.bf16.mxu1 %v5677_v63  ;;  %v951_v59 = vld [vmem:[#allocation2 + $0xd0] sm:$0xff] }
 0x2a1   : > { %4082 = vst [vmem:[#allocation2 + $0x98] sm:$0xff] %v3954_v3  ;;  %v5699_v3 = vld [vmem:[%s6791_s6 + $0x524] ss:$16 sps:$4 sm:$0xff]  }
 0x2a2   : > { %v2959_v4 = vpop.f32.mrb[40].mxu0  ;;  %v3504_v6 = vpop.f32.mrb[40].mxu1 }
 0x2a3   : > { %v2961_v7 = vpop.f32.mrb[41].mxu0  ;;  %v3505_v9 = vadd.f32 %v3504_v6, %v2959_v4  ;;  %v3506_v10 = vpop.f32.mrb[41].mxu1  ;;  %v952_v4 = vld [vmem:[#allocation2 + $0xd8] sm:$0xff] }
 0x2a4   : > { %v2962_v11 = vpop.f32.mrb[42].mxu0  ;;  %v3507_v15 = vpop.f32.mrb[42].mxu1  ;;  %v5701_v7 = vld [vmem:[%s6791_s6 + $0x52c] ss:$16 sps:$4 sm:$0xff]  }
 0x2a5   : > { %v2964_v16 = vpop.f32.mrb[43].mxu0  ;;  %v3955_v18 = vadd.f32 %v3505_v9, %v945_v5  ;;  %v3508_v19 = vadd.f32 %v3507_v15, %v2962_v11  ;;  %v3509_v20 = vpop.f32.mrb[43].mxu1 }
 0x2a6   : > { %v5703_v16 = vld [vmem:[%s6791_s6 + $0x520] ss:$16 sps:$4 sm:$0xff]   ;;  %v5704_v20 = vld [vmem:[%s6791_s6 + $0x528] ss:$16 sps:$4 sm:$0xff]  }
 0x2a7   : > { %3174 = vmatmul.mubr.bf16.gmra.mrb[148].mxu0 %v5679_v8  ;;  %4083 = vst [vmem:[#allocation2 + $0xa0] sm:$0xff] %v3955_v18  ;;  %v3956_v21 = vadd.f32 %v3508_v19, %v946_v14  ;;  %3719 = vmatmul.mubr.bf16.gmra.mrb[148].mxu1 %v5680_v12 }
 0x2a8   : > { %3181 = vmatprep.mubr.bf16.mxu0 %v5681_v13  ;;  %3726 = vmatprep.mubr.bf16.mxu1 %v5683_v17  ;;  %v953_v13 = vld [vmem:[#allocation2 + $0xe0] sm:$0xff] }
 0x2a9   : > { %4084 = vst [vmem:[#allocation2 + $0xa8] sm:$0xff] %v3956_v21  ;;  %v5705_v21 = vld [vmem:[%s6791_s6 + $0x544] ss:$16 sps:$4 sm:$0xff]  }
 0x2aa   : > { %v2967_v22 = vpop.f32.mrb[44].mxu0  ;;  %v3512_v24 = vpop.f32.mrb[44].mxu1 }
 0x2ab   : > { %v2969_v25 = vpop.f32.mrb[45].mxu0  ;;  %v3513_v27 = vadd.f32 %v3512_v24, %v2967_v22  ;;  %v3514_v28 = vpop.f32.mrb[45].mxu1  ;;  %v954_v22 = vld [vmem:[#allocation2 + $0xe8] sm:$0xff] }
 0x2ac   : > { %v2970_v29 = vpop.f32.mrb[46].mxu0  ;;  %v3515_v33 = vpop.f32.mrb[46].mxu1  ;;  %v5707_v25 = vld [vmem:[%s6791_s6 + $0x54c] ss:$16 sps:$4 sm:$0xff]  }
 0x2ad   : > { %v2972_v34 = vpop.f32.mrb[47].mxu0  ;;  %v3957_v36 = vadd.f32 %v3513_v27, %v947_v23  ;;  %v3516_v37 = vadd.f32 %v3515_v33, %v2970_v29  ;;  %v3517_v38 = vpop.f32.mrb[47].mxu1 }
 0x2ae   : > { %v5709_v34 = vld [vmem:[%s6791_s6 + $0x540] ss:$16 sps:$4 sm:$0xff]   ;;  %v5710_v38 = vld [vmem:[%s6791_s6 + $0x548] ss:$16 sps:$4 sm:$0xff]  }
 0x2af   : > { %3182 = vmatmul.mubr.bf16.gmra.mrb[152].mxu0 %v5685_v26  ;;  %4085 = vst [vmem:[#allocation2 + $0xb0] sm:$0xff] %v3957_v36  ;;  %v3958_v39 = vadd.f32 %v3516_v37, %v948_v32  ;;  %3727 = vmatmul.mubr.bf16.gmra.mrb[152].mxu1 %v5686_v30 }
 0x2b0   : > { %3189 = vmatprep.mubr.bf16.mxu0 %v5687_v31  ;;  %3734 = vmatprep.mubr.bf16.mxu1 %v5689_v35  ;;  %v955_v31 = vld [vmem:[#allocation2 + $0xf0] sm:$0xff] }
 0x2b1   : > { %4086 = vst [vmem:[#allocation2 + $0xb8] sm:$0xff] %v3958_v39  ;;  %v5711_v39 = vld [vmem:[%s6791_s6 + $0x564] ss:$16 sps:$4 sm:$0xff]  }
 0x2b2   : > { %v2975_v40 = vpop.f32.mrb[48].mxu0  ;;  %v3520_v42 = vpop.f32.mrb[48].mxu1 }
 0x2b3   : > { %v2977_v43 = vpop.f32.mrb[49].mxu0  ;;  %v3521_v45 = vadd.f32 %v3520_v42, %v2975_v40  ;;  %v3522_v46 = vpop.f32.mrb[49].mxu1  ;;  %v956_v40 = vld [vmem:[#allocation2 + $0xf8] sm:$0xff] }
 0x2b4   : > { %v2978_v47 = vpop.f32.mrb[50].mxu0  ;;  %v3523_v51 = vpop.f32.mrb[50].mxu1  ;;  %v5713_v43 = vld [vmem:[%s6791_s6 + $0x56c] ss:$16 sps:$4 sm:$0xff]  }
 0x2b5   : > { %v2980_v52 = vpop.f32.mrb[51].mxu0  ;;  %v3959_v54 = vadd.f32 %v3521_v45, %v949_v41  ;;  %v3524_v55 = vadd.f32 %v3523_v51, %v2978_v47  ;;  %v3525_v56 = vpop.f32.mrb[51].mxu1 }
 0x2b6   : > { %v5715_v52 = vld [vmem:[%s6791_s6 + $0x560] ss:$16 sps:$4 sm:$0xff]   ;;  %v5716_v56 = vld [vmem:[%s6791_s6 + $0x568] ss:$16 sps:$4 sm:$0xff]  }
 0x2b7   : > { %3190 = vmatmul.mubr.bf16.gmra.mrb[156].mxu0 %v5691_v44  ;;  %4087 = vst [vmem:[#allocation2 + $0xc0] sm:$0xff] %v3959_v54  ;;  %v3960_v57 = vadd.f32 %v3524_v55, %v950_v50  ;;  %3735 = vmatmul.mubr.bf16.gmra.mrb[156].mxu1 %v5692_v48 }
 0x2b8   : > { %3197 = vmatprep.mubr.bf16.mxu0 %v5693_v49  ;;  %3742 = vmatprep.mubr.bf16.mxu1 %v5695_v53  ;;  %v957_v49 = vld [vmem:[#allocation2 + $0x100] sm:$0xff] }
 0x2b9   : > { %4088 = vst [vmem:[#allocation2 + $0xc8] sm:$0xff] %v3960_v57  ;;  %v5717_v57 = vld [vmem:[%s6791_s6 + $0x584] ss:$16 sps:$4 sm:$0xff]  }
 0x2ba   : > { %v2983_v58 = vpop.f32.mrb[52].mxu0  ;;  %v3528_v60 = vpop.f32.mrb[52].mxu1 }
 0x2bb   : > { %v2985_v61 = vpop.f32.mrb[53].mxu0  ;;  %v3529_v63 = vadd.f32 %v3528_v60, %v2983_v58  ;;  %v3530_v0 = vpop.f32.mrb[53].mxu1  ;;  %v958_v58 = vld [vmem:[#allocation2 + $0x108] sm:$0xff] }
 0x2bc   : > { %v2986_v1 = vpop.f32.mrb[54].mxu0  ;;  %v3531_v5 = vpop.f32.mrb[54].mxu1  ;;  %v5719_v61 = vld [vmem:[%s6791_s6 + $0x58c] ss:$16 sps:$4 sm:$0xff]  }
 0x2bd   : > { %v2988_v6 = vpop.f32.mrb[55].mxu0  ;;  %v3961_v8 = vadd.f32 %v3529_v63, %v951_v59  ;;  %v3532_v9 = vadd.f32 %v3531_v5, %v2986_v1  ;;  %v3533_v10 = vpop.f32.mrb[55].mxu1 }
 0x2be   : > { %v5721_v6 = vld [vmem:[%s6791_s6 + $0x580] ss:$16 sps:$4 sm:$0xff]   ;;  %v5722_v10 = vld [vmem:[%s6791_s6 + $0x588] ss:$16 sps:$4 sm:$0xff]  }
 0x2bf   : > { %3198 = vmatmul.mubr.bf16.gmra.mrb[160].mxu0 %v5697_v62  ;;  %4089 = vst [vmem:[#allocation2 + $0xd0] sm:$0xff] %v3961_v8  ;;  %v3962_v11 = vadd.f32 %v3532_v9, %v952_v4  ;;  %3743 = vmatmul.mubr.bf16.gmra.mrb[160].mxu1 %v5698_v2 }
 0x2c0   : > { %3205 = vmatprep.mubr.bf16.mxu0 %v5699_v3  ;;  %3750 = vmatprep.mubr.bf16.mxu1 %v5701_v7  ;;  %v959_v3 = vld [vmem:[#allocation2 + $0x110] sm:$0xff] }
 0x2c1   : > { %4090 = vst [vmem:[#allocation2 + $0xd8] sm:$0xff] %v3962_v11  ;;  %v5723_v11 = vld [vmem:[%s6791_s6 + $0x5a4] ss:$16 sps:$4 sm:$0xff]  }
 0x2c2   : > { %v2991_v12 = vpop.f32.mrb[56].mxu0  ;;  %v3536_v14 = vpop.f32.mrb[56].mxu1 }
 0x2c3   : > { %v2993_v15 = vpop.f32.mrb[57].mxu0  ;;  %v3537_v17 = vadd.f32 %v3536_v14, %v2991_v12  ;;  %v3538_v18 = vpop.f32.mrb[57].mxu1  ;;  %v960_v12 = vld [vmem:[#allocation2 + $0x118] sm:$0xff] }
 0x2c4   : > { %v2994_v19 = vpop.f32.mrb[58].mxu0  ;;  %v3539_v23 = vpop.f32.mrb[58].mxu1  ;;  %v5725_v15 = vld [vmem:[%s6791_s6 + $0x5ac] ss:$16 sps:$4 sm:$0xff]  }
 0x2c5   : > { %v2996_v24 = vpop.f32.mrb[59].mxu0  ;;  %v3963_v26 = vadd.f32 %v3537_v17, %v953_v13  ;;  %v3540_v27 = vadd.f32 %v3539_v23, %v2994_v19  ;;  %v3541_v28 = vpop.f32.mrb[59].mxu1 }
 0x2c6   : > { %v5727_v24 = vld [vmem:[%s6791_s6 + $0x5a0] ss:$16 sps:$4 sm:$0xff]   ;;  %v5728_v28 = vld [vmem:[%s6791_s6 + $0x5a8] ss:$16 sps:$4 sm:$0xff]  }
 0x2c7   : > { %3206 = vmatmul.mubr.bf16.gmra.mrb[164].mxu0 %v5703_v16  ;;  %4091 = vst [vmem:[#allocation2 + $0xe0] sm:$0xff] %v3963_v26  ;;  %v3964_v29 = vadd.f32 %v3540_v27, %v954_v22  ;;  %3751 = vmatmul.mubr.bf16.gmra.mrb[164].mxu1 %v5704_v20 }
 0x2c8   : > { %3213 = vmatprep.mubr.bf16.mxu0 %v5705_v21  ;;  %3758 = vmatprep.mubr.bf16.mxu1 %v5707_v25  ;;  %v961_v21 = vld [vmem:[#allocation2 + $0x120] sm:$0xff] }
 0x2c9   : > { %4092 = vst [vmem:[#allocation2 + $0xe8] sm:$0xff] %v3964_v29  ;;  %v5729_v29 = vld [vmem:[%s6791_s6 + $0x5c4] ss:$16 sps:$4 sm:$0xff]  }
 0x2ca   : > { %v2999_v30 = vpop.f32.mrb[60].mxu0  ;;  %v3544_v32 = vpop.f32.mrb[60].mxu1 }
 0x2cb   : > { %v3001_v33 = vpop.f32.mrb[61].mxu0  ;;  %v3545_v35 = vadd.f32 %v3544_v32, %v2999_v30  ;;  %v3546_v36 = vpop.f32.mrb[61].mxu1  ;;  %v962_v30 = vld [vmem:[#allocation2 + $0x128] sm:$0xff] }
 0x2cc   : > { %v3002_v37 = vpop.f32.mrb[62].mxu0  ;;  %v3547_v41 = vpop.f32.mrb[62].mxu1  ;;  %v5731_v33 = vld [vmem:[%s6791_s6 + $0x5cc] ss:$16 sps:$4 sm:$0xff]  }
 0x2cd   : > { %v3004_v42 = vpop.f32.mrb[63].mxu0  ;;  %v3965_v44 = vadd.f32 %v3545_v35, %v955_v31  ;;  %v3548_v45 = vadd.f32 %v3547_v41, %v3002_v37  ;;  %v3549_v46 = vpop.f32.mrb[63].mxu1 }
 0x2ce   : > { %v5733_v42 = vld [vmem:[%s6791_s6 + $0x5c0] ss:$16 sps:$4 sm:$0xff]   ;;  %v5734_v46 = vld [vmem:[%s6791_s6 + $0x5c8] ss:$16 sps:$4 sm:$0xff]  }
 0x2cf   : > { %3214 = vmatmul.mubr.bf16.gmra.mrb[168].mxu0 %v5709_v34  ;;  %4093 = vst [vmem:[#allocation2 + $0xf0] sm:$0xff] %v3965_v44  ;;  %v3966_v47 = vadd.f32 %v3548_v45, %v956_v40  ;;  %3759 = vmatmul.mubr.bf16.gmra.mrb[168].mxu1 %v5710_v38 }
 0x2d0   : > { %3221 = vmatprep.mubr.bf16.mxu0 %v5711_v39  ;;  %3766 = vmatprep.mubr.bf16.mxu1 %v5713_v43  ;;  %v963_v39 = vld [vmem:[#allocation2 + $0x130] sm:$0xff] }
 0x2d1   : > { %4094 = vst [vmem:[#allocation2 + $0xf8] sm:$0xff] %v3966_v47  ;;  %v5735_v47 = vld [vmem:[%s6791_s6 + $0x5e4] ss:$16 sps:$4 sm:$0xff]  }
 0x2d2   : > { %v3007_v48 = vpop.f32.mrb[64].mxu0  ;;  %v3552_v50 = vpop.f32.mrb[64].mxu1 }
 0x2d3   : > { %v3009_v51 = vpop.f32.mrb[65].mxu0  ;;  %v3553_v53 = vadd.f32 %v3552_v50, %v3007_v48  ;;  %v3554_v54 = vpop.f32.mrb[65].mxu1  ;;  %v964_v48 = vld [vmem:[#allocation2 + $0x138] sm:$0xff] }
 0x2d4   : > { %v3010_v55 = vpop.f32.mrb[66].mxu0  ;;  %v3555_v59 = vpop.f32.mrb[66].mxu1  ;;  %v5737_v51 = vld [vmem:[%s6791_s6 + $0x5ec] ss:$16 sps:$4 sm:$0xff]  }
 0x2d5   : > { %v3012_v60 = vpop.f32.mrb[67].mxu0  ;;  %v3967_v62 = vadd.f32 %v3553_v53, %v957_v49  ;;  %v3556_v63 = vadd.f32 %v3555_v59, %v3010_v55  ;;  %v3557_v0 = vpop.f32.mrb[67].mxu1 }
 0x2d6   : > { %v5739_v60 = vld [vmem:[%s6791_s6 + $0x5e0] ss:$16 sps:$4 sm:$0xff]   ;;  %v5740_v0 = vld [vmem:[%s6791_s6 + $0x5e8] ss:$16 sps:$4 sm:$0xff]  }
 0x2d7   : > { %3222 = vmatmul.mubr.bf16.gmra.mrb[172].mxu0 %v5715_v52  ;;  %4095 = vst [vmem:[#allocation2 + $0x100] sm:$0xff] %v3967_v62  ;;  %v3968_v1 = vadd.f32 %v3556_v63, %v958_v58  ;;  %3767 = vmatmul.mubr.bf16.gmra.mrb[172].mxu1 %v5716_v56 }
 0x2d8   : > { %3229 = vmatprep.mubr.bf16.mxu0 %v5717_v57  ;;  %3774 = vmatprep.mubr.bf16.mxu1 %v5719_v61  ;;  %v965_v57 = vld [vmem:[#allocation2 + $0x140] sm:$0xff] }
 0x2d9   : > { %4096 = vst [vmem:[#allocation2 + $0x108] sm:$0xff] %v3968_v1  ;;  %v5741_v1 = vld [vmem:[%s6791_s6 + $0x604] ss:$16 sps:$4 sm:$0xff]  }
 0x2da   : > { %v3015_v2 = vpop.f32.mrb[68].mxu0  ;;  %v3560_v4 = vpop.f32.mrb[68].mxu1 }
 0x2db   : > { %v3017_v5 = vpop.f32.mrb[69].mxu0  ;;  %v3561_v7 = vadd.f32 %v3560_v4, %v3015_v2  ;;  %v3562_v8 = vpop.f32.mrb[69].mxu1  ;;  %v966_v2 = vld [vmem:[#allocation2 + $0x148] sm:$0xff] }
 0x2dc   : > { %v3018_v9 = vpop.f32.mrb[70].mxu0  ;;  %v3563_v13 = vpop.f32.mrb[70].mxu1  ;;  %v5743_v5 = vld [vmem:[%s6791_s6 + $0x60c] ss:$16 sps:$4 sm:$0xff]  }
 0x2dd   : > { %v3020_v14 = vpop.f32.mrb[71].mxu0  ;;  %v3969_v16 = vadd.f32 %v3561_v7, %v959_v3  ;;  %v3564_v17 = vadd.f32 %v3563_v13, %v3018_v9  ;;  %v3565_v18 = vpop.f32.mrb[71].mxu1 }
 0x2de   : > { %v5745_v14 = vld [vmem:[%s6791_s6 + $0x600] ss:$16 sps:$4 sm:$0xff]   ;;  %v5746_v18 = vld [vmem:[%s6791_s6 + $0x608] ss:$16 sps:$4 sm:$0xff]  }
 0x2df   : > { %3230 = vmatmul.mubr.bf16.gmra.mrb[176].mxu0 %v5721_v6  ;;  %4097 = vst [vmem:[#allocation2 + $0x110] sm:$0xff] %v3969_v16  ;;  %v3970_v19 = vadd.f32 %v3564_v17, %v960_v12  ;;  %3775 = vmatmul.mubr.bf16.gmra.mrb[176].mxu1 %v5722_v10 }
 0x2e0   : > { %3237 = vmatprep.mubr.bf16.mxu0 %v5723_v11  ;;  %3782 = vmatprep.mubr.bf16.mxu1 %v5725_v15  ;;  %v967_v11 = vld [vmem:[#allocation2 + $0x150] sm:$0xff] }
 0x2e1   : > { %4098 = vst [vmem:[#allocation2 + $0x118] sm:$0xff] %v3970_v19  ;;  %v5747_v19 = vld [vmem:[%s6791_s6 + $0x624] ss:$16 sps:$4 sm:$0xff]  }
 0x2e2   : > { %v3023_v20 = vpop.f32.mrb[72].mxu0  ;;  %v3568_v22 = vpop.f32.mrb[72].mxu1 }
 0x2e3   : > { %v3025_v23 = vpop.f32.mrb[73].mxu0  ;;  %v3569_v25 = vadd.f32 %v3568_v22, %v3023_v20  ;;  %v3570_v26 = vpop.f32.mrb[73].mxu1  ;;  %v968_v20 = vld [vmem:[#allocation2 + $0x158] sm:$0xff] }
 0x2e4   : > { %v3026_v27 = vpop.f32.mrb[74].mxu0  ;;  %v3571_v31 = vpop.f32.mrb[74].mxu1  ;;  %v5749_v23 = vld [vmem:[%s6791_s6 + $0x62c] ss:$16 sps:$4 sm:$0xff]  }
 0x2e5   : > { %v3028_v32 = vpop.f32.mrb[75].mxu0  ;;  %v3971_v34 = vadd.f32 %v3569_v25, %v961_v21  ;;  %v3572_v35 = vadd.f32 %v3571_v31, %v3026_v27  ;;  %v3573_v36 = vpop.f32.mrb[75].mxu1 }
 0x2e6   : > { %v5751_v32 = vld [vmem:[%s6791_s6 + $0x620] ss:$16 sps:$4 sm:$0xff]   ;;  %v5752_v36 = vld [vmem:[%s6791_s6 + $0x628] ss:$16 sps:$4 sm:$0xff]  }
 0x2e7   : > { %3238 = vmatmul.mubr.bf16.gmra.mrb[180].mxu0 %v5727_v24  ;;  %4099 = vst [vmem:[#allocation2 + $0x120] sm:$0xff] %v3971_v34  ;;  %v3972_v37 = vadd.f32 %v3572_v35, %v962_v30  ;;  %3783 = vmatmul.mubr.bf16.gmra.mrb[180].mxu1 %v5728_v28 }
 0x2e8   : > { %3245 = vmatprep.mubr.bf16.mxu0 %v5729_v29  ;;  %3790 = vmatprep.mubr.bf16.mxu1 %v5731_v33  ;;  %v969_v29 = vld [vmem:[#allocation2 + $0x160] sm:$0xff] }
 0x2e9   : > { %4100 = vst [vmem:[#allocation2 + $0x128] sm:$0xff] %v3972_v37  ;;  %v5753_v37 = vld [vmem:[%s6791_s6 + $0x644] ss:$16 sps:$4 sm:$0xff]  }
 0x2ea   : > { %v3031_v38 = vpop.f32.mrb[76].mxu0  ;;  %v3576_v40 = vpop.f32.mrb[76].mxu1 }
 0x2eb   : > { %v3033_v41 = vpop.f32.mrb[77].mxu0  ;;  %v3577_v43 = vadd.f32 %v3576_v40, %v3031_v38  ;;  %v3578_v44 = vpop.f32.mrb[77].mxu1  ;;  %v970_v38 = vld [vmem:[#allocation2 + $0x168] sm:$0xff] }
 0x2ec   : > { %v3034_v45 = vpop.f32.mrb[78].mxu0  ;;  %v3579_v49 = vpop.f32.mrb[78].mxu1  ;;  %v5755_v41 = vld [vmem:[%s6791_s6 + $0x64c] ss:$16 sps:$4 sm:$0xff]  }
 0x2ed   : > { %v3036_v50 = vpop.f32.mrb[79].mxu0  ;;  %v3973_v52 = vadd.f32 %v3577_v43, %v963_v39  ;;  %v3580_v53 = vadd.f32 %v3579_v49, %v3034_v45  ;;  %v3581_v54 = vpop.f32.mrb[79].mxu1 }
 0x2ee   : > { %v5757_v50 = vld [vmem:[%s6791_s6 + $0x640] ss:$16 sps:$4 sm:$0xff]   ;;  %v5758_v54 = vld [vmem:[%s6791_s6 + $0x648] ss:$16 sps:$4 sm:$0xff]  }
 0x2ef   : > { %3246 = vmatmul.mubr.bf16.gmra.mrb[184].mxu0 %v5733_v42  ;;  %4101 = vst [vmem:[#allocation2 + $0x130] sm:$0xff] %v3973_v52  ;;  %v3974_v55 = vadd.f32 %v3580_v53, %v964_v48  ;;  %3791 = vmatmul.mubr.bf16.gmra.mrb[184].mxu1 %v5734_v46 }
 0x2f0   : > { %3253 = vmatprep.mubr.bf16.mxu0 %v5735_v47  ;;  %3798 = vmatprep.mubr.bf16.mxu1 %v5737_v51  ;;  %v971_v47 = vld [vmem:[#allocation2 + $0x170] sm:$0xff] }
 0x2f1   : > { %4102 = vst [vmem:[#allocation2 + $0x138] sm:$0xff] %v3974_v55  ;;  %v5759_v55 = vld [vmem:[%s6791_s6 + $0x664] ss:$16 sps:$4 sm:$0xff]  }
 0x2f2   : > { %v3039_v56 = vpop.f32.mrb[80].mxu0  ;;  %v3584_v58 = vpop.f32.mrb[80].mxu1 }
 0x2f3   : > { %v3041_v59 = vpop.f32.mrb[81].mxu0  ;;  %v3585_v61 = vadd.f32 %v3584_v58, %v3039_v56  ;;  %v3586_v62 = vpop.f32.mrb[81].mxu1  ;;  %v972_v56 = vld [vmem:[#allocation2 + $0x178] sm:$0xff] }
 0x2f4   : > { %v3042_v63 = vpop.f32.mrb[82].mxu0  ;;  %v3587_v3 = vpop.f32.mrb[82].mxu1  ;;  %v5761_v59 = vld [vmem:[%s6791_s6 + $0x66c] ss:$16 sps:$4 sm:$0xff]  }
 0x2f5   : > { %v3044_v4 = vpop.f32.mrb[83].mxu0  ;;  %v3975_v6 = vadd.f32 %v3585_v61, %v965_v57  ;;  %v3588_v7 = vadd.f32 %v3587_v3, %v3042_v63  ;;  %v3589_v8 = vpop.f32.mrb[83].mxu1 }
 0x2f6   : > { %v5763_v4 = vld [vmem:[%s6791_s6 + $0x660] ss:$16 sps:$4 sm:$0xff]   ;;  %v5764_v8 = vld [vmem:[%s6791_s6 + $0x668] ss:$16 sps:$4 sm:$0xff]  }
 0x2f7   : > { %3254 = vmatmul.mubr.bf16.gmra.mrb[188].mxu0 %v5739_v60  ;;  %4103 = vst [vmem:[#allocation2 + $0x140] sm:$0xff] %v3975_v6  ;;  %v3976_v9 = vadd.f32 %v3588_v7, %v966_v2  ;;  %3799 = vmatmul.mubr.bf16.gmra.mrb[188].mxu1 %v5740_v0 }
 0x2f8   : > { %3261 = vmatprep.mubr.bf16.mxu0 %v5741_v1  ;;  %3806 = vmatprep.mubr.bf16.mxu1 %v5743_v5  ;;  %v973_v1 = vld [vmem:[#allocation2 + $0x180] sm:$0xff] }
 0x2f9   : > { %4104 = vst [vmem:[#allocation2 + $0x148] sm:$0xff] %v3976_v9  ;;  %v5765_v9 = vld [vmem:[%s6791_s6 + $0x684] ss:$16 sps:$4 sm:$0xff]  }
 0x2fa   : > { %v3047_v10 = vpop.f32.mrb[84].mxu0  ;;  %v3592_v12 = vpop.f32.mrb[84].mxu1 }
 0x2fb   : > { %v3049_v13 = vpop.f32.mrb[85].mxu0  ;;  %v3593_v15 = vadd.f32 %v3592_v12, %v3047_v10  ;;  %v3594_v16 = vpop.f32.mrb[85].mxu1  ;;  %v974_v10 = vld [vmem:[#allocation2 + $0x188] sm:$0xff] }
 0x2fc   : > { %v3050_v17 = vpop.f32.mrb[86].mxu0  ;;  %v3595_v21 = vpop.f32.mrb[86].mxu1  ;;  %v5767_v13 = vld [vmem:[%s6791_s6 + $0x68c] ss:$16 sps:$4 sm:$0xff]  }
 0x2fd   : > { %v3052_v22 = vpop.f32.mrb[87].mxu0  ;;  %v3977_v24 = vadd.f32 %v3593_v15, %v967_v11  ;;  %v3596_v25 = vadd.f32 %v3595_v21, %v3050_v17  ;;  %v3597_v26 = vpop.f32.mrb[87].mxu1 }
 0x2fe   : > { %v5769_v22 = vld [vmem:[%s6791_s6 + $0x680] ss:$16 sps:$4 sm:$0xff]   ;;  %v5770_v26 = vld [vmem:[%s6791_s6 + $0x688] ss:$16 sps:$4 sm:$0xff]  }
 0x2ff   : > { %3262 = vmatmul.mubr.bf16.gmra.mrb[192].mxu0 %v5745_v14  ;;  %4105 = vst [vmem:[#allocation2 + $0x150] sm:$0xff] %v3977_v24  ;;  %v3978_v27 = vadd.f32 %v3596_v25, %v968_v20  ;;  %3807 = vmatmul.mubr.bf16.gmra.mrb[192].mxu1 %v5746_v18 }
 0x300   : > { %3269 = vmatprep.mubr.bf16.mxu0 %v5747_v19  ;;  %3814 = vmatprep.mubr.bf16.mxu1 %v5749_v23  ;;  %v975_v19 = vld [vmem:[#allocation2 + $0x190] sm:$0xff] }
 0x301   : > { %4106 = vst [vmem:[#allocation2 + $0x158] sm:$0xff] %v3978_v27  ;;  %v5771_v27 = vld [vmem:[%s6791_s6 + $0x6a4] ss:$16 sps:$4 sm:$0xff]  }
 0x302   : > { %v3055_v28 = vpop.f32.mrb[88].mxu0  ;;  %v3600_v30 = vpop.f32.mrb[88].mxu1 }
 0x303   : > { %v3057_v31 = vpop.f32.mrb[89].mxu0  ;;  %v3601_v33 = vadd.f32 %v3600_v30, %v3055_v28  ;;  %v3602_v34 = vpop.f32.mrb[89].mxu1  ;;  %v976_v28 = vld [vmem:[#allocation2 + $0x198] sm:$0xff] }
 0x304   : > { %v3058_v35 = vpop.f32.mrb[90].mxu0  ;;  %v3603_v39 = vpop.f32.mrb[90].mxu1  ;;  %v5773_v31 = vld [vmem:[%s6791_s6 + $0x6ac] ss:$16 sps:$4 sm:$0xff]  }
 0x305   : > { %v3060_v40 = vpop.f32.mrb[91].mxu0  ;;  %v3979_v42 = vadd.f32 %v3601_v33, %v969_v29  ;;  %v3604_v43 = vadd.f32 %v3603_v39, %v3058_v35  ;;  %v3605_v44 = vpop.f32.mrb[91].mxu1 }
 0x306   : > { %v5775_v40 = vld [vmem:[%s6791_s6 + $0x6a0] ss:$16 sps:$4 sm:$0xff]   ;;  %v5776_v44 = vld [vmem:[%s6791_s6 + $0x6a8] ss:$16 sps:$4 sm:$0xff]  }
 0x307   : > { %3270 = vmatmul.mubr.bf16.gmra.mrb[196].mxu0 %v5751_v32  ;;  %4107 = vst [vmem:[#allocation2 + $0x160] sm:$0xff] %v3979_v42  ;;  %v3980_v45 = vadd.f32 %v3604_v43, %v970_v38  ;;  %3815 = vmatmul.mubr.bf16.gmra.mrb[196].mxu1 %v5752_v36 }
 0x308   : > { %3277 = vmatprep.mubr.bf16.mxu0 %v5753_v37  ;;  %3822 = vmatprep.mubr.bf16.mxu1 %v5755_v41  ;;  %v977_v37 = vld [vmem:[#allocation2 + $0x1a0] sm:$0xff] }
 0x309   : > { %4108 = vst [vmem:[#allocation2 + $0x168] sm:$0xff] %v3980_v45  ;;  %v5777_v45 = vld [vmem:[%s6791_s6 + $0x6c4] ss:$16 sps:$4 sm:$0xff]  }
 0x30a   : > { %v3063_v46 = vpop.f32.mrb[92].mxu0  ;;  %v3608_v48 = vpop.f32.mrb[92].mxu1 }
 0x30b   : > { %v3065_v49 = vpop.f32.mrb[93].mxu0  ;;  %v3609_v51 = vadd.f32 %v3608_v48, %v3063_v46  ;;  %v3610_v52 = vpop.f32.mrb[93].mxu1  ;;  %v978_v46 = vld [vmem:[#allocation2 + $0x1a8] sm:$0xff] }
 0x30c   : > { %v3066_v53 = vpop.f32.mrb[94].mxu0  ;;  %v3611_v57 = vpop.f32.mrb[94].mxu1  ;;  %v5779_v49 = vld [vmem:[%s6791_s6 + $0x6cc] ss:$16 sps:$4 sm:$0xff]  }
 0x30d   : > { %v3068_v58 = vpop.f32.mrb[95].mxu0  ;;  %v3981_v60 = vadd.f32 %v3609_v51, %v971_v47  ;;  %v3612_v61 = vadd.f32 %v3611_v57, %v3066_v53  ;;  %v3613_v62 = vpop.f32.mrb[95].mxu1 }
 0x30e   : > { %v5781_v58 = vld [vmem:[%s6791_s6 + $0x6c0] ss:$16 sps:$4 sm:$0xff]   ;;  %v5782_v62 = vld [vmem:[%s6791_s6 + $0x6c8] ss:$16 sps:$4 sm:$0xff]  }
 0x30f   : > { %3278 = vmatmul.mubr.bf16.gmra.mrb[200].mxu0 %v5757_v50  ;;  %4109 = vst [vmem:[#allocation2 + $0x170] sm:$0xff] %v3981_v60  ;;  %v3982_v63 = vadd.f32 %v3612_v61, %v972_v56  ;;  %3823 = vmatmul.mubr.bf16.gmra.mrb[200].mxu1 %v5758_v54 }
 0x310   : > { %3285 = vmatprep.mubr.bf16.mxu0 %v5759_v55  ;;  %3830 = vmatprep.mubr.bf16.mxu1 %v5761_v59  ;;  %v979_v55 = vld [vmem:[#allocation2 + $0x1b0] sm:$0xff] }
 0x311   : > { %4110 = vst [vmem:[#allocation2 + $0x178] sm:$0xff] %v3982_v63  ;;  %v5783_v63 = vld [vmem:[%s6791_s6 + $0x6e4] ss:$16 sps:$4 sm:$0xff]  }
 0x312   : > { %v3071_v0 = vpop.f32.mrb[96].mxu0  ;;  %v3616_v2 = vpop.f32.mrb[96].mxu1 }
 0x313   : > { %v3073_v3 = vpop.f32.mrb[97].mxu0  ;;  %v3617_v5 = vadd.f32 %v3616_v2, %v3071_v0  ;;  %v3618_v6 = vpop.f32.mrb[97].mxu1  ;;  %v980_v0 = vld [vmem:[#allocation2 + $0x1b8] sm:$0xff] }
 0x314   : > { %v3074_v7 = vpop.f32.mrb[98].mxu0  ;;  %v3619_v11 = vpop.f32.mrb[98].mxu1  ;;  %v5785_v3 = vld [vmem:[%s6791_s6 + $0x6ec] ss:$16 sps:$4 sm:$0xff]  }
 0x315   : > { %v3076_v12 = vpop.f32.mrb[99].mxu0  ;;  %v3983_v14 = vadd.f32 %v3617_v5, %v973_v1  ;;  %v3620_v15 = vadd.f32 %v3619_v11, %v3074_v7  ;;  %v3621_v16 = vpop.f32.mrb[99].mxu1 }
 0x316   : > { %v5787_v12 = vld [vmem:[%s6791_s6 + $0x6e0] ss:$16 sps:$4 sm:$0xff]   ;;  %v5788_v16 = vld [vmem:[%s6791_s6 + $0x6e8] ss:$16 sps:$4 sm:$0xff]  }
 0x317   : > { %3286 = vmatmul.mubr.bf16.gmra.mrb[204].mxu0 %v5763_v4  ;;  %4111 = vst [vmem:[#allocation2 + $0x180] sm:$0xff] %v3983_v14  ;;  %v3984_v17 = vadd.f32 %v3620_v15, %v974_v10  ;;  %3831 = vmatmul.mubr.bf16.gmra.mrb[204].mxu1 %v5764_v8 }
 0x318   : > { %3293 = vmatprep.mubr.bf16.mxu0 %v5765_v9  ;;  %3838 = vmatprep.mubr.bf16.mxu1 %v5767_v13  ;;  %v981_v9 = vld [vmem:[#allocation2 + $0x1c0] sm:$0xff] }
 0x319   : > { %4112 = vst [vmem:[#allocation2 + $0x188] sm:$0xff] %v3984_v17  ;;  %v5789_v17 = vld [vmem:[%s6791_s6 + $0x704] ss:$16 sps:$4 sm:$0xff]  }
 0x31a   : > { %v3079_v18 = vpop.f32.mrb[100].mxu0  ;;  %v3624_v20 = vpop.f32.mrb[100].mxu1 }
 0x31b   : > { %v3081_v21 = vpop.f32.mrb[101].mxu0  ;;  %v3625_v23 = vadd.f32 %v3624_v20, %v3079_v18  ;;  %v3626_v24 = vpop.f32.mrb[101].mxu1  ;;  %v982_v18 = vld [vmem:[#allocation2 + $0x1c8] sm:$0xff] }
 0x31c   : > { %v3082_v25 = vpop.f32.mrb[102].mxu0  ;;  %v3627_v29 = vpop.f32.mrb[102].mxu1  ;;  %v5791_v21 = vld [vmem:[%s6791_s6 + $0x70c] ss:$16 sps:$4 sm:$0xff]  }
 0x31d   : > { %v3084_v30 = vpop.f32.mrb[103].mxu0  ;;  %v3985_v32 = vadd.f32 %v3625_v23, %v975_v19  ;;  %v3628_v33 = vadd.f32 %v3627_v29, %v3082_v25  ;;  %v3629_v34 = vpop.f32.mrb[103].mxu1 }
 0x31e   : > { %v5793_v30 = vld [vmem:[%s6791_s6 + $0x700] ss:$16 sps:$4 sm:$0xff]   ;;  %v5794_v34 = vld [vmem:[%s6791_s6 + $0x708] ss:$16 sps:$4 sm:$0xff]  }
 0x31f   : > { %3294 = vmatmul.mubr.bf16.gmra.mrb[208].mxu0 %v5769_v22  ;;  %4113 = vst [vmem:[#allocation2 + $0x190] sm:$0xff] %v3985_v32  ;;  %v3986_v35 = vadd.f32 %v3628_v33, %v976_v28  ;;  %3839 = vmatmul.mubr.bf16.gmra.mrb[208].mxu1 %v5770_v26 }
 0x320   : > { %3301 = vmatprep.mubr.bf16.mxu0 %v5771_v27  ;;  %3846 = vmatprep.mubr.bf16.mxu1 %v5773_v31  ;;  %v983_v27 = vld [vmem:[#allocation2 + $0x1d0] sm:$0xff] }
 0x321   : > { %4114 = vst [vmem:[#allocation2 + $0x198] sm:$0xff] %v3986_v35  ;;  %v5795_v35 = vld [vmem:[%s6791_s6 + $0x724] ss:$16 sps:$4 sm:$0xff]  }
 0x322   : > { %v3087_v36 = vpop.f32.mrb[104].mxu0  ;;  %v3632_v38 = vpop.f32.mrb[104].mxu1 }
 0x323   : > { %v3089_v39 = vpop.f32.mrb[105].mxu0  ;;  %v3633_v41 = vadd.f32 %v3632_v38, %v3087_v36  ;;  %v3634_v42 = vpop.f32.mrb[105].mxu1  ;;  %v984_v36 = vld [vmem:[#allocation2 + $0x1d8] sm:$0xff] }
 0x324   : > { %v3090_v43 = vpop.f32.mrb[106].mxu0  ;;  %v3635_v47 = vpop.f32.mrb[106].mxu1  ;;  %v5797_v39 = vld [vmem:[%s6791_s6 + $0x72c] ss:$16 sps:$4 sm:$0xff]  }
 0x325   : > { %v3092_v48 = vpop.f32.mrb[107].mxu0  ;;  %v3987_v50 = vadd.f32 %v3633_v41, %v977_v37  ;;  %v3636_v51 = vadd.f32 %v3635_v47, %v3090_v43  ;;  %v3637_v52 = vpop.f32.mrb[107].mxu1 }
 0x326   : > { %v5799_v48 = vld [vmem:[%s6791_s6 + $0x720] ss:$16 sps:$4 sm:$0xff]   ;;  %v5800_v52 = vld [vmem:[%s6791_s6 + $0x728] ss:$16 sps:$4 sm:$0xff]  }
 0x327   : > { %3302 = vmatmul.mubr.bf16.gmra.mrb[212].mxu0 %v5775_v40  ;;  %4115 = vst [vmem:[#allocation2 + $0x1a0] sm:$0xff] %v3987_v50  ;;  %v3988_v53 = vadd.f32 %v3636_v51, %v978_v46  ;;  %3847 = vmatmul.mubr.bf16.gmra.mrb[212].mxu1 %v5776_v44 }
 0x328   : > { %3309 = vmatprep.mubr.bf16.mxu0 %v5777_v45  ;;  %3854 = vmatprep.mubr.bf16.mxu1 %v5779_v49  ;;  %v985_v45 = vld [vmem:[#allocation2 + $0x1e0] sm:$0xff] }
 0x329   : > { %4116 = vst [vmem:[#allocation2 + $0x1a8] sm:$0xff] %v3988_v53  ;;  %v5801_v53 = vld [vmem:[%s6791_s6 + $0x744] ss:$16 sps:$4 sm:$0xff]  }
 0x32a   : > { %v3095_v54 = vpop.f32.mrb[108].mxu0  ;;  %v3640_v56 = vpop.f32.mrb[108].mxu1 }
 0x32b   : > { %v3097_v57 = vpop.f32.mrb[109].mxu0  ;;  %v3641_v59 = vadd.f32 %v3640_v56, %v3095_v54  ;;  %v3642_v60 = vpop.f32.mrb[109].mxu1  ;;  %v986_v54 = vld [vmem:[#allocation2 + $0x1e8] sm:$0xff] }
 0x32c   : > { %v3098_v61 = vpop.f32.mrb[110].mxu0  ;;  %v3643_v1 = vpop.f32.mrb[110].mxu1  ;;  %v5803_v57 = vld [vmem:[%s6791_s6 + $0x74c] ss:$16 sps:$4 sm:$0xff]  }
 0x32d   : > { %v3100_v2 = vpop.f32.mrb[111].mxu0  ;;  %v3989_v4 = vadd.f32 %v3641_v59, %v979_v55  ;;  %v3644_v5 = vadd.f32 %v3643_v1, %v3098_v61  ;;  %v3645_v6 = vpop.f32.mrb[111].mxu1 }
 0x32e   : > { %v5805_v2 = vld [vmem:[%s6791_s6 + $0x740] ss:$16 sps:$4 sm:$0xff]   ;;  %v5806_v6 = vld [vmem:[%s6791_s6 + $0x748] ss:$16 sps:$4 sm:$0xff]  }
 0x32f   : > { %3310 = vmatmul.mubr.bf16.gmra.mrb[216].mxu0 %v5781_v58  ;;  %4117 = vst [vmem:[#allocation2 + $0x1b0] sm:$0xff] %v3989_v4  ;;  %v3990_v7 = vadd.f32 %v3644_v5, %v980_v0  ;;  %3855 = vmatmul.mubr.bf16.gmra.mrb[216].mxu1 %v5782_v62 }
 0x330   : > { %3317 = vmatprep.mubr.bf16.mxu0 %v5783_v63  ;;  %3862 = vmatprep.mubr.bf16.mxu1 %v5785_v3  ;;  %v987_v63 = vld [vmem:[#allocation2 + $0x1f0] sm:$0xff] }
 0x331   : > { %4118 = vst [vmem:[#allocation2 + $0x1b8] sm:$0xff] %v3990_v7  ;;  %v5807_v7 = vld [vmem:[%s6791_s6 + $0x764] ss:$16 sps:$4 sm:$0xff]  }
 0x332   : > { %v3103_v8 = vpop.f32.mrb[112].mxu0  ;;  %v3648_v10 = vpop.f32.mrb[112].mxu1 }
 0x333   : > { %v3105_v11 = vpop.f32.mrb[113].mxu0  ;;  %v3649_v13 = vadd.f32 %v3648_v10, %v3103_v8  ;;  %v3650_v14 = vpop.f32.mrb[113].mxu1  ;;  %v988_v8 = vld [vmem:[#allocation2 + $0x1f8] sm:$0xff] }
 0x334   : > { %v3106_v15 = vpop.f32.mrb[114].mxu0  ;;  %v3651_v19 = vpop.f32.mrb[114].mxu1  ;;  %v5809_v11 = vld [vmem:[%s6791_s6 + $0x76c] ss:$16 sps:$4 sm:$0xff]  }
 0x335   : > { %v3108_v20 = vpop.f32.mrb[115].mxu0  ;;  %v3991_v22 = vadd.f32 %v3649_v13, %v981_v9  ;;  %v3652_v23 = vadd.f32 %v3651_v19, %v3106_v15  ;;  %v3653_v24 = vpop.f32.mrb[115].mxu1 }
 0x336   : > { %v5811_v20 = vld [vmem:[%s6791_s6 + $0x760] ss:$16 sps:$4 sm:$0xff]   ;;  %v5812_v24 = vld [vmem:[%s6791_s6 + $0x768] ss:$16 sps:$4 sm:$0xff]  }
 0x337   : > { %3318 = vmatmul.mubr.bf16.gmra.mrb[220].mxu0 %v5787_v12  ;;  %4119 = vst [vmem:[#allocation2 + $0x1c0] sm:$0xff] %v3991_v22  ;;  %v3992_v25 = vadd.f32 %v3652_v23, %v982_v18  ;;  %3863 = vmatmul.mubr.bf16.gmra.mrb[220].mxu1 %v5788_v16 }
 0x338   : > { %3325 = vmatprep.mubr.bf16.mxu0 %v5789_v17  ;;  %3870 = vmatprep.mubr.bf16.mxu1 %v5791_v21  ;;  %v989_v17 = vld [vmem:[#allocation2 + $0x200] sm:$0xff] }
 0x339   : > { %4120 = vst [vmem:[#allocation2 + $0x1c8] sm:$0xff] %v3992_v25  ;;  %v5813_v25 = vld [vmem:[%s6791_s6 + $0x784] ss:$16 sps:$4 sm:$0xff]  }
 0x33a   : > { %v3111_v26 = vpop.f32.mrb[116].mxu0  ;;  %v3656_v28 = vpop.f32.mrb[116].mxu1 }
 0x33b   : > { %v3113_v29 = vpop.f32.mrb[117].mxu0  ;;  %v3657_v31 = vadd.f32 %v3656_v28, %v3111_v26  ;;  %v3658_v32 = vpop.f32.mrb[117].mxu1  ;;  %v990_v26 = vld [vmem:[#allocation2 + $0x208] sm:$0xff] }
 0x33c   : > { %v3114_v33 = vpop.f32.mrb[118].mxu0  ;;  %v3659_v37 = vpop.f32.mrb[118].mxu1  ;;  %v5815_v29 = vld [vmem:[%s6791_s6 + $0x78c] ss:$16 sps:$4 sm:$0xff]  }
 0x33d   : > { %v3116_v38 = vpop.f32.mrb[119].mxu0  ;;  %v3993_v40 = vadd.f32 %v3657_v31, %v983_v27  ;;  %v3660_v41 = vadd.f32 %v3659_v37, %v3114_v33  ;;  %v3661_v42 = vpop.f32.mrb[119].mxu1 }
 0x33e   : > { %v5817_v38 = vld [vmem:[%s6791_s6 + $0x780] ss:$16 sps:$4 sm:$0xff]   ;;  %v5818_v42 = vld [vmem:[%s6791_s6 + $0x788] ss:$16 sps:$4 sm:$0xff]  }
 0x33f   : > { %3326 = vmatmul.mubr.bf16.gmra.mrb[224].mxu0 %v5793_v30  ;;  %4121 = vst [vmem:[#allocation2 + $0x1d0] sm:$0xff] %v3993_v40  ;;  %v3994_v43 = vadd.f32 %v3660_v41, %v984_v36  ;;  %3871 = vmatmul.mubr.bf16.gmra.mrb[224].mxu1 %v5794_v34 }
 0x340   : > { %3333 = vmatprep.mubr.bf16.mxu0 %v5795_v35  ;;  %3878 = vmatprep.mubr.bf16.mxu1 %v5797_v39  ;;  %v991_v35 = vld [vmem:[#allocation2 + $0x210] sm:$0xff] }
 0x341   : > { %4122 = vst [vmem:[#allocation2 + $0x1d8] sm:$0xff] %v3994_v43  ;;  %v5819_v43 = vld [vmem:[%s6791_s6 + $0x7a4] ss:$16 sps:$4 sm:$0xff]  }
 0x342   : > { %v3119_v44 = vpop.f32.mrb[120].mxu0  ;;  %v3664_v46 = vpop.f32.mrb[120].mxu1 }
 0x343   : > { %v3121_v47 = vpop.f32.mrb[121].mxu0  ;;  %v3665_v49 = vadd.f32 %v3664_v46, %v3119_v44  ;;  %v3666_v50 = vpop.f32.mrb[121].mxu1  ;;  %v992_v44 = vld [vmem:[#allocation2 + $0x218] sm:$0xff] }
 0x344   : > { %v3122_v51 = vpop.f32.mrb[122].mxu0  ;;  %v3667_v55 = vpop.f32.mrb[122].mxu1  ;;  %v5821_v47 = vld [vmem:[%s6791_s6 + $0x7ac] ss:$16 sps:$4 sm:$0xff]  }
 0x345   : > { %v3124_v56 = vpop.f32.mrb[123].mxu0  ;;  %v3995_v58 = vadd.f32 %v3665_v49, %v985_v45  ;;  %v3668_v59 = vadd.f32 %v3667_v55, %v3122_v51  ;;  %v3669_v60 = vpop.f32.mrb[123].mxu1 }
 0x346   : > { %v5823_v56 = vld [vmem:[%s6791_s6 + $0x7a0] ss:$16 sps:$4 sm:$0xff]   ;;  %v5824_v60 = vld [vmem:[%s6791_s6 + $0x7a8] ss:$16 sps:$4 sm:$0xff]  }
 0x347   : > { %3334 = vmatmul.mubr.bf16.gmra.mrb[228].mxu0 %v5799_v48  ;;  %4123 = vst [vmem:[#allocation2 + $0x1e0] sm:$0xff] %v3995_v58  ;;  %v3996_v61 = vadd.f32 %v3668_v59, %v986_v54  ;;  %3879 = vmatmul.mubr.bf16.gmra.mrb[228].mxu1 %v5800_v52 }
 0x348   : > { %3341 = vmatprep.mubr.bf16.mxu0 %v5801_v53  ;;  %3886 = vmatprep.mubr.bf16.mxu1 %v5803_v57  ;;  %v993_v53 = vld [vmem:[#allocation2 + $0x220] sm:$0xff] }
 0x349   : > { %4124 = vst [vmem:[#allocation2 + $0x1e8] sm:$0xff] %v3996_v61  ;;  %v5825_v61 = vld [vmem:[%s6791_s6 + $0x7c4] ss:$16 sps:$4 sm:$0xff]  }
 0x34a   : > { %v3127_v62 = vpop.f32.mrb[124].mxu0  ;;  %v3672_v0 = vpop.f32.mrb[124].mxu1 }
 0x34b   : > { %v3129_v1 = vpop.f32.mrb[125].mxu0  ;;  %v3673_v3 = vadd.f32 %v3672_v0, %v3127_v62  ;;  %v3674_v4 = vpop.f32.mrb[125].mxu1  ;;  %v994_v62 = vld [vmem:[#allocation2 + $0x228] sm:$0xff] }
 0x34c   : > { %v3130_v5 = vpop.f32.mrb[126].mxu0  ;;  %v3675_v9 = vpop.f32.mrb[126].mxu1  ;;  %v5827_v1 = vld [vmem:[%s6791_s6 + $0x7cc] ss:$16 sps:$4 sm:$0xff]  }
 0x34d   : > { %v3132_v10 = vpop.f32.mrb[127].mxu0  ;;  %v3997_v12 = vadd.f32 %v3673_v3, %v987_v63  ;;  %v3676_v13 = vadd.f32 %v3675_v9, %v3130_v5  ;;  %v3677_v14 = vpop.f32.mrb[127].mxu1 }
 0x34e   : > { %v5829_v10 = vld [vmem:[%s6791_s6 + $0x7c0] ss:$16 sps:$4 sm:$0xff]   ;;  %v5830_v14 = vld [vmem:[%s6791_s6 + $0x7c8] ss:$16 sps:$4 sm:$0xff]  }
 0x34f   : > { %3342 = vmatmul.mubr.bf16.gmra.mrb[232].mxu0 %v5805_v2  ;;  %4125 = vst [vmem:[#allocation2 + $0x1f0] sm:$0xff] %v3997_v12  ;;  %v3998_v15 = vadd.f32 %v3676_v13, %v988_v8  ;;  %3887 = vmatmul.mubr.bf16.gmra.mrb[232].mxu1 %v5806_v6 }
 0x350   : > { %3349 = vmatprep.mubr.bf16.mxu0 %v5807_v7  ;;  %3894 = vmatprep.mubr.bf16.mxu1 %v5809_v11  ;;  %v995_v7 = vld [vmem:[#allocation2 + $0x230] sm:$0xff] }
 0x351   : > { %4126 = vst [vmem:[#allocation2 + $0x1f8] sm:$0xff] %v3998_v15  ;;  %v5831_v15 = vld [vmem:[%s6791_s6 + $0x7e4] ss:$16 sps:$4 sm:$0xff]  }
 0x352   : > { %v3135_v16 = vpop.f32.mrb[128].mxu0  ;;  %v3680_v18 = vpop.f32.mrb[128].mxu1 }
 0x353   : > { %v3137_v19 = vpop.f32.mrb[129].mxu0  ;;  %v3681_v21 = vadd.f32 %v3680_v18, %v3135_v16  ;;  %v3682_v22 = vpop.f32.mrb[129].mxu1  ;;  %v996_v16 = vld [vmem:[#allocation2 + $0x238] sm:$0xff] }
 0x354   : > { %v3138_v23 = vpop.f32.mrb[130].mxu0  ;;  %v3683_v27 = vpop.f32.mrb[130].mxu1  ;;  %v5833_v19 = vld [vmem:[%s6791_s6 + $0x7ec] ss:$16 sps:$4 sm:$0xff]  }
 0x355   : > { %v3140_v28 = vpop.f32.mrb[131].mxu0  ;;  %v3999_v30 = vadd.f32 %v3681_v21, %v989_v17  ;;  %v3684_v31 = vadd.f32 %v3683_v27, %v3138_v23  ;;  %v3685_v32 = vpop.f32.mrb[131].mxu1 }
 0x356   : > { %v5835_v28 = vld [vmem:[%s6791_s6 + $0x7e0] ss:$16 sps:$4 sm:$0xff]   ;;  %v5836_v32 = vld [vmem:[%s6791_s6 + $0x7e8] ss:$16 sps:$4 sm:$0xff]  }
 0x357   : > { %3350 = vmatmul.mubr.bf16.gmra.mrb[236].mxu0 %v5811_v20  ;;  %4127 = vst [vmem:[#allocation2 + $0x200] sm:$0xff] %v3999_v30  ;;  %v4000_v33 = vadd.f32 %v3684_v31, %v990_v26  ;;  %3895 = vmatmul.mubr.bf16.gmra.mrb[236].mxu1 %v5812_v24 }
 0x358   : > { %3357 = vmatprep.mubr.bf16.mxu0 %v5813_v25  ;;  %3902 = vmatprep.mubr.bf16.mxu1 %v5815_v29  ;;  %v997_v25 = vld [vmem:[#allocation2 + $0x240] sm:$0xff] }
 0x359   : > { %4128 = vst [vmem:[#allocation2 + $0x208] sm:$0xff] %v4000_v33  ;;  %v998_v33 = vld [vmem:[#allocation2 + $0x248] sm:$0xff] }
 0x35a   : > { %v3143_v34 = vpop.f32.mrb[132].mxu0  ;;  %v3688_v36 = vpop.f32.mrb[132].mxu1 }
 0x35b   : > { %v3145_v37 = vpop.f32.mrb[133].mxu0  ;;  %v3689_v39 = vadd.f32 %v3688_v36, %v3143_v34  ;;  %v3690_v40 = vpop.f32.mrb[133].mxu1 }
 0x35c   : > { %v3146_v41 = vpop.f32.mrb[134].mxu0  ;;  %v3691_v45 = vpop.f32.mrb[134].mxu1 }
 0x35d   : > { %v3148_v46 = vpop.f32.mrb[135].mxu0  ;;  %v4001_v48 = vadd.f32 %v3689_v39, %v991_v35  ;;  %v3692_v49 = vadd.f32 %v3691_v45, %v3146_v41  ;;  %v3693_v50 = vpop.f32.mrb[135].mxu1  ;;  %v999_v41 = vld [vmem:[#allocation2 + $0x250] sm:$0xff] }
 0x35f   : > { %3358 = vmatmul.mubr.bf16.gmra.mrb[240].mxu0 %v5817_v38  ;;  %4129 = vst [vmem:[#allocation2 + $0x210] sm:$0xff] %v4001_v48  ;;  %v4002_v51 = vadd.f32 %v3692_v49, %v992_v44  ;;  %3903 = vmatmul.mubr.bf16.gmra.mrb[240].mxu1 %v5818_v42 }
 0x360   : > { %3365 = vmatprep.mubr.bf16.mxu0 %v5819_v43  ;;  %3910 = vmatprep.mubr.bf16.mxu1 %v5821_v47  ;;  %v1000_v47 = vld [vmem:[#allocation2 + $0x258] sm:$0xff] }
 0x361   : > { %4130 = vst [vmem:[#allocation2 + $0x218] sm:$0xff] %v4002_v51 }
 0x362   : > { %v3151_v52 = vpop.f32.mrb[136].mxu0  ;;  %v3696_v54 = vpop.f32.mrb[136].mxu1 }
 0x363   : > { %v3153_v55 = vpop.f32.mrb[137].mxu0  ;;  %v3697_v57 = vadd.f32 %v3696_v54, %v3151_v52  ;;  %v3698_v58 = vpop.f32.mrb[137].mxu1 }
 0x364   : > { %v3154_v59 = vpop.f32.mrb[138].mxu0  ;;  %v3699_v63 = vpop.f32.mrb[138].mxu1  ;;  %v1001_v55 = vld [vmem:[#allocation2 + $0x260] sm:$0xff] }
 0x365   : > { %v3156_v0 = vpop.f32.mrb[139].mxu0  ;;  %v4003_v2 = vadd.f32 %v3697_v57, %v993_v53  ;;  %v3700_v3 = vadd.f32 %v3699_v63, %v3154_v59  ;;  %v3701_v4 = vpop.f32.mrb[139].mxu1 }
 0x367   : > { %3366 = vmatmul.mubr.bf16.gmra.mrb[244].mxu0 %v5823_v56  ;;  %4131 = vst [vmem:[#allocation2 + $0x220] sm:$0xff] %v4003_v2  ;;  %v4004_v5 = vadd.f32 %v3700_v3, %v994_v62  ;;  %3911 = vmatmul.mubr.bf16.gmra.mrb[244].mxu1 %v5824_v60 }
 0x368   : > { %3373 = vmatprep.mubr.bf16.mxu0 %v5825_v61  ;;  %3918 = vmatprep.mubr.bf16.mxu1 %v5827_v1  ;;  %v1002_v61 = vld [vmem:[#allocation2 + $0x268] sm:$0xff] }
 0x369   : > { %4132 = vst [vmem:[#allocation2 + $0x228] sm:$0xff] %v4004_v5  ;;  %v1003_v5 = vld [vmem:[#allocation2 + $0x270] sm:$0xff] }
 0x36a   : > { %v3159_v6 = vpop.f32.mrb[140].mxu0  ;;  %v3704_v8 = vpop.f32.mrb[140].mxu1 }
 0x36b   : > { %v3161_v9 = vpop.f32.mrb[141].mxu0  ;;  %v3705_v11 = vadd.f32 %v3704_v8, %v3159_v6  ;;  %v3706_v12 = vpop.f32.mrb[141].mxu1 }
 0x36c   : > { %v3162_v13 = vpop.f32.mrb[142].mxu0  ;;  %v3707_v17 = vpop.f32.mrb[142].mxu1 }
 0x36d   : > { %v3164_v18 = vpop.f32.mrb[143].mxu0  ;;  %v4005_v20 = vadd.f32 %v3705_v11, %v995_v7  ;;  %v3708_v21 = vadd.f32 %v3707_v17, %v3162_v13  ;;  %v3709_v22 = vpop.f32.mrb[143].mxu1  ;;  %v1004_v11 = vld [vmem:[#allocation2 + $0x278] sm:$0xff] }
 0x36f   : > { %3374 = vmatmul.mubr.bf16.gmra.mrb[248].mxu0 %v5829_v10  ;;  %4133 = vst [vmem:[#allocation2 + $0x230] sm:$0xff] %v4005_v20  ;;  %v4006_v23 = vadd.f32 %v3708_v21, %v996_v16  ;;  %3919 = vmatmul.mubr.bf16.gmra.mrb[248].mxu1 %v5830_v14 }
 0x370   : > { %3381 = vmatprep.mubr.bf16.mxu0 %v5831_v15  ;;  %3926 = vmatprep.mubr.bf16.mxu1 %v5833_v19  ;;  %v1005_v19 = vld [vmem:[#allocation2 + $0x280] sm:$0xff] }
 0x371   : > { %4134 = vst [vmem:[#allocation2 + $0x238] sm:$0xff] %v4006_v23 }
 0x372   : > { %v3167_v24 = vpop.f32.mrb[144].mxu0  ;;  %v3712_v26 = vpop.f32.mrb[144].mxu1 }
 0x373   : > { %v3169_v27 = vpop.f32.mrb[145].mxu0  ;;  %v3713_v29 = vadd.f32 %v3712_v26, %v3167_v24  ;;  %v3714_v30 = vpop.f32.mrb[145].mxu1 }
 0x374   : > { %v3170_v31 = vpop.f32.mrb[146].mxu0  ;;  %v3715_v34 = vpop.f32.mrb[146].mxu1 }
 0x375   : > { %v3172_v35 = vpop.f32.mrb[147].mxu0  ;;  %v4007_v36 = vadd.f32 %v3713_v29, %v997_v25  ;;  %v3716_v37 = vadd.f32 %v3715_v34, %v3170_v31  ;;  %v3717_v38 = vpop.f32.mrb[147].mxu1  ;;  %v1006_v25 = vld [vmem:[#allocation2 + $0x288] sm:$0xff] }
 0x377   : > { %3382 = vmatmul.mubr.bf16.gmra.mrb[252].mxu0 %v5835_v28  ;;  %4135 = vst [vmem:[#allocation2 + $0x240] sm:$0xff] %v4007_v36  ;;  %v4008_v39 = vadd.f32 %v3716_v37, %v998_v33  ;;  %3927 = vmatmul.mubr.bf16.gmra.mrb[252].mxu1 %v5836_v32  ;;  %v1007_v33 = vld [vmem:[#allocation2 + $0x290] sm:$0xff] }
 0x379   : > { %4136 = vst [vmem:[#allocation2 + $0x248] sm:$0xff] %v4008_v39  ;;  %v1008_v39 = vld [vmem:[#allocation2 + $0x298] sm:$0xff] }
 0x37a   : > { %v3175_v40 = vpop.f32.mrb[148].mxu0  ;;  %v3720_v42 = vpop.f32.mrb[148].mxu1 }
 0x37b   : > { %v3177_v43 = vpop.f32.mrb[149].mxu0  ;;  %v3721_v44 = vadd.f32 %v3720_v42, %v3175_v40  ;;  %v3722_v45 = vpop.f32.mrb[149].mxu1 }
 0x37c   : > { %v3178_v46 = vpop.f32.mrb[150].mxu0  ;;  %v3723_v48 = vpop.f32.mrb[150].mxu1 }
 0x37d   : > { %v3180_v49 = vpop.f32.mrb[151].mxu0  ;;  %v4009_v50 = vadd.f32 %v3721_v44, %v999_v41  ;;  %v3724_v51 = vadd.f32 %v3723_v48, %v3178_v46  ;;  %v3725_v52 = vpop.f32.mrb[151].mxu1 }
 0x37f   : > { %4137 = vst [vmem:[#allocation2 + $0x250] sm:$0xff] %v4009_v50  ;;  %v4010_v53 = vadd.f32 %v3724_v51, %v1000_v47  ;;  %v1009_v47 = vld [vmem:[#allocation2 + $0x2a0] sm:$0xff] }
 0x381   : > { %4138 = vst [vmem:[#allocation2 + $0x258] sm:$0xff] %v4010_v53  ;;  %v1010_v53 = vld [vmem:[#allocation2 + $0x2a8] sm:$0xff] }
 0x382   : > { %v3183_v54 = vpop.f32.mrb[152].mxu0  ;;  %v3728_v56 = vpop.f32.mrb[152].mxu1 }
 0x383   : > { %v3185_v57 = vpop.f32.mrb[153].mxu0  ;;  %v3729_v58 = vadd.f32 %v3728_v56, %v3183_v54  ;;  %v3730_v59 = vpop.f32.mrb[153].mxu1 }
 0x384   : > { %v3186_v60 = vpop.f32.mrb[154].mxu0  ;;  %v3731_v62 = vpop.f32.mrb[154].mxu1 }
 0x385   : > { %v3188_v63 = vpop.f32.mrb[155].mxu0  ;;  %v4011_v0 = vadd.f32 %v3729_v58, %v1001_v55  ;;  %v3732_v1 = vadd.f32 %v3731_v62, %v3186_v60  ;;  %v3733_v2 = vpop.f32.mrb[155].mxu1 }
 0x387   : > { %4139 = vst [vmem:[#allocation2 + $0x260] sm:$0xff] %v4011_v0  ;;  %v4012_v3 = vadd.f32 %v3732_v1, %v1002_v61  ;;  %v1011_v61 = vld [vmem:[#allocation2 + $0x2b0] sm:$0xff] }
 0x389   : > { %4140 = vst [vmem:[#allocation2 + $0x268] sm:$0xff] %v4012_v3  ;;  %v1012_v3 = vld [vmem:[#allocation2 + $0x2b8] sm:$0xff] }
 0x38a   : > { %v3191_v4 = vpop.f32.mrb[156].mxu0  ;;  %v3736_v6 = vpop.f32.mrb[156].mxu1 }
 0x38b   : > { %v3193_v7 = vpop.f32.mrb[157].mxu0  ;;  %v3737_v8 = vadd.f32 %v3736_v6, %v3191_v4  ;;  %v3738_v9 = vpop.f32.mrb[157].mxu1 }
 0x38c   : > { %v3194_v10 = vpop.f32.mrb[158].mxu0  ;;  %v3739_v12 = vpop.f32.mrb[158].mxu1 }
 0x38d   : > { %v3196_v13 = vpop.f32.mrb[159].mxu0  ;;  %v4013_v14 = vadd.f32 %v3737_v8, %v1003_v5  ;;  %v3740_v15 = vadd.f32 %v3739_v12, %v3194_v10  ;;  %v3741_v16 = vpop.f32.mrb[159].mxu1 }
 0x38f   : > { %4141 = vst [vmem:[#allocation2 + $0x270] sm:$0xff] %v4013_v14  ;;  %v4014_v17 = vadd.f32 %v3740_v15, %v1004_v11  ;;  %v1013_v11 = vld [vmem:[#allocation2 + $0x2c0] sm:$0xff] }
 0x391   : > { %4142 = vst [vmem:[#allocation2 + $0x278] sm:$0xff] %v4014_v17  ;;  %v1014_v17 = vld [vmem:[#allocation2 + $0x2c8] sm:$0xff] }
 0x392   : > { %v3199_v18 = vpop.f32.mrb[160].mxu0  ;;  %v3744_v20 = vpop.f32.mrb[160].mxu1 }
 0x393   : > { %v3201_v21 = vpop.f32.mrb[161].mxu0  ;;  %v3745_v22 = vadd.f32 %v3744_v20, %v3199_v18  ;;  %v3746_v23 = vpop.f32.mrb[161].mxu1 }
 0x394   : > { %v3202_v24 = vpop.f32.mrb[162].mxu0  ;;  %v3747_v26 = vpop.f32.mrb[162].mxu1 }
 0x395   : > { %v3204_v27 = vpop.f32.mrb[163].mxu0  ;;  %v4015_v28 = vadd.f32 %v3745_v22, %v1005_v19  ;;  %v3748_v29 = vadd.f32 %v3747_v26, %v3202_v24  ;;  %v3749_v30 = vpop.f32.mrb[163].mxu1 }
 0x397   : > { %4143 = vst [vmem:[#allocation2 + $0x280] sm:$0xff] %v4015_v28  ;;  %v4016_v31 = vadd.f32 %v3748_v29, %v1006_v25  ;;  %v1015_v25 = vld [vmem:[#allocation2 + $0x2d0] sm:$0xff] }
 0x399   : > { %4144 = vst [vmem:[#allocation2 + $0x288] sm:$0xff] %v4016_v31  ;;  %v1016_v31 = vld [vmem:[#allocation2 + $0x2d8] sm:$0xff] }
 0x39a   : > { %v3207_v32 = vpop.f32.mrb[164].mxu0  ;;  %v3752_v34 = vpop.f32.mrb[164].mxu1 }
 0x39b   : > { %v3209_v35 = vpop.f32.mrb[165].mxu0  ;;  %v3753_v36 = vadd.f32 %v3752_v34, %v3207_v32  ;;  %v3754_v37 = vpop.f32.mrb[165].mxu1 }
 0x39c   : > { %v3210_v38 = vpop.f32.mrb[166].mxu0  ;;  %v3755_v40 = vpop.f32.mrb[166].mxu1 }
 0x39d   : > { %v3212_v41 = vpop.f32.mrb[167].mxu0  ;;  %v4017_v42 = vadd.f32 %v3753_v36, %v1007_v33  ;;  %v3756_v43 = vadd.f32 %v3755_v40, %v3210_v38  ;;  %v3757_v44 = vpop.f32.mrb[167].mxu1 }
 0x39f   : > { %4145 = vst [vmem:[#allocation2 + $0x290] sm:$0xff] %v4017_v42  ;;  %v4018_v45 = vadd.f32 %v3756_v43, %v1008_v39  ;;  %v1017_v39 = vld [vmem:[#allocation2 + $0x2e0] sm:$0xff] }
 0x3a1   : > { %4146 = vst [vmem:[#allocation2 + $0x298] sm:$0xff] %v4018_v45  ;;  %v1018_v45 = vld [vmem:[#allocation2 + $0x2e8] sm:$0xff] }
 0x3a2   : > { %v3215_v46 = vpop.f32.mrb[168].mxu0  ;;  %v3760_v48 = vpop.f32.mrb[168].mxu1 }
 0x3a3   : > { %v3217_v49 = vpop.f32.mrb[169].mxu0  ;;  %v3761_v50 = vadd.f32 %v3760_v48, %v3215_v46  ;;  %v3762_v51 = vpop.f32.mrb[169].mxu1 }
 0x3a4   : > { %v3218_v52 = vpop.f32.mrb[170].mxu0  ;;  %v3763_v54 = vpop.f32.mrb[170].mxu1 }
 0x3a5   : > { %v3220_v55 = vpop.f32.mrb[171].mxu0  ;;  %v4019_v56 = vadd.f32 %v3761_v50, %v1009_v47  ;;  %v3764_v57 = vadd.f32 %v3763_v54, %v3218_v52  ;;  %v3765_v58 = vpop.f32.mrb[171].mxu1 }
 0x3a7   : > { %4147 = vst [vmem:[#allocation2 + $0x2a0] sm:$0xff] %v4019_v56  ;;  %v4020_v59 = vadd.f32 %v3764_v57, %v1010_v53  ;;  %v1019_v53 = vld [vmem:[#allocation2 + $0x2f0] sm:$0xff] }
 0x3a9   : > { %4148 = vst [vmem:[#allocation2 + $0x2a8] sm:$0xff] %v4020_v59  ;;  %v1020_v59 = vld [vmem:[#allocation2 + $0x2f8] sm:$0xff] }
 0x3aa   : > { %v3223_v60 = vpop.f32.mrb[172].mxu0  ;;  %v3768_v62 = vpop.f32.mrb[172].mxu1 }
 0x3ab   : > { %v3225_v63 = vpop.f32.mrb[173].mxu0  ;;  %v3769_v0 = vadd.f32 %v3768_v62, %v3223_v60  ;;  %v3770_v1 = vpop.f32.mrb[173].mxu1 }
 0x3ac   : > { %v3226_v2 = vpop.f32.mrb[174].mxu0  ;;  %v3771_v4 = vpop.f32.mrb[174].mxu1 }
 0x3ad   : > { %v3228_v5 = vpop.f32.mrb[175].mxu0  ;;  %v4021_v6 = vadd.f32 %v3769_v0, %v1011_v61  ;;  %v3772_v7 = vadd.f32 %v3771_v4, %v3226_v2  ;;  %v3773_v8 = vpop.f32.mrb[175].mxu1 }
 0x3af   : > { %4149 = vst [vmem:[#allocation2 + $0x2b0] sm:$0xff] %v4021_v6  ;;  %v4022_v9 = vadd.f32 %v3772_v7, %v1012_v3  ;;  %v1021_v3 = vld [vmem:[#allocation2 + $0x300] sm:$0xff] }
 0x3b1   : > { %4150 = vst [vmem:[#allocation2 + $0x2b8] sm:$0xff] %v4022_v9  ;;  %v1022_v9 = vld [vmem:[#allocation2 + $0x308] sm:$0xff] }
 0x3b2   : > { %v3231_v10 = vpop.f32.mrb[176].mxu0  ;;  %v3776_v12 = vpop.f32.mrb[176].mxu1 }
 0x3b3   : > { %v3233_v13 = vpop.f32.mrb[177].mxu0  ;;  %v3777_v14 = vadd.f32 %v3776_v12, %v3231_v10  ;;  %v3778_v15 = vpop.f32.mrb[177].mxu1 }
 0x3b4   : > { %v3234_v16 = vpop.f32.mrb[178].mxu0  ;;  %v3779_v18 = vpop.f32.mrb[178].mxu1 }
 0x3b5   : > { %v3236_v19 = vpop.f32.mrb[179].mxu0  ;;  %v4023_v20 = vadd.f32 %v3777_v14, %v1013_v11  ;;  %v3780_v21 = vadd.f32 %v3779_v18, %v3234_v16  ;;  %v3781_v22 = vpop.f32.mrb[179].mxu1 }
 0x3b7   : > { %4151 = vst [vmem:[#allocation2 + $0x2c0] sm:$0xff] %v4023_v20  ;;  %v4024_v23 = vadd.f32 %v3780_v21, %v1014_v17  ;;  %v1023_v17 = vld [vmem:[#allocation2 + $0x310] sm:$0xff] }
 0x3b9   : > { %4152 = vst [vmem:[#allocation2 + $0x2c8] sm:$0xff] %v4024_v23  ;;  %v1024_v23 = vld [vmem:[#allocation2 + $0x318] sm:$0xff] }
 0x3ba   : > { %v3239_v24 = vpop.f32.mrb[180].mxu0  ;;  %v3784_v26 = vpop.f32.mrb[180].mxu1 }
 0x3bb   : > { %v3241_v27 = vpop.f32.mrb[181].mxu0  ;;  %v3785_v28 = vadd.f32 %v3784_v26, %v3239_v24  ;;  %v3786_v29 = vpop.f32.mrb[181].mxu1 }
 0x3bc   : > { %v3242_v30 = vpop.f32.mrb[182].mxu0  ;;  %v3787_v32 = vpop.f32.mrb[182].mxu1 }
 0x3bd   : > { %v3244_v33 = vpop.f32.mrb[183].mxu0  ;;  %v4025_v34 = vadd.f32 %v3785_v28, %v1015_v25  ;;  %v3788_v35 = vadd.f32 %v3787_v32, %v3242_v30  ;;  %v3789_v36 = vpop.f32.mrb[183].mxu1 }
 0x3bf   : > { %4153 = vst [vmem:[#allocation2 + $0x2d0] sm:$0xff] %v4025_v34  ;;  %v4026_v37 = vadd.f32 %v3788_v35, %v1016_v31  ;;  %v1025_v31 = vld [vmem:[#allocation2 + $0x320] sm:$0xff] }
 0x3c1   : > { %4154 = vst [vmem:[#allocation2 + $0x2d8] sm:$0xff] %v4026_v37  ;;  %v1026_v37 = vld [vmem:[#allocation2 + $0x328] sm:$0xff] }
 0x3c2   : > { %v3247_v38 = vpop.f32.mrb[184].mxu0  ;;  %v3792_v40 = vpop.f32.mrb[184].mxu1 }
 0x3c3   : > { %v3249_v41 = vpop.f32.mrb[185].mxu0  ;;  %v3793_v42 = vadd.f32 %v3792_v40, %v3247_v38  ;;  %v3794_v43 = vpop.f32.mrb[185].mxu1 }
 0x3c4   : > { %v3250_v44 = vpop.f32.mrb[186].mxu0  ;;  %v3795_v46 = vpop.f32.mrb[186].mxu1 }
 0x3c5   : > { %v3252_v47 = vpop.f32.mrb[187].mxu0  ;;  %v4027_v48 = vadd.f32 %v3793_v42, %v1017_v39  ;;  %v3796_v49 = vadd.f32 %v3795_v46, %v3250_v44  ;;  %v3797_v50 = vpop.f32.mrb[187].mxu1 }
 0x3c7   : > { %4155 = vst [vmem:[#allocation2 + $0x2e0] sm:$0xff] %v4027_v48  ;;  %v4028_v51 = vadd.f32 %v3796_v49, %v1018_v45  ;;  %v1027_v45 = vld [vmem:[#allocation2 + $0x330] sm:$0xff] }
 0x3c9   : > { %4156 = vst [vmem:[#allocation2 + $0x2e8] sm:$0xff] %v4028_v51  ;;  %v1028_v51 = vld [vmem:[#allocation2 + $0x338] sm:$0xff] }
 0x3ca   : > { %v3255_v52 = vpop.f32.mrb[188].mxu0  ;;  %v3800_v54 = vpop.f32.mrb[188].mxu1 }
 0x3cb   : > { %v3257_v55 = vpop.f32.mrb[189].mxu0  ;;  %v3801_v56 = vadd.f32 %v3800_v54, %v3255_v52  ;;  %v3802_v57 = vpop.f32.mrb[189].mxu1 }
 0x3cc   : > { %v3258_v58 = vpop.f32.mrb[190].mxu0  ;;  %v3803_v60 = vpop.f32.mrb[190].mxu1 }
 0x3cd   : > { %v3260_v61 = vpop.f32.mrb[191].mxu0  ;;  %v4029_v62 = vadd.f32 %v3801_v56, %v1019_v53  ;;  %v3804_v63 = vadd.f32 %v3803_v60, %v3258_v58  ;;  %v3805_v0 = vpop.f32.mrb[191].mxu1 }
 0x3cf   : > { %4157 = vst [vmem:[#allocation2 + $0x2f0] sm:$0xff] %v4029_v62  ;;  %v4030_v1 = vadd.f32 %v3804_v63, %v1020_v59  ;;  %v1029_v59 = vld [vmem:[#allocation2 + $0x340] sm:$0xff] }
 0x3d1   : > { %4158 = vst [vmem:[#allocation2 + $0x2f8] sm:$0xff] %v4030_v1  ;;  %v1030_v1 = vld [vmem:[#allocation2 + $0x348] sm:$0xff] }
 0x3d2   : > { %v3263_v2 = vpop.f32.mrb[192].mxu0  ;;  %v3808_v4 = vpop.f32.mrb[192].mxu1 }
 0x3d3   : > { %v3265_v5 = vpop.f32.mrb[193].mxu0  ;;  %v3809_v6 = vadd.f32 %v3808_v4, %v3263_v2  ;;  %v3810_v7 = vpop.f32.mrb[193].mxu1 }
 0x3d4   : > { %v3266_v8 = vpop.f32.mrb[194].mxu0  ;;  %v3811_v10 = vpop.f32.mrb[194].mxu1 }
 0x3d5   : > { %v3268_v11 = vpop.f32.mrb[195].mxu0  ;;  %v4031_v12 = vadd.f32 %v3809_v6, %v1021_v3  ;;  %v3812_v13 = vadd.f32 %v3811_v10, %v3266_v8  ;;  %v3813_v14 = vpop.f32.mrb[195].mxu1 }
 0x3d7   : > { %4159 = vst [vmem:[#allocation2 + $0x300] sm:$0xff] %v4031_v12  ;;  %v4032_v15 = vadd.f32 %v3812_v13, %v1022_v9  ;;  %v1031_v9 = vld [vmem:[#allocation2 + $0x350] sm:$0xff] }
 0x3d9   : > { %4160 = vst [vmem:[#allocation2 + $0x308] sm:$0xff] %v4032_v15  ;;  %v1032_v15 = vld [vmem:[#allocation2 + $0x358] sm:$0xff] }
 0x3da   : > { %v3271_v16 = vpop.f32.mrb[196].mxu0  ;;  %v3816_v18 = vpop.f32.mrb[196].mxu1 }
 0x3db   : > { %v3273_v19 = vpop.f32.mrb[197].mxu0  ;;  %v3817_v20 = vadd.f32 %v3816_v18, %v3271_v16  ;;  %v3818_v21 = vpop.f32.mrb[197].mxu1 }
 0x3dc   : > { %v3274_v22 = vpop.f32.mrb[198].mxu0  ;;  %v3819_v24 = vpop.f32.mrb[198].mxu1 }
 0x3dd   : > { %v3276_v25 = vpop.f32.mrb[199].mxu0  ;;  %v4033_v26 = vadd.f32 %v3817_v20, %v1023_v17  ;;  %v3820_v27 = vadd.f32 %v3819_v24, %v3274_v22  ;;  %v3821_v28 = vpop.f32.mrb[199].mxu1 }
 0x3df   : > { %4161 = vst [vmem:[#allocation2 + $0x310] sm:$0xff] %v4033_v26  ;;  %v4034_v29 = vadd.f32 %v3820_v27, %v1024_v23  ;;  %v1033_v23 = vld [vmem:[#allocation2 + $0x360] sm:$0xff] }
 0x3e1   : > { %4162 = vst [vmem:[#allocation2 + $0x318] sm:$0xff] %v4034_v29  ;;  %v1034_v29 = vld [vmem:[#allocation2 + $0x368] sm:$0xff] }
 0x3e2   : > { %v3279_v30 = vpop.f32.mrb[200].mxu0  ;;  %v3824_v32 = vpop.f32.mrb[200].mxu1 }
 0x3e3   : > { %v3281_v33 = vpop.f32.mrb[201].mxu0  ;;  %v3825_v34 = vadd.f32 %v3824_v32, %v3279_v30  ;;  %v3826_v35 = vpop.f32.mrb[201].mxu1 }
 0x3e4   : > { %v3282_v36 = vpop.f32.mrb[202].mxu0  ;;  %v3827_v38 = vpop.f32.mrb[202].mxu1 }
 0x3e5   : > { %v3284_v39 = vpop.f32.mrb[203].mxu0  ;;  %v4035_v40 = vadd.f32 %v3825_v34, %v1025_v31  ;;  %v3828_v41 = vadd.f32 %v3827_v38, %v3282_v36  ;;  %v3829_v42 = vpop.f32.mrb[203].mxu1 }
 0x3e7   : > { %4163 = vst [vmem:[#allocation2 + $0x320] sm:$0xff] %v4035_v40  ;;  %v4036_v43 = vadd.f32 %v3828_v41, %v1026_v37  ;;  %v1035_v37 = vld [vmem:[#allocation2 + $0x370] sm:$0xff] }
 0x3e9   : > { %4164 = vst [vmem:[#allocation2 + $0x328] sm:$0xff] %v4036_v43  ;;  %v1036_v43 = vld [vmem:[#allocation2 + $0x378] sm:$0xff] }
 0x3ea   : > { %v3287_v44 = vpop.f32.mrb[204].mxu0  ;;  %v3832_v46 = vpop.f32.mrb[204].mxu1 }
 0x3eb   : > { %v3289_v47 = vpop.f32.mrb[205].mxu0  ;;  %v3833_v48 = vadd.f32 %v3832_v46, %v3287_v44  ;;  %v3834_v49 = vpop.f32.mrb[205].mxu1 }
 0x3ec   : > { %v3290_v50 = vpop.f32.mrb[206].mxu0  ;;  %v3835_v52 = vpop.f32.mrb[206].mxu1 }
 0x3ed   : > { %v3292_v53 = vpop.f32.mrb[207].mxu0  ;;  %v4037_v54 = vadd.f32 %v3833_v48, %v1027_v45  ;;  %v3836_v55 = vadd.f32 %v3835_v52, %v3290_v50  ;;  %v3837_v56 = vpop.f32.mrb[207].mxu1 }
 0x3ef   : > { %4165 = vst [vmem:[#allocation2 + $0x330] sm:$0xff] %v4037_v54  ;;  %v4038_v57 = vadd.f32 %v3836_v55, %v1028_v51  ;;  %v1037_v51 = vld [vmem:[#allocation2 + $0x380] sm:$0xff] }
 0x3f1   : > { %4166 = vst [vmem:[#allocation2 + $0x338] sm:$0xff] %v4038_v57  ;;  %v1038_v57 = vld [vmem:[#allocation2 + $0x388] sm:$0xff] }
 0x3f2   : > { %v3295_v58 = vpop.f32.mrb[208].mxu0  ;;  %v3840_v60 = vpop.f32.mrb[208].mxu1 }
 0x3f3   : > { %v3297_v61 = vpop.f32.mrb[209].mxu0  ;;  %v3841_v62 = vadd.f32 %v3840_v60, %v3295_v58  ;;  %v3842_v63 = vpop.f32.mrb[209].mxu1 }
 0x3f4   : > { %v3298_v0 = vpop.f32.mrb[210].mxu0  ;;  %v3843_v2 = vpop.f32.mrb[210].mxu1 }
 0x3f5   : > { %v3300_v3 = vpop.f32.mrb[211].mxu0  ;;  %v4039_v4 = vadd.f32 %v3841_v62, %v1029_v59  ;;  %v3844_v5 = vadd.f32 %v3843_v2, %v3298_v0  ;;  %v3845_v6 = vpop.f32.mrb[211].mxu1 }
 0x3f7   : > { %4167 = vst [vmem:[#allocation2 + $0x340] sm:$0xff] %v4039_v4  ;;  %v4040_v7 = vadd.f32 %v3844_v5, %v1030_v1  ;;  %v1039_v1 = vld [vmem:[#allocation2 + $0x390] sm:$0xff] }
 0x3f9   : > { %4168 = vst [vmem:[#allocation2 + $0x348] sm:$0xff] %v4040_v7  ;;  %v1040_v7 = vld [vmem:[#allocation2 + $0x398] sm:$0xff] }
 0x3fa   : > { %v3303_v8 = vpop.f32.mrb[212].mxu0  ;;  %v3848_v10 = vpop.f32.mrb[212].mxu1 }
 0x3fb   : > { %v3305_v11 = vpop.f32.mrb[213].mxu0  ;;  %v3849_v12 = vadd.f32 %v3848_v10, %v3303_v8  ;;  %v3850_v13 = vpop.f32.mrb[213].mxu1 }
 0x3fc   : > { %v3306_v14 = vpop.f32.mrb[214].mxu0  ;;  %v3851_v16 = vpop.f32.mrb[214].mxu1 }
 0x3fd   : > { %v3308_v17 = vpop.f32.mrb[215].mxu0  ;;  %v4041_v18 = vadd.f32 %v3849_v12, %v1031_v9  ;;  %v3852_v19 = vadd.f32 %v3851_v16, %v3306_v14  ;;  %v3853_v20 = vpop.f32.mrb[215].mxu1 }
 0x3ff   : > { %4169 = vst [vmem:[#allocation2 + $0x350] sm:$0xff] %v4041_v18  ;;  %v4042_v21 = vadd.f32 %v3852_v19, %v1032_v15  ;;  %v1041_v15 = vld [vmem:[#allocation2 + $0x3a0] sm:$0xff] }
 0x401   : > { %4170 = vst [vmem:[#allocation2 + $0x358] sm:$0xff] %v4042_v21  ;;  %v1042_v21 = vld [vmem:[#allocation2 + $0x3a8] sm:$0xff] }
 0x402   : > { %v3311_v22 = vpop.f32.mrb[216].mxu0  ;;  %v3856_v24 = vpop.f32.mrb[216].mxu1 }
 0x403   : > { %v3313_v25 = vpop.f32.mrb[217].mxu0  ;;  %v3857_v26 = vadd.f32 %v3856_v24, %v3311_v22  ;;  %v3858_v27 = vpop.f32.mrb[217].mxu1 }
 0x404   : > { %v3314_v28 = vpop.f32.mrb[218].mxu0  ;;  %v3859_v30 = vpop.f32.mrb[218].mxu1 }
 0x405   : > { %v3316_v31 = vpop.f32.mrb[219].mxu0  ;;  %v4043_v32 = vadd.f32 %v3857_v26, %v1033_v23  ;;  %v3860_v33 = vadd.f32 %v3859_v30, %v3314_v28  ;;  %v3861_v34 = vpop.f32.mrb[219].mxu1 }
 0x407   : > { %4171 = vst [vmem:[#allocation2 + $0x360] sm:$0xff] %v4043_v32  ;;  %v4044_v35 = vadd.f32 %v3860_v33, %v1034_v29  ;;  %v1043_v29 = vld [vmem:[#allocation2 + $0x3b0] sm:$0xff] }
 0x409   : > { %4172 = vst [vmem:[#allocation2 + $0x368] sm:$0xff] %v4044_v35  ;;  %v1044_v35 = vld [vmem:[#allocation2 + $0x3b8] sm:$0xff] }
 0x40a   : > { %v3319_v36 = vpop.f32.mrb[220].mxu0  ;;  %v3864_v38 = vpop.f32.mrb[220].mxu1 }
 0x40b   : > { %v3321_v39 = vpop.f32.mrb[221].mxu0  ;;  %v3865_v40 = vadd.f32 %v3864_v38, %v3319_v36  ;;  %v3866_v41 = vpop.f32.mrb[221].mxu1 }
 0x40c   : > { %v3322_v42 = vpop.f32.mrb[222].mxu0  ;;  %v3867_v44 = vpop.f32.mrb[222].mxu1 }
 0x40d   : > { %v3324_v45 = vpop.f32.mrb[223].mxu0  ;;  %v4045_v46 = vadd.f32 %v3865_v40, %v1035_v37  ;;  %v3868_v47 = vadd.f32 %v3867_v44, %v3322_v42  ;;  %v3869_v48 = vpop.f32.mrb[223].mxu1 }
 0x40f   : > { %4173 = vst [vmem:[#allocation2 + $0x370] sm:$0xff] %v4045_v46  ;;  %v4046_v49 = vadd.f32 %v3868_v47, %v1036_v43  ;;  %v1045_v43 = vld [vmem:[#allocation2 + $0x3c0] sm:$0xff] }
 0x411   : > { %4174 = vst [vmem:[#allocation2 + $0x378] sm:$0xff] %v4046_v49  ;;  %v1046_v49 = vld [vmem:[#allocation2 + $0x3c8] sm:$0xff] }
 0x412   : > { %v3327_v50 = vpop.f32.mrb[224].mxu0  ;;  %v3872_v52 = vpop.f32.mrb[224].mxu1 }
 0x413   : > { %v3329_v53 = vpop.f32.mrb[225].mxu0  ;;  %v3873_v54 = vadd.f32 %v3872_v52, %v3327_v50  ;;  %v3874_v55 = vpop.f32.mrb[225].mxu1 }
 0x414   : > { %v3330_v56 = vpop.f32.mrb[226].mxu0  ;;  %v3875_v58 = vpop.f32.mrb[226].mxu1 }
 0x415   : > { %v3332_v59 = vpop.f32.mrb[227].mxu0  ;;  %v4047_v60 = vadd.f32 %v3873_v54, %v1037_v51  ;;  %v3876_v61 = vadd.f32 %v3875_v58, %v3330_v56  ;;  %v3877_v62 = vpop.f32.mrb[227].mxu1 }
 0x417   : > { %4175 = vst [vmem:[#allocation2 + $0x380] sm:$0xff] %v4047_v60  ;;  %v4048_v63 = vadd.f32 %v3876_v61, %v1038_v57  ;;  %v1047_v57 = vld [vmem:[#allocation2 + $0x3d0] sm:$0xff] }
 0x419   : > { %4176 = vst [vmem:[#allocation2 + $0x388] sm:$0xff] %v4048_v63  ;;  %v1048_v63 = vld [vmem:[#allocation2 + $0x3d8] sm:$0xff] }
 0x41a   : > { %v3335_v0 = vpop.f32.mrb[228].mxu0  ;;  %v3880_v2 = vpop.f32.mrb[228].mxu1 }
 0x41b   : > { %v3337_v3 = vpop.f32.mrb[229].mxu0  ;;  %v3881_v4 = vadd.f32 %v3880_v2, %v3335_v0  ;;  %v3882_v5 = vpop.f32.mrb[229].mxu1 }
 0x41c   : > { %v3338_v6 = vpop.f32.mrb[230].mxu0  ;;  %v3883_v8 = vpop.f32.mrb[230].mxu1 }
 0x41d   : > { %v3340_v9 = vpop.f32.mrb[231].mxu0  ;;  %v4049_v10 = vadd.f32 %v3881_v4, %v1039_v1  ;;  %v3884_v11 = vadd.f32 %v3883_v8, %v3338_v6  ;;  %v3885_v12 = vpop.f32.mrb[231].mxu1 }
 0x41f   : > { %4177 = vst [vmem:[#allocation2 + $0x390] sm:$0xff] %v4049_v10  ;;  %v4050_v13 = vadd.f32 %v3884_v11, %v1040_v7  ;;  %v1049_v7 = vld [vmem:[#allocation2 + $0x3e0] sm:$0xff] }
 0x421   : > { %4178 = vst [vmem:[#allocation2 + $0x398] sm:$0xff] %v4050_v13  ;;  %v1050_v13 = vld [vmem:[#allocation2 + $0x3e8] sm:$0xff] }
 0x422   : > { %v3343_v14 = vpop.f32.mrb[232].mxu0  ;;  %v3888_v16 = vpop.f32.mrb[232].mxu1 }
 0x423   : > { %v3345_v17 = vpop.f32.mrb[233].mxu0  ;;  %v3889_v18 = vadd.f32 %v3888_v16, %v3343_v14  ;;  %v3890_v19 = vpop.f32.mrb[233].mxu1 }
 0x424   : > { %v3346_v20 = vpop.f32.mrb[234].mxu0  ;;  %v3891_v22 = vpop.f32.mrb[234].mxu1 }
 0x425   : > { %v3348_v23 = vpop.f32.mrb[235].mxu0  ;;  %v4051_v24 = vadd.f32 %v3889_v18, %v1041_v15  ;;  %v3892_v25 = vadd.f32 %v3891_v22, %v3346_v20  ;;  %v3893_v26 = vpop.f32.mrb[235].mxu1 }
 0x427   : > { %4179 = vst [vmem:[#allocation2 + $0x3a0] sm:$0xff] %v4051_v24  ;;  %v4052_v27 = vadd.f32 %v3892_v25, %v1042_v21  ;;  %v1051_v21 = vld [vmem:[#allocation2 + $0x3f0] sm:$0xff] }
 0x429   : > { %4180 = vst [vmem:[#allocation2 + $0x3a8] sm:$0xff] %v4052_v27  ;;  %v1052_v27 = vld [vmem:[#allocation2 + $0x3f8] sm:$0xff] }
 0x42a   : > { %v3351_v28 = vpop.f32.mrb[236].mxu0  ;;  %v3896_v30 = vpop.f32.mrb[236].mxu1 }
 0x42b   : > { %v3353_v31 = vpop.f32.mrb[237].mxu0  ;;  %v3897_v32 = vadd.f32 %v3896_v30, %v3351_v28  ;;  %v3898_v33 = vpop.f32.mrb[237].mxu1 }
 0x42c   : > { %v3354_v34 = vpop.f32.mrb[238].mxu0  ;;  %v3899_v36 = vpop.f32.mrb[238].mxu1 }
 0x42d   : > { %v3356_v37 = vpop.f32.mrb[239].mxu0  ;;  %v4053_v38 = vadd.f32 %v3897_v32, %v1043_v29  ;;  %v3900_v39 = vadd.f32 %v3899_v36, %v3354_v34  ;;  %v3901_v40 = vpop.f32.mrb[239].mxu1 }
 0x42f   : > { %4181 = vst [vmem:[#allocation2 + $0x3b0] sm:$0xff] %v4053_v38  ;;  %v4054_v41 = vadd.f32 %v3900_v39, %v1044_v35 }
 0x431   : > { %4182 = vst [vmem:[#allocation2 + $0x3b8] sm:$0xff] %v4054_v41 }
 0x432   : > { %v3359_v42 = vpop.f32.mrb[240].mxu0  ;;  %v3904_v44 = vpop.f32.mrb[240].mxu1 }
 0x433   : > { %v3361_v45 = vpop.f32.mrb[241].mxu0  ;;  %v3905_v46 = vadd.f32 %v3904_v44, %v3359_v42  ;;  %v3906_v47 = vpop.f32.mrb[241].mxu1 }
 0x434   : > { %v3362_v48 = vpop.f32.mrb[242].mxu0  ;;  %v3907_v50 = vpop.f32.mrb[242].mxu1 }
 0x435   : > { %v3364_v51 = vpop.f32.mrb[243].mxu0  ;;  %v4055_v52 = vadd.f32 %v3905_v46, %v1045_v43  ;;  %v3908_v53 = vadd.f32 %v3907_v50, %v3362_v48  ;;  %v3909_v54 = vpop.f32.mrb[243].mxu1 }
 0x437   : > { %4183 = vst [vmem:[#allocation2 + $0x3c0] sm:$0xff] %v4055_v52  ;;  %v4056_v55 = vadd.f32 %v3908_v53, %v1046_v49 }
 0x439   : > { %4184 = vst [vmem:[#allocation2 + $0x3c8] sm:$0xff] %v4056_v55 }
 0x43a   : > { %v3367_v56 = vpop.f32.mrb[244].mxu0  ;;  %v3912_v58 = vpop.f32.mrb[244].mxu1 }
 0x43b   : > { %v3369_v59 = vpop.f32.mrb[245].mxu0  ;;  %v3913_v60 = vadd.f32 %v3912_v58, %v3367_v56  ;;  %v3914_v61 = vpop.f32.mrb[245].mxu1 }
 0x43c   : > { %v3370_v62 = vpop.f32.mrb[246].mxu0  ;;  %v3915_v0 = vpop.f32.mrb[246].mxu1 }
 0x43d   : > { %v3372_v1 = vpop.f32.mrb[247].mxu0  ;;  %v4057_v2 = vadd.f32 %v3913_v60, %v1047_v57  ;;  %v3916_v3 = vadd.f32 %v3915_v0, %v3370_v62  ;;  %v3917_v4 = vpop.f32.mrb[247].mxu1 }
 0x43f   : > { %4185 = vst [vmem:[#allocation2 + $0x3d0] sm:$0xff] %v4057_v2  ;;  %v4058_v5 = vadd.f32 %v3916_v3, %v1048_v63 }
 0x441   : > { %4186 = vst [vmem:[#allocation2 + $0x3d8] sm:$0xff] %v4058_v5 }
 0x442   : > { %v3375_v6 = vpop.f32.mrb[248].mxu0  ;;  %v3920_v8 = vpop.f32.mrb[248].mxu1 }
 0x443   : > { %v3377_v9 = vpop.f32.mrb[249].mxu0  ;;  %v3921_v10 = vadd.f32 %v3920_v8, %v3375_v6  ;;  %v3922_v11 = vpop.f32.mrb[249].mxu1 }
 0x444   : > { %v3378_v12 = vpop.f32.mrb[250].mxu0  ;;  %v3923_v14 = vpop.f32.mrb[250].mxu1 }
 0x445   : > { %v3380_v15 = vpop.f32.mrb[251].mxu0  ;;  %v4059_v16 = vadd.f32 %v3921_v10, %v1049_v7  ;;  %v3924_v17 = vadd.f32 %v3923_v14, %v3378_v12  ;;  %v3925_v18 = vpop.f32.mrb[251].mxu1 }
 0x447   : > { %4187 = vst [vmem:[#allocation2 + $0x3e0] sm:$0xff] %v4059_v16  ;;  %v4060_v19 = vadd.f32 %v3924_v17, %v1050_v13 }
 0x449   : > { %4188 = vst [vmem:[#allocation2 + $0x3e8] sm:$0xff] %v4060_v19 }
 0x44a   : > { %v3383_v20 = vpop.f32.mrb[252].mxu0  ;;  %v3928_v22 = vpop.f32.mrb[252].mxu1 }
 0x44b   : > { %v3385_v23 = vpop.f32.mrb[253].mxu0  ;;  %v3929_v24 = vadd.f32 %v3928_v22, %v3383_v20  ;;  %v3930_v25 = vpop.f32.mrb[253].mxu1  ;;  %4194 = sbr.rel (%p5281_p13) target bundleno = 1257 (0x4e9), region = 71 }
 0x44c   : > { %v3386_v26 = vpop.f32.mrb[254].mxu0  ;;  %v3931_v28 = vpop.f32.mrb[254].mxu1 }
 0x44d   : > { %v3388_v29 = vpop.f32.mrb[255].mxu0  ;;  %v4061_v30 = vadd.f32 %v3929_v24, %v1051_v21  ;;  %v3932_v31 = vadd.f32 %v3931_v28, %v3386_v26  ;;  %v3933_v32 = vpop.f32.mrb[255].mxu1 }
 0x44f   : > { %4189 = vst [vmem:[#allocation2 + $0x3f0] sm:$0xff] %v4061_v30  ;;  %v4062_v33 = vadd.f32 %v3932_v31, %v1052_v27 }
 0x451   : > { %4190 = vst [vmem:[#allocation2 + $0x3f8] sm:$0xff] %v4062_v33 }
 0x452   : > { %v4195_v34 = vld [vmem:[#allocation2] sm:$0xff]  ;;  %v4196_v35 = vld [vmem:[#allocation2 + $0x8] sm:$0xff]  ;;  %v4197_v36 = vld [vmem:[#allocation2 + $0x10] sm:$0xff]  ;;  %vm4810_vm0 = vcmask 1041409   ;;  %vm4812_vm1 = vcmask 1042434   ;;  %vm4814_vm2 = vcmask 1043459  }
 0x453   : > { %v4198_v37 = vld [vmem:[#allocation2 + $0x18] sm:$0xff]  ;;  %v4199_v38 = vld [vmem:[#allocation2 + $0x20] sm:$0xff]  ;;  %v4200_v39 = vld [vmem:[#allocation2 + $0x28] sm:$0xff]  ;;  %vm4816_vm3 = vcmask 1044484   ;;  %vm4818_vm4 = vcmask 1045509   ;;  %vm4820_vm5 = vcmask 1046534  }
 0x454   : > { %v4201_v40 = vld [vmem:[#allocation2 + $0x30] sm:$0xff]  ;;  %v4202_v41 = vld [vmem:[#allocation2 + $0x38] sm:$0xff]  ;;  %v4203_v42 = vld [vmem:[#allocation2 + $0x40] sm:$0xff]  ;;  %vm4822_vm6 = vcmask 1047559  }
 0x455   : > { %v4204_v43 = vld [vmem:[#allocation2 + $0x48] sm:$0xff]  ;;  %v4205_v44 = vld [vmem:[#allocation2 + $0x50] sm:$0xff]  ;;  %v4206_v45 = vld [vmem:[#allocation2 + $0x58] sm:$0xff] }
 0x456   : > { %v4207_v46 = vld [vmem:[#allocation2 + $0x60] sm:$0xff]  ;;  %v4208_v47 = vld [vmem:[#allocation2 + $0x68] sm:$0xff]  ;;  %v4209_v48 = vld [vmem:[#allocation2 + $0x70] sm:$0xff] }
 0x457   : > { %v4210_v49 = vld [vmem:[#allocation2 + $0x78] sm:$0xff]  ;;  %v7258_v50 = vld [vmem:[#allocation7] ss:$0 sm:$0xff]  ;;  %v4212_v52 = vld [vmem:[#allocation2 + $0x88] sm:$0xff] }
 0x458   : > { %v4211_v51 = vld [vmem:[#allocation2 + $0x80] sm:$0xff]  ;;  %v4213_v53 = vld [vmem:[#allocation2 + $0x90] sm:$0xff]  ;;  %v4214_v54 = vld [vmem:[#allocation2 + $0x98] sm:$0xff]  ;;  %v7261_v59 = vadd.f32 %v7258_v50, %v4195_v34  ;;  %v7264_v60 = vadd.f32 %v7258_v50, %v4196_v35  ;;  %v7267_v61 = vadd.f32 %v7258_v50, %v4197_v36  ;;  %v7270_v62 = vadd.f32 %v7258_v50, %v4198_v37 }
 0x459   : > { %v4215_v55 = vld [vmem:[#allocation2 + $0xa0] sm:$0xff]  ;;  %v4216_v56 = vld [vmem:[#allocation2 + $0xa8] sm:$0xff]  ;;  %v4217_v57 = vld [vmem:[#allocation2 + $0xb0] sm:$0xff]  ;;  %v7273_v3 = vadd.f32 %v7258_v50, %v4199_v38  ;;  %v7276_v4 = vadd.f32 %v7258_v50, %v4200_v39  ;;  %v7279_v5 = vadd.f32 %v7258_v50, %v4201_v40  ;;  %v7282_v6 = vadd.f32 %v7258_v50, %v4202_v41 }
 0x45a   : > { %v4218_v58 = vld [vmem:[#allocation2 + $0xb8] sm:$0xff]  ;;  %8291 = vst [vmem:[#allocation21_spill] sm:$0xff] %v7270_v62  ;;  %v4219_v63 = vld [vmem:[#allocation2 + $0xc0] sm:$0xff]  ;;  %v4220_v0 = vld [vmem:[#allocation2 + $0xc8] sm:$0xff]  ;;  %v7285_v11 = vadd.f32 %v7258_v50, %v4203_v42  ;;  %v7288_v12 = vadd.f32 %v7258_v50, %v4204_v43  ;;  %v7291_v13 = vadd.f32 %v7258_v50, %v4205_v44  ;;  %v7294_v14 = vadd.f32 %v7258_v50, %v4206_v45 }
 0x45b   : > { %v4221_v1 = vld [vmem:[#allocation2 + $0xd0] sm:$0xff]  ;;  %v4222_v2 = vld [vmem:[#allocation2 + $0xd8] sm:$0xff]  ;;  %8292 = vst [vmem:[#allocation22_spill] sm:$0xff] %v7273_v3  ;;  %8293 = vst [vmem:[#allocation23_spill] sm:$0xff] %v7276_v4  ;;  %v7297_v19 = vadd.f32 %v7258_v50, %v4207_v46  ;;  %v7300_v20 = vadd.f32 %v7258_v50, %v4208_v47  ;;  %v7303_v21 = vadd.f32 %v7258_v50, %v4209_v48 }
 0x45c   : > { %8294 = vst [vmem:[#allocation24_spill] sm:$0xff] %v7279_v5  ;;  %8295 = vst [vmem:[#allocation25_spill] sm:$0xff] %v7282_v6  ;;  %v4223_v7 = vld [vmem:[#allocation2 + $0xe0] sm:$0xff]  ;;  %v4224_v8 = vld [vmem:[#allocation2 + $0xe8] sm:$0xff]  ;;  %v7306_v22 = vadd.f32 %v7258_v50, %v4210_v49  ;;  %v7309_v27 = vadd.f32 %v7258_v50, %v4211_v51  ;;  %v7312_v28 = vadd.f32 %v7258_v50, %v4212_v52 }
 0x45d   : > { %v4225_v9 = vld [vmem:[#allocation2 + $0xf0] sm:$0xff]  ;;  %v4226_v10 = vld [vmem:[#allocation2 + $0xf8] sm:$0xff]  ;;  %8296 = vst [vmem:[#allocation26_spill] sm:$0xff] %v7294_v14  ;;  %v4227_v15 = vld [vmem:[#allocation2 + $0x100] sm:$0xff]  ;;  %v7315_v29 = vadd.f32 %v7258_v50, %v4213_v53  ;;  %v7318_v30 = vadd.f32 %v7258_v50, %v4214_v54  ;;  %v7321_v35 = vadd.f32 %v7258_v50, %v4215_v55  ;;  %v7324_v36 = vadd.f32 %v7258_v50, %v4216_v56 }
 0x45e   : > { %v4228_v16 = vld [vmem:[#allocation2 + $0x108] sm:$0xff]  ;;  %v4229_v17 = vld [vmem:[#allocation2 + $0x110] sm:$0xff]  ;;  %v4230_v18 = vld [vmem:[#allocation2 + $0x118] sm:$0xff]  ;;  %8297 = vst [vmem:[#allocation27_spill] sm:$0xff] %v7297_v19  ;;  %v7327_v37 = vadd.f32 %v7258_v50, %v4217_v57  ;;  %v7330_v38 = vadd.f32 %v7258_v50, %v4218_v58  ;;  %v7333_v43 = vadd.f32 %v7258_v50, %v4219_v63  ;;  %v7336_v44 = vadd.f32 %v7258_v50, %v4220_v0 }
 0x45f   : > { %8298 = vst [vmem:[#allocation28_spill] sm:$0xff] %v7300_v20  ;;  %8299 = vst [vmem:[#allocation29_spill] sm:$0xff] %v7303_v21  ;;  %v4231_v23 = vld [vmem:[#allocation2 + $0x120] sm:$0xff]  ;;  %v4232_v24 = vld [vmem:[#allocation2 + $0x128] sm:$0xff]  ;;  %v7339_v45 = vadd.f32 %v7258_v50, %v4221_v1  ;;  %v7342_v46 = vadd.f32 %v7258_v50, %v4222_v2  ;;  %v7345_v52 = vadd.f32 %v7258_v50, %v4223_v7 }
 0x460   : > { %8300 = vst [vmem:[#allocation30_spill] sm:$0xff] %v7306_v22  ;;  %v4233_v25 = vld [vmem:[#allocation2 + $0x130] sm:$0xff]  ;;  %v4234_v26 = vld [vmem:[#allocation2 + $0x138] sm:$0xff]  ;;  %8301 = vst [vmem:[#allocation31_spill] sm:$0xff] %v7318_v30  ;;  %v7348_v53 = vadd.f32 %v7258_v50, %v4224_v8  ;;  %v7351_v54 = vadd.f32 %v7258_v50, %v4225_v9  ;;  %v7354_v55 = vadd.f32 %v7258_v50, %v4226_v10 }
 0x461   : > { %v4235_v31 = vld [vmem:[#allocation2 + $0x140] sm:$0xff]  ;;  %v4236_v32 = vld [vmem:[#allocation2 + $0x148] sm:$0xff]  ;;  %v4237_v33 = vld [vmem:[#allocation2 + $0x150] sm:$0xff]  ;;  %8302 = vst [vmem:[#allocation32_spill] sm:$0xff] %v7321_v35  ;;  %v7357_v0 = vadd.f32 %v7258_v50, %v4227_v15  ;;  %v7360_v1 = vadd.f32 %v7258_v50, %v4228_v16  ;;  %v7363_v2 = vadd.f32 %v7258_v50, %v4229_v17  ;;  %v7366_v7 = vadd.f32 %v7258_v50, %v4230_v18 }
 0x462   : > { %v4238_v34 = vld [vmem:[#allocation2 + $0x158] sm:$0xff]  ;;  %8303 = vst [vmem:[#allocation33_spill] sm:$0xff] %v7324_v36  ;;  %8304 = vst [vmem:[#allocation34_spill] sm:$0xff] %v7327_v37  ;;  %v4239_v39 = vld [vmem:[#allocation2 + $0x160] sm:$0xff]  ;;  %v7375_v15 = vadd.f32 %v7258_v50, %v4233_v25  ;;  %v7378_v16 = vadd.f32 %v7258_v50, %v4234_v26 }
 0x463   : > { %8305 = vst [vmem:[#allocation35_spill] sm:$0xff] %v7330_v38  ;;  %v4240_v40 = vld [vmem:[#allocation2 + $0x168] sm:$0xff]  ;;  %v4241_v41 = vld [vmem:[#allocation2 + $0x170] sm:$0xff]  ;;  %v4242_v42 = vld [vmem:[#allocation2 + $0x178] sm:$0xff] }
 0x464   : > { %8306 = vst [vmem:[#allocation36_spill] sm:$0xff] %v7342_v46  ;;  %v4243_v47 = vld [vmem:[#allocation2 + $0x180] sm:$0xff]  ;;  %v4244_v48 = vld [vmem:[#allocation2 + $0x188] sm:$0xff]  ;;  %v4245_v49 = vld [vmem:[#allocation2 + $0x190] sm:$0xff] }
 0x465   : > { %v4246_v51 = vld [vmem:[#allocation2 + $0x198] sm:$0xff]  ;;  %8307 = vst [vmem:[#allocation37_spill] sm:$0xff] %v7345_v52  ;;  %8308 = vst [vmem:[#allocation38_spill] sm:$0xff] %v7348_v53  ;;  %v4247_v56 = vld [vmem:[#allocation2 + $0x1a0] sm:$0xff]  ;;  %v7372_v53 = vadd.f32 %v7258_v50, %v4232_v24  ;;  %v7390_v24 = vadd.f32 %v7258_v50, %v4238_v34 }
 0x466   : > { %8309 = vst [vmem:[#allocation39_spill] sm:$0xff] %v7351_v54  ;;  %8310 = vst [vmem:[#allocation40_spill] sm:$0xff] %v7354_v55  ;;  %v4248_v57 = vld [vmem:[#allocation2 + $0x1a8] sm:$0xff]  ;;  %v4249_v58 = vld [vmem:[#allocation2 + $0x1b0] sm:$0xff]  ;;  %v7369_v54 = vadd.f32 %v7258_v50, %v4231_v23  ;;  %v7387_v23 = vadd.f32 %v7258_v50, %v4237_v33 }
 0x467   : > { %v4250_v63 = vld [vmem:[#allocation2 + $0x1b8] sm:$0xff]  ;;  %8311 = vst [vmem:[#allocation41_spill] sm:$0xff] %v7357_v0  ;;  %8312 = vst [vmem:[#allocation42_spill] sm:$0xff] %v7360_v1  ;;  %v4251_v8 = vld [vmem:[#allocation2 + $0x1c0] sm:$0xff]  ;;  %v7381_v1 = vadd.f32 %v7258_v50, %v4235_v31  ;;  %v7384_v0 = vadd.f32 %v7258_v50, %v4236_v32  ;;  %v7399_v31 = vadd.f32 %v7258_v50, %v4241_v41 }
 0x468   : > { %8313 = vst [vmem:[#allocation43_spill] sm:$0xff] %v7363_v2  ;;  %8314 = vst [vmem:[#allocation44_spill] sm:$0xff] %v7366_v7  ;;  %v4252_v9 = vld [vmem:[#allocation2 + $0x1c8] sm:$0xff]  ;;  %v4253_v10 = vld [vmem:[#allocation2 + $0x1d0] sm:$0xff]  ;;  %v7402_v32 = vadd.f32 %v7258_v50, %v4242_v42 }
 0x469   : > { %v4254_v55 = vld [vmem:[#allocation2 + $0x1d8] sm:$0xff]  ;;  %8315 = vst [vmem:[#allocation45_spill] sm:$0xff] %v7369_v54  ;;  %8316 = vst [vmem:[#allocation46_spill] sm:$0xff] %v7372_v53  ;;  %v4255_v17 = vld [vmem:[#allocation2 + $0x1e0] sm:$0xff]  ;;  %v7393_v53 = vadd.f32 %v7258_v50, %v4239_v39  ;;  %v7396_v54 = vadd.f32 %v7258_v50, %v4240_v40  ;;  %v7411_v39 = vadd.f32 %v7258_v50, %v4245_v49 }
 0x46a   : > { %8317 = vst [vmem:[#allocation47_spill] sm:$0xff] %v7375_v15  ;;  %8318 = vst [vmem:[#allocation48_spill] sm:$0xff] %v7378_v16  ;;  %v4256_v2 = vld [vmem:[#allocation2 + $0x1e8] sm:$0xff]  ;;  %v4257_v18 = vld [vmem:[#allocation2 + $0x1f0] sm:$0xff]  ;;  %v7414_v40 = vadd.f32 %v7258_v50, %v4246_v51 }
 0x46b   : > { %v4258_v7 = vld [vmem:[#allocation2 + $0x1f8] sm:$0xff]  ;;  %8319 = vst [vmem:[#allocation49_spill] sm:$0xff] %v7381_v1  ;;  %8320 = vst [vmem:[#allocation50_spill] sm:$0xff] %v7384_v0  ;;  %v4259_v25 = vld [vmem:[#allocation2 + $0x200] sm:$0xff]  ;;  %v7405_v0 = vadd.f32 %v7258_v50, %v4243_v47  ;;  %v7408_v1 = vadd.f32 %v7258_v50, %v4244_v48  ;;  %v7423_v47 = vadd.f32 %v7258_v50, %v4249_v58 }
 0x46c   : > { %8321 = vst [vmem:[#allocation51_spill] sm:$0xff] %v7387_v23  ;;  %8322 = vst [vmem:[#allocation52_spill] sm:$0xff] %v7390_v24  ;;  %v4260_v15 = vld [vmem:[#allocation2 + $0x208] sm:$0xff]  ;;  %v4261_v26 = vld [vmem:[#allocation2 + $0x210] sm:$0xff]  ;;  %v7426_v48 = vadd.f32 %v7258_v50, %v4250_v63 }
 0x46d   : > { %v4262_v16 = vld [vmem:[#allocation2 + $0x218] sm:$0xff]  ;;  %8323 = vst [vmem:[#allocation53_spill] sm:$0xff] %v7393_v53  ;;  %8324 = vst [vmem:[#allocation54_spill] sm:$0xff] %v7396_v54  ;;  %v4263_v33 = vld [vmem:[#allocation2 + $0x220] sm:$0xff]  ;;  %v7417_v54 = vadd.f32 %v7258_v50, %v4247_v56  ;;  %v7420_v53 = vadd.f32 %v7258_v50, %v4248_v57  ;;  %v7435_v56 = vadd.f32 %v7258_v50, %v4253_v10 }
 0x46e   : > { %8325 = vst [vmem:[#allocation55_spill] sm:$0xff] %v7399_v31  ;;  %8326 = vst [vmem:[#allocation56_spill] sm:$0xff] %v7402_v32  ;;  %v4264_v23 = vld [vmem:[#allocation2 + $0x228] sm:$0xff]  ;;  %v4265_v34 = vld [vmem:[#allocation2 + $0x230] sm:$0xff]  ;;  %v7438_v57 = vadd.f32 %v7258_v50, %v4254_v55 }
 0x46f   : > { %v4266_v24 = vld [vmem:[#allocation2 + $0x238] sm:$0xff]  ;;  %8327 = vst [vmem:[#allocation57_spill] sm:$0xff] %v7405_v0  ;;  %8328 = vst [vmem:[#allocation58_spill] sm:$0xff] %v7408_v1  ;;  %v4267_v41 = vld [vmem:[#allocation2 + $0x240] sm:$0xff]  ;;  %v7429_v1 = vadd.f32 %v7258_v50, %v4251_v8  ;;  %v7432_v0 = vadd.f32 %v7258_v50, %v4252_v9  ;;  %v7447_v8 = vadd.f32 %v7258_v50, %v4257_v18 }
 0x470   : > { %8329 = vst [vmem:[#allocation59_spill] sm:$0xff] %v7411_v39  ;;  %8330 = vst [vmem:[#allocation60_spill] sm:$0xff] %v7414_v40  ;;  %v4268_v31 = vld [vmem:[#allocation2 + $0x248] sm:$0xff]  ;;  %v4269_v42 = vld [vmem:[#allocation2 + $0x250] sm:$0xff]  ;;  %v7450_v9 = vadd.f32 %v7258_v50, %v4258_v7 }
 0x471   : > { %v4270_v32 = vld [vmem:[#allocation2 + $0x258] sm:$0xff]  ;;  %8331 = vst [vmem:[#allocation61_spill] sm:$0xff] %v7417_v54  ;;  %8332 = vst [vmem:[#allocation62_spill] sm:$0xff] %v7420_v53  ;;  %v4271_v49 = vld [vmem:[#allocation2 + $0x260] sm:$0xff]  ;;  %v7441_v53 = vadd.f32 %v7258_v50, %v4255_v17  ;;  %v7444_v54 = vadd.f32 %v7258_v50, %v4256_v2  ;;  %v7459_v17 = vadd.f32 %v7258_v50, %v4261_v26 }
 0x472   : > { %8333 = vst [vmem:[#allocation63_spill] sm:$0xff] %v7423_v47  ;;  %8334 = vst [vmem:[#allocation64_spill] sm:$0xff] %v7426_v48  ;;  %v4272_v39 = vld [vmem:[#allocation2 + $0x268] sm:$0xff]  ;;  %v4273_v51 = vld [vmem:[#allocation2 + $0x270] sm:$0xff]  ;;  %v7462_v2 = vadd.f32 %v7258_v50, %v4262_v16 }
 0x473   : > { %v4274_v40 = vld [vmem:[#allocation2 + $0x278] sm:$0xff]  ;;  %8335 = vst [vmem:[#allocation65_spill] sm:$0xff] %v7429_v1  ;;  %8336 = vst [vmem:[#allocation66_spill] sm:$0xff] %v7432_v0  ;;  %v4275_v58 = vld [vmem:[#allocation2 + $0x280] sm:$0xff]  ;;  %v7453_v0 = vadd.f32 %v7258_v50, %v4259_v25  ;;  %v7456_v1 = vadd.f32 %v7258_v50, %v4260_v15  ;;  %v7471_v25 = vadd.f32 %v7258_v50, %v4265_v34 }
 0x474   : > { %8337 = vst [vmem:[#allocation67_spill] sm:$0xff] %v7435_v56  ;;  %8338 = vst [vmem:[#allocation68_spill] sm:$0xff] %v7438_v57  ;;  %v4276_v47 = vld [vmem:[#allocation2 + $0x288] sm:$0xff]  ;;  %v4277_v63 = vld [vmem:[#allocation2 + $0x290] sm:$0xff]  ;;  %v7474_v15 = vadd.f32 %v7258_v50, %v4266_v24 }
 0x475   : > { %v4278_v48 = vld [vmem:[#allocation2 + $0x298] sm:$0xff]  ;;  %8339 = vst [vmem:[#allocation69_spill] sm:$0xff] %v7441_v53  ;;  %8340 = vst [vmem:[#allocation70_spill] sm:$0xff] %v7444_v54  ;;  %v4279_v10 = vld [vmem:[#allocation2 + $0x2a0] sm:$0xff]  ;;  %v7465_v54 = vadd.f32 %v7258_v50, %v4263_v33  ;;  %v7468_v53 = vadd.f32 %v7258_v50, %v4264_v23  ;;  %v7483_v33 = vadd.f32 %v7258_v50, %v4269_v42 }
 0x476   : > { %8341 = vst [vmem:[#allocation71_spill] sm:$0xff] %v7447_v8  ;;  %8342 = vst [vmem:[#allocation72_spill] sm:$0xff] %v7450_v9  ;;  %v4280_v56 = vld [vmem:[#allocation2 + $0x2a8] sm:$0xff]  ;;  %v4281_v55 = vld [vmem:[#allocation2 + $0x2b0] sm:$0xff]  ;;  %v7486_v23 = vadd.f32 %v7258_v50, %v4270_v32 }
 0x477   : > { %v4282_v57 = vld [vmem:[#allocation2 + $0x2b8] sm:$0xff]  ;;  %8343 = vst [vmem:[#allocation73_spill] sm:$0xff] %v7453_v0  ;;  %8344 = vst [vmem:[#allocation74_spill] sm:$0xff] %v7456_v1  ;;  %v4283_v18 = vld [vmem:[#allocation2 + $0x2c0] sm:$0xff]  ;;  %v7477_v1 = vadd.f32 %v7258_v50, %v4267_v41  ;;  %v7480_v0 = vadd.f32 %v7258_v50, %v4268_v31  ;;  %v7495_v41 = vadd.f32 %v7258_v50, %v4273_v51 }
 0x478   : > { %8345 = vst [vmem:[#allocation75_spill] sm:$0xff] %v7459_v17  ;;  %8346 = vst [vmem:[#allocation76_spill] sm:$0xff] %v7462_v2  ;;  %v4284_v8 = vld [vmem:[#allocation2 + $0x2c8] sm:$0xff]  ;;  %v4285_v7 = vld [vmem:[#allocation2 + $0x2d0] sm:$0xff]  ;;  %v7498_v31 = vadd.f32 %v7258_v50, %v4274_v40 }
 0x479   : > { %v4286_v9 = vld [vmem:[#allocation2 + $0x2d8] sm:$0xff]  ;;  %8347 = vst [vmem:[#allocation77_spill] sm:$0xff] %v7465_v54  ;;  %8348 = vst [vmem:[#allocation78_spill] sm:$0xff] %v7468_v53  ;;  %v4287_v26 = vld [vmem:[#allocation2 + $0x2e0] sm:$0xff]  ;;  %v7489_v53 = vadd.f32 %v7258_v50, %v4271_v49  ;;  %v7492_v54 = vadd.f32 %v7258_v50, %v4272_v39  ;;  %v7507_v49 = vadd.f32 %v7258_v50, %v4277_v63 }
 0x47a   : > { %8349 = vst [vmem:[#allocation79_spill] sm:$0xff] %v7471_v25  ;;  %8350 = vst [vmem:[#allocation80_spill] sm:$0xff] %v7474_v15  ;;  %v4288_v17 = vld [vmem:[#allocation2 + $0x2e8] sm:$0xff]  ;;  %v4289_v16 = vld [vmem:[#allocation2 + $0x2f0] sm:$0xff]  ;;  %v7510_v39 = vadd.f32 %v7258_v50, %v4278_v48  ;;  %v7525_v48 = vadd.f32 %v7258_v50, %v4283_v18 }
 0x47b   : > { %v4290_v2 = vld [vmem:[#allocation2 + $0x2f8] sm:$0xff]  ;;  %8351 = vst [vmem:[#allocation81_spill] sm:$0xff] %v7477_v1  ;;  %8352 = vst [vmem:[#allocation82_spill] sm:$0xff] %v7480_v0  ;;  %v4291_v34 = vld [vmem:[#allocation2 + $0x300] sm:$0xff]  ;;  %v7501_v0 = vadd.f32 %v7258_v50, %v4275_v58  ;;  %v7504_v1 = vadd.f32 %v7258_v50, %v4276_v47  ;;  %v7519_v58 = vadd.f32 %v7258_v50, %v4281_v55 }
 0x47c   : > { %8353 = vst [vmem:[#allocation83_spill] sm:$0xff] %v7483_v33  ;;  %8354 = vst [vmem:[#allocation84_spill] sm:$0xff] %v7486_v23  ;;  %v4292_v25 = vld [vmem:[#allocation2 + $0x308] sm:$0xff]  ;;  %v4293_v24 = vld [vmem:[#allocation2 + $0x310] sm:$0xff]  ;;  %v7522_v47 = vadd.f32 %v7258_v50, %v4282_v57  ;;  %v7537_v57 = vadd.f32 %v7258_v50, %v4287_v26  ;;  %v7543_v18 = vadd.f32 %v7258_v50, %v4289_v16 }
 0x47d   : > { %v4294_v15 = vld [vmem:[#allocation2 + $0x318] sm:$0xff]  ;;  %8355 = vst [vmem:[#allocation85_spill] sm:$0xff] %v7489_v53  ;;  %8356 = vst [vmem:[#allocation86_spill] sm:$0xff] %v7492_v54  ;;  %v4295_v42 = vld [vmem:[#allocation2 + $0x320] sm:$0xff]  ;;  %v7516_v54 = vadd.f32 %v7258_v50, %v4280_v56  ;;  %v7534_v56 = vadd.f32 %v7258_v50, %v4286_v9  ;;  %v7549_v9 = vadd.f32 %v7258_v50, %v4291_v34 }
 0x47e   : > { %8357 = vst [vmem:[#allocation87_spill] sm:$0xff] %v7495_v41  ;;  %8358 = vst [vmem:[#allocation88_spill] sm:$0xff] %v7498_v31  ;;  %v4296_v33 = vld [vmem:[#allocation2 + $0x328] sm:$0xff]  ;;  %v4297_v32 = vld [vmem:[#allocation2 + $0x330] sm:$0xff]  ;;  %v7513_v31 = vadd.f32 %v7258_v50, %v4279_v10  ;;  %v7531_v10 = vadd.f32 %v7258_v50, %v4285_v7  ;;  %v7555_v26 = vadd.f32 %v7258_v50, %v4293_v24 }
 0x47f   : > { %v4298_v23 = vld [vmem:[#allocation2 + $0x338] sm:$0xff]  ;;  %8359 = vst [vmem:[#allocation89_spill] sm:$0xff] %v7504_v1  ;;  %8360 = vst [vmem:[#allocation90_spill] sm:$0xff] %v7507_v49  ;;  %v4299_v51 = vld [vmem:[#allocation2 + $0x340] sm:$0xff]  ;;  %v7567_v34 = vadd.f32 %v7258_v50, %v4297_v32 }
 0x480   : > { %8361 = vst [vmem:[#allocation91_spill] sm:$0xff] %v7510_v39  ;;  %v4300_v41 = vld [vmem:[#allocation2 + $0x348] sm:$0xff]  ;;  %v4301_v40 = vld [vmem:[#allocation2 + $0x350] sm:$0xff]  ;;  %8362 = vst [vmem:[#allocation92_spill] sm:$0xff] %v7513_v31  ;;  %v7528_v39 = vadd.f32 %v7258_v50, %v4284_v8  ;;  %v7546_v8 = vadd.f32 %v7258_v50, %v4290_v2  ;;  %v7561_v2 = vadd.f32 %v7258_v50, %v4295_v42 }
 0x481   : > { %8363 = vst [vmem:[#allocation93_spill] sm:$0xff] %v7516_v54  ;;  %8364 = vst [vmem:[#allocation94_spill] sm:$0xff] %v7519_v58  ;;  %v4302_v63 = vld [vmem:[#allocation2 + $0x358] sm:$0xff]  ;;  %v4303_v49 = vld [vmem:[#allocation2 + $0x360] sm:$0xff]  ;;  %v7579_v42 = vadd.f32 %v7258_v50, %v4301_v40 }
 0x482   : > { %8365 = vst [vmem:[#allocation95_spill] sm:$0xff] %v7522_v47  ;;  %v4304_v1 = vld [vmem:[#allocation2 + $0x368] sm:$0xff]  ;;  %8366 = vst [vmem:[#allocation96_spill] sm:$0xff] %v7528_v39  ;;  %v4305_v55 = vld [vmem:[#allocation2 + $0x370] sm:$0xff]  ;;  %v7540_v47 = vadd.f32 %v7258_v50, %v4288_v17  ;;  %v7558_v17 = vadd.f32 %v7258_v50, %v4294_v15  ;;  %v7573_v15 = vadd.f32 %v7258_v50, %v4299_v51 }
 0x483   : > { %8367 = vst [vmem:[#allocation97_spill] sm:$0xff] %v7531_v10  ;;  %8368 = vst [vmem:[#allocation98_spill] sm:$0xff] %v7534_v56  ;;  %v4306_v58 = vld [vmem:[#allocation2 + $0x378] sm:$0xff]  ;;  %v4307_v54 = vld [vmem:[#allocation2 + $0x380] sm:$0xff]  ;;  %v7552_v56 = vadd.f32 %v7258_v50, %v4292_v25  ;;  %v7570_v25 = vadd.f32 %v7258_v50, %v4298_v23  ;;  %v7585_v23 = vadd.f32 %v7258_v50, %v4303_v49 }
 0x484   : > { %8369 = vst [vmem:[#allocation99_spill] sm:$0xff] %v7537_v57  ;;  %8370 = vst [vmem:[#allocation100_spill] sm:$0xff] %v7540_v47  ;;  %v4308_v7 = vld [vmem:[#allocation2 + $0x388] sm:$0xff]  ;;  %v4309_v10 = vld [vmem:[#allocation2 + $0x390] sm:$0xff]  ;;  %v7591_v51 = vadd.f32 %v7258_v50, %v4305_v55 }
 0x485   : > { %8371 = vst [vmem:[#allocation101_spill] sm:$0xff] %v7543_v18  ;;  %8372 = vst [vmem:[#allocation102_spill] sm:$0xff] %v7546_v8  ;;  %v4310_v39 = vld [vmem:[#allocation2 + $0x398] sm:$0xff]  ;;  %v4311_v16 = vld [vmem:[#allocation2 + $0x3a0] sm:$0xff]  ;;  %v7564_v8 = vadd.f32 %v7258_v50, %v4296_v33  ;;  %v7582_v33 = vadd.f32 %v7258_v50, %v4302_v63  ;;  %v7597_v63 = vadd.f32 %v7258_v50, %v4307_v54 }
 0x486   : > { %8373 = vst [vmem:[#allocation103_spill] sm:$0xff] %v7552_v56  ;;  %8374 = vst [vmem:[#allocation104_spill] sm:$0xff] %v7555_v26  ;;  %v4312_v18 = vld [vmem:[#allocation2 + $0x3a8] sm:$0xff]  ;;  %v4313_v47 = vld [vmem:[#allocation2 + $0x3b0] sm:$0xff]  ;;  %v7603_v49 = vadd.f32 %v7258_v50, %v4309_v10  ;;  %v7609_v55 = vadd.f32 %v7258_v50, %v4311_v16 }
 0x487   : > { %8375 = vst [vmem:[#allocation105_spill] sm:$0xff] %v7558_v17  ;;  %8376 = vst [vmem:[#allocation106_spill] sm:$0xff] %v7561_v2  ;;  %v4314_v24 = vld [vmem:[#allocation2 + $0x3b8] sm:$0xff]  ;;  %v4315_v26 = vld [vmem:[#allocation2 + $0x3c0] sm:$0xff]  ;;  %v7576_v17 = vadd.f32 %v7258_v50, %v4300_v41  ;;  %v7594_v41 = vadd.f32 %v7258_v50, %v4306_v58  ;;  %v7612_v58 = vadd.f32 %v7258_v50, %v4312_v18 }
 0x488   : > { %8377 = vst [vmem:[#allocation107_spill] sm:$0xff] %v7564_v8  ;;  %8378 = vst [vmem:[#allocation108_spill] sm:$0xff] %v7567_v34  ;;  %v4316_v56 = vld [vmem:[#allocation2 + $0x3c8] sm:$0xff]  ;;  %v4317_v32 = vld [vmem:[#allocation2 + $0x3d0] sm:$0xff]  ;;  %v7618_v54 = vadd.f32 %v7258_v50, %v4314_v24 }
 0x489   : > { %8379 = vst [vmem:[#allocation109_spill] sm:$0xff] %v7570_v25  ;;  %8380 = vst [vmem:[#allocation110_spill] sm:$0xff] %v7576_v17  ;;  %v4318_v34 = vld [vmem:[#allocation2 + $0x3d8] sm:$0xff]  ;;  %v4319_v8 = vld [vmem:[#allocation2 + $0x3e0] sm:$0xff]  ;;  %v7588_v25 = vadd.f32 %v7258_v50, %v4304_v1  ;;  %v7606_v1 = vadd.f32 %v7258_v50, %v4310_v39  ;;  %v7624_v10 = vadd.f32 %v7258_v50, %v4316_v56  ;;  %v8471_v56 = vmax.f32 %v7336_v44, 0.0 }
 0x48a   : > { %8381 = vst [vmem:[#allocation111_spill] sm:$0xff] %v7579_v42  ;;  %8382 = vst [vmem:[#allocation112_spill] sm:$0xff] %v7582_v33  ;;  %v4320_v40 = vld [vmem:[#allocation2 + $0x3e8] sm:$0xff]  ;;  %v4321_v42 = vld [vmem:[#allocation2 + $0x3f0] sm:$0xff]  ;;  %v7600_v33 = vadd.f32 %v7258_v50, %v4308_v7  ;;  %v7621_v7 = vadd.f32 %v7258_v50, %v4315_v26  ;;  %v7627_v39 = vadd.f32 %v7258_v50, %v4317_v32 }
 0x48b   : > { %8383 = vst [vmem:[#allocation113_spill] sm:$0xff] %v7591_v51  ;;  %8384 = vst [vmem:[#allocation114_spill] sm:$0xff] %v7594_v41  ;;  %v4322_v17 = vld [vmem:[#allocation2 + $0x3f8] sm:$0xff]  ;;  %v7615_v41 = vadd.f32 %v7258_v50, %v4313_v47  ;;  %v7630_v16 = vadd.f32 %v7258_v50, %v4318_v34  ;;  %v7633_v18 = vadd.f32 %v7258_v50, %v4319_v8  ;;  %v8395_v22 = vld [vmem:[#allocation41_spill] sm:$0xff]  ;;  %v8465_v8 = vmax.f32 %v7264_v60, 0.0 }
 0x48c   : > { %8386 = vst [vmem:[#allocation116_spill] sm:$0xff] %v7618_v54  ;;  %8387 = vst [vmem:[#allocation117_spill] sm:$0xff] %v7627_v39  ;;  %v7636_v47 = vadd.f32 %v7258_v50, %v4320_v40  ;;  %v7639_v24 = vadd.f32 %v7258_v50, %v4321_v42  ;;  %v7642_v26 = vadd.f32 %v7258_v50, %v4322_v17  ;;  %v8396_v6 = vld [vmem:[#allocation42_spill] sm:$0xff]  ;;  %v8397_v38 = vld [vmem:[#allocation43_spill] sm:$0xff]  ;;  %v8464_v2 = vmov %v7627_v39 }
 0x48d   : > { %8385 = vst [vmem:[#allocation115_spill] sm:$0xff] %v7615_v41  ;;  %8388 = vst [vmem:[#allocation118_spill] sm:$0xff] %v7633_v18  ;;  %v8403_v32 = vld [vmem:[#allocation49_spill] sm:$0xff]  ;;  %v8412_v36 = vld [vmem:[#allocation58_spill] sm:$0xff]  ;;  %v8466_v18 = vmax.f32 %v7261_v59, 0.0  ;;  %v8467_v40 = vmax.f32 %v7288_v12, 0.0 }
 0x48e   : > { %8389 = vst [vmem:[#allocation119_spill] sm:$0xff] %v7636_v47  ;;  %8390 = vst [vmem:[#allocation120_spill] sm:$0xff] %v7639_v24  ;;  %v8411_v5 = vld [vmem:[#allocation57_spill] sm:$0xff]  ;;  %v8420_v19 = vld [vmem:[#allocation66_spill] sm:$0xff]  ;;  %v8468_v42 = vmax.f32 %v7285_v11, 0.0  ;;  %v8469_v50 = vmax.f32 %v7312_v28, 0.0 }
 0x48f   : > { %8391 = vst [vmem:[#allocation121_spill] sm:$0xff] %v7642_v26  ;;  %v8404_v26 = vld [vmem:[#allocation50_spill] sm:$0xff]  ;;  %v8419_v35 = vld [vmem:[#allocation65_spill] sm:$0xff]  ;;  %v8448_v20 = vld [vmem:[#allocation96_spill] sm:$0xff]  ;;  %v4586_v57 = vmax.f32 %v8466_v18, %v8465_v8  ;;  %v8470_v17 = vmax.f32 %v7309_v27, 0.0  ;;  %v8472_v39 = vmax.f32 %v7333_v43, 0.0 }
 0x490   : > { %v8428_v4 = vld [vmem:[#allocation74_spill] sm:$0xff]  ;;  %v8435_v62 = vld [vmem:[#allocation81_spill] sm:$0xff]  ;;  %v8454_v46 = vld [vmem:[#allocation103_spill] sm:$0xff]  ;;  %v4599_v24 = vmax.f32 %v8468_v42, %v8467_v40  ;;  %v8473_v60 = vmax.f32 %v8396_v6, 0.0  ;;  %v8474_v59 = vmax.f32 %v8395_v22, 0.0  ;;  %v8475_v12 = vmax.f32 %v8404_v26, 0.0 }
 0x491   : > { %v8436_v3 = vld [vmem:[#allocation82_spill] sm:$0xff]  ;;  %v8442_v30 = vld [vmem:[#allocation89_spill] sm:$0xff]  ;;  %v8455_v53 = vld [vmem:[#allocation104_spill] sm:$0xff]  ;;  %v4612_v54 = vmax.f32 %v8470_v17, %v8469_v50  ;;  %v4625_v34 = vmax.f32 %v8472_v39, %v8471_v56  ;;  %v8476_v11 = vmax.f32 %v8403_v32, 0.0  ;;  %v8477_v28 = vmax.f32 %v8412_v36, 0.0 }
 0x492   : > { %v8456_v37 = vld [vmem:[#allocation105_spill] sm:$0xff]  ;;  %v8457_v47 = vld [vmem:[#allocation107_spill] sm:$0xff]  ;;  %v8460_v21 = vld [vmem:[#allocation110_spill] sm:$0xff]  ;;  %v4638_v18 = vmax.f32 %v8474_v59, %v8473_v60  ;;  %v8478_v27 = vmax.f32 %v8411_v5, 0.0  ;;  %v8479_v44 = vmax.f32 %v8420_v19, 0.0  ;;  %v8480_v43 = vmax.f32 %v8419_v35, 0.0 }
 0x493   : > { %v8461_v31 = vld [vmem:[#allocation111_spill] sm:$0xff]  ;;  %v8462_v14 = vld [vmem:[#allocation112_spill] sm:$0xff]  ;;  %v4651_v8 = vmax.f32 %v8476_v11, %v8475_v12  ;;  %v8481_v6 = vmax.f32 %v7267_v61, 0.0  ;;  %v8482_v22 = vmax.f32 %v7291_v13, 0.0  ;;  %v8483_v26 = vmax.f32 %v7315_v29, 0.0  ;;  %v8492_v13 = vld [vmem:[#allocation21_spill] sm:$0xff] }
 0x494   : > { %v4664_v40 = vmax.f32 %v8478_v27, %v8477_v28  ;;  %v4677_v39 = vmax.f32 %v8480_v43, %v8479_v44  ;;  %v8484_v50 = vmax.f32 %v7339_v45, 0.0  ;;  %v8485_v5 = vmax.f32 %v8397_v38, 0.0  ;;  %v8486_v60 = vld [vmem:[#allocation51_spill] sm:$0xff]  ;;  %v8494_v29 = vld [vmem:[#allocation26_spill] sm:$0xff]  ;;  %v8498_v38 = vld [vmem:[#allocation36_spill] sm:$0xff] }
 0x495   : > { %v4587_v56 = vmax.f32 %v4586_v57, %v8481_v6  ;;  %v4600_v42 = vmax.f32 %v4599_v24, %v8482_v22  ;;  %v4613_v32 = vmax.f32 %v4612_v54, %v8483_v26  ;;  %v8487_v19 = vmax.f32 %v8486_v60, 0.0  ;;  %v8488_v35 = vld [vmem:[#allocation59_spill] sm:$0xff]  ;;  %v8500_v22 = vld [vmem:[#allocation44_spill] sm:$0xff] }
 0x496   : > { %v4626_v36 = vmax.f32 %v4625_v34, %v8484_v50  ;;  %v4639_v17 = vmax.f32 %v4638_v18, %v8485_v5  ;;  %v8489_v12 = vmax.f32 %v8488_v35, 0.0  ;;  %v8490_v61 = vld [vmem:[#allocation67_spill] sm:$0xff]  ;;  %v8493_v24 = vmax.f32 %v8492_v13, 0.0  ;;  %v8502_v50 = vld [vmem:[#allocation52_spill] sm:$0xff] }
 0x497   : > { %v4652_v59 = vmax.f32 %v4651_v8, %v8487_v19  ;;  %v8491_v57 = vmax.f32 %v8490_v61, 0.0  ;;  %v8495_v54 = vmax.f32 %v8494_v29, 0.0  ;;  %v8496_v45 = vld [vmem:[#allocation31_spill] sm:$0xff]  ;;  %v8499_v18 = vmax.f32 %v8498_v38, 0.0  ;;  %v8504_v60 = vld [vmem:[#allocation60_spill] sm:$0xff]  ;;  %v8508_v61 = vld [vmem:[#allocation22_spill] sm:$0xff] }
 0x498   : > { %v4665_v11 = vmax.f32 %v4664_v40, %v8489_v12  ;;  %v4588_v27 = vmax.f32 %v4587_v56, %v8493_v24  ;;  %v8497_v34 = vmax.f32 %v8496_v45, 0.0  ;;  %v8501_v8 = vmax.f32 %v8500_v22, 0.0  ;;  %v8506_v35 = vld [vmem:[#allocation68_spill] sm:$0xff]  ;;  %v8510_v13 = vld [vmem:[#allocation27_spill] sm:$0xff]  ;;  %v8514_v45 = vld [vmem:[#allocation37_spill] sm:$0xff] }
 0x499   : > { %v4678_v28 = vmax.f32 %v4677_v39, %v8491_v57  ;;  %v4601_v44 = vmax.f32 %v4600_v42, %v8495_v54  ;;  %v4627_v6 = vmax.f32 %v4626_v36, %v8499_v18  ;;  %v8503_v40 = vmax.f32 %v8502_v50, 0.0  ;;  %v8512_v29 = vld [vmem:[#allocation32_spill] sm:$0xff]  ;;  %v8516_v38 = vld [vmem:[#allocation45_spill] sm:$0xff] }
 0x49a   : > { %v4614_v43 = vmax.f32 %v4613_v32, %v8497_v34  ;;  %v4640_v26 = vmax.f32 %v4639_v17, %v8501_v8  ;;  %v8505_v39 = vmax.f32 %v8504_v60, 0.0  ;;  %v8507_v56 = vmax.f32 %v8506_v35, 0.0  ;;  %v8518_v22 = vld [vmem:[#allocation53_spill] sm:$0xff]  ;;  %v8524_v35 = vld [vmem:[#allocation23_spill] sm:$0xff] }
 0x49b   : > { %v4653_v5 = vmax.f32 %v4652_v59, %v8503_v40  ;;  %v8509_v42 = vmax.f32 %v8508_v61, 0.0  ;;  %v8511_v32 = vmax.f32 %v8510_v13, 0.0  ;;  %v8513_v36 = vmax.f32 %v8512_v29, 0.0  ;;  %v8520_v50 = vld [vmem:[#allocation61_spill] sm:$0xff]  ;;  %v8526_v61 = vld [vmem:[#allocation28_spill] sm:$0xff]  ;;  %v8530_v29 = vld [vmem:[#allocation38_spill] sm:$0xff] }
 0x49c   : > { %v4666_v19 = vmax.f32 %v4665_v11, %v8505_v39  ;;  %v4679_v12 = vmax.f32 %v4678_v28, %v8507_v56  ;;  %v8515_v17 = vmax.f32 %v8514_v45, 0.0  ;;  %v8517_v59 = vmax.f32 %v8516_v38, 0.0  ;;  %v8522_v60 = vld [vmem:[#allocation69_spill] sm:$0xff]  ;;  %v8532_v45 = vld [vmem:[#allocation46_spill] sm:$0xff] }
 0x49d   : > { %v4589_v57 = vmax.f32 %v4588_v27, %v8509_v42  ;;  %v4602_v24 = vmax.f32 %v4601_v44, %v8511_v32  ;;  %v4615_v54 = vmax.f32 %v4614_v43, %v8513_v36  ;;  %v8519_v11 = vmax.f32 %v8518_v22, 0.0  ;;  %v8528_v13 = vld [vmem:[#allocation33_spill] sm:$0xff]  ;;  %v8534_v38 = vld [vmem:[#allocation54_spill] sm:$0xff] }
 0x49e   : > { %v4628_v34 = vmax.f32 %v4627_v6, %v8515_v17  ;;  %v4641_v18 = vmax.f32 %v4640_v26, %v8517_v59  ;;  %v8521_v28 = vmax.f32 %v8520_v50, 0.0  ;;  %v8523_v27 = vmax.f32 %v8522_v60, 0.0  ;;  %v8536_v22 = vld [vmem:[#allocation62_spill] sm:$0xff]  ;;  %v8540_v60 = vld [vmem:[#allocation24_spill] sm:$0xff] }
 0x49f   : > { %v4654_v8 = vmax.f32 %v4653_v5, %v8519_v11  ;;  %v8525_v44 = vmax.f32 %v8524_v35, 0.0  ;;  %v8527_v43 = vmax.f32 %v8526_v61, 0.0  ;;  %v8529_v6 = vmax.f32 %v8528_v13, 0.0  ;;  %v8538_v50 = vld [vmem:[#allocation70_spill] sm:$0xff]  ;;  %v8542_v35 = vld [vmem:[#allocation29_spill] sm:$0xff]  ;;  %v8546_v13 = vld [vmem:[#allocation39_spill] sm:$0xff] }
 0x4a0   : > { %v4667_v40 = vmax.f32 %v4666_v19, %v8521_v28  ;;  %v4680_v39 = vmax.f32 %v4679_v12, %v8523_v27  ;;  %v8531_v26 = vmax.f32 %v8530_v29, 0.0  ;;  %v8533_v5 = vmax.f32 %v8532_v45, 0.0  ;;  %v8544_v61 = vld [vmem:[#allocation34_spill] sm:$0xff]  ;;  %v8548_v29 = vld [vmem:[#allocation47_spill] sm:$0xff] }
 0x4a1   : > { %v4590_v56 = vmax.f32 %v4589_v57, %v8525_v44  ;;  %v4603_v42 = vmax.f32 %v4602_v24, %v8527_v43  ;;  %v4616_v32 = vmax.f32 %v4615_v54, %v8529_v6  ;;  %v8535_v19 = vmax.f32 %v8534_v38, 0.0  ;;  %v8550_v45 = vld [vmem:[#allocation55_spill] sm:$0xff] }
 0x4a2   : > { %v4629_v36 = vmax.f32 %v4628_v34, %v8531_v26  ;;  %v4642_v17 = vmax.f32 %v4641_v18, %v8533_v5  ;;  %v8537_v12 = vmax.f32 %v8536_v22, 0.0  ;;  %v8539_v57 = vmax.f32 %v8538_v50, 0.0  ;;  %v8552_v38 = vld [vmem:[#allocation63_spill] sm:$0xff]  ;;  %v8556_v50 = vld [vmem:[#allocation25_spill] sm:$0xff] }
 0x4a3   : > { %v4655_v59 = vmax.f32 %v4654_v8, %v8535_v19  ;;  %v8541_v24 = vmax.f32 %v8540_v60, 0.0  ;;  %v8543_v54 = vmax.f32 %v8542_v35, 0.0  ;;  %v8545_v34 = vmax.f32 %v8544_v61, 0.0  ;;  %v8554_v22 = vld [vmem:[#allocation71_spill] sm:$0xff]  ;;  %v8558_v60 = vld [vmem:[#allocation30_spill] sm:$0xff]  ;;  %v8562_v61 = vld [vmem:[#allocation40_spill] sm:$0xff] }
 0x4a4   : > { %v4668_v11 = vmax.f32 %v4667_v40, %v8537_v12  ;;  %v4681_v28 = vmax.f32 %v4680_v39, %v8539_v57  ;;  %v8547_v18 = vmax.f32 %v8546_v13, 0.0  ;;  %v8549_v8 = vmax.f32 %v8548_v29, 0.0  ;;  %v8560_v35 = vld [vmem:[#allocation35_spill] sm:$0xff]  ;;  %v8564_v13 = vld [vmem:[#allocation48_spill] sm:$0xff] }
 0x4a5   : > { %v4591_v27 = vmax.f32 %v4590_v56, %v8541_v24  ;;  %v4604_v44 = vmax.f32 %v4603_v42, %v8543_v54  ;;  %v4617_v43 = vmax.f32 %v4616_v32, %v8545_v34  ;;  %v8551_v40 = vmax.f32 %v8550_v45, 0.0  ;;  %v8566_v29 = vld [vmem:[#allocation56_spill] sm:$0xff] }
 0x4a6   : > { %v4630_v6 = vmax.f32 %v4629_v36, %v8547_v18  ;;  %v4643_v26 = vmax.f32 %v4642_v17, %v8549_v8  ;;  %v8553_v39 = vmax.f32 %v8552_v38, 0.0  ;;  %v8555_v56 = vmax.f32 %v8554_v22, 0.0  ;;  %v8568_v45 = vld [vmem:[#allocation64_spill] sm:$0xff] }
 0x4a7   : > { %v4656_v5 = vmax.f32 %v4655_v59, %v8551_v40  ;;  %v8557_v42 = vmax.f32 %v8556_v50, 0.0  ;;  %v8559_v32 = vmax.f32 %v8558_v60, 0.0  ;;  %v8561_v36 = vmax.f32 %v8560_v35, 0.0  ;;  %v8570_v38 = vld [vmem:[#allocation72_spill] sm:$0xff] }
 0x4a8   : > { %v4669_v19 = vmax.f32 %v4668_v11, %v8553_v39  ;;  %v4682_v12 = vmax.f32 %v4681_v28, %v8555_v56  ;;  %v8563_v17 = vmax.f32 %v8562_v61, 0.0  ;;  %v8565_v59 = vmax.f32 %v8564_v13, 0.0 }
 0x4a9   : > { %v4592_v57 = vmax.f32 %v4591_v27, %v8557_v42  ;;  %v4605_v24 = vmax.f32 %v4604_v44, %v8559_v32  ;;  %v4618_v54 = vmax.f32 %v4617_v43, %v8561_v36  ;;  %v8567_v11 = vmax.f32 %v8566_v29, 0.0 }
 0x4aa   : > { %v4631_v34 = vmax.f32 %v4630_v6, %v8563_v17  ;;  %v4644_v18 = vmax.f32 %v4643_v26, %v8565_v59  ;;  %v8569_v28 = vmax.f32 %v8568_v45, 0.0  ;;  %v8571_v27 = vmax.f32 %v8570_v38, 0.0 }
 0x4ab   : > { %v4657_v8 = vmax.f32 %v4656_v5, %v8567_v11  ;;  %v4593_v22 = vrot.slane %v4592_v57, 4  ;;  %v4606_v44 = vrot.slane %v4605_v24, 4  ;;  %v4619_v56 = vrot.slane %v4618_v54, 4 }
 0x4ac   : > { %v4670_v40 = vmax.f32 %v4669_v19, %v8569_v28  ;;  %v4683_v39 = vmax.f32 %v4682_v12, %v8571_v27  ;;  %v4632_v50 = vrot.slane %v4631_v34, 4  ;;  %v4645_v43 = vrot.slane %v4644_v18, 4 }
 0x4ad   : > { %v4658_v42 = vrot.slane %v4657_v8, 4  ;;  %v4594_v32 = vmax.f32 %v4592_v57, %v4593_v22  ;;  %v4607_v35 = vmax.f32 %v4605_v24, %v4606_v44  ;;  %v4620_v26 = vmax.f32 %v4618_v54, %v4619_v56  ;;  %v8572_v22 = vld [vmem:[#allocation118_spill] sm:$0xff]  ;;  %v8573_v56 = vld [vmem:[#allocation119_spill] sm:$0xff] }
 0x4ae   : > { %v4671_v60 = vrot.slane %v4670_v40, 4  ;;  %v4684_v6 = vrot.slane %v4683_v39, 4  ;;  %v4633_v36 = vmax.f32 %v4631_v34, %v4632_v50  ;;  %v4646_v61 = vmax.f32 %v4644_v18, %v4645_v43  ;;  %v8574_v43 = vld [vmem:[#allocation120_spill] sm:$0xff] }
 0x4af   : > { %v4659_v5 = vmax.f32 %v4657_v8, %v4658_v42  ;;  %v4595_v19 = vrot.slane %v4594_v32, 2  ;;  %v4608_v59 = vrot.slane %v4607_v35, 2  ;;  %v4621_v29 = vrot.slane %v4620_v26, 2 }
 0x4b0   : > { %v4672_v17 = vmax.f32 %v4670_v40, %v4671_v60  ;;  %v4685_v13 = vmax.f32 %v4683_v39, %v4684_v6  ;;  %v4634_v12 = vrot.slane %v4633_v36, 2  ;;  %v4647_v11 = vrot.slane %v4646_v61, 2  ;;  %v8575_v60 = vld [vmem:[#allocation121_spill] sm:$0xff] }
 0x4b1   : > { %v4660_v45 = vrot.slane %v4659_v5, 2  ;;  %v4596_v27 = vmax.f32 %v4594_v32, %v4595_v19  ;;  %v4609_v41 = vmax.f32 %v4607_v35, %v4608_v59  ;;  %v4622_v51 = vmax.f32 %v4620_v26, %v4621_v29  ;;  %v8577_v59 = vld [vmem:[#allocation73_spill] sm:$0xff] }
 0x4b2   : > { %v4673_v28 = vrot.slane %v4672_v17, 2  ;;  %v4686_v38 = vrot.slane %v4685_v13, 2  ;;  %v4635_v52 = vmax.f32 %v4633_v36, %v4634_v12  ;;  %v7896_v57 = vmax.f32 %v4646_v61, %v4647_v11 }
 0x4b3   : > { %v7898_v24 = vmax.f32 %v4659_v5, %v4660_v45  ;;  %v4597_v18 = vrot.slane %v4596_v27, 1  ;;  %v4610_v8 = vrot.slane %v4609_v41, 1  ;;  %v4623_v40 = vrot.slane %v4622_v51, 1 }
 0x4b4   : > { %v7900_v54 = vmax.f32 %v4672_v17, %v4673_v28  ;;  %v7902_v34 = vmax.f32 %v4685_v13, %v4686_v38  ;;  %v4636_v39 = vrot.slane %v4635_v52, 1  ;;  %v4582_v44 = vmax.f32 %v8572_v22, 0.0 }
 0x4b5   : > { %v4583_v50 = vmax.f32 %v8573_v56, 0.0  ;;  %v4584_v42 = vmax.f32 %v8574_v43, 0.0  ;;  %v4585_v6 = vmax.f32 %v8575_v60, 0.0  ;;  %v4649_v32 = vrot.slane %v7896_v57, 1  ;;  %v8593_v43 = vld [vmem:[#allocation75_spill] sm:$0xff] }
 0x4b6   : > { %v4662_v35 = vrot.slane %v7898_v24, 1  ;;  %v4675_v26 = vrot.slane %v7900_v54, 1  ;;  %v4688_v36 = vrot.slane %v7902_v34, 1  ;;  %v7912_v61 = vmax.f32 %v4596_v27, %v4597_v18 }
 0x4b7   : > { %v7914_v5 = vmax.f32 %v4609_v41, %v4610_v8  ;;  %v7916_v17 = vmax.f32 %v4622_v51, %v4623_v40  ;;  %v7918_v13 = vmax.f32 %v4635_v52, %v4636_v39  ;;  %v8576_v19 = vmax.f32 %v8428_v4, 0.0 }
 0x4b8   : > { %v8578_v29 = vmax.f32 %v8577_v59, 0.0  ;;  %v8579_v11 = vmax.f32 %v8436_v3, 0.0  ;;  %v8580_v45 = vmax.f32 %v8435_v62, 0.0  ;;  %v8581_v38 = vmax.f32 %v8442_v30, 0.0 }
 0x4b9   : > { %v8582_v27 = vmax.f32 %v7501_v0, 0.0  ;;  %v8583_v51 = vmax.f32 %v8448_v20, 0.0  ;;  %v8584_v52 = vmax.f32 %v7525_v48, 0.0  ;;  %v8585_v4 = vmax.f32 %v8454_v46, 0.0 }
 0x4ba   : > { %v4690_v12 = vmax.f32 %v8578_v29, %v8576_v19  ;;  %v4703_v28 = vmax.f32 %v8580_v45, %v8579_v11  ;;  %v8586_v8 = vmax.f32 %v7549_v9, 0.0  ;;  %v8587_v3 = vmax.f32 %v8460_v21, 0.0  ;;  %v8595_v9 = vld [vmem:[#allocation83_spill] sm:$0xff]  ;;  %v8597_v21 = vld [vmem:[#allocation90_spill] sm:$0xff]  ;;  %v8599_v45 = vld [vmem:[#allocation97_spill] sm:$0xff] }
 0x4bb   : > { %v4716_v41 = vmax.f32 %v8582_v27, %v8581_v38  ;;  %v4729_v18 = vmax.f32 %v8584_v52, %v8583_v51  ;;  %v8588_v62 = vmax.f32 %v7573_v15, 0.0  ;;  %v8589_v30 = vmax.f32 %v7600_v33, 0.0 }
 0x4bc   : > { %v4742_v40 = vmax.f32 %v8586_v8, %v8585_v4  ;;  %v8590_v0 = vmax.f32 %v7597_v63, 0.0  ;;  %v8591_v20 = vmax.f32 %v7624_v10, 0.0  ;;  %v8592_v48 = vmax.f32 %v7621_v7, 0.0  ;;  %v8605_v8 = vld [vmem:[#allocation76_spill] sm:$0xff] }
 0x4bd   : > { %v4755_v39 = vmax.f32 %v8588_v62, %v8587_v3  ;;  %v8594_v46 = vmax.f32 %v8593_v43, 0.0  ;;  %v8596_v59 = vmax.f32 %v8595_v9, 0.0  ;;  %v8598_v11 = vmax.f32 %v8597_v21, 0.0  ;;  %v8607_v62 = vld [vmem:[#allocation84_spill] sm:$0xff] }
 0x4be   : > { %v4768_v22 = vmax.f32 %v8590_v0, %v8589_v30  ;;  %v4781_v56 = vmax.f32 %v8592_v48, %v8591_v20  ;;  %v8600_v38 = vmax.f32 %v8599_v45, 0.0  ;;  %v8601_v63 = vmax.f32 %v8455_v53, 0.0  ;;  %v8609_v0 = vld [vmem:[#allocation91_spill] sm:$0xff]  ;;  %v8611_v53 = vld [vmem:[#allocation98_spill] sm:$0xff] }
 0x4bf   : > { %v4691_v19 = vmax.f32 %v4690_v12, %v8594_v46  ;;  %v4704_v29 = vmax.f32 %v4703_v28, %v8596_v59  ;;  %v4717_v15 = vmax.f32 %v4716_v41, %v8598_v11  ;;  %v8602_v10 = vmax.f32 %v8461_v31, 0.0 }
 0x4c0   : > { %v4730_v33 = vmax.f32 %v4729_v18, %v8600_v38  ;;  %v4743_v27 = vmax.f32 %v4742_v40, %v8601_v63  ;;  %v8603_v7 = vmax.f32 %v7603_v49, 0.0  ;;  %v8604_v12 = vmax.f32 %v8464_v2, 0.0 }
 0x4c1   : > { %v4756_v51 = vmax.f32 %v4755_v39, %v8602_v10  ;;  %v8606_v28 = vmax.f32 %v8605_v8, 0.0  ;;  %v8608_v41 = vmax.f32 %v8607_v62, 0.0  ;;  %v8610_v18 = vmax.f32 %v8609_v0, 0.0 }
 0x4c2   : > { %v4769_v52 = vmax.f32 %v4768_v22, %v8603_v7  ;;  %v4782_v4 = vmax.f32 %v4781_v56, %v8604_v12  ;;  %v8612_v40 = vmax.f32 %v8611_v53, 0.0  ;;  %v8613_v31 = vmax.f32 %v8456_v37, 0.0  ;;  %v8623_v37 = vld [vmem:[#allocation99_spill] sm:$0xff]  ;;  %v8629_v12 = vld [vmem:[#allocation78_spill] sm:$0xff] }
 0x4c3   : > { %v4692_v3 = vmax.f32 %v4691_v19, %v8606_v28  ;;  %v4705_v30 = vmax.f32 %v4704_v29, %v8608_v41  ;;  %v4718_v20 = vmax.f32 %v4717_v15, %v8610_v18  ;;  %v8614_v49 = vmax.f32 %v8462_v14, 0.0  ;;  %v8617_v19 = vld [vmem:[#allocation77_spill] sm:$0xff]  ;;  %v8621_v15 = vld [vmem:[#allocation92_spill] sm:$0xff]  ;;  %v8625_v14 = vld [vmem:[#allocation106_spill] sm:$0xff] }
 0x4c4   : > { %v4731_v48 = vmax.f32 %v4730_v33, %v8612_v40  ;;  %v4744_v39 = vmax.f32 %v4743_v27, %v8613_v31  ;;  %v8615_v2 = vmax.f32 %v7606_v1, 0.0  ;;  %v8616_v43 = vmax.f32 %v7630_v16, 0.0  ;;  %v8619_v29 = vld [vmem:[#allocation85_spill] sm:$0xff]  ;;  %v8631_v28 = vld [vmem:[#allocation86_spill] sm:$0xff]  ;;  %v8635_v18 = vld [vmem:[#allocation100_spill] sm:$0xff] }
 0x4c5   : > { %v4757_v22 = vmax.f32 %v4756_v51, %v8614_v49  ;;  %v8618_v9 = vmax.f32 %v8617_v19, 0.0  ;;  %v8620_v21 = vmax.f32 %v8619_v29, 0.0  ;;  %v8622_v45 = vmax.f32 %v8621_v15, 0.0  ;;  %v8633_v41 = vld [vmem:[#allocation93_spill] sm:$0xff]  ;;  %v8640_v49 = vld [vmem:[#allocation79_spill] sm:$0xff]  ;;  %v8644_v19 = vld [vmem:[#allocation94_spill] sm:$0xff] }
 0x4c6   : > { %v4770_v56 = vmax.f32 %v4769_v52, %v8615_v2  ;;  %v4783_v46 = vmax.f32 %v4782_v4, %v8616_v43  ;;  %v8624_v33 = vmax.f32 %v8623_v37, 0.0  ;;  %v8626_v27 = vmax.f32 %v8625_v14, 0.0  ;;  %v8646_v29 = vld [vmem:[#allocation101_spill] sm:$0xff]  ;;  %v8652_v37 = vld [vmem:[#allocation115_spill] sm:$0xff]  ;;  %v8654_v14 = vld [vmem:[#allocation80_spill] sm:$0xff] }
 0x4c7   : > { %v4693_v59 = vmax.f32 %v4692_v3, %v8618_v9  ;;  %v4706_v11 = vmax.f32 %v4705_v30, %v8620_v21  ;;  %v4719_v38 = vmax.f32 %v4718_v20, %v8622_v45  ;;  %v8627_v1 = vmax.f32 %v7585_v23, 0.0  ;;  %v8650_v45 = vld [vmem:[#allocation113_spill] sm:$0xff] }
 0x4c8   : > { %v4732_v63 = vmax.f32 %v4731_v48, %v8624_v33  ;;  %v4745_v10 = vmax.f32 %v4744_v39, %v8626_v27  ;;  %v8628_v16 = vmax.f32 %v7609_v55, 0.0  ;;  %v4784_v52 = vmax.f32 %v4783_v46, %v4582_v44 }
 0x4c9   : > { %v4758_v51 = vmax.f32 %v4757_v22, %v8627_v1  ;;  %v8630_v4 = vmax.f32 %v8629_v12, 0.0  ;;  %v8632_v3 = vmax.f32 %v8631_v28, 0.0  ;;  %v8634_v30 = vmax.f32 %v8633_v41, 0.0  ;;  %v8656_v1 = vld [vmem:[#allocation88_spill] sm:$0xff] }
 0x4ca   : > { %v4771_v7 = vmax.f32 %v4770_v56, %v8628_v16  ;;  %v8636_v20 = vmax.f32 %v8635_v18, 0.0  ;;  %v8637_v40 = vmax.f32 %v8457_v47, 0.0  ;;  %v8638_v48 = vmax.f32 %v7588_v25, 0.0  ;;  %v8642_v56 = vld [vmem:[#allocation87_spill] sm:$0xff] }
 0x4cb   : > { %v4694_v8 = vmax.f32 %v4693_v59, %v8630_v4  ;;  %v4707_v62 = vmax.f32 %v4706_v11, %v8632_v3  ;;  %v4720_v0 = vmax.f32 %v4719_v38, %v8634_v30  ;;  %v8639_v44 = vmax.f32 %v7612_v58, 0.0  ;;  %v8648_v11 = vld [vmem:[#allocation108_spill] sm:$0xff]  ;;  %v8660_v4 = vld [vmem:[#allocation102_spill] sm:$0xff]  ;;  %v8662_v3 = vld [vmem:[#allocation109_spill] sm:$0xff] }
 0x4cc   : > { %v4733_v53 = vmax.f32 %v4732_v63, %v8636_v20  ;;  %v4746_v23 = vmax.f32 %v4745_v10, %v8637_v40  ;;  %v4759_v55 = vmax.f32 %v4758_v51, %v8638_v48  ;;  %v4785_v39 = vmax.f32 %v4784_v52, %v4583_v50  ;;  %v8664_v30 = vld [vmem:[#allocation114_spill] sm:$0xff]  ;;  %v8666_v20 = vld [vmem:[#allocation116_spill] sm:$0xff] }
 0x4cd   : > { %v4772_v31 = vmax.f32 %v4771_v7, %v8639_v44  ;;  %v8641_v22 = vmax.f32 %v8640_v49, 0.0  ;;  %v8643_v43 = vmax.f32 %v8642_v56, 0.0  ;;  %v8645_v9 = vmax.f32 %v8644_v19, 0.0  ;;  %v8658_v7 = vld [vmem:[#allocation95_spill] sm:$0xff] }
 0x4ce   : > { %v8647_v21 = vmax.f32 %v8646_v29, 0.0  ;;  %v8649_v15 = vmax.f32 %v8648_v11, 0.0  ;;  %v8651_v38 = vmax.f32 %v8650_v45, 0.0  ;;  %v8653_v50 = vmax.f32 %v8652_v37, 0.0 }
 0x4cf   : > { %v4695_v2 = vmax.f32 %v4694_v8, %v8641_v22  ;;  %v4708_v46 = vmax.f32 %v4707_v62, %v8643_v43  ;;  %v4721_v59 = vmax.f32 %v4720_v0, %v8645_v9  ;;  %v4786_v63 = vmax.f32 %v4785_v39, %v4584_v42 }
 0x4d0   : > { %v4734_v47 = vmax.f32 %v4733_v53, %v8647_v21  ;;  %v4747_v25 = vmax.f32 %v4746_v23, %v8649_v15  ;;  %v4760_v58 = vmax.f32 %v4759_v55, %v8651_v38  ;;  %v4773_v33 = vmax.f32 %v4772_v31, %v8653_v50 }
 0x4d1   : > { %v8655_v27 = vmax.f32 %v8654_v14, 0.0  ;;  %v8657_v51 = vmax.f32 %v8656_v1, 0.0  ;;  %v8659_v52 = vmax.f32 %v8658_v7, 0.0  ;;  %v8661_v8 = vmax.f32 %v8660_v4, 0.0 }
 0x4d2   : > { %v8663_v62 = vmax.f32 %v8662_v3, 0.0  ;;  %v8665_v0 = vmax.f32 %v8664_v30, 0.0  ;;  %v8667_v42 = vmax.f32 %v8666_v20, 0.0  ;;  %v4787_v40 = vmax.f32 %v4786_v63, %v4585_v6 }
 0x4d3   : > { %v4696_v10 = vmax.f32 %v4695_v2, %v8655_v27  ;;  %v4709_v16 = vmax.f32 %v4708_v46, %v8657_v51  ;;  %v4722_v12 = vmax.f32 %v4721_v59, %v8659_v52  ;;  %v4735_v28 = vmax.f32 %v4734_v47, %v8661_v8 }
 0x4d4   : > { %v4748_v41 = vmax.f32 %v4747_v25, %v8663_v62  ;;  %v4761_v18 = vmax.f32 %v4760_v58, %v8665_v0  ;;  %v4774_v53 = vmax.f32 %v4773_v33, %v8667_v42  ;;  %v4788_v22 = vrot.slane %v4787_v40, 4 }
 0x4d5   : > { %v4697_v23 = vrot.slane %v4696_v10, 4  ;;  %v4710_v48 = vrot.slane %v4709_v16, 4  ;;  %v4723_v55 = vrot.slane %v4722_v12, 4  ;;  %v4736_v44 = vrot.slane %v4735_v28, 4 }
 0x4d6   : > { %v4749_v31 = vrot.slane %v4748_v41, 4  ;;  %v4762_v39 = vrot.slane %v4761_v18, 4  ;;  %v4775_v49 = vrot.slane %v4774_v53, 4  ;;  %v4789_v29 = vmax.f32 %v4787_v40, %v4788_v22 }
 0x4d7   : > { %v4698_v2 = vmax.f32 %v4696_v10, %v4697_v23  ;;  %v4711_v56 = vmax.f32 %v4709_v16, %v4710_v48  ;;  %v4724_v43 = vmax.f32 %v4722_v12, %v4723_v55  ;;  %v4737_v46 = vmax.f32 %v4735_v28, %v4736_v44 }
 0x4d8   : > { %v4750_v19 = vmax.f32 %v4748_v41, %v4749_v31  ;;  %v4763_v9 = vmax.f32 %v4761_v18, %v4762_v39  ;;  %v4776_v59 = vmax.f32 %v4774_v53, %v4775_v49  ;;  %v4790_v45 = vrot.slane %v4789_v29, 2 }
 0x4d9   : > { %v4699_v60 = vrot.slane %v4698_v2, 2  ;;  %v4712_v6 = vrot.slane %v4711_v56, 2  ;;  %v4725_v21 = vrot.slane %v4724_v43, 2  ;;  %v4738_v47 = vrot.slane %v4737_v46, 2 }
 0x4da   : > { %v4751_v11 = vrot.slane %v4750_v19, 2  ;;  %v4764_v15 = vrot.slane %v4763_v9, 2  ;;  %v4777_v25 = vrot.slane %v4776_v59, 2  ;;  %v4791_v27 = vmax.f32 %v4789_v29, %v4790_v45 }
 0x4db   : > { %v4700_v38 = vmax.f32 %v4698_v2, %v4699_v60  ;;  %v4713_v58 = vmax.f32 %v4711_v56, %v4712_v6  ;;  %v4726_v37 = vmax.f32 %v4724_v43, %v4725_v21  ;;  %v4739_v50 = vmax.f32 %v4737_v46, %v4738_v47 }
 0x4dc   : > { %v4752_v33 = vmax.f32 %v4750_v19, %v4751_v11  ;;  %v4765_v63 = vmax.f32 %v4763_v9, %v4764_v15  ;;  %v4778_v14 = vmax.f32 %v4776_v59, %v4777_v25  ;;  %v4792_v4 = vrot.slane %v4791_v27, 1 }
 0x4dd   : > { %v4701_v10 = vrot.slane %v4700_v38, 1  ;;  %v4714_v1 = vrot.slane %v4713_v58, 1  ;;  %v4727_v51 = vrot.slane %v4726_v37, 1  ;;  %v4740_v16 = vrot.slane %v4739_v50, 1 }
 0x4de   : > { %v4753_v7 = vrot.slane %v4752_v33, 1  ;;  %v4766_v52 = vrot.slane %v4765_v63, 1  ;;  %v4779_v12 = vrot.slane %v4778_v14, 1  ;;  %v4650_v41 = vmax.f32 %v7896_v57, %v4649_v32 }
 0x4df   : > { %v4702_v8 = vmax.f32 %v4700_v38, %v4701_v10  ;;  %v4715_v28 = vmax.f32 %v4713_v58, %v4714_v1  ;;  %v4728_v3 = vmax.f32 %v4726_v37, %v4727_v51  ;;  %v4741_v62 = vmax.f32 %v4739_v50, %v4740_v16 }
 0x4e0   : > { %v4754_v30 = vmax.f32 %v4752_v33, %v4753_v7  ;;  %v4663_v0 = vmax.f32 %v7898_v24, %v4662_v35  ;;  %v4767_v18 = vmax.f32 %v4765_v63, %v4766_v52  ;;  %v4811_v20 = vsel %vm4810_vm0, %v7914_v5, %v7912_v61 }
 0x4e1   : > { %v4824_v42 = vsel %vm4810_vm0, %v4715_v28, %v4702_v8  ;;  %v4676_v53 = vmax.f32 %v7900_v54, %v4675_v26  ;;  %v4780_v40 = vmax.f32 %v4778_v14, %v4779_v12  ;;  %v4813_v57 = vsel %vm4812_vm1, %v7916_v17, %v4811_v20 }
 0x4e2   : > { %v4825_v32 = vsel %vm4812_vm1, %v4728_v3, %v4824_v42  ;;  %v4689_v24 = vmax.f32 %v7902_v34, %v4688_v36  ;;  %v4793_v35 = vmax.f32 %v4791_v27, %v4792_v4  ;;  %v4815_v61 = vsel %vm4814_vm2, %v7918_v13, %v4813_v57 }
 0x4e3   : > { %v4826_v5 = vsel %vm4814_vm2, %v4741_v62, %v4825_v32  ;;  %v4817_v54 = vsel %vm4816_vm3, %v4650_v41, %v4815_v61 }
 0x4e4   : > { %v4827_v26 = vsel %vm4816_vm3, %v4754_v30, %v4826_v5  ;;  %v4819_v17 = vsel %vm4818_vm4, %v4663_v0, %v4817_v54 }
 0x4e5   : > { %v4828_v23 = vsel %vm4818_vm4, %v4767_v18, %v4827_v26  ;;  %v4821_v48 = vsel %vm4820_vm5, %v4676_v53, %v4819_v17 }
 0x4e6   : > { %v4829_v55 = vsel %vm4820_vm5, %v4780_v40, %v4828_v23  ;;  %v4823_v34 = vsel %vm4822_vm6, %v4689_v24, %v4821_v48 }
 0x4e7   : > { %v4830_v36 = vsel %vm4822_vm6, %v4793_v35, %v4829_v55  ;;  %4833 = vst [vmem:[%s6806_s9] sm:$0xff] %v4823_v34 }
 0x4e8   : > { %4834 = vst [vmem:[%s6806_s9 + $0x8] sm:$0xff] %v4830_v36 }
 0x4e9 PF: > { %s5290_s20 = sshll.u32 %s6023_s21, 8  ;;  %s4850_s11 = sshll.u32 %s6806_s9, 4  ;;  %s8079_s11 = int_to_ptr.vmem [resolvable:$true] %s4850_s11 }
 0x4ea   : > { %s8076_s30 = scalar_lea.hbm %s8159_s3, %s5290_s20  ;;  %s8083_s27 = scalar_lea.sflag [#allocation6], %s785_s18 }
 0x4eb   : > { %s5893_s15 = scalar_lea.vmem %s8079_s11, 256  ;;  %p8668_p4 = scmp.ne.s32.totalorder %s8281_s7, 0 }
 0x4ec   : > { %p5894_p1 = scmp.ne.s32.totalorder %s8079_s11, %s5893_s15  ;;  %s6043_s21 = smov [#allocation9]  }
 0x4ed   : > { %s5897_s4 = sshll.u32 %s6043_s21, 4  ;;  %s5898_s4 = int_to_ptr.vmem [resolvable:$false] %s5897_s4 }
 0x4ee   : > { %p5895_p6 = pnand %p5894_p1, %p8668_p4  ;;  %s5899_s25 = scalar_lea.vmem %s5898_s4, 512 }
 0x4ef   : > { %p5900_p0 = scmp.lt.s32.totalorder %s8079_s11, %s5898_s4  ;;  %p5901_p2 = scmp.lt.s32.totalorder %s5899_s25, %s5893_s15 }
 0x4f0   : > { %p5896_p11 = pneg %p5895_p6 }
 0x4f1   : > { %p5902_p3 = por %p5901_p2, %p5900_p0 }
 0x4f3   : > { %p5903_p10 = pnand %p5902_p3, %p5896_p11 }
 0x4f5   : > { %5906 = shalt.err (!%p5903_p10)
}
 0x4f6   : > { %s5907_s14 = scalar_lea.hbm %s8076_s30, 256  ;;  %s5911_s6 = scalar_lea.hbm %s8159_s3, 512 }
 0x4f7   : > { %p5908_p5 = scmp.ne.s32.totalorder %s8076_s30, %s5907_s14  ;;  %p5912_p7 = scmp.lt.u32.totalorder %s8076_s30, %s8159_s3 }
 0x4f8   : > { %p5913_p8 = scmp.lt.u32.totalorder %s5911_s6, %s5907_s14  ;;  %p5915_p1 = scmp.lt.u32.totalorder %s5907_s14, %s8076_s30 }
 0x4f9   : > { %p5909_p12 = pnand %p5908_p5, %p8668_p4 }
 0x4fa   : > { %p5914_p13 = por %p5913_p8, %p5912_p7 }
 0x4fb   : > { %p5910_p9 = pneg %p5909_p12 }
 0x4fc   : > { %p5916_p6 = por %p5915_p1, %p5914_p13 }
 0x4fe   : > { %p5917_p11 = pnand %p5916_p6, %p5910_p9 }
 0x500   : > { %5920 = shalt.err (!%p5917_p11)
}
 0x501   : > { %s6044_s18 = smov 128   ;;  %s6045_s8 = smov 8  }
 0x502   : > { %5297 = dma.vmem_to_hbm [thread:$0]  (%p8668_p4), %s8079_s11, 256, %s8076_s30, %s8083_s27, %s6044_s18, %s6044_s18, %s6045_s8  }
 0x503 PF: > { %s8669_s9 = sld [smem:[#allocation13_spill]]  ;;  %s8670_s20 = sld [smem:[#allocation20_spill]] }
 0x504   : > { %p5309_p0 = scmp.ge.s32.totalorder %s6035_s24, 2 }
 0x509   : > { %s4865_s26 = sand.u32 1, %s8669_s9   ;;  %p8671_p2 = scmp.ne.s32.totalorder %s8670_s20, 0 }
 0x50a   : > { %s4866_s10 = scalar_lea.sflag [#allocation6], %s4865_s26 }
 0x50b   : > { %p5304_p3 = pnand %p5309_p0, %p8671_p2 }
 0x50d   : > { %5982 = dma.done.wait (!%p5304_p3), %s4866_s10, 256  }
 0x50e   : > { %5984 = vsyncadd (!%p5304_p3), %s4866_s10, 4294967040  ;;  %s20_s24 = sadd.s32 1, %s6035_s24   ;;  %s8673_s7 = sld [smem:[#allocation14_spill]] }
 0x50f   : > { %p8112_p10 = scmp.ge.s32.totalorder %s20_s24, 18   ;;  %s8674_s14 = sld [smem:[#allocation19_spill]] }
 0x510   : > { %s8675_s30 = sld [smem:[#allocation17_spill]]  ;;  %s8676_s11 = sld [smem:[#allocation18_spill]] }
 0x511   : > { %s8677_s27 = sld [smem:[#allocation15_spill]]  ;;  %s8678_s4 = sld [smem:[#allocation16_spill]] }
 0x512   : > { %s8680_s12 = smov %s5991_s13  ;;  %s8682_s15 = smov %s6003_s16 }
 0x513   : > { %s8683_s16 = smov %s6007_s17  ;;  %s8685_s18 = smov %s6015_s19 }
 0x514   : > { %s8681_s13 = smov %s8673_s7  ;;  %s8687_s20 = smov %s6027_s22 }
 0x515   : > { %s8688_s21 = smov %s6031_s23  ;;  %19 = sbr.rel (!%p8112_p10) target bundleno = 11 (0xb), region = 121 }
 0x516   : > { %s8684_s17 = smov %s8675_s30  ;;  %s8686_s19 = smov %s8676_s11 }
 0x517   : > { %s8689_s22 = smov %s8677_s27  ;;  %s8690_s23 = smov %s8678_s4 }
 0x51c   :  { %4871 = vsyncpa [#allocation5], 1 }
 0x51d   :  { %4873 = vsyncpa [#allocation5 + $0x1], 1 }
 0x51e   :  { %4874 = vsyncpa [#allocation8], 1 }
 0x51f   :  { %4875 = vsyncpa [#allocation6], 1 }
 0x520   :  { %4877 = vsyncpa [#allocation6 + $0x1], 1 }

</bundles_post_ra>
